<compile_context>
chip_gen: v7x
topology: tpu7x:2x2x1
jax: 0.10.0
libtpu: 0.0.40
codegen_flags: <defaults>
</compile_context>

<pallas_src>
import functools
import math

import jax
import jax.numpy as jnp
from jax import lax
from jax.experimental import pallas as pl
from jax.experimental.pallas import tpu as pltpu


# ----------------------------- helpers -----------------------------

def _round_up(x, m):
    return ((x + m - 1) // m) * m


def _pad2d(a, mult0, mult1):
    p0 = (-a.shape[0]) % mult0
    p1 = (-a.shape[1]) % mult1
    if p0 == 0 and p1 == 0:
        return a
    return jnp.pad(a, ((0, p0), (0, p1)))


# ----------------------------- Linear (y = x @ W^T, bias=False) -----------------------------

def _linear_kernel(x_ref, w_ref, o_ref, acc_ref):
    @pl.when(pl.program_id(2) == 0)
    def _():
        acc_ref[...] = jnp.zeros(acc_ref.shape, acc_ref.dtype)

    # Contract the fan-in (K) dim of both operands: consumes the PyTorch
    # (out_features, in_features) weight layout directly -- no wrapper transpose.
    acc_ref[...] += lax.dot_general(
        x_ref[...], w_ref[...],
        dimension_numbers=(((1,), (1,)), ((), ())),
        preferred_element_type=jnp.float32,
    )

    @pl.when(pl.program_id(2) == pl.num_programs(2) - 1)
    def _():
        o_ref[...] = acc_ref[...].astype(o_ref.dtype)


def linear_no_bias(x2d, w, *, block_m=256, block_n=256, block_k=512):
    """x2d: (M, K), w: (N, K) [nn.Linear weight layout] -> (M, N) = x2d @ w.T."""
    M, K = x2d.shape
    N, Kw = w.shape
    assert K == Kw
    bm = min(block_m, _round_up(M, 8))
    bn = min(block_n, _round_up(N, 128))
    bk = min(block_k, _round_up(K, 128))
    xp = _pad2d(x2d, bm, bk)
    wp = _pad2d(w, bn, bk)
    Mp, Kp = xp.shape
    Np = wp.shape[0]

    out = pl.pallas_call(
        _linear_kernel,
        out_shape=jax.ShapeDtypeStruct((Mp, Np), x2d.dtype),
        grid_spec=pltpu.PrefetchScalarGridSpec(
            num_scalar_prefetch=0,
            grid=(Mp // bm, Np // bn, Kp // bk),
            in_specs=[
                pl.BlockSpec((bm, bk), lambda i, j, k: (i, k)),
                pl.BlockSpec((bn, bk), lambda i, j, k: (j, k)),
            ],
            out_specs=pl.BlockSpec((bm, bn), lambda i, j, k: (i, j)),
            scratch_shapes=[pltpu.VMEM((bm, bn), jnp.float32)],
        ),
        compiler_params=pltpu.CompilerParams(
            dimension_semantics=("parallel", "parallel", "arbitrary"),
            vmem_limit_bytes=32 * 1024 * 1024,
        ),
    )(xp, wp)
    if (Mp, Np) != (M, N):
        out = out[:M, :N]
    return out


# ----------------------------- Flash attention on (B, S, 3E) qkv -----------------------------

def _flash_attn_kernel(q_ref, k_ref, v_ref, o_ref, m_sc, l_sc, acc_sc, *,
                       num_heads, scale, causal, block_q, block_kv):
    ki = pl.program_id(2)

    @pl.when(ki == 0)
    def _init():
        m_sc[...] = jnp.full(m_sc.shape, -jnp.inf, dtype=m_sc.dtype)
        l_sc[...] = jnp.zeros(l_sc.shape, l_sc.dtype)
        acc_sc[...] = jnp.zeros(acc_sc.shape, acc_sc.dtype)

    E = q_ref.shape[-1]
    D = E // num_heads

    def update():
        if causal:
            row = pl.program_id(1) * block_q + lax.broadcasted_iota(
                jnp.int32, (block_q, block_kv), 0)
            col = ki * block_kv + lax.broadcasted_iota(
                jnp.int32, (block_q, block_kv), 1)
            keep = col <= row
        # Static loop over heads; each head is a plain 2-D flash update.
        for h in range(num_heads):
            lo, hi = h * D, (h + 1) * D
            qh = q_ref[0, :, lo:hi] * scale            # fold 1/sqrt(D) into q
            kh = k_ref[0, :, lo:hi]                    # (block_kv, D)
            vh = v_ref[0, :, lo:hi]                    # (block_kv, D)
            # q k^T without materializing k.T: contract last dims of both.
            s = lax.dot_general(qh, kh, (((1,), (1,)), ((), ())),
                                preferred_element_type=jnp.float32)  # (bq, bkv) f32
            if causal:
                s = jnp.where(keep, s, -jnp.inf)
            m_prev = m_sc[h]                                          # (bq, 1)
            m_new = jnp.maximum(m_prev, jnp.max(s, axis=-1, keepdims=True))
            alpha = jnp.exp(m_prev - m_new)
            p = jnp.exp(s - m_new)                                    # f32 softmax stats
            l_sc[h] = alpha * l_sc[h] + jnp.sum(p, axis=-1, keepdims=True)
            acc_sc[h] = alpha * acc_sc[h] + lax.dot_general(
                p.astype(vh.dtype), vh, (((1,), (0,)), ((), ())),     # bf16 MXU if v is bf16
                preferred_element_type=jnp.float32)
            m_sc[h] = m_new

    if causal:
        # Skip KV blocks that are entirely above the diagonal.
        q_last = (pl.program_id(1) + 1) * block_q - 1
        kv_first = ki * block_kv
        pl.when(kv_first <= q_last)(update)
    else:
        update()

    @pl.when(ki == pl.num_programs(2) - 1)
    def _finalize():
        for h in range(num_heads):
            lo, hi = h * D, (h + 1) * D
            l_h = l_sc[h]
            inv = pl.reciprocal(l_h, approx=True)      # EUP slot
            inv = inv * (2.0 - l_h * inv)              # one Newton step -> ~f32-exact
            o_ref[0, :, lo:hi] = (acc_sc[h] * inv).astype(o_ref.dtype)


def flash_mha(qkv, *, num_heads, is_causal=False, block_q=128, block_kv=128):
    """qkv: (B, S, 3E) packed [q | k | v] along the last dim -> (B, S, E)."""
    B, S, threeE = qkv.shape
    assert threeE % 3 == 0
    E = threeE // 3
    assert E % num_heads == 0
    assert E % 128 == 0, "embed dim must be a multiple of 128 for lane-dense blocks"
    D = E // num_heads
    block_q = min(block_q, S)
    block_kv = min(block_kv, S)
    if S % block_q != 0:
        block_q = S
    if S % block_kv != 0:
        block_kv = S
    scale = 1.0 / math.sqrt(D)

    kernel = functools.partial(
        _flash_attn_kernel, num_heads=num_heads, scale=scale, causal=is_causal,
        block_q=block_q, block_kv=block_kv)

    return pl.pallas_call(
        kernel,
        out_shape=jax.ShapeDtypeStruct((B, S, E), qkv.dtype),
        grid_spec=pltpu.PrefetchScalarGridSpec(
            num_scalar_prefetch=0,
            grid=(B, S // block_q, S // block_kv),
            in_specs=[
                # Column-block index on the packed last dim does the q/k/v "split"
                # and the head layout for free at DMA time (no XLA relayouts):
                pl.BlockSpec((1, block_q, E), lambda b, qi, ki: (b, qi, 0)),   # Q: cols [0, E)
                pl.BlockSpec((1, block_kv, E), lambda b, qi, ki: (b, ki, 1)),  # K: cols [E, 2E)
                pl.BlockSpec((1, block_kv, E), lambda b, qi, ki: (b, ki, 2)),  # V: cols [2E, 3E)
            ],
            out_specs=pl.BlockSpec((1, block_q, E), lambda b, qi, ki: (b, qi, 0)),
            scratch_shapes=[
                pltpu.VMEM((num_heads, block_q, 1), jnp.float32),  # running max m
                pltpu.VMEM((num_heads, block_q, 1), jnp.float32),  # running sum l
                pltpu.VMEM((num_heads, block_q, D), jnp.float32),  # output accumulator
            ],
        ),
        compiler_params=pltpu.CompilerParams(
            dimension_semantics=("parallel", "parallel", "arbitrary"),
            vmem_limit_bytes=32 * 1024 * 1024,
        ),
    )(qkv, qkv, qkv)


# ----------------------------- Module forward -----------------------------

def causal_self_attention_forward(x, w_attn, w_proj, *, num_heads, is_causal=False):
    """x: (B, S, E); w_attn: (3E, E); w_proj: (E, E) [PyTorch layouts]. Returns (B, S, E)."""
    B, S, E = x.shape
    assert E % num_heads == 0

    # c_attn: x @ W_attn^T  (weight consumed in (out,in) layout, no transpose).
    qkv = linear_no_bias(x.reshape(B * S, E), w_attn).reshape(B, S, 3 * E)

    # scaled_dot_product_attention, heads handled inside the kernel; output stays (B, S, E).
    y = flash_mha(qkv, num_heads=num_heads, is_causal=is_causal)

    # c_proj; resid_dropout is identity at p=0 / eval.
    # TODO(synk): training-mode dropout (dropout_p > 0) not implemented (eval semantics only).
    out = linear_no_bias(y.reshape(B * S, E), w_proj).reshape(B, S, E)
    return out


# ----------------------------- Pure-JAX reference -----------------------------

def reference_forward(x, w_attn, w_proj, *, num_heads, is_causal=False):
    B, S, E = x.shape
    head_dim = E // num_heads
    qkv = x @ w_attn.T
    q, k, v = jnp.split(qkv, 3, axis=-1)

    def to_heads(t):
        return t.reshape(B, S, num_heads, head_dim).transpose(0, 2, 1, 3)

    q, k, v = to_heads(q), to_heads(k), to_heads(v)
    s = jnp.einsum("bhqd,bhkd->bhqk", q, k) / math.sqrt(head_dim)
    if is_causal:
        mask = jnp.tril(jnp.ones((S, S), dtype=bool))
        s = jnp.where(mask, s, -jnp.inf)
    p = jax.nn.softmax(s, axis=-1)
    y = jnp.einsum("bhqk,bhkd->bhqd", p, v)
    y = y.transpose(0, 2, 1, 3).reshape(B, S, E)
    return y @ w_proj.T


# ----------------------------- Main -----------------------------

if __name__ == "__main__":
    # Small shapes consistent with the module (head_dim = 64 like the tutorial; fewer
    # heads / shorter sequence to stay small): E = H * Dh.
    B, S, H, Dh = 2, 256, 4, 64
    E = H * Dh  # 256
    dtype = jnp.float32

    key = jax.random.PRNGKey(0)
    kx, kw1, kw2 = jax.random.split(key, 3)

    x = jax.random.uniform(kx, (B, S, E), dtype=dtype)
    # Deterministic nn.Linear-style uniform fan-in init, bias=False; PyTorch (out, in) layout.
    bound = 1.0 / math.sqrt(E)
    w_attn = jax.random.uniform(kw1, (3 * E, E), dtype=dtype, minval=-bound, maxval=bound)
    w_proj = jax.random.uniform(kw2, (E, E), dtype=dtype, minval=-bound, maxval=bound)

    # Eval-mode semantics of the PyTorch forward: dropout_p = 0.0, is_causal = False.
    fwd = jax.jit(functools.partial(
        causal_self_attention_forward, num_heads=H, is_causal=False))
    out = jax.block_until_ready(fwd(x, w_attn, w_proj))

    ref = reference_forward(x, w_attn, w_proj, num_heads=H, is_causal=False)
    assert out.shape == (B, S, E)
    assert jnp.allclose(out, ref, atol=1e-4, rtol=1e-4), "mismatch vs pure-JAX reference"

    print("KERNEL_OK")
</pallas_src>

<mosaic_0001>
module attributes {stable_mosaic.version = 11 : i64} {
  func.func @_linear_kernel(%arg0: i32, %arg1: i32, %arg2: i32, %arg3: memref<256x256xf32, #tpu.memory_space<vmem>>, %arg4: memref<256x256xf32, #tpu.memory_space<vmem>>, %arg5: memref<256x256xf32, #tpu.memory_space<vmem>>, %arg6: memref<256x256xf32, #tpu.memory_space<vmem>>) attributes {dimension_semantics = [#tpu.dimension_semantics<parallel>, #tpu.dimension_semantics<parallel>, #tpu.dimension_semantics<arbitrary>], iteration_bounds = array<i64: 2, 1, 1>, scalar_prefetch = 0 : i64, scratch_operands = 1 : i64, tpu.core_type = #tpu.core_type<tc>, window_params = [{transform_indices = @transform_0, window_bounds = array<i64: 256, 256>}, {transform_indices = @transform_1, window_bounds = array<i64: 256, 256>}, {transform_indices = @transform_2, window_bounds = array<i64: 256, 256>}]} {
    %c0_i32 = arith.constant 0 : i32
    %0 = arith.cmpi eq, %arg2, %c0_i32 : i32
    %1 = arith.extui %0 : i1 to i32
    %c0_i32_0 = arith.constant 0 : i32
    %2 = arith.cmpi ne, %1, %c0_i32_0 : i32
    scf.if %2 {
      %cst_10 = arith.constant 0.000000e+00 : f32
      %12 = vector.broadcast %cst_10 : f32 to vector<256x256xf32>
      %c0_11 = arith.constant 0 : index
      %c0_12 = arith.constant 0 : index
      %13 = vector.load %arg6[%c0_11, %c0_12] : memref<256x256xf32, #tpu.memory_space<vmem>>, vector<256x256xf32>
      tpu.vector_store %arg6[%c0_11, %c0_12], %12 {strides = array<i32>} : memref<256x256xf32, #tpu.memory_space<vmem>>, vector<256x256xf32>,
    } else {
    }
    %c0 = arith.constant 0 : index
    %c0_1 = arith.constant 0 : index
    %3 = vector.load %arg6[%c0, %c0_1] : memref<256x256xf32, #tpu.memory_space<vmem>>, vector<256x256xf32>
    %c0_2 = arith.constant 0 : index
    %c0_3 = arith.constant 0 : index
    %4 = vector.load %arg3[%c0_2, %c0_3] : memref<256x256xf32, #tpu.memory_space<vmem>>, vector<256x256xf32>
    %c0_4 = arith.constant 0 : index
    %c0_5 = arith.constant 0 : index
    %5 = vector.load %arg4[%c0_4, %c0_5] : memref<256x256xf32, #tpu.memory_space<vmem>>, vector<256x256xf32>
    %cst = arith.constant dense<0.000000e+00> : vector<256x256xf32>
    %6 = tpu.matmul %4, %5, %cst {dimension_numbers = #tpu.dot_dimension_numbers<[1], [1], [0], [0], [0, 0, 1, 0], [], []>} : vector<256x256xf32>, vector<256x256xf32>, vector<256x256xf32> -> vector<256x256xf32>
    %7 = arith.addf %3, %6 : vector<256x256xf32>
    %c0_6 = arith.constant 0 : index
    %c0_7 = arith.constant 0 : index
    %8 = vector.load %arg6[%c0_6, %c0_7] : memref<256x256xf32, #tpu.memory_space<vmem>>, vector<256x256xf32>
    tpu.vector_store %arg6[%c0_6, %c0_7], %7 {strides = array<i32>} : memref<256x256xf32, #tpu.memory_space<vmem>>, vector<256x256xf32>,
    %c0_i32_8 = arith.constant 0 : i32
    %9 = arith.cmpi eq, %arg2, %c0_i32_8 : i32
    %10 = arith.extui %9 : i1 to i32
    %c0_i32_9 = arith.constant 0 : i32
    %11 = arith.cmpi ne, %10, %c0_i32_9 : i32
    scf.if %11 {
      %c0_10 = arith.constant 0 : index
      %c0_11 = arith.constant 0 : index
      %12 = vector.load %arg6[%c0_10, %c0_11] : memref<256x256xf32, #tpu.memory_space<vmem>>, vector<256x256xf32>
      %c0_12 = arith.constant 0 : index
      %c0_13 = arith.constant 0 : index
      %13 = vector.load %arg5[%c0_12, %c0_13] : memref<256x256xf32, #tpu.memory_space<vmem>>, vector<256x256xf32>
      tpu.vector_store %arg5[%c0_12, %c0_13], %12 {strides = array<i32>} : memref<256x256xf32, #tpu.memory_space<vmem>>, vector<256x256xf32>,
    } else {
    }
    return
  }
  func.func @transform_0(%arg0: i32, %arg1: i32, %arg2: i32) -> (i32, i32) {
    %c0_i32 = arith.constant 0 : i32
    return %arg0, %arg2 : i32, i32
  }
  func.func @transform_1(%arg0: i32, %arg1: i32, %arg2: i32) -> (i32, i32) {
    %c0_i32 = arith.constant 0 : i32
    return %arg1, %arg2 : i32, i32
  }
  func.func @transform_2(%arg0: i32, %arg1: i32, %arg2: i32) -> (i32, i32) {
    %c0_i32 = arith.constant 0 : i32
    return %arg0, %arg1 : i32, i32
  }
}

module attributes {stable_mosaic.version = 11 : i64} {
  func.func @_flash_attn_kernel(%arg0: i32, %arg1: i32, %arg2: i32, %arg3: memref<1x128x256xf32, #tpu.memory_space<vmem>>, %arg4: memref<1x128x256xf32, #tpu.memory_space<vmem>>, %arg5: memref<1x128x256xf32, #tpu.memory_space<vmem>>, %arg6: memref<1x128x256xf32, #tpu.memory_space<vmem>>, %arg7: memref<4x128x1xf32, #tpu.memory_space<vmem>>, %arg8: memref<4x128x1xf32, #tpu.memory_space<vmem>>, %arg9: memref<4x128x64xf32, #tpu.memory_space<vmem>>) attributes {dimension_semantics = [#tpu.dimension_semantics<parallel>, #tpu.dimension_semantics<parallel>, #tpu.dimension_semantics<arbitrary>], iteration_bounds = array<i64: 2, 2, 2>, scalar_prefetch = 0 : i64, scratch_operands = 3 : i64, tpu.core_type = #tpu.core_type<tc>, window_params = [{transform_indices = @transform_0, window_bounds = array<i64: 1, 128, 256>}, {transform_indices = @transform_1, window_bounds = array<i64: 1, 128, 256>}, {transform_indices = @transform_2, window_bounds = array<i64: 1, 128, 256>}, {transform_indices = @transform_3, window_bounds = array<i64: 1, 128, 256>}]} {
    %c0_i32 = arith.constant 0 : i32
    %0 = arith.cmpi eq, %arg2, %c0_i32 : i32
    %1 = arith.extui %0 : i1 to i32
    %c0_i32_0 = arith.constant 0 : i32
    %2 = arith.cmpi ne, %1, %c0_i32_0 : i32
    scf.if %2 {
      %cst_122 = arith.constant 0xFF800000 : f32
      %166 = vector.broadcast %cst_122 : f32 to vector<4x128x1xf32>
      %c0_123 = arith.constant 0 : index
      %c0_124 = arith.constant 0 : index
      %c0_125 = arith.constant 0 : index
      %167 = vector.load %arg7[%c0_123, %c0_124, %c0_125] : memref<4x128x1xf32, #tpu.memory_space<vmem>>, vector<4x128x1xf32>
      tpu.vector_store %arg7[%c0_123, %c0_124, %c0_125], %166 {strides = array<i32>} : memref<4x128x1xf32, #tpu.memory_space<vmem>>, vector<4x128x1xf32>,
      %cst_126 = arith.constant 0.000000e+00 : f32
      %168 = vector.broadcast %cst_126 : f32 to vector<4x128x1xf32>
      %c0_127 = arith.constant 0 : index
      %c0_128 = arith.constant 0 : index
      %c0_129 = arith.constant 0 : index
      %169 = vector.load %arg8[%c0_127, %c0_128, %c0_129] : memref<4x128x1xf32, #tpu.memory_space<vmem>>, vector<4x128x1xf32>
      tpu.vector_store %arg8[%c0_127, %c0_128, %c0_129], %168 {strides = array<i32>} : memref<4x128x1xf32, #tpu.memory_space<vmem>>, vector<4x128x1xf32>,
      %cst_130 = arith.constant 0.000000e+00 : f32
      %170 = vector.broadcast %cst_130 : f32 to vector<4x128x64xf32>
      %c0_131 = arith.constant 0 : index
      %c0_132 = arith.constant 0 : index
      %c0_133 = arith.constant 0 : index
      %171 = vector.load %arg9[%c0_131, %c0_132, %c0_133] : memref<4x128x64xf32, #tpu.memory_space<vmem>>, vector<4x128x64xf32>
      tpu.vector_store %arg9[%c0_131, %c0_132, %c0_133], %170 {strides = array<i32>} : memref<4x128x64xf32, #tpu.memory_space<vmem>>, vector<4x128x64xf32>,
    } else {
    }
    %c0 = arith.constant 0 : index
    %c0_1 = arith.constant 0 : index
    %c0_2 = arith.constant 0 : index
    %3 = vector.load %arg3[%c0, %c0_1, %c0_2] : memref<1x128x256xf32, #tpu.memory_space<vmem>>, vector<1x128x64xf32>
    %4 = vector.shape_cast %3 : vector<1x128x64xf32> to vector<128x64xf32>
    %cst = arith.constant 1.250000e-01 : f32
    %5 = vector.broadcast %cst : f32 to vector<128x64xf32>
    %6 = arith.mulf %4, %5 : vector<128x64xf32>
    %c0_3 = arith.constant 0 : index
    %c0_4 = arith.constant 0 : index
    %c0_5 = arith.constant 0 : index
    %7 = vector.load %arg4[%c0_3, %c0_4, %c0_5] : memref<1x128x256xf32, #tpu.memory_space<vmem>>, vector<1x128x64xf32>
    %8 = vector.shape_cast %7 : vector<1x128x64xf32> to vector<128x64xf32>
    %c0_6 = arith.constant 0 : index
    %c0_7 = arith.constant 0 : index
    %c0_8 = arith.constant 0 : index
    %9 = vector.load %arg5[%c0_6, %c0_7, %c0_8] : memref<1x128x256xf32, #tpu.memory_space<vmem>>, vector<1x128x64xf32>
    %10 = vector.shape_cast %9 : vector<1x128x64xf32> to vector<128x64xf32>
    %cst_9 = arith.constant dense<0.000000e+00> : vector<128x128xf32>
    %11 = tpu.matmul %6, %8, %cst_9 {dimension_numbers = #tpu.dot_dimension_numbers<[1], [1], [0], [0], [0, 0, 1, 0], [], []>} : vector<128x64xf32>, vector<128x64xf32>, vector<128x128xf32> -> vector<128x128xf32>
    %c0_10 = arith.constant 0 : index
    %c0_11 = arith.constant 0 : index
    %c0_12 = arith.constant 0 : index
    %12 = vector.load %arg7[%c0_10, %c0_11, %c0_12] : memref<4x128x1xf32, #tpu.memory_space<vmem>>, vector<1x128x1xf32>
    %13 = vector.shape_cast %12 : vector<1x128x1xf32> to vector<128x1xf32>
    %cst_13 = arith.constant dense<0xFF800000> : vector<128xf32>
    %14 = vector.multi_reduction <maximumf>, %11, %cst_13 [1] : vector<128x128xf32> to vector<128xf32>
    %15 = vector.shape_cast %14 : vector<128xf32> to vector<128x1xf32>
    %16 = arith.maximumf %13, %15 : vector<128x1xf32>
    %17 = arith.subf %13, %16 : vector<128x1xf32>
    %18 = math.exp %17 : vector<128x1xf32>
    %19 = vector.broadcast %16 : vector<128x1xf32> to vector<128x128xf32>
    %20 = arith.subf %11, %19 : vector<128x128xf32>
    %21 = math.exp %20 : vector<128x128xf32>
    %c0_14 = arith.constant 0 : index
    %c0_15 = arith.constant 0 : index
    %c0_16 = arith.constant 0 : index
    %22 = vector.load %arg8[%c0_14, %c0_15, %c0_16] : memref<4x128x1xf32, #tpu.memory_space<vmem>>, vector<1x128x1xf32>
    %23 = vector.shape_cast %22 : vector<1x128x1xf32> to vector<128x1xf32>
    %24 = arith.mulf %18, %23 : vector<128x1xf32>
    %cst_17 = arith.constant dense<0.000000e+00> : vector<128xf32>
    %25 = vector.multi_reduction <add>, %21, %cst_17 [1] : vector<128x128xf32> to vector<128xf32>
    %26 = vector.shape_cast %25 : vector<128xf32> to vector<128x1xf32>
    %27 = arith.addf %24, %26 : vector<128x1xf32>
    %c0_18 = arith.constant 0 : index
    %c0_19 = arith.constant 0 : index
    %c0_20 = arith.constant 0 : index
    %28 = vector.load %arg8[%c0_18, %c0_19, %c0_20] : memref<4x128x1xf32, #tpu.memory_space<vmem>>, vector<1x128x1xf32>
    %29 = vector.shape_cast %28 : vector<1x128x1xf32> to vector<128x1xf32>
    %30 = vector.shape_cast %27 : vector<128x1xf32> to vector<1x128x1xf32>
    tpu.vector_store %arg8[%c0_18, %c0_19, %c0_20], %30 {strides = array<i32>} : memref<4x128x1xf32, #tpu.memory_space<vmem>>, vector<1x128x1xf32>,
    %c0_21 = arith.constant 0 : index
    %c0_22 = arith.constant 0 : index
    %c0_23 = arith.constant 0 : index
    %31 = vector.load %arg9[%c0_21, %c0_22, %c0_23] : memref<4x128x64xf32, #tpu.memory_space<vmem>>, vector<1x128x64xf32>
    %32 = vector.shape_cast %31 : vector<1x128x64xf32> to vector<128x64xf32>
    %33 = vector.broadcast %18 : vector<128x1xf32> to vector<128x64xf32>
    %34 = arith.mulf %33, %32 : vector<128x64xf32>
    %cst_24 = arith.constant dense<0.000000e+00> : vector<128x64xf32>
    %35 = tpu.matmul %21, %10, %cst_24 {dimension_numbers = #tpu.dot_dimension_numbers<[1], [0], [0], [1], [0, 0, 1, 1], [], []>} : vector<128x128xf32>, vector<128x64xf32>, vector<128x64xf32> -> vector<128x64xf32>
    %36 = arith.addf %34, %35 : vector<128x64xf32>
    %c0_25 = arith.constant 0 : index
    %c0_26 = arith.constant 0 : index
    %c0_27 = arith.constant 0 : index
    %37 = vector.load %arg9[%c0_25, %c0_26, %c0_27] : memref<4x128x64xf32, #tpu.memory_space<vmem>>, vector<1x128x64xf32>
    %38 = vector.shape_cast %37 : vector<1x128x64xf32> to vector<128x64xf32>
    %39 = vector.shape_cast %36 : vector<128x64xf32> to vector<1x128x64xf32>
    tpu.vector_store %arg9[%c0_25, %c0_26, %c0_27], %39 {strides = array<i32>} : memref<4x128x64xf32, #tpu.memory_space<vmem>>, vector<1x128x64xf32>,
    %c0_28 = arith.constant 0 : index
    %c0_29 = arith.constant 0 : index
    %c0_30 = arith.constant 0 : index
    %40 = vector.load %arg7[%c0_28, %c0_29, %c0_30] : memref<4x128x1xf32, #tpu.memory_space<vmem>>, vector<1x128x1xf32>
    %41 = vector.shape_cast %40 : vector<1x128x1xf32> to vector<128x1xf32>
    %42 = vector.shape_cast %16 : vector<128x1xf32> to vector<1x128x1xf32>
    tpu.vector_store %arg7[%c0_28, %c0_29, %c0_30], %42 {strides = array<i32>} : memref<4x128x1xf32, #tpu.memory_space<vmem>>, vector<1x128x1xf32>,
    %c0_31 = arith.constant 0 : index
    %c0_32 = arith.constant 0 : index
    %c64 = arith.constant 64 : index
    %43 = vector.load %arg3[%c0_31, %c0_32, %c64] : memref<1x128x256xf32, #tpu.memory_space<vmem>>, vector<1x128x64xf32>
    %44 = vector.shape_cast %43 : vector<1x128x64xf32> to vector<128x64xf32>
    %cst_33 = arith.constant 1.250000e-01 : f32
    %45 = vector.broadcast %cst_33 : f32 to vector<128x64xf32>
    %46 = arith.mulf %44, %45 : vector<128x64xf32>
    %c0_34 = arith.constant 0 : index
    %c0_35 = arith.constant 0 : index
    %c64_36 = arith.constant 64 : index
    %47 = vector.load %arg4[%c0_34, %c0_35, %c64_36] : memref<1x128x256xf32, #tpu.memory_space<vmem>>, vector<1x128x64xf32>
    %48 = vector.shape_cast %47 : vector<1x128x64xf32> to vector<128x64xf32>
    %c0_37 = arith.constant 0 : index
    %c0_38 = arith.constant 0 : index
    %c64_39 = arith.constant 64 : index
    %49 = vector.load %arg5[%c0_37, %c0_38, %c64_39] : memref<1x128x256xf32, #tpu.memory_space<vmem>>, vector<1x128x64xf32>
    %50 = vector.shape_cast %49 : vector<1x128x64xf32> to vector<128x64xf32>
    %cst_40 = arith.constant dense<0.000000e+00> : vector<128x128xf32>
    %51 = tpu.matmul %46, %48, %cst_40 {dimension_numbers = #tpu.dot_dimension_numbers<[1], [1], [0], [0], [0, 0, 1, 0], [], []>} : vector<128x64xf32>, vector<128x64xf32>, vector<128x128xf32> -> vector<128x128xf32>
    %c1 = arith.constant 1 : index
    %c0_41 = arith.constant 0 : index
    %c0_42 = arith.constant 0 : index
    %52 = vector.load %arg7[%c1, %c0_41, %c0_42] : memref<4x128x1xf32, #tpu.memory_space<vmem>>, vector<1x128x1xf32>
    %53 = vector.shape_cast %52 : vector<1x128x1xf32> to vector<128x1xf32>
    %cst_43 = arith.constant dense<0xFF800000> : vector<128xf32>
    %54 = vector.multi_reduction <maximumf>, %51, %cst_43 [1] : vector<128x128xf32> to vector<128xf32>
    %55 = vector.shape_cast %54 : vector<128xf32> to vector<128x1xf32>
    %56 = arith.maximumf %53, %55 : vector<128x1xf32>
    %57 = arith.subf %53, %56 : vector<128x1xf32>
    %58 = math.exp %57 : vector<128x1xf32>
    %59 = vector.broadcast %56 : vector<128x1xf32> to vector<128x128xf32>
    %60 = arith.subf %51, %59 : vector<128x128xf32>
    %61 = math.exp %60 : vector<128x128xf32>
    %c1_44 = arith.constant 1 : index
    %c0_45 = arith.constant 0 : index
    %c0_46 = arith.constant 0 : index
    %62 = vector.load %arg8[%c1_44, %c0_45, %c0_46] : memref<4x128x1xf32, #tpu.memory_space<vmem>>, vector<1x128x1xf32>
    %63 = vector.shape_cast %62 : vector<1x128x1xf32> to vector<128x1xf32>
    %64 = arith.mulf %58, %63 : vector<128x1xf32>
    %cst_47 = arith.constant dense<0.000000e+00> : vector<128xf32>
    %65 = vector.multi_reduction <add>, %61, %cst_47 [1] : vector<128x128xf32> to vector<128xf32>
    %66 = vector.shape_cast %65 : vector<128xf32> to vector<128x1xf32>
    %67 = arith.addf %64, %66 : vector<128x1xf32>
    %c1_48 = arith.constant 1 : index
    %c0_49 = arith.constant 0 : index
    %c0_50 = arith.constant 0 : index
    %68 = vector.load %arg8[%c1_48, %c0_49, %c0_50] : memref<4x128x1xf32, #tpu.memory_space<vmem>>, vector<1x128x1xf32>
    %69 = vector.shape_cast %68 : vector<1x128x1xf32> to vector<128x1xf32>
    %70 = vector.shape_cast %67 : vector<128x1xf32> to vector<1x128x1xf32>
    tpu.vector_store %arg8[%c1_48, %c0_49, %c0_50], %70 {strides = array<i32>} : memref<4x128x1xf32, #tpu.memory_space<vmem>>, vector<1x128x1xf32>,
    %c1_51 = arith.constant 1 : index
    %c0_52 = arith.constant 0 : index
    %c0_53 = arith.constant 0 : index
    %71 = vector.load %arg9[%c1_51, %c0_52, %c0_53] : memref<4x128x64xf32, #tpu.memory_space<vmem>>, vector<1x128x64xf32>
    %72 = vector.shape_cast %71 : vector<1x128x64xf32> to vector<128x64xf32>
    %73 = vector.broadcast %58 : vector<128x1xf32> to vector<128x64xf32>
    %74 = arith.mulf %73, %72 : vector<128x64xf32>
    %cst_54 = arith.constant dense<0.000000e+00> : vector<128x64xf32>
    %75 = tpu.matmul %61, %50, %cst_54 {dimension_numbers = #tpu.dot_dimension_numbers<[1], [0], [0], [1], [0, 0, 1, 1], [], []>} : vector<128x128xf32>, vector<128x64xf32>, vector<128x64xf32> -> vector<128x64xf32>
    %76 = arith.addf %74, %75 : vector<128x64xf32>
    %c1_55 = arith.constant 1 : index
    %c0_56 = arith.constant 0 : index
    %c0_57 = arith.constant 0 : index
    %77 = vector.load %arg9[%c1_55, %c0_56, %c0_57] : memref<4x128x64xf32, #tpu.memory_space<vmem>>, vector<1x128x64xf32>
    %78 = vector.shape_cast %77 : vector<1x128x64xf32> to vector<128x64xf32>
    %79 = vector.shape_cast %76 : vector<128x64xf32> to vector<1x128x64xf32>
    tpu.vector_store %arg9[%c1_55, %c0_56, %c0_57], %79 {strides = array<i32>} : memref<4x128x64xf32, #tpu.memory_space<vmem>>, vector<1x128x64xf32>,
    %c1_58 = arith.constant 1 : index
    %c0_59 = arith.constant 0 : index
    %c0_60 = arith.constant 0 : index
    %80 = vector.load %arg7[%c1_58, %c0_59, %c0_60] : memref<4x128x1xf32, #tpu.memory_space<vmem>>, vector<1x128x1xf32>
    %81 = vector.shape_cast %80 : vector<1x128x1xf32> to vector<128x1xf32>
    %82 = vector.shape_cast %56 : vector<128x1xf32> to vector<1x128x1xf32>
    tpu.vector_store %arg7[%c1_58, %c0_59, %c0_60], %82 {strides = array<i32>} : memref<4x128x1xf32, #tpu.memory_space<vmem>>, vector<1x128x1xf32>,
    %c0_61 = arith.constant 0 : index
    %c0_62 = arith.constant 0 : index
    %c128 = arith.constant 128 : index
    %83 = vector.load %arg3[%c0_61, %c0_62, %c128] : memref<1x128x256xf32, #tpu.memory_space<vmem>>, vector<1x128x64xf32>
    %84 = vector.shape_cast %83 : vector<1x128x64xf32> to vector<128x64xf32>
    %cst_63 = arith.constant 1.250000e-01 : f32
    %85 = vector.broadcast %cst_63 : f32 to vector<128x64xf32>
    %86 = arith.mulf %84, %85 : vector<128x64xf32>
    %c0_64 = arith.constant 0 : index
    %c0_65 = arith.constant 0 : index
    %c128_66 = arith.constant 128 : index
    %87 = vector.load %arg4[%c0_64, %c0_65, %c128_66] : memref<1x128x256xf32, #tpu.memory_space<vmem>>, vector<1x128x64xf32>
    %88 = vector.shape_cast %87 : vector<1x128x64xf32> to vector<128x64xf32>
    %c0_67 = arith.constant 0 : index
    %c0_68 = arith.constant 0 : index
    %c128_69 = arith.constant 128 : index
    %89 = vector.load %arg5[%c0_67, %c0_68, %c128_69] : memref<1x128x256xf32, #tpu.memory_space<vmem>>, vector<1x128x64xf32>
    %90 = vector.shape_cast %89 : vector<1x128x64xf32> to vector<128x64xf32>
    %cst_70 = arith.constant dense<0.000000e+00> : vector<128x128xf32>
    %91 = tpu.matmul %86, %88, %cst_70 {dimension_numbers = #tpu.dot_dimension_numbers<[1], [1], [0], [0], [0, 0, 1, 0], [], []>} : vector<128x64xf32>, vector<128x64xf32>, vector<128x128xf32> -> vector<128x128xf32>
    %c2 = arith.constant 2 : index
    %c0_71 = arith.constant 0 : index
    %c0_72 = arith.constant 0 : index
    %92 = vector.load %arg7[%c2, %c0_71, %c0_72] : memref<4x128x1xf32, #tpu.memory_space<vmem>>, vector<1x128x1xf32>
    %93 = vector.shape_cast %92 : vector<1x128x1xf32> to vector<128x1xf32>
    %cst_73 = arith.constant dense<0xFF800000> : vector<128xf32>
    %94 = vector.multi_reduction <maximumf>, %91, %cst_73 [1] : vector<128x128xf32> to vector<128xf32>
    %95 = vector.shape_cast %94 : vector<128xf32> to vector<128x1xf32>
    %96 = arith.maximumf %93, %95 : vector<128x1xf32>
    %97 = arith.subf %93, %96 : vector<128x1xf32>
    %98 = math.exp %97 : vector<128x1xf32>
    %99 = vector.broadcast %96 : vector<128x1xf32> to vector<128x128xf32>
    %100 = arith.subf %91, %99 : vector<128x128xf32>
    %101 = math.exp %100 : vector<128x128xf32>
    %c2_74 = arith.constant 2 : index
    %c0_75 = arith.constant 0 : index
    %c0_76 = arith.constant 0 : index
    %102 = vector.load %arg8[%c2_74, %c0_75, %c0_76] : memref<4x128x1xf32, #tpu.memory_space<vmem>>, vector<1x128x1xf32>
    %103 = vector.shape_cast %102 : vector<1x128x1xf32> to vector<128x1xf32>
    %104 = arith.mulf %98, %103 : vector<128x1xf32>
    %cst_77 = arith.constant dense<0.000000e+00> : vector<128xf32>
    %105 = vector.multi_reduction <add>, %101, %cst_77 [1] : vector<128x128xf32> to vector<128xf32>
    %106 = vector.shape_cast %105 : vector<128xf32> to vector<128x1xf32>
    %107 = arith.addf %104, %106 : vector<128x1xf32>
    %c2_78 = arith.constant 2 : index
    %c0_79 = arith.constant 0 : index
    %c0_80 = arith.constant 0 : index
    %108 = vector.load %arg8[%c2_78, %c0_79, %c0_80] : memref<4x128x1xf32, #tpu.memory_space<vmem>>, vector<1x128x1xf32>
    %109 = vector.shape_cast %108 : vector<1x128x1xf32> to vector<128x1xf32>
    %110 = vector.shape_cast %107 : vector<128x1xf32> to vector<1x128x1xf32>
    tpu.vector_store %arg8[%c2_78, %c0_79, %c0_80], %110 {strides = array<i32>} : memref<4x128x1xf32, #tpu.memory_space<vmem>>, vector<1x128x1xf32>,
    %c2_81 = arith.constant 2 : index
    %c0_82 = arith.constant 0 : index
    %c0_83 = arith.constant 0 : index
    %111 = vector.load %arg9[%c2_81, %c0_82, %c0_83] : memref<4x128x64xf32, #tpu.memory_space<vmem>>, vector<1x128x64xf32>
    %112 = vector.shape_cast %111 : vector<1x128x64xf32> to vector<128x64xf32>
    %113 = vector.broadcast %98 : vector<128x1xf32> to vector<128x64xf32>
    %114 = arith.mulf %113, %112 : vector<128x64xf32>
    %cst_84 = arith.constant dense<0.000000e+00> : vector<128x64xf32>
    %115 = tpu.matmul %101, %90, %cst_84 {dimension_numbers = #tpu.dot_dimension_numbers<[1], [0], [0], [1], [0, 0, 1, 1], [], []>} : vector<128x128xf32>, vector<128x64xf32>, vector<128x64xf32> -> vector<128x64xf32>
    %116 = arith.addf %114, %115 : vector<128x64xf32>
    %c2_85 = arith.constant 2 : index
    %c0_86 = arith.constant 0 : index
    %c0_87 = arith.constant 0 : index
    %117 = vector.load %arg9[%c2_85, %c0_86, %c0_87] : memref<4x128x64xf32, #tpu.memory_space<vmem>>, vector<1x128x64xf32>
    %118 = vector.shape_cast %117 : vector<1x128x64xf32> to vector<128x64xf32>
    %119 = vector.shape_cast %116 : vector<128x64xf32> to vector<1x128x64xf32>
    tpu.vector_store %arg9[%c2_85, %c0_86, %c0_87], %119 {strides = array<i32>} : memref<4x128x64xf32, #tpu.memory_space<vmem>>, vector<1x128x64xf32>,
    %c2_88 = arith.constant 2 : index
    %c0_89 = arith.constant 0 : index
    %c0_90 = arith.constant 0 : index
    %120 = vector.load %arg7[%c2_88, %c0_89, %c0_90] : memref<4x128x1xf32, #tpu.memory_space<vmem>>, vector<1x128x1xf32>
    %121 = vector.shape_cast %120 : vector<1x128x1xf32> to vector<128x1xf32>
    %122 = vector.shape_cast %96 : vector<128x1xf32> to vector<1x128x1xf32>
    tpu.vector_store %arg7[%c2_88, %c0_89, %c0_90], %122 {strides = array<i32>} : memref<4x128x1xf32, #tpu.memory_space<vmem>>, vector<1x128x1xf32>,
    %c0_91 = arith.constant 0 : index
    %c0_92 = arith.constant 0 : index
    %c192 = arith.constant 192 : index
    %123 = vector.load %arg3[%c0_91, %c0_92, %c192] : memref<1x128x256xf32, #tpu.memory_space<vmem>>, vector<1x128x64xf32>
    %124 = vector.shape_cast %123 : vector<1x128x64xf32> to vector<128x64xf32>
    %cst_93 = arith.constant 1.250000e-01 : f32
    %125 = vector.broadcast %cst_93 : f32 to vector<128x64xf32>
    %126 = arith.mulf %124, %125 : vector<128x64xf32>
    %c0_94 = arith.constant 0 : index
    %c0_95 = arith.constant 0 : index
    %c192_96 = arith.constant 192 : index
    %127 = vector.load %arg4[%c0_94, %c0_95, %c192_96] : memref<1x128x256xf32, #tpu.memory_space<vmem>>, vector<1x128x64xf32>
    %128 = vector.shape_cast %127 : vector<1x128x64xf32> to vector<128x64xf32>
    %c0_97 = arith.constant 0 : index
    %c0_98 = arith.constant 0 : index
    %c192_99 = arith.constant 192 : index
    %129 = vector.load %arg5[%c0_97, %c0_98, %c192_99] : memref<1x128x256xf32, #tpu.memory_space<vmem>>, vector<1x128x64xf32>
    %130 = vector.shape_cast %129 : vector<1x128x64xf32> to vector<128x64xf32>
    %cst_100 = arith.constant dense<0.000000e+00> : vector<128x128xf32>
    %131 = tpu.matmul %126, %128, %cst_100 {dimension_numbers = #tpu.dot_dimension_numbers<[1], [1], [0], [0], [0, 0, 1, 0], [], []>} : vector<128x64xf32>, vector<128x64xf32>, vector<128x128xf32> -> vector<128x128xf32>
    %c3 = arith.constant 3 : index
    %c0_101 = arith.constant 0 : index
    %c0_102 = arith.constant 0 : index
    %132 = vector.load %arg7[%c3, %c0_101, %c0_102] : memref<4x128x1xf32, #tpu.memory_space<vmem>>, vector<1x128x1xf32>
    %133 = vector.shape_cast %132 : vector<1x128x1xf32> to vector<128x1xf32>
    %cst_103 = arith.constant dense<0xFF800000> : vector<128xf32>
    %134 = vector.multi_reduction <maximumf>, %131, %cst_103 [1] : vector<128x128xf32> to vector<128xf32>
    %135 = vector.shape_cast %134 : vector<128xf32> to vector<128x1xf32>
    %136 = arith.maximumf %133, %135 : vector<128x1xf32>
    %137 = arith.subf %133, %136 : vector<128x1xf32>
    %138 = math.exp %137 : vector<128x1xf32>
    %139 = vector.broadcast %136 : vector<128x1xf32> to vector<128x128xf32>
    %140 = arith.subf %131, %139 : vector<128x128xf32>
    %141 = math.exp %140 : vector<128x128xf32>
    %c3_104 = arith.constant 3 : index
    %c0_105 = arith.constant 0 : index
    %c0_106 = arith.constant 0 : index
    %142 = vector.load %arg8[%c3_104, %c0_105, %c0_106] : memref<4x128x1xf32, #tpu.memory_space<vmem>>, vector<1x128x1xf32>
    %143 = vector.shape_cast %142 : vector<1x128x1xf32> to vector<128x1xf32>
    %144 = arith.mulf %138, %143 : vector<128x1xf32>
    %cst_107 = arith.constant dense<0.000000e+00> : vector<128xf32>
    %145 = vector.multi_reduction <add>, %141, %cst_107 [1] : vector<128x128xf32> to vector<128xf32>
    %146 = vector.shape_cast %145 : vector<128xf32> to vector<128x1xf32>
    %147 = arith.addf %144, %146 : vector<128x1xf32>
    %c3_108 = arith.constant 3 : index
    %c0_109 = arith.constant 0 : index
    %c0_110 = arith.constant 0 : index
    %148 = vector.load %arg8[%c3_108, %c0_109, %c0_110] : memref<4x128x1xf32, #tpu.memory_space<vmem>>, vector<1x128x1xf32>
    %149 = vector.shape_cast %148 : vector<1x128x1xf32> to vector<128x1xf32>
    %150 = vector.shape_cast %147 : vector<128x1xf32> to vector<1x128x1xf32>
    tpu.vector_store %arg8[%c3_108, %c0_109, %c0_110], %150 {strides = array<i32>} : memref<4x128x1xf32, #tpu.memory_space<vmem>>, vector<1x128x1xf32>,
    %c3_111 = arith.constant 3 : index
    %c0_112 = arith.constant 0 : index
    %c0_113 = arith.constant 0 : index
    %151 = vector.load %arg9[%c3_111, %c0_112, %c0_113] : memref<4x128x64xf32, #tpu.memory_space<vmem>>, vector<1x128x64xf32>
    %152 = vector.shape_cast %151 : vector<1x128x64xf32> to vector<128x64xf32>
    %153 = vector.broadcast %138 : vector<128x1xf32> to vector<128x64xf32>
    %154 = arith.mulf %153, %152 : vector<128x64xf32>
    %cst_114 = arith.constant dense<0.000000e+00> : vector<128x64xf32>
    %155 = tpu.matmul %141, %130, %cst_114 {dimension_numbers = #tpu.dot_dimension_numbers<[1], [0], [0], [1], [0, 0, 1, 1], [], []>} : vector<128x128xf32>, vector<128x64xf32>, vector<128x64xf32> -> vector<128x64xf32>
    %156 = arith.addf %154, %155 : vector<128x64xf32>
    %c3_115 = arith.constant 3 : index
    %c0_116 = arith.constant 0 : index
    %c0_117 = arith.constant 0 : index
    %157 = vector.load %arg9[%c3_115, %c0_116, %c0_117] : memref<4x128x64xf32, #tpu.memory_space<vmem>>, vector<1x128x64xf32>
    %158 = vector.shape_cast %157 : vector<1x128x64xf32> to vector<128x64xf32>
    %159 = vector.shape_cast %156 : vector<128x64xf32> to vector<1x128x64xf32>
    tpu.vector_store %arg9[%c3_115, %c0_116, %c0_117], %159 {strides = array<i32>} : memref<4x128x64xf32, #tpu.memory_space<vmem>>, vector<1x128x64xf32>,
    %c3_118 = arith.constant 3 : index
    %c0_119 = arith.constant 0 : index
    %c0_120 = arith.constant 0 : index
    %160 = vector.load %arg7[%c3_118, %c0_119, %c0_120] : memref<4x128x1xf32, #tpu.memory_space<vmem>>, vector<1x128x1xf32>
    %161 = vector.shape_cast %160 : vector<1x128x1xf32> to vector<128x1xf32>
    %162 = vector.shape_cast %136 : vector<128x1xf32> to vector<1x128x1xf32>
    tpu.vector_store %arg7[%c3_118, %c0_119, %c0_120], %162 {strides = array<i32>} : memref<4x128x1xf32, #tpu.memory_space<vmem>>, vector<1x128x1xf32>,
    %c1_i32 = arith.constant 1 : i32
    %163 = arith.cmpi eq, %arg2, %c1_i32 : i32
    %164 = arith.extui %163 : i1 to i32
    %c0_i32_121 = arith.constant 0 : i32
    %165 = arith.cmpi ne, %164, %c0_i32_121 : i32
    scf.if %165 {
      %c0_122 = arith.constant 0 : index
      %c0_123 = arith.constant 0 : index
      %c0_124 = arith.constant 0 : index
      %166 = vector.load %arg8[%c0_122, %c0_123, %c0_124] : memref<4x128x1xf32, #tpu.memory_space<vmem>>, vector<1x128x1xf32>
      %167 = vector.shape_cast %166 : vector<1x128x1xf32> to vector<128x1xf32>
      %168 = tpu.reciprocal %167 {approx = true} : vector<128x1xf32> -> vector<128x1xf32>
      %169 = arith.mulf %167, %168 : vector<128x1xf32>
      %cst_125 = arith.constant 2.000000e+00 : f32
      %170 = vector.broadcast %cst_125 : f32 to vector<128x1xf32>
      %171 = arith.subf %170, %169 : vector<128x1xf32>
      %172 = arith.mulf %168, %171 : vector<128x1xf32>
      %c0_126 = arith.constant 0 : index
      %c0_127 = arith.constant 0 : index
      %c0_128 = arith.constant 0 : index
      %173 = vector.load %arg9[%c0_126, %c0_127, %c0_128] : memref<4x128x64xf32, #tpu.memory_space<vmem>>, vector<1x128x64xf32>
      %174 = vector.shape_cast %173 : vector<1x128x64xf32> to vector<128x64xf32>
      %175 = vector.broadcast %172 : vector<128x1xf32> to vector<128x64xf32>
      %176 = arith.mulf %174, %175 : vector<128x64xf32>
      %c0_129 = arith.constant 0 : index
      %c0_130 = arith.constant 0 : index
      %c0_131 = arith.constant 0 : index
      %177 = vector.load %arg6[%c0_129, %c0_130, %c0_131] : memref<1x128x256xf32, #tpu.memory_space<vmem>>, vector<1x128x64xf32>
      %178 = vector.shape_cast %177 : vector<1x128x64xf32> to vector<128x64xf32>
      %179 = vector.shape_cast %176 : vector<128x64xf32> to vector<1x128x64xf32>
      tpu.vector_store %arg6[%c0_129, %c0_130, %c0_131], %179 {strides = array<i32>} : memref<1x128x256xf32, #tpu.memory_space<vmem>>, vector<1x128x64xf32>,
      %c1_132 = arith.constant 1 : index
      %c0_133 = arith.constant 0 : index
      %c0_134 = arith.constant 0 : index
      %180 = vector.load %arg8[%c1_132, %c0_133, %c0_134] : memref<4x128x1xf32, #tpu.memory_space<vmem>>, vector<1x128x1xf32>
      %181 = vector.shape_cast %180 : vector<1x128x1xf32> to vector<128x1xf32>
      %182 = tpu.reciprocal %181 {approx = true} : vector<128x1xf32> -> vector<128x1xf32>
      %183 = arith.mulf %181, %182 : vector<128x1xf32>
      %cst_135 = arith.constant 2.000000e+00 : f32
      %184 = vector.broadcast %cst_135 : f32 to vector<128x1xf32>
      %185 = arith.subf %184, %183 : vector<128x1xf32>
      %186 = arith.mulf %182, %185 : vector<128x1xf32>
      %c1_136 = arith.constant 1 : index
      %c0_137 = arith.constant 0 : index
      %c0_138 = arith.constant 0 : index
      %187 = vector.load %arg9[%c1_136, %c0_137, %c0_138] : memref<4x128x64xf32, #tpu.memory_space<vmem>>, vector<1x128x64xf32>
      %188 = vector.shape_cast %187 : vector<1x128x64xf32> to vector<128x64xf32>
      %189 = vector.broadcast %186 : vector<128x1xf32> to vector<128x64xf32>
      %190 = arith.mulf %188, %189 : vector<128x64xf32>
      %c0_139 = arith.constant 0 : index
      %c0_140 = arith.constant 0 : index
      %c64_141 = arith.constant 64 : index
      %191 = vector.load %arg6[%c0_139, %c0_140, %c64_141] : memref<1x128x256xf32, #tpu.memory_space<vmem>>, vector<1x128x64xf32>
      %192 = vector.shape_cast %191 : vector<1x128x64xf32> to vector<128x64xf32>
      %193 = vector.shape_cast %190 : vector<128x64xf32> to vector<1x128x64xf32>
      tpu.vector_store %arg6[%c0_139, %c0_140, %c64_141], %193 {strides = array<i32>} : memref<1x128x256xf32, #tpu.memory_space<vmem>>, vector<1x128x64xf32>,
      %c2_142 = arith.constant 2 : index
      %c0_143 = arith.constant 0 : index
      %c0_144 = arith.constant 0 : index
      %194 = vector.load %arg8[%c2_142, %c0_143, %c0_144] : memref<4x128x1xf32, #tpu.memory_space<vmem>>, vector<1x128x1xf32>
      %195 = vector.shape_cast %194 : vector<1x128x1xf32> to vector<128x1xf32>
      %196 = tpu.reciprocal %195 {approx = true} : vector<128x1xf32> -> vector<128x1xf32>
      %197 = arith.mulf %195, %196 : vector<128x1xf32>
      %cst_145 = arith.constant 2.000000e+00 : f32
      %198 = vector.broadcast %cst_145 : f32 to vector<128x1xf32>
      %199 = arith.subf %198, %197 : vector<128x1xf32>
      %200 = arith.mulf %196, %199 : vector<128x1xf32>
      %c2_146 = arith.constant 2 : index
      %c0_147 = arith.constant 0 : index
      %c0_148 = arith.constant 0 : index
      %201 = vector.load %arg9[%c2_146, %c0_147, %c0_148] : memref<4x128x64xf32, #tpu.memory_space<vmem>>, vector<1x128x64xf32>
      %202 = vector.shape_cast %201 : vector<1x128x64xf32> to vector<128x64xf32>
      %203 = vector.broadcast %200 : vector<128x1xf32> to vector<128x64xf32>
      %204 = arith.mulf %202, %203 : vector<128x64xf32>
      %c0_149 = arith.constant 0 : index
      %c0_150 = arith.constant 0 : index
      %c128_151 = arith.constant 128 : index
      %205 = vector.load %arg6[%c0_149, %c0_150, %c128_151] : memref<1x128x256xf32, #tpu.memory_space<vmem>>, vector<1x128x64xf32>
      %206 = vector.shape_cast %205 : vector<1x128x64xf32> to vector<128x64xf32>
      %207 = vector.shape_cast %204 : vector<128x64xf32> to vector<1x128x64xf32>
      tpu.vector_store %arg6[%c0_149, %c0_150, %c128_151], %207 {strides = array<i32>} : memref<1x128x256xf32, #tpu.memory_space<vmem>>, vector<1x128x64xf32>,
      %c3_152 = arith.constant 3 : index
      %c0_153 = arith.constant 0 : index
      %c0_154 = arith.constant 0 : index
      %208 = vector.load %arg8[%c3_152, %c0_153, %c0_154] : memref<4x128x1xf32, #tpu.memory_space<vmem>>, vector<1x128x1xf32>
      %209 = vector.shape_cast %208 : vector<1x128x1xf32> to vector<128x1xf32>
      %210 = tpu.reciprocal %209 {approx = true} : vector<128x1xf32> -> vector<128x1xf32>
      %211 = arith.mulf %209, %210 : vector<128x1xf32>
      %cst_155 = arith.constant 2.000000e+00 : f32
      %212 = vector.broadcast %cst_155 : f32 to vector<128x1xf32>
      %213 = arith.subf %212, %211 : vector<128x1xf32>
      %214 = arith.mulf %210, %213 : vector<128x1xf32>
      %c3_156 = arith.constant 3 : index
      %c0_157 = arith.constant 0 : index
      %c0_158 = arith.constant 0 : index
      %215 = vector.load %arg9[%c3_156, %c0_157, %c0_158] : memref<4x128x64xf32, #tpu.memory_space<vmem>>, vector<1x128x64xf32>
      %216 = vector.shape_cast %215 : vector<1x128x64xf32> to vector<128x64xf32>
      %217 = vector.broadcast %214 : vector<128x1xf32> to vector<128x64xf32>
      %218 = arith.mulf %216, %217 : vector<128x64xf32>
      %c0_159 = arith.constant 0 : index
      %c0_160 = arith.constant 0 : index
      %c192_161 = arith.constant 192 : index
      %219 = vector.load %arg6[%c0_159, %c0_160, %c192_161] : memref<1x128x256xf32, #tpu.memory_space<vmem>>, vector<1x128x64xf32>
      %220 = vector.shape_cast %219 : vector<1x128x64xf32> to vector<128x64xf32>
      %221 = vector.shape_cast %218 : vector<128x64xf32> to vector<1x128x64xf32>
      tpu.vector_store %arg6[%c0_159, %c0_160, %c192_161], %221 {strides = array<i32>} : memref<1x128x256xf32, #tpu.memory_space<vmem>>, vector<1x128x64xf32>,
    } else {
    }
    return
  }
  func.func @transform_0(%arg0: i32, %arg1: i32, %arg2: i32) -> (i32, i32, i32) {
    %c0_i32 = arith.constant 0 : i32
    %c0_i32_0 = arith.constant 0 : i32
    return %arg0, %arg1, %c0_i32 : i32, i32, i32
  }
  func.func @transform_1(%arg0: i32, %arg1: i32, %arg2: i32) -> (i32, i32, i32) {
    %c1_i32 = arith.constant 1 : i32
    %c0_i32 = arith.constant 0 : i32
    return %arg0, %arg2, %c1_i32 : i32, i32, i32
  }
  func.func @transform_2(%arg0: i32, %arg1: i32, %arg2: i32) -> (i32, i32, i32) {
    %c2_i32 = arith.constant 2 : i32
    %c0_i32 = arith.constant 0 : i32
    return %arg0, %arg2, %c2_i32 : i32, i32, i32
  }
  func.func @transform_3(%arg0: i32, %arg1: i32, %arg2: i32) -> (i32, i32, i32) {
    %c0_i32 = arith.constant 0 : i32
    %c0_i32_0 = arith.constant 0 : i32
    return %arg0, %arg1, %c0_i32 : i32, i32, i32
  }
}

module attributes {stable_mosaic.version = 11 : i64} {
  func.func @_linear_kernel(%arg0: i32, %arg1: i32, %arg2: i32, %arg3: memref<256x256xf32, #tpu.memory_space<vmem>>, %arg4: memref<256x256xf32, #tpu.memory_space<vmem>>, %arg5: memref<256x256xf32, #tpu.memory_space<vmem>>, %arg6: memref<256x256xf32, #tpu.memory_space<vmem>>) attributes {dimension_semantics = [#tpu.dimension_semantics<parallel>, #tpu.dimension_semantics<parallel>, #tpu.dimension_semantics<arbitrary>], iteration_bounds = array<i64: 2, 3, 1>, scalar_prefetch = 0 : i64, scratch_operands = 1 : i64, tpu.core_type = #tpu.core_type<tc>, window_params = [{transform_indices = @transform_0, window_bounds = array<i64: 256, 256>}, {transform_indices = @transform_1, window_bounds = array<i64: 256, 256>}, {transform_indices = @transform_2, window_bounds = array<i64: 256, 256>}]} {
    %c0_i32 = arith.constant 0 : i32
    %0 = arith.cmpi eq, %arg2, %c0_i32 : i32
    %1 = arith.extui %0 : i1 to i32
    %c0_i32_0 = arith.constant 0 : i32
    %2 = arith.cmpi ne, %1, %c0_i32_0 : i32
    scf.if %2 {
      %cst_10 = arith.constant 0.000000e+00 : f32
      %12 = vector.broadcast %cst_10 : f32 to vector<256x256xf32>
      %c0_11 = arith.constant 0 : index
      %c0_12 = arith.constant 0 : index
      %13 = vector.load %arg6[%c0_11, %c0_12] : memref<256x256xf32, #tpu.memory_space<vmem>>, vector<256x256xf32>
      tpu.vector_store %arg6[%c0_11, %c0_12], %12 {strides = array<i32>} : memref<256x256xf32, #tpu.memory_space<vmem>>, vector<256x256xf32>,
    } else {
    }
    %c0 = arith.constant 0 : index
    %c0_1 = arith.constant 0 : index
    %3 = vector.load %arg6[%c0, %c0_1] : memref<256x256xf32, #tpu.memory_space<vmem>>, vector<256x256xf32>
    %c0_2 = arith.constant 0 : index
    %c0_3 = arith.constant 0 : index
    %4 = vector.load %arg3[%c0_2, %c0_3] : memref<256x256xf32, #tpu.memory_space<vmem>>, vector<256x256xf32>
    %c0_4 = arith.constant 0 : index
    %c0_5 = arith.constant 0 : index
    %5 = vector.load %arg4[%c0_4, %c0_5] : memref<256x256xf32, #tpu.memory_space<vmem>>, vector<256x256xf32>
    %cst = arith.constant dense<0.000000e+00> : vector<256x256xf32>
    %6 = tpu.matmul %4, %5, %cst {dimension_numbers = #tpu.dot_dimension_numbers<[1], [1], [0], [0], [0, 0, 1, 0], [], []>} : vector<256x256xf32>, vector<256x256xf32>, vector<256x256xf32> -> vector<256x256xf32>
    %7 = arith.addf %3, %6 : vector<256x256xf32>
    %c0_6 = arith.constant 0 : index
    %c0_7 = arith.constant 0 : index
    %8 = vector.load %arg6[%c0_6, %c0_7] : memref<256x256xf32, #tpu.memory_space<vmem>>, vector<256x256xf32>
    tpu.vector_store %arg6[%c0_6, %c0_7], %7 {strides = array<i32>} : memref<256x256xf32, #tpu.memory_space<vmem>>, vector<256x256xf32>,
    %c0_i32_8 = arith.constant 0 : i32
    %9 = arith.cmpi eq, %arg2, %c0_i32_8 : i32
    %10 = arith.extui %9 : i1 to i32
    %c0_i32_9 = arith.constant 0 : i32
    %11 = arith.cmpi ne, %10, %c0_i32_9 : i32
    scf.if %11 {
      %c0_10 = arith.constant 0 : index
      %c0_11 = arith.constant 0 : index
      %12 = vector.load %arg6[%c0_10, %c0_11] : memref<256x256xf32, #tpu.memory_space<vmem>>, vector<256x256xf32>
      %c0_12 = arith.constant 0 : index
      %c0_13 = arith.constant 0 : index
      %13 = vector.load %arg5[%c0_12, %c0_13] : memref<256x256xf32, #tpu.memory_space<vmem>>, vector<256x256xf32>
      tpu.vector_store %arg5[%c0_12, %c0_13], %12 {strides = array<i32>} : memref<256x256xf32, #tpu.memory_space<vmem>>, vector<256x256xf32>,
    } else {
    }
    return
  }
  func.func @transform_0(%arg0: i32, %arg1: i32, %arg2: i32) -> (i32, i32) {
    %c0_i32 = arith.constant 0 : i32
    return %arg0, %arg2 : i32, i32
  }
  func.func @transform_1(%arg0: i32, %arg1: i32, %arg2: i32) -> (i32, i32) {
    %c0_i32 = arith.constant 0 : i32
    return %arg1, %arg2 : i32, i32
  }
  func.func @transform_2(%arg0: i32, %arg1: i32, %arg2: i32) -> (i32, i32) {
    %c0_i32 = arith.constant 0 : i32
    return %arg0, %arg1 : i32, i32
  }
}

</mosaic_0001>

<bundles_post_ra>
// kernel: causal_self_attention_forward.5
= control target key start
LH: loop header
LB: loop body
LE: loop exit
PB: predicated region body
PF: predicated region fallthrough
CT: control target
= control target key end

     0   :  { %7 = vsyncpa [#allocation4], 0  ;;  %s1836_s0 = inlined_call_operand.vmem [shape: f32[512,256], index: 0, kind: input, shape index: {}]   ;;  %s1837_s1 = inlined_call_operand.vmem [shape: f32[256,256], index: 1, kind: input, shape index: {}]   ;;  %s1838_s2 = inlined_call_operand.hbm [shape: f32[512,256], index: 2, kind: output, shape index: {}]  }
   0x1   :  { %9 = vsyncpa [#allocation4 + $0x1], 0  ;;  %s1393_s9 = smov 0   ;;  %s1395_s10 = smov 0  }
   0x2   :  { %s1397_s11 = smov 0   ;;  %s1399_s12 = smov 0  }
   0x3   :  { %s1401_s13 = smov 0   ;;  %s1403_s14 = smov 0  }
   0x4 LB: > { %s1123_s15 = sadd.s32 4294967295, %s1373_s14   ;;  %s1124_s16 = sadd.s32 4294967294, %s1373_s14   ;;  %s1373_s14 = sphi %s1403_s14, %s15_s14   ;;  %s1369_s13 = sphi %s1401_s13, %s1845_s13   ;;  %s1365_s12 = sphi %s1399_s12, %s1844_s12   ;;  %s1361_s11 = sphi %s1397_s11, %s1843_s11   ;;  %s1357_s10 = sphi %s1395_s10, %s1842_s10   ;;  %s1353_s9 = sphi %s1393_s9, %s1841_s9  }
   0x5   : > { %s34_s17 = sadd.s32 1, %s1369_s13  ;;  %s99_s18 = sadd.s32 1, %s1361_s11 }
   0x6   : > { %p36_p0 = scmp.ge.s32.totalorder %s34_s17, 2  ;;  %p109_p1 = scmp.ne.s32.totalorder %s1361_s11, %s1357_s10 }
   0x7   : > { %p110_p2 = scmp.eq.s32.totalorder %s1123_s15, 1  ;;  %p115_p3 = scmp.ne.s32.totalorder %s1357_s10, %s1353_s9 }
   0x8   : > { %s1847_s17 = smov (%p36_p0, %s34_s17), 0  ;;  %p116_p5 = scmp.eq.s32.totalorder %s1124_s16, 1 }
   0x9   : > { %p1433_p4 = por %p110_p2, %p109_p1  ;;  %s94_s20 = ssub.s32 %s1369_s13, %s1847_s17 }
   0xa   : > { %p1128_p6 = scmp.ge.s32.totalorder %s1373_s14, 1  ;;  %p97_p7 = scmp.eq.s32.totalorder %s94_s20, 0 }
   0xb   : > { %p1440_p8 = por %p116_p5, %p115_p3  ;;  %p164_p9 = scmp.lt.s32.totalorder %s1373_s14, 3 }
   0xc   : > { %s1446_s22 = scalar_select %p97_p7, %s1361_s11, %s99_s18  }
   0xd   : > { %p165_p10 = pnand %p1128_p6, %p164_p9 }
   0xe   : > { %v424_v0 = vld [vmem:[%s1837_s1 + $0x8] sm:$0xff] (!%p165_p10)  ;;  %v426_v1 = vld [vmem:[%s1837_s1 + $0x18] sm:$0xff] (!%p165_p10)  ;;  %v423_v2 = vld [vmem:[%s1837_s1] sm:$0xff] (!%p165_p10)  ;;  %s1130_s7 = sshll.u32 (!%p165_p10), %s1365_s12, 5  ;;  %s198_s8 = sand.u32 (!%p165_p10), 1, %s1357_s10  }
   0xf   : > { %168 = sbr.rel (%p165_p10) target bundleno = 433 (0x1b1), region = 28  ;;  %v1142_v3 = vpack.c.bf16 (!%p165_p10), %v426_v1, %v424_v0  ;;  %v425_v4 = vld [vmem:[%s1837_s1 + $0x10] sm:$0xff] (!%p165_p10)  ;;  %v428_v5 = vld [vmem:[%s1837_s1 + $0x28] sm:$0xff] (!%p165_p10)  ;;  %v430_v6 = vld [vmem:[%s1837_s1 + $0x38] sm:$0xff] (!%p165_p10)  ;;  %p203_p11 = scmp.lt.s32.totalorder (!%p165_p10), %s1130_s7, 63 }
  0x10   : > { %v1144_v7 = vpack.c.bf16 (!%p165_p10), %v425_v4, %v423_v2  ;;  %v1146_v8 = vpack.c.bf16 (!%p165_p10), %v430_v6, %v428_v5  ;;  %v427_v9 = vld [vmem:[%s1837_s1 + $0x20] sm:$0xff] (!%p165_p10)  ;;  %v429_v10 = vld [vmem:[%s1837_s1 + $0x30] sm:$0xff] (!%p165_p10)  ;;  %v432_v11 = vld [vmem:[%s1837_s1 + $0x48] sm:$0xff] (!%p165_p10)  ;;  %s1129_s15 = sshll.u32 (!%p165_p10), %s198_s8, 9  ;;  %s1375_s26 = smov (!%p165_p10), [#allocation3]  }
  0x11   : > { %1143 = vmatprep.subr.bf16.mxu0 (!%p165_p10), %v1142_v3  ;;  %1206 = vmatprep.subr.bf16.mxu1 (!%p165_p10), %v1142_v3  ;;  %v434_v12 = vld [vmem:[%s1837_s1 + $0x58] sm:$0xff] (!%p165_p10)  ;;  %v1148_v13 = vpack.c.bf16 (!%p165_p10), %v429_v10, %v427_v9  ;;  %v431_v15 = vld [vmem:[%s1837_s1 + $0x40] sm:$0xff] (!%p165_p10)  ;;  %v433_v16 = vld [vmem:[%s1837_s1 + $0x50] sm:$0xff] (!%p165_p10)  ;;  %s1713_s18 = scalar_lea.vmem (!%p165_p10), [#allocation3], %s1129_s15  ;;  %s1299_s27 = sshll.u32 (!%p165_p10), %s1375_s26, 4  ;;  %s1300_s27 = int_to_ptr.vmem [resolvable:$false] %s1299_s27 }
  0x12   : > { %1145 = vmatpush1.bf16.xpose.msra.mxu0 (!%p165_p10), %v1144_v7  ;;  %1222 = vmatpush1.bf16.xpose.msra.mxu1 (!%p165_p10), %v1144_v7  ;;  %v1150_v14 = vpack.c.bf16 (!%p165_p10), %v434_v12, %v432_v11  ;;  %v436_v17 = vld [vmem:[%s1837_s1 + $0x68] sm:$0xff] (!%p165_p10)  ;;  %v438_v18 = vld [vmem:[%s1837_s1 + $0x78] sm:$0xff] (!%p165_p10)  ;;  %v1152_v19 = vpack.c.bf16 (!%p165_p10), %v433_v16, %v431_v15  ;;  %v435_v21 = vld [vmem:[%s1837_s1 + $0x60] sm:$0xff] (!%p165_p10)  ;;  %s1020_s20 = sshll.u32 (!%p165_p10), %s1713_s18, 4  ;;  %s1301_s28 = scalar_lea.vmem (!%p165_p10), %s1300_s27, 16384  ;;  %s1782_s20 = int_to_ptr.vmem [resolvable:$true] %s1020_s20 }
  0x13   : > { %1147 = vmatprep.subr.bf16.mxu0 (!%p165_p10), %v1146_v8  ;;  %1207 = vmatprep.subr.bf16.mxu1 (!%p165_p10), %v1146_v8  ;;  %v1154_v20 = vpack.c.bf16 (!%p165_p10), %v438_v18, %v436_v17  ;;  %v437_v22 = vld [vmem:[%s1837_s1 + $0x70] sm:$0xff] (!%p165_p10)  ;;  %v440_v25 = vld [vmem:[%s1837_s1 + $0x88] sm:$0xff] (!%p165_p10)  ;;  %v442_v26 = vld [vmem:[%s1837_s1 + $0x98] sm:$0xff] (!%p165_p10)  ;;  %s1295_s25 = scalar_lea.vmem (!%p165_p10), %s1782_s20, 8192  ;;  %p1302_p1 = scmp.lt.s32.totalorder (!%p165_p10), %s1782_s20, %s1300_s27 }
  0x14   : > { %v1156_v27 = vpack.c.bf16 (!%p165_p10), %v437_v22, %v435_v21  ;;  %v1158_v28 = vpack.c.bf16 (!%p165_p10), %v442_v26, %v440_v25  ;;  %v439_v29 = vld [vmem:[%s1837_s1 + $0x80] sm:$0xff] (!%p165_p10)  ;;  %v441_v30 = vld [vmem:[%s1837_s1 + $0x90] sm:$0xff] (!%p165_p10)  ;;  %v444_v31 = vld [vmem:[%s1837_s1 + $0xa8] sm:$0xff] (!%p165_p10)  ;;  %p1296_p12 = scmp.ne.s32.totalorder (!%p165_p10), %s1782_s20, %s1295_s25  ;;  %p1303_p2 = scmp.lt.s32.totalorder (!%p165_p10), %s1301_s28, %s1295_s25 }
  0x15   : > { %v446_v32 = vld [vmem:[%s1837_s1 + $0xb8] sm:$0xff] (!%p165_p10)  ;;  %v1160_v33 = vpack.c.bf16 (!%p165_p10), %v441_v30, %v439_v29  ;;  %v443_v35 = vld [vmem:[%s1837_s1 + $0xa0] sm:$0xff] (!%p165_p10)  ;;  %v445_v36 = vld [vmem:[%s1837_s1 + $0xb0] sm:$0xff] (!%p165_p10) }
  0x16   : > { %s1849_s7 = smov (!%p203_p11, %s1130_s7), 63  ;;  %v1162_v34 = vpack.c.bf16 %v446_v32, %v444_v31  ;;  %v448_v37 = vld [vmem:[%s1837_s1 + $0xc8] sm:$0xff]  ;;  %v450_v38 = vld [vmem:[%s1837_s1 + $0xd8] sm:$0xff]  ;;  %v1164_v39 = vpack.c.bf16 %v445_v36, %v443_v35  ;;  %v447_v41 = vld [vmem:[%s1837_s1 + $0xc0] sm:$0xff]  ;;  %p1297_p13 = pnand %p1296_p12, %p1433_p4 }
  0x17   : > { %s1139_s6 = sshll.u32 %s1849_s7, 4  ;;  %v1166_v40 = vpack.c.bf16 %v450_v38, %v448_v37  ;;  %v449_v42 = vld [vmem:[%s1837_s1 + $0xd0] sm:$0xff]  ;;  %v452_v43 = vld [vmem:[%s1837_s1 + $0xe8] sm:$0xff]  ;;  %v454_v44 = vld [vmem:[%s1837_s1 + $0xf8] sm:$0xff]  ;;  %p1304_p3 = por %p1303_p2, %p1302_p1 }
  0x18   : > { %s1494_s16 = scalar_lea.vmem %s1836_s0, %s1139_s6  ;;  %v1168_v45 = vpack.c.bf16 %v449_v42, %v447_v41  ;;  %v1170_v46 = vpack.c.bf16 %v454_v44, %v452_v43  ;;  %v451_v47 = vld [vmem:[%s1837_s1 + $0xe0] sm:$0xff]  ;;  %v453_v48 = vld [vmem:[%s1837_s1 + $0xf0] sm:$0xff]  ;;  %v456_v49 = vld [vmem:[%s1837_s1 + $0x108] sm:$0xff]  ;;  %p1298_p0 = pneg %p1297_p13 }
  0x19   : > { %v360_v23 = vld [vmem:[%s1494_s16 + $0x8] sm:$0xff]  ;;  %v458_v50 = vld [vmem:[%s1837_s1 + $0x118] sm:$0xff]  ;;  %v1172_v51 = vpack.c.bf16 %v453_v48, %v451_v47  ;;  %v455_v53 = vld [vmem:[%s1837_s1 + $0x100] sm:$0xff] }
  0x1a   : > { %1149 = vmatpush1.bf16.xpose.msra.mxu0 %v1148_v13  ;;  %1223 = vmatpush1.bf16.xpose.msra.mxu1 %v1148_v13  ;;  %v392_v24 = vld [vmem:[%s1494_s16 + $0x108] sm:$0xff]  ;;  %v1174_v52 = vpack.c.bf16 %v458_v50, %v456_v49  ;;  %v457_v54 = vld [vmem:[%s1837_s1 + $0x110] sm:$0xff]  ;;  %v462_v56 = vld [vmem:[%s1837_s1 + $0x138] sm:$0xff]  ;;  %p1305_p5 = pnand %p1304_p3, %p1298_p0 }
  0x1b   : > { %1151 = vmatprep.subr.bf16.mxu0 %v1150_v14  ;;  %1208 = vmatprep.subr.bf16.mxu1 %v1150_v14  ;;  %v460_v55 = vld [vmem:[%s1837_s1 + $0x128] sm:$0xff]  ;;  %v1176_v57 = vpack.c.bf16 %v457_v54, %v455_v53  ;;  %v459_v59 = vld [vmem:[%s1837_s1 + $0x120] sm:$0xff]  ;;  %v461_v60 = vld [vmem:[%s1837_s1 + $0x130] sm:$0xff] }
  0x1c   : > { %551 = vmatprep.mubr.f32.mxu0 %v360_v23  ;;  %647 = vmatprep.mubr.f32.mxu1 %v392_v24  ;;  %v1178_v58 = vpack.c.bf16 %v462_v56, %v460_v55  ;;  %v464_v61 = vld [vmem:[%s1837_s1 + $0x148] sm:$0xff]  ;;  %v466_v62 = vld [vmem:[%s1837_s1 + $0x158] sm:$0xff]  ;;  %v1180_v63 = vpack.c.bf16 %v461_v60, %v459_v59  ;;  %v463_v1 = vld [vmem:[%s1837_s1 + $0x140] sm:$0xff] }
  0x1d   : > { %v1182_v0 = vpack.c.bf16 %v466_v62, %v464_v61  ;;  %v465_v2 = vld [vmem:[%s1837_s1 + $0x150] sm:$0xff]  ;;  %v468_v3 = vld [vmem:[%s1837_s1 + $0x168] sm:$0xff]  ;;  %v470_v4 = vld [vmem:[%s1837_s1 + $0x178] sm:$0xff] }
  0x1e   : > { %v1184_v5 = vpack.c.bf16 %v465_v2, %v463_v1  ;;  %v1186_v6 = vpack.c.bf16 %v470_v4, %v468_v3  ;;  %v467_v7 = vld [vmem:[%s1837_s1 + $0x160] sm:$0xff]  ;;  %v469_v8 = vld [vmem:[%s1837_s1 + $0x170] sm:$0xff]  ;;  %v472_v9 = vld [vmem:[%s1837_s1 + $0x188] sm:$0xff] }
  0x1f   : > { %v474_v10 = vld [vmem:[%s1837_s1 + $0x198] sm:$0xff]  ;;  %v1188_v11 = vpack.c.bf16 %v469_v8, %v467_v7  ;;  %v471_v13 = vld [vmem:[%s1837_s1 + $0x180] sm:$0xff]  ;;  %v473_v14 = vld [vmem:[%s1837_s1 + $0x190] sm:$0xff] }
  0x20   : > { %v1190_v12 = vpack.c.bf16 %v474_v10, %v472_v9  ;;  %v476_v15 = vld [vmem:[%s1837_s1 + $0x1a8] sm:$0xff]  ;;  %v478_v16 = vld [vmem:[%s1837_s1 + $0x1b8] sm:$0xff]  ;;  %v1192_v17 = vpack.c.bf16 %v473_v14, %v471_v13  ;;  %v479_v25 = vld [vmem:[%s1837_s1 + $0x1c0] sm:$0xff] }
  0x21   : > { %v1194_v18 = vpack.c.bf16 %v478_v16, %v476_v15  ;;  %v480_v21 = vld [vmem:[%s1837_s1 + $0x1c8] sm:$0xff]  ;;  %v482_v22 = vld [vmem:[%s1837_s1 + $0x1d8] sm:$0xff]  ;;  %v481_v26 = vld [vmem:[%s1837_s1 + $0x1d0] sm:$0xff] }
  0x22   : > { %1153 = vmatpush1.bf16.xpose.msra.mxu0 %v1152_v19  ;;  %1224 = vmatpush1.bf16.xpose.msra.mxu1 %v1152_v19  ;;  %v475_v19 = vld [vmem:[%s1837_s1 + $0x1a0] sm:$0xff]  ;;  %v1198_v24 = vpack.c.bf16 %v482_v22, %v480_v21  ;;  %v1200_v29 = vpack.c.bf16 %v481_v26, %v479_v25  ;;  %v485_v32 = vld [vmem:[%s1837_s1 + $0x1f0] sm:$0xff]  ;;  %v362_v36 = vld [vmem:[%s1494_s16 + $0x18] sm:$0xff] }
  0x23   : > { %1155 = vmatprep.subr.bf16.mxu0 %v1154_v20  ;;  %1209 = vmatprep.subr.bf16.mxu1 %v1154_v20  ;;  %v477_v20 = vld [vmem:[%s1837_s1 + $0x1b0] sm:$0xff]  ;;  %v483_v31 = vld [vmem:[%s1837_s1 + $0x1e0] sm:$0xff]  ;;  %v394_v37 = vld [vmem:[%s1494_s16 + $0x118] sm:$0xff] }
  0x24   : > { %v1196_v23 = vpack.c.bf16 %v477_v20, %v475_v19  ;;  %v391_v35 = vld [vmem:[%s1494_s16 + $0x100] sm:$0xff]  ;;  %v361_v38 = vld [vmem:[%s1494_s16 + $0x10] sm:$0xff]  ;;  %v396_v41 = vld [vmem:[%s1494_s16 + $0x128] sm:$0xff] }
  0x25   : > { %v363_v42 = vld [vmem:[%s1494_s16 + $0x20] sm:$0xff]  ;;  %v366_v44 = vld [vmem:[%s1494_s16 + $0x38] sm:$0xff]  ;;  %v397_v47 = vld [vmem:[%s1494_s16 + $0x130] sm:$0xff] }
  0x26   : > { %v395_v43 = vld [vmem:[%s1494_s16 + $0x120] sm:$0xff]  ;;  %v368_v48 = vld [vmem:[%s1494_s16 + $0x48] sm:$0xff]  ;;  %v402_v53 = vld [vmem:[%s1494_s16 + $0x158] sm:$0xff] }
  0x27   : > { %v400_v49 = vld [vmem:[%s1494_s16 + $0x148] sm:$0xff]  ;;  %v367_v50 = vld [vmem:[%s1494_s16 + $0x40] sm:$0xff]  ;;  %v369_v54 = vld [vmem:[%s1494_s16 + $0x50] sm:$0xff] }
  0x28   : > { %v401_v55 = vld [vmem:[%s1494_s16 + $0x150] sm:$0xff]  ;;  %v372_v56 = vld [vmem:[%s1494_s16 + $0x68] sm:$0xff]  ;;  %v403_v59 = vld [vmem:[%s1494_s16 + $0x160] sm:$0xff] }
  0x29   : > { %v374_v60 = vld [vmem:[%s1494_s16 + $0x78] sm:$0xff]  ;;  %v373_v62 = vld [vmem:[%s1494_s16 + $0x70] sm:$0xff]  ;;  %v408_v1 = vld [vmem:[%s1494_s16 + $0x188] sm:$0xff] }
  0x2a   : > { %1157 = vmatpush1.bf16.xpose.msra.mxu0 %v1156_v27  ;;  %1225 = vmatpush1.bf16.xpose.msra.mxu1 %v1156_v27  ;;  %v484_v27 = vld [vmem:[%s1837_s1 + $0x1e8] sm:$0xff]  ;;  %v406_v61 = vld [vmem:[%s1494_s16 + $0x178] sm:$0xff]  ;;  %v375_v2 = vld [vmem:[%s1494_s16 + $0x80] sm:$0xff] }
  0x2b   : > { %1159 = vmatprep.subr.bf16.mxu0 %v1158_v28  ;;  %1210 = vmatprep.subr.bf16.mxu1 %v1158_v28  ;;  %v486_v28 = vld [vmem:[%s1837_s1 + $0x1f8] sm:$0xff]  ;;  %v407_v3 = vld [vmem:[%s1494_s16 + $0x180] sm:$0xff]  ;;  %v409_v7 = vld [vmem:[%s1494_s16 + $0x190] sm:$0xff] }
  0x2c   : > { %v1202_v30 = vpack.c.bf16 %v486_v28, %v484_v27  ;;  %v378_v4 = vld [vmem:[%s1494_s16 + $0x98] sm:$0xff]  ;;  %v380_v8 = vld [vmem:[%s1494_s16 + $0xa8] sm:$0xff]  ;;  %v379_v10 = vld [vmem:[%s1494_s16 + $0xa0] sm:$0xff] }
  0x2d   : > { %v412_v9 = vld [vmem:[%s1494_s16 + $0x1a8] sm:$0xff]  ;;  %v414_v13 = vld [vmem:[%s1494_s16 + $0x1b8] sm:$0xff]  ;;  %v381_v14 = vld [vmem:[%s1494_s16 + $0xb0] sm:$0xff] }
  0x2e   : > { %v413_v15 = vld [vmem:[%s1494_s16 + $0x1b0] sm:$0xff]  ;;  %v384_v16 = vld [vmem:[%s1494_s16 + $0xc8] sm:$0xff]  ;;  %v415_v19 = vld [vmem:[%s1494_s16 + $0x1c0] sm:$0xff] }
  0x2f   : > { %v386_v20 = vld [vmem:[%s1494_s16 + $0xd8] sm:$0xff]  ;;  %v385_v22 = vld [vmem:[%s1494_s16 + $0xd0] sm:$0xff]  ;;  %v420_v25 = vld [vmem:[%s1494_s16 + $0x1e8] sm:$0xff] }
  0x30   : > { %v418_v21 = vld [vmem:[%s1494_s16 + $0x1d8] sm:$0xff]  ;;  %v387_v26 = vld [vmem:[%s1494_s16 + $0xe0] sm:$0xff] }
  0x31   : > { %v419_v27 = vld [vmem:[%s1494_s16 + $0x1e0] sm:$0xff]  ;;  %v390_v28 = vld [vmem:[%s1494_s16 + $0xf8] sm:$0xff] }
  0x32   : > { %1161 = vmatpush1.bf16.xpose.msra.mxu0 %v1160_v33  ;;  %1226 = vmatpush1.bf16.xpose.msra.mxu1 %v1160_v33  ;;  %v1204_v33 = vpack.c.bf16 %v485_v32, %v483_v31  ;;  %v421_v31 = vld [vmem:[%s1494_s16 + $0x1f0] sm:$0xff] }
  0x33   : > { %1163 = vmatprep.subr.bf16.mxu0 %v1162_v34  ;;  %1211 = vmatprep.subr.bf16.mxu1 %v1162_v34  ;;  %v359_v34 = vld [vmem:[%s1494_s16] sm:$0xff] }
  0x3a   : > { %1165 = vmatpush1.bf16.xpose.msra.mxu0 %v1164_v39  ;;  %1227 = vmatpush1.bf16.xpose.msra.mxu1 %v1164_v39  ;;  %v393_v39 = vld [vmem:[%s1494_s16 + $0x110] sm:$0xff] }
  0x3b   : > { %1167 = vmatprep.subr.bf16.mxu0 %v1166_v40  ;;  %1212 = vmatprep.subr.bf16.mxu1 %v1166_v40  ;;  %v364_v40 = vld [vmem:[%s1494_s16 + $0x28] sm:$0xff] }
  0x42   : > { %1169 = vmatpush1.bf16.xpose.msra.mxu0 %v1168_v45  ;;  %1228 = vmatpush1.bf16.xpose.msra.mxu1 %v1168_v45  ;;  %v398_v45 = vld [vmem:[%s1494_s16 + $0x138] sm:$0xff] }
  0x43   : > { %1171 = vmatprep.subr.bf16.mxu0 %v1170_v46  ;;  %1213 = vmatprep.subr.bf16.mxu1 %v1170_v46  ;;  %v365_v46 = vld [vmem:[%s1494_s16 + $0x30] sm:$0xff] }
  0x4a   : > { %1173 = vmatpush1.bf16.xpose.msra.mxu0 %v1172_v51  ;;  %1229 = vmatpush1.bf16.xpose.msra.mxu1 %v1172_v51  ;;  %v399_v51 = vld [vmem:[%s1494_s16 + $0x140] sm:$0xff] }
  0x4b   : > { %1175 = vmatprep.subr.bf16.mxu0 %v1174_v52  ;;  %1214 = vmatprep.subr.bf16.mxu1 %v1174_v52  ;;  %v370_v52 = vld [vmem:[%s1494_s16 + $0x58] sm:$0xff] }
  0x52   : > { %1177 = vmatpush1.bf16.xpose.msra.mxu0 %v1176_v57  ;;  %1230 = vmatpush1.bf16.xpose.msra.mxu1 %v1176_v57  ;;  %v404_v57 = vld [vmem:[%s1494_s16 + $0x168] sm:$0xff] }
  0x53   : > { %1179 = vmatprep.subr.bf16.mxu0 %v1178_v58  ;;  %1215 = vmatprep.subr.bf16.mxu1 %v1178_v58  ;;  %v371_v58 = vld [vmem:[%s1494_s16 + $0x60] sm:$0xff] }
  0x5a   : > { %1181 = vmatpush1.bf16.xpose.msra.mxu0 %v1180_v63  ;;  %1231 = vmatpush1.bf16.xpose.msra.mxu1 %v1180_v63  ;;  %v405_v63 = vld [vmem:[%s1494_s16 + $0x170] sm:$0xff] }
  0x5b   : > { %1183 = vmatprep.subr.bf16.mxu0 %v1182_v0  ;;  %1216 = vmatprep.subr.bf16.mxu1 %v1182_v0  ;;  %v376_v0 = vld [vmem:[%s1494_s16 + $0x88] sm:$0xff] }
  0x62   : > { %1185 = vmatpush1.bf16.xpose.msra.mxu0 %v1184_v5  ;;  %1232 = vmatpush1.bf16.xpose.msra.mxu1 %v1184_v5  ;;  %v410_v5 = vld [vmem:[%s1494_s16 + $0x198] sm:$0xff] }
  0x63   : > { %1187 = vmatprep.subr.bf16.mxu0 %v1186_v6  ;;  %1217 = vmatprep.subr.bf16.mxu1 %v1186_v6  ;;  %v377_v6 = vld [vmem:[%s1494_s16 + $0x90] sm:$0xff] }
  0x6a   : > { %1189 = vmatpush1.bf16.xpose.msra.mxu0 %v1188_v11  ;;  %1233 = vmatpush1.bf16.xpose.msra.mxu1 %v1188_v11  ;;  %v411_v11 = vld [vmem:[%s1494_s16 + $0x1a0] sm:$0xff] }
  0x6b   : > { %1191 = vmatprep.subr.bf16.mxu0 %v1190_v12  ;;  %1218 = vmatprep.subr.bf16.mxu1 %v1190_v12  ;;  %v382_v12 = vld [vmem:[%s1494_s16 + $0xb8] sm:$0xff] }
  0x72   : > { %1193 = vmatpush1.bf16.xpose.msra.mxu0 %v1192_v17  ;;  %1234 = vmatpush1.bf16.xpose.msra.mxu1 %v1192_v17  ;;  %v416_v17 = vld [vmem:[%s1494_s16 + $0x1c8] sm:$0xff] }
  0x73   : > { %1195 = vmatprep.subr.bf16.mxu0 %v1194_v18  ;;  %1219 = vmatprep.subr.bf16.mxu1 %v1194_v18  ;;  %v383_v18 = vld [vmem:[%s1494_s16 + $0xc0] sm:$0xff] }
  0x7a   : > { %1197 = vmatpush1.bf16.xpose.msra.mxu0 %v1196_v23  ;;  %1235 = vmatpush1.bf16.xpose.msra.mxu1 %v1196_v23  ;;  %v417_v23 = vld [vmem:[%s1494_s16 + $0x1d0] sm:$0xff] }
  0x7b   : > { %1199 = vmatprep.subr.bf16.mxu0 %v1198_v24  ;;  %1220 = vmatprep.subr.bf16.mxu1 %v1198_v24  ;;  %v388_v24 = vld [vmem:[%s1494_s16 + $0xe8] sm:$0xff] }
  0x82   : > { %1201 = vmatpush1.bf16.xpose.msra.mxu0 %v1200_v29  ;;  %1236 = vmatpush1.bf16.xpose.msra.mxu1 %v1200_v29  ;;  %v422_v29 = vld [vmem:[%s1494_s16 + $0x1f8] sm:$0xff] }
  0x83   : > { %1203 = vmatprep.subr.bf16.mxu0 %v1202_v30  ;;  %1221 = vmatprep.subr.bf16.mxu1 %v1202_v30  ;;  %v389_v30 = vld [vmem:[%s1494_s16 + $0xf0] sm:$0xff]  ;;  %s1141_s16 = sshll.u32 %s1365_s12, 13  ;;  %s1790_s12 = scalar_lea.sflag [#allocation4], %s198_s8 }
  0x84   : > { %s1780_s7 = scalar_lea.hbm %s1838_s2, %s1141_s16 }
  0x8a   : > { %1205 = vmatpush1.bf16.xpose.msra.mxu0 %v1204_v33  ;;  %1237 = vmatpush1.bf16.xpose.msra.mxu1 %v1204_v33 }
  0x91   : > { %552 = vmatmul.mubr.f32.vlgmr.msra.gmra.mrb[0].mxu0 %v359_v34  ;;  %648 = vmatmul.mubr.f32.vlgmr.msra.gmra.mrb[0].mxu1 %v391_v35 }
  0x92   : > { %557 = vmatprep.mubr.f32.mxu0 %v362_v36  ;;  %653 = vmatprep.mubr.f32.mxu1 %v394_v37 }
  0x95   : > { %558 = vmatmul.mubr.f32.gmra.mrb[2].mxu0 %v361_v38  ;;  %654 = vmatmul.mubr.f32.gmra.mrb[2].mxu1 %v393_v39 }
  0x96   : > { %563 = vmatprep.mubr.f32.mxu0 %v364_v40  ;;  %659 = vmatprep.mubr.f32.mxu1 %v396_v41 }
  0x99   : > { %564 = vmatmul.mubr.f32.gmra.mrb[4].mxu0 %v363_v42  ;;  %660 = vmatmul.mubr.f32.gmra.mrb[4].mxu1 %v395_v43 }
  0x9a   : > { %569 = vmatprep.mubr.f32.mxu0 %v366_v44  ;;  %665 = vmatprep.mubr.f32.mxu1 %v398_v45 }
  0x9d   : > { %570 = vmatmul.mubr.f32.gmra.mrb[6].mxu0 %v365_v46  ;;  %666 = vmatmul.mubr.f32.gmra.mrb[6].mxu1 %v397_v47 }
  0x9e   : > { %575 = vmatprep.mubr.f32.mxu0 %v368_v48  ;;  %671 = vmatprep.mubr.f32.mxu1 %v400_v49 }
  0xa1   : > { %576 = vmatmul.mubr.f32.gmra.mrb[8].mxu0 %v367_v50  ;;  %672 = vmatmul.mubr.f32.gmra.mrb[8].mxu1 %v399_v51 }
  0xa2   : > { %581 = vmatprep.mubr.f32.mxu0 %v370_v52  ;;  %677 = vmatprep.mubr.f32.mxu1 %v402_v53 }
  0xa5   : > { %582 = vmatmul.mubr.f32.gmra.mrb[10].mxu0 %v369_v54  ;;  %678 = vmatmul.mubr.f32.gmra.mrb[10].mxu1 %v401_v55 }
  0xa6   : > { %587 = vmatprep.mubr.f32.mxu0 %v372_v56  ;;  %683 = vmatprep.mubr.f32.mxu1 %v404_v57 }
  0xa9   : > { %588 = vmatmul.mubr.f32.gmra.mrb[12].mxu0 %v371_v58  ;;  %684 = vmatmul.mubr.f32.gmra.mrb[12].mxu1 %v403_v59 }
  0xaa   : > { %593 = vmatprep.mubr.f32.mxu0 %v374_v60  ;;  %689 = vmatprep.mubr.f32.mxu1 %v406_v61 }
  0xad   : > { %594 = vmatmul.mubr.f32.gmra.mrb[14].mxu0 %v373_v62  ;;  %690 = vmatmul.mubr.f32.gmra.mrb[14].mxu1 %v405_v63 }
  0xae   : > { %599 = vmatprep.mubr.f32.mxu0 %v376_v0  ;;  %695 = vmatprep.mubr.f32.mxu1 %v408_v1 }
  0xb1   : > { %600 = vmatmul.mubr.f32.gmra.mrb[16].mxu0 %v375_v2  ;;  %696 = vmatmul.mubr.f32.gmra.mrb[16].mxu1 %v407_v3 }
  0xb2   : > { %605 = vmatprep.mubr.f32.mxu0 %v378_v4  ;;  %701 = vmatprep.mubr.f32.mxu1 %v410_v5 }
  0xb5   : > { %606 = vmatmul.mubr.f32.gmra.mrb[18].mxu0 %v377_v6  ;;  %702 = vmatmul.mubr.f32.gmra.mrb[18].mxu1 %v409_v7 }
  0xb6   : > { %611 = vmatprep.mubr.f32.mxu0 %v380_v8  ;;  %707 = vmatprep.mubr.f32.mxu1 %v412_v9 }
  0xb9   : > { %612 = vmatmul.mubr.f32.gmra.mrb[20].mxu0 %v379_v10  ;;  %708 = vmatmul.mubr.f32.gmra.mrb[20].mxu1 %v411_v11 }
  0xba   : > { %617 = vmatprep.mubr.f32.mxu0 %v382_v12  ;;  %713 = vmatprep.mubr.f32.mxu1 %v414_v13 }
  0xbd   : > { %618 = vmatmul.mubr.f32.gmra.mrb[22].mxu0 %v381_v14  ;;  %714 = vmatmul.mubr.f32.gmra.mrb[22].mxu1 %v413_v15 }
  0xbe   : > { %623 = vmatprep.mubr.f32.mxu0 %v384_v16  ;;  %719 = vmatprep.mubr.f32.mxu1 %v416_v17 }
  0xc1   : > { %624 = vmatmul.mubr.f32.gmra.mrb[24].mxu0 %v383_v18  ;;  %720 = vmatmul.mubr.f32.gmra.mrb[24].mxu1 %v415_v19 }
  0xc2   : > { %629 = vmatprep.mubr.f32.mxu0 %v386_v20  ;;  %725 = vmatprep.mubr.f32.mxu1 %v418_v21 }
  0xc5   : > { %630 = vmatmul.mubr.f32.gmra.mrb[26].mxu0 %v385_v22  ;;  %726 = vmatmul.mubr.f32.gmra.mrb[26].mxu1 %v417_v23 }
  0xc6   : > { %635 = vmatprep.mubr.f32.mxu0 %v388_v24  ;;  %731 = vmatprep.mubr.f32.mxu1 %v420_v25 }
  0xc9   : > { %636 = vmatmul.mubr.f32.gmra.mrb[28].mxu0 %v387_v26  ;;  %732 = vmatmul.mubr.f32.gmra.mrb[28].mxu1 %v419_v27 }
  0xca   : > { %641 = vmatprep.mubr.f32.mxu0 %v390_v28  ;;  %737 = vmatprep.mubr.f32.mxu1 %v422_v29 }
  0xcd   : > { %642 = vmatmul.mubr.f32.gmra.mrb[30].mxu0 %v389_v30  ;;  %738 = vmatmul.mubr.f32.gmra.mrb[30].mxu1 %v421_v31 }
 0x164   : > { %v553_v32 = vpop.f32.mrb[0].mxu0  ;;  %v649_v33 = vpop.f32.mrb[0].mxu1 }
 0x165   : > { %939 = vst [vmem:[%s1713_s18] sm:$0xff] %v553_v32  ;;  %971 = vst [vmem:[%s1713_s18 + $0x100] sm:$0xff] %v649_v33  ;;  %v555_v34 = vpop.f32.mrb[1].mxu0  ;;  %v651_v35 = vpop.f32.mrb[1].mxu1 }
 0x166   : > { %940 = vst [vmem:[%s1713_s18 + $0x8] sm:$0xff] %v555_v34  ;;  %972 = vst [vmem:[%s1713_s18 + $0x108] sm:$0xff] %v651_v35 }
 0x168   : > { %v559_v36 = vpop.f32.mrb[2].mxu0  ;;  %v655_v37 = vpop.f32.mrb[2].mxu1 }
 0x169   : > { %941 = vst [vmem:[%s1713_s18 + $0x10] sm:$0xff] %v559_v36  ;;  %973 = vst [vmem:[%s1713_s18 + $0x110] sm:$0xff] %v655_v37  ;;  %v561_v38 = vpop.f32.mrb[3].mxu0  ;;  %v657_v39 = vpop.f32.mrb[3].mxu1 }
 0x16a   : > { %942 = vst [vmem:[%s1713_s18 + $0x18] sm:$0xff] %v561_v38  ;;  %974 = vst [vmem:[%s1713_s18 + $0x118] sm:$0xff] %v657_v39 }
 0x16c   : > { %v565_v40 = vpop.f32.mrb[4].mxu0  ;;  %v661_v41 = vpop.f32.mrb[4].mxu1 }
 0x16d   : > { %943 = vst [vmem:[%s1713_s18 + $0x20] sm:$0xff] %v565_v40  ;;  %975 = vst [vmem:[%s1713_s18 + $0x120] sm:$0xff] %v661_v41  ;;  %v567_v42 = vpop.f32.mrb[5].mxu0  ;;  %v663_v43 = vpop.f32.mrb[5].mxu1 }
 0x16e   : > { %944 = vst [vmem:[%s1713_s18 + $0x28] sm:$0xff] %v567_v42  ;;  %976 = vst [vmem:[%s1713_s18 + $0x128] sm:$0xff] %v663_v43 }
 0x170   : > { %v571_v44 = vpop.f32.mrb[6].mxu0  ;;  %v667_v45 = vpop.f32.mrb[6].mxu1 }
 0x171   : > { %945 = vst [vmem:[%s1713_s18 + $0x30] sm:$0xff] %v571_v44  ;;  %977 = vst [vmem:[%s1713_s18 + $0x130] sm:$0xff] %v667_v45  ;;  %v573_v46 = vpop.f32.mrb[7].mxu0  ;;  %v669_v47 = vpop.f32.mrb[7].mxu1 }
 0x172   : > { %946 = vst [vmem:[%s1713_s18 + $0x38] sm:$0xff] %v573_v46  ;;  %978 = vst [vmem:[%s1713_s18 + $0x138] sm:$0xff] %v669_v47 }
 0x174   : > { %v577_v48 = vpop.f32.mrb[8].mxu0  ;;  %v673_v49 = vpop.f32.mrb[8].mxu1 }
 0x175   : > { %947 = vst [vmem:[%s1713_s18 + $0x40] sm:$0xff] %v577_v48  ;;  %979 = vst [vmem:[%s1713_s18 + $0x140] sm:$0xff] %v673_v49  ;;  %v579_v50 = vpop.f32.mrb[9].mxu0  ;;  %v675_v51 = vpop.f32.mrb[9].mxu1 }
 0x176   : > { %948 = vst [vmem:[%s1713_s18 + $0x48] sm:$0xff] %v579_v50  ;;  %980 = vst [vmem:[%s1713_s18 + $0x148] sm:$0xff] %v675_v51 }
 0x178   : > { %v583_v52 = vpop.f32.mrb[10].mxu0  ;;  %v679_v53 = vpop.f32.mrb[10].mxu1 }
 0x179   : > { %949 = vst [vmem:[%s1713_s18 + $0x50] sm:$0xff] %v583_v52  ;;  %981 = vst [vmem:[%s1713_s18 + $0x150] sm:$0xff] %v679_v53  ;;  %v585_v54 = vpop.f32.mrb[11].mxu0  ;;  %v681_v55 = vpop.f32.mrb[11].mxu1 }
 0x17a   : > { %950 = vst [vmem:[%s1713_s18 + $0x58] sm:$0xff] %v585_v54  ;;  %982 = vst [vmem:[%s1713_s18 + $0x158] sm:$0xff] %v681_v55 }
 0x17c   : > { %v589_v56 = vpop.f32.mrb[12].mxu0  ;;  %v685_v57 = vpop.f32.mrb[12].mxu1 }
 0x17d   : > { %951 = vst [vmem:[%s1713_s18 + $0x60] sm:$0xff] %v589_v56  ;;  %983 = vst [vmem:[%s1713_s18 + $0x160] sm:$0xff] %v685_v57  ;;  %v591_v58 = vpop.f32.mrb[13].mxu0  ;;  %v687_v59 = vpop.f32.mrb[13].mxu1 }
 0x17e   : > { %952 = vst [vmem:[%s1713_s18 + $0x68] sm:$0xff] %v591_v58  ;;  %984 = vst [vmem:[%s1713_s18 + $0x168] sm:$0xff] %v687_v59 }
 0x180   : > { %v595_v60 = vpop.f32.mrb[14].mxu0  ;;  %v691_v61 = vpop.f32.mrb[14].mxu1 }
 0x181   : > { %953 = vst [vmem:[%s1713_s18 + $0x70] sm:$0xff] %v595_v60  ;;  %985 = vst [vmem:[%s1713_s18 + $0x170] sm:$0xff] %v691_v61  ;;  %v597_v62 = vpop.f32.mrb[15].mxu0  ;;  %v693_v63 = vpop.f32.mrb[15].mxu1 }
 0x182   : > { %954 = vst [vmem:[%s1713_s18 + $0x78] sm:$0xff] %v597_v62  ;;  %986 = vst [vmem:[%s1713_s18 + $0x178] sm:$0xff] %v693_v63 }
 0x184   : > { %v601_v0 = vpop.f32.mrb[16].mxu0  ;;  %v697_v1 = vpop.f32.mrb[16].mxu1 }
 0x185   : > { %955 = vst [vmem:[%s1713_s18 + $0x80] sm:$0xff] %v601_v0  ;;  %987 = vst [vmem:[%s1713_s18 + $0x180] sm:$0xff] %v697_v1  ;;  %v603_v2 = vpop.f32.mrb[17].mxu0  ;;  %v699_v3 = vpop.f32.mrb[17].mxu1 }
 0x186   : > { %956 = vst [vmem:[%s1713_s18 + $0x88] sm:$0xff] %v603_v2  ;;  %988 = vst [vmem:[%s1713_s18 + $0x188] sm:$0xff] %v699_v3 }
 0x188   : > { %v607_v4 = vpop.f32.mrb[18].mxu0  ;;  %v703_v5 = vpop.f32.mrb[18].mxu1 }
 0x189   : > { %957 = vst [vmem:[%s1713_s18 + $0x90] sm:$0xff] %v607_v4  ;;  %989 = vst [vmem:[%s1713_s18 + $0x190] sm:$0xff] %v703_v5  ;;  %v609_v6 = vpop.f32.mrb[19].mxu0  ;;  %v705_v7 = vpop.f32.mrb[19].mxu1 }
 0x18a   : > { %958 = vst [vmem:[%s1713_s18 + $0x98] sm:$0xff] %v609_v6  ;;  %990 = vst [vmem:[%s1713_s18 + $0x198] sm:$0xff] %v705_v7 }
 0x18c   : > { %v613_v8 = vpop.f32.mrb[20].mxu0  ;;  %v709_v9 = vpop.f32.mrb[20].mxu1 }
 0x18d   : > { %959 = vst [vmem:[%s1713_s18 + $0xa0] sm:$0xff] %v613_v8  ;;  %991 = vst [vmem:[%s1713_s18 + $0x1a0] sm:$0xff] %v709_v9  ;;  %v615_v10 = vpop.f32.mrb[21].mxu0  ;;  %v711_v11 = vpop.f32.mrb[21].mxu1 }
 0x18e   : > { %960 = vst [vmem:[%s1713_s18 + $0xa8] sm:$0xff] %v615_v10  ;;  %992 = vst [vmem:[%s1713_s18 + $0x1a8] sm:$0xff] %v711_v11 }
 0x190   : > { %v619_v12 = vpop.f32.mrb[22].mxu0  ;;  %v715_v13 = vpop.f32.mrb[22].mxu1 }
 0x191   : > { %961 = vst [vmem:[%s1713_s18 + $0xb0] sm:$0xff] %v619_v12  ;;  %993 = vst [vmem:[%s1713_s18 + $0x1b0] sm:$0xff] %v715_v13  ;;  %v621_v14 = vpop.f32.mrb[23].mxu0  ;;  %v717_v15 = vpop.f32.mrb[23].mxu1 }
 0x192   : > { %962 = vst [vmem:[%s1713_s18 + $0xb8] sm:$0xff] %v621_v14  ;;  %994 = vst [vmem:[%s1713_s18 + $0x1b8] sm:$0xff] %v717_v15 }
 0x194   : > { %v625_v16 = vpop.f32.mrb[24].mxu0  ;;  %v721_v17 = vpop.f32.mrb[24].mxu1 }
 0x195   : > { %963 = vst [vmem:[%s1713_s18 + $0xc0] sm:$0xff] %v625_v16  ;;  %995 = vst [vmem:[%s1713_s18 + $0x1c0] sm:$0xff] %v721_v17  ;;  %v627_v18 = vpop.f32.mrb[25].mxu0  ;;  %v723_v19 = vpop.f32.mrb[25].mxu1 }
 0x196   : > { %964 = vst [vmem:[%s1713_s18 + $0xc8] sm:$0xff] %v627_v18  ;;  %996 = vst [vmem:[%s1713_s18 + $0x1c8] sm:$0xff] %v723_v19 }
 0x198   : > { %v631_v20 = vpop.f32.mrb[26].mxu0  ;;  %v727_v21 = vpop.f32.mrb[26].mxu1 }
 0x199   : > { %965 = vst [vmem:[%s1713_s18 + $0xd0] sm:$0xff] %v631_v20  ;;  %997 = vst [vmem:[%s1713_s18 + $0x1d0] sm:$0xff] %v727_v21  ;;  %v633_v22 = vpop.f32.mrb[27].mxu0  ;;  %v729_v23 = vpop.f32.mrb[27].mxu1 }
 0x19a   : > { %966 = vst [vmem:[%s1713_s18 + $0xd8] sm:$0xff] %v633_v22  ;;  %998 = vst [vmem:[%s1713_s18 + $0x1d8] sm:$0xff] %v729_v23 }
 0x19c   : > { %v637_v24 = vpop.f32.mrb[28].mxu0  ;;  %v733_v25 = vpop.f32.mrb[28].mxu1 }
 0x19d   : > { %967 = vst [vmem:[%s1713_s18 + $0xe0] sm:$0xff] %v637_v24  ;;  %999 = vst [vmem:[%s1713_s18 + $0x1e0] sm:$0xff] %v733_v25  ;;  %v639_v26 = vpop.f32.mrb[29].mxu0  ;;  %v735_v27 = vpop.f32.mrb[29].mxu1 }
 0x19e   : > { %968 = vst [vmem:[%s1713_s18 + $0xe8] sm:$0xff] %v639_v26  ;;  %1000 = vst [vmem:[%s1713_s18 + $0x1e8] sm:$0xff] %v735_v27 }
 0x1a0   : > { %v643_v28 = vpop.f32.mrb[30].mxu0  ;;  %v739_v29 = vpop.f32.mrb[30].mxu1 }
 0x1a1   : > { %969 = vst [vmem:[%s1713_s18 + $0xf0] sm:$0xff] %v643_v28  ;;  %1001 = vst [vmem:[%s1713_s18 + $0x1f0] sm:$0xff] %v739_v29  ;;  %v645_v30 = vpop.f32.mrb[31].mxu0  ;;  %v741_v31 = vpop.f32.mrb[31].mxu1 }
 0x1a2   : > { %970 = vst [vmem:[%s1713_s18 + $0xf8] sm:$0xff] %v645_v30  ;;  %1002 = vst [vmem:[%s1713_s18 + $0x1f8] sm:$0xff] %v741_v31 }
 0x1a3   : > { %1308 = shalt.err (!%p1305_p5)
}
 0x1a4   : > { %s1309_s29 = scalar_lea.hbm %s1780_s7, 8192  ;;  %s1313_s4 = scalar_lea.hbm %s1838_s2, 16384 }
 0x1a5   : > { %p1310_p6 = scmp.ne.s32.totalorder %s1780_s7, %s1309_s29  ;;  %p1314_p10 = scmp.lt.u32.totalorder %s1780_s7, %s1838_s2 }
 0x1a6   : > { %p1315_p11 = scmp.lt.u32.totalorder %s1313_s4, %s1309_s29  ;;  %p1317_p13 = scmp.lt.u32.totalorder %s1309_s29, %s1780_s7 }
 0x1a7   : > { %p1311_p7 = pnand %p1310_p6, %p1433_p4 }
 0x1a8   : > { %p1316_p12 = por %p1315_p11, %p1314_p10 }
 0x1a9   : > { %p1312_p9 = pneg %p1311_p7 }
 0x1aa   : > { %p1318_p0 = por %p1317_p13, %p1316_p12 }
 0x1ac   : > { %p1319_p1 = pnand %p1318_p0, %p1312_p9 }
 0x1ae   : > { %1322 = shalt.err (!%p1319_p1)
}
 0x1af   : > { %s1376_s8 = smov 256   ;;  %s1377_s15 = smov 16  }
 0x1b0   : > { %1238 = dma.vmem_to_hbm [thread:$0]  (%p1433_p4), %s1782_s20, 8192, %s1780_s7, %s1790_s12, %s1376_s8, %s1376_s8, %s1377_s15  }
 0x1b1 PF: > { %p1244_p2 = scmp.ge.s32.totalorder %s1373_s14, 2  ;;  %s1035_s18 = sand.u32 1, %s1353_s9  }
 0x1b2   : > { %s1036_s16 = scalar_lea.sflag [#allocation4], %s1035_s18 }
 0x1b3   : > { %p1241_p3 = pnand %p1244_p2, %p1440_p8 }
 0x1b5   : > { %1348 = dma.done.wait (!%p1241_p3), %s1036_s16, 8192  }
 0x1b6   : > { %1350 = vsyncadd (!%p1241_p3), %s1036_s16, 4294959104  ;;  %s15_s14 = sadd.s32 1, %s1373_s14   ;;  %s1841_s9 = smov %s1357_s10 }
 0x1b7   : > { %p12_p5 = scmp.ge.s32.totalorder %s15_s14, 4   ;;  %s1842_s10 = smov %s1361_s11 }
 0x1b8   : > { %s1843_s11 = smov %s1446_s22  ;;  %s1844_s12 = smov %s1369_s13 }
 0x1b9   : > { %s1845_s13 = smov %s1847_s17  ;;  %14 = sbr.rel (!%p12_p5) target bundleno = 4 (0x4), region = 74 }
 0x1c0   :  { %1041 = vsyncpa [#allocation4], 1 }
 0x1c1   :  { %1043 = vsyncpa [#allocation4 + $0x1], 1 }

// kernel: causal_self_attention_forward.3
= control target key start
LH: loop header
LB: loop body
LE: loop exit
PB: predicated region body
PF: predicated region fallthrough
CT: control target
= control target key end

     0   :  { %s2337_s0 = inlined_call_operand.hbm [shape: f32[512,256], index: 0, kind: input, shape index: {}]   ;;  %s2338_s1 = inlined_call_operand.hbm [shape: f32[768,256], index: 1, kind: input, shape index: {}]   ;;  %s2339_s2 = inlined_call_operand.vmem [shape: f32[512,768], index: 2, kind: output, shape index: {}]  }
   0x1   :  { %2348 = sst [smem:[#allocation13_spill]] %s2337_s0 }
   0x2   :  { %2349 = sst [smem:[#allocation14_spill]] %s2339_s2 }
   0x3   :  { %7 = vsyncpa [#allocation4], 0 }
   0x4   :  { %9 = vsyncpa [#allocation4 + $0x1], 0 }
   0x5   :  { %10 = vsyncpa [#allocation6], 0 }
   0x6   :  { %12 = vsyncpa [#allocation6 + $0x1], 0  ;;  %s1708_s9 = smov 0   ;;  %s1710_s10 = smov 0  }
   0x7   :  { %s1712_s11 = smov 0   ;;  %s1714_s12 = smov 0  }
   0x8   :  { %s1716_s13 = smov 0   ;;  %s1718_s14 = smov 0  }
   0x9   :  { %s1720_s15 = smov 0   ;;  %s1722_s16 = smov 0  }
   0xa   :  { %s1724_s17 = smov 0   ;;  %s1726_s18 = smov 0  }
   0xb   :  { %s1728_s19 = smov 0   ;;  %s1730_s20 = smov 0  }
   0xc   :  { %s1732_s21 = smov 0  }
   0xd LB: > { %s1275_s22 = sadd.s32 4294967295, %s1687_s21   ;;  %s37_s23 = sadd.s32 1, %s1683_s20  ;;  %s1687_s21 = sphi %s1732_s21, %s18_s21   ;;  %s1683_s20 = sphi %s1730_s20, %s2387_s20   ;;  %s1679_s19 = sphi %s1728_s19, %s2386_s19   ;;  %s1675_s18 = sphi %s1726_s18, %s2385_s18   ;;  %s1671_s17 = sphi %s1724_s17, %s2384_s17   ;;  %s1667_s16 = sphi %s1722_s16, %s2383_s16   ;;  %s1663_s15 = sphi %s1720_s15, %s2382_s15   ;;  %s1659_s14 = sphi %s1718_s14, %s2381_s14   ;;  %s1655_s13 = sphi %s1716_s13, %s2380_s13   ;;  %s1651_s12 = sphi %s1714_s12, %s2379_s12   ;;  %s1647_s11 = sphi %s1712_s11, %s2378_s11   ;;  %s1643_s10 = sphi %s1710_s10, %s2377_s10   ;;  %s1639_s9 = sphi %s1708_s9, %s2376_s9  }
   0xe   : > { %s46_s24 = sadd.s32 1, %s1667_s16  ;;  %p53_p0 = scmp.ne.s32.totalorder %s1667_s16, %s1663_s15 }
   0xf   : > { %p2341_p1 = scmp.eq.s32.totalorder %s1687_s21, 0  ;;  %p59_p2 = scmp.ne.s32.totalorder %s1663_s15, %s1659_s14 }
  0x10   : > { %p1778_p3 = scmp.eq.s32.totalorder %s1275_s22, 0  ;;  %p1782_p4 = scmp.eq.s32.totalorder %s1275_s22, 5 }
  0x11   : > { %p55_p5 = por %p2341_p1, %p53_p0  ;;  %p2340_p7 = scmp.lt.s32.totalorder %s1687_s21, 6 }
  0x12   : > { %s2351_s26 = scalar_select %p1782_p4, 1, 0 }
  0x13   : > { %p1790_p6 = por %p1778_p3, %p59_p2  ;;  %s139_s28 = sand.u32 1, %s1667_s16  }
  0x14   : > { %s1299_s29 = sshll.u32 %s1683_s20, 13  ;;  %s1279_s30 = sshll.u32 %s139_s28, 9 }
  0x15   : > { %s2352_s27 = scalar_select %p1790_p6, 1, 0 }
  0x16   : > { %s2353_s0 = sld [smem:[#allocation13_spill]]  ;;  %s143_s6 = scalar_lea.vmem [#allocation3], %s1279_s30 }
  0x17   : > { %s153_s7 = sshll.u32 %s143_s6, 4  ;;  %p1804_p8 = pnand %p2340_p7, %p55_p5  ;;  %s1808_s7 = int_to_ptr.vmem [resolvable:$true] %s153_s7 }
  0x18   : > { %s1810_s14 = scalar_lea.sflag [#allocation4], %s139_s28 }
  0x19   : > { %p1519_p10 = pneg %p1804_p8 }
  0x1c   : > { %s1800_s5 = scalar_lea.hbm %s2353_s0, %s1299_s29  ;;  %s1522_s3 = scalar_lea.hbm %s2353_s0, 16384 }
  0x1d   : > { %s1517_s22 = scalar_lea.hbm %s1800_s5, 8192  ;;  %p1523_p13 = scmp.lt.u32.totalorder %s1800_s5, %s2353_s0 }
  0x1e   : > { %p1518_p9 = scmp.ne.s32.totalorder %s1800_s5, %s1517_s22  ;;  %p1524_p0 = scmp.lt.u32.totalorder %s1522_s3, %s1517_s22 }
  0x1f   : > { %p1526_p5 = scmp.lt.u32.totalorder %s1517_s22, %s1800_s5 }
  0x20   : > { %p1520_p11 = pnand %p1519_p10, %p1518_p9  ;;  %p1525_p2 = por %p1524_p0, %p1523_p13 }
  0x22   : > { %p1521_p12 = pneg %p1520_p11  ;;  %p1527_p7 = por %p1526_p5, %p1525_p2 }
  0x24   : > { %p1528_p1 = pnand %p1527_p7, %p1521_p12 }
  0x26   : > { %1531 = shalt.err (!%p1528_p1)
}
  0x27   : > { %s1532_s28 = scalar_lea.vmem %s1808_s7, 8192  ;;  %s1689_s29 = smov [#allocation3]  }
  0x28   : > { %p1533_p9 = scmp.ne.s32.totalorder %s1808_s7, %s1532_s28  ;;  %s1537_s30 = sshll.u32 %s1689_s29, 4  ;;  %s1538_s30 = int_to_ptr.vmem [resolvable:$false] %s1537_s30 }
  0x29   : > { %s1539_s4 = scalar_lea.vmem %s1538_s30, 16384  ;;  %p1540_p4 = scmp.lt.s32.totalorder %s1808_s7, %s1538_s30 }
  0x2a   : > { %p1535_p11 = pnand %p1533_p9, %p1519_p10  ;;  %p1541_p13 = scmp.lt.s32.totalorder %s1539_s4, %s1532_s28 }
  0x2c   : > { %p1536_p6 = pneg %p1535_p11  ;;  %p1542_p0 = por %p1541_p13, %p1540_p4 }
  0x2e   : > { %p1543_p2 = pnand %p1542_p0, %p1536_p6 }
  0x30   : > { %1546 = shalt.err (!%p1543_p2)
}
  0x31   : > { %s2343_s22 = smov 256   ;;  %s2344_s3 = smov 16  }
  0x32   : > { %1406 = dma.hbm_to_vmem [thread:$0]  (!%p1804_p8), %s1800_s5, 8192, %s1808_s7, %s1810_s14, %s2343_s22, %s2343_s22, %s2344_s3  }
  0x33   : > { %p1287_p1 = scmp.ge.s32.totalorder %s1687_s21, 1  ;;  %p185_p4 = scmp.lt.s32.totalorder %s1687_s21, 7 }
  0x34   : > { %s33_s28 = sadd.s32 1, %s1679_s19  ;;  %s74_s29 = sadd.s32 1, %s1655_s13 }
  0x35   : > { %p1843_p6 = pnand %p1287_p1, %p185_p4  ;;  %p35_p7 = scmp.ge.s32.totalorder %s33_s28, 3 }
  0x36   : > { %p81_p10 = scmp.ne.s32.totalorder %s1655_s13, %s1651_s12  ;;  %p87_p12 = scmp.ne.s32.totalorder %s1651_s12, %s1647_s11 }
  0x37   : > { %s2389_s28 = smov (%p35_p7, %s33_s28), 0  ;;  %s2391_s23 = smov (!%p35_p7, %s37_s23), %s1683_s20 }
  0x38   : > { %2356 = sst [smem:[#allocation10_spill]] %s2389_s28  ;;  %s69_s5 = ssub.s32 %s1679_s19, %s2389_s28 }
  0x39   : > { %p2357_p8 = scmp.eq.s32.totalorder %s1687_s21, 0  ;;  %p39_p9 = scmp.ge.s32.totalorder %s2391_s23, 2 }
  0x3a   : > { %p72_p11 = scmp.eq.s32.totalorder %s69_s5, 0  ;;  %p1868_p13 = por %p87_p12, %p1778_p3 }
  0x3b   : > { %p1862_p5 = por %p81_p10, %p2357_p8  ;;  %s102_s8 = sadd.s32 1, %s1643_s10 }
  0x3c   : > { %s2359_s11 = scalar_select %p1868_p13, 1, 0 }
  0x3d   : > { %s2393_s23 = smov (%p39_p9, %s2391_s23), 0  ;;  %p112_p0 = scmp.ne.s32.totalorder %s1643_s10, %s1639_s9 }
  0x3e   : > { %2360 = sst [smem:[#allocation11_spill]] %s2393_s23  ;;  %s41_s30 = ssub.s32 %s1683_s20, %s2393_s23 }
  0x3f   : > { %s1876_s14 = scalar_select %p72_p11, %s1655_s13, %s74_s29  }
  0x40   : > { %p44_p2 = scmp.eq.s32.totalorder %s41_s30, 0  ;;  %s99_s4 = sor.u32 %s69_s5, %s41_s30 }
  0x41   : > { %2361 = sst [smem:[#allocation12_spill]] %s1876_s14  ;;  %p100_p1 = scmp.eq.s32.totalorder %s99_s4, 0 }
  0x42   : > { %p2362_p4 = scmp.ne.s32.totalorder %s2351_s26, 0  ;;  %s163_s0 = sand.u32 1, %s1655_s13  }
  0x43   : > { %s1891_s22 = scalar_select %p44_p2, %s1667_s16, %s46_s24  }
  0x44   : > { %p1884_p7 = por %p2362_p4, %p112_p0  ;;  %s1301_s28 = sshll.u32 %s1679_s19, 13 }
  0x45   : > { %s1894_s3 = scalar_select %p100_p1, %s1643_s10, %s102_s8  }
  0x46   : > { %s2363_s25 = scalar_select %p1884_p7, 1, 0 }
  0x47   : > { %s1283_s2 = sshll.u32 %s163_s0, 9  ;;  %s1901_s23 = scalar_lea.hbm %s2338_s1, %s1301_s28 }
  0x48   : > { %s167_s26 = scalar_lea.vmem [#allocation5], %s1283_s2  ;;  %p2364_p3 = scmp.lt.s32.totalorder %s1687_s21, 6 }
  0x49   : > { %s177_s5 = sshll.u32 %s167_s26, 4  ;;  %s1913_s8 = scalar_lea.sflag [#allocation6], %s163_s0  ;;  %s1911_s5 = int_to_ptr.vmem [resolvable:$true] %s177_s5 }
  0x4a   : > { %p1907_p10 = pnand %p2364_p3, %p1862_p5  ;;  %s1547_s28 = scalar_lea.hbm %s1901_s23, 8192 }
  0x4b   : > { %p1548_p12 = scmp.ne.s32.totalorder %s1901_s23, %s1547_s28  ;;  %s1552_s14 = scalar_lea.hbm %s2338_s1, 24576 }
  0x4c   : > { %p1549_p8 = pneg %p1907_p10  ;;  %p1553_p5 = scmp.lt.u32.totalorder %s1901_s23, %s2338_s1 }
  0x4d   : > { %p1554_p0 = scmp.lt.u32.totalorder %s1552_s14, %s1547_s28  ;;  %p1556_p1 = scmp.lt.u32.totalorder %s1547_s28, %s1901_s23 }
  0x4e   : > { %p1550_p9 = pnand %p1549_p8, %p1548_p12 }
  0x4f   : > { %p1555_p2 = por %p1554_p0, %p1553_p5 }
  0x50   : > { %p1551_p11 = pneg %p1550_p9 }
  0x51   : > { %p1557_p4 = por %p1556_p1, %p1555_p2 }
  0x53   : > { %p1558_p3 = pnand %p1557_p4, %p1551_p11 }
  0x55   : > { %1561 = shalt.err (!%p1558_p3)
}
  0x56   : > { %s1562_s0 = scalar_lea.vmem %s1911_s5, 8192  ;;  %s1692_s29 = smov [#allocation5]  }
  0x57   : > { %p1563_p12 = scmp.ne.s32.totalorder %s1911_s5, %s1562_s0  ;;  %s1567_s26 = sshll.u32 %s1692_s29, 4  ;;  %s1568_s26 = int_to_ptr.vmem [resolvable:$false] %s1567_s26 }
  0x58   : > { %s1569_s2 = scalar_lea.vmem %s1568_s26, 16384  ;;  %p1570_p13 = scmp.lt.s32.totalorder %s1911_s5, %s1568_s26 }
  0x59   : > { %p1565_p9 = pnand %p1563_p12, %p1549_p8  ;;  %p1571_p5 = scmp.lt.s32.totalorder %s1569_s2, %s1562_s0 }
  0x5b   : > { %p1566_p7 = pneg %p1565_p9  ;;  %p1572_p0 = por %p1571_p5, %p1570_p13 }
  0x5d   : > { %p1573_p2 = pnand %p1572_p0, %p1566_p7 }
  0x5f   : > { %1576 = shalt.err (!%p1573_p2)
}
  0x60   : > { %s2366_s28 = smov 16   ;;  %s2367_s7 = smov 256  }
  0x61   : > { %1409 = dma.hbm_to_vmem [thread:$0]  (!%p1907_p10), %s1901_s23, 8192, %s1911_s5, %s1913_s8, %s2367_s7, %s2367_s7, %s2366_s28  }
  0x62   : > { %189 = sbr.rel (%p1843_p6) target bundleno = 527 (0x20f), region = 28  ;;  %s191_s14 = sand.u32 (!%p1843_p6), 1, %s1663_s15  }
  0x63   : > { %s1288_s30 = sshll.u32 (!%p1843_p6), %s191_s14, 9  ;;  %s192_s4 = scalar_lea.sflag (!%p1843_p6), [#allocation4], %s191_s14 }
  0x64   : > { %s1947_s0 = scalar_lea.vmem (!%p1843_p6), [#allocation3], %s1288_s30  ;;  %p2368_p13 = scmp.ne.s32.totalorder (!%p1843_p6), %s2352_s27, 0 }
  0x69   : > { %1630 = dma.done.wait (%p2368_p13), %s192_s4, 8192  }
  0x6a   : > { %1632 = vsyncadd (%p2368_p13), %s192_s4, 4294959104  ;;  %s200_s24 = sand.u32 1, %s1651_s12   ;;  %p2369_p6 = scmp.ne.s32.totalorder %s2359_s11, 0 }
  0x6b   : > { %s1289_s29 = sshll.u32 %s200_s24, 9  ;;  %s201_s23 = scalar_lea.sflag [#allocation6], %s200_s24 }
  0x6c   : > { %s1954_s5 = scalar_lea.vmem [#allocation5], %s1289_s29 }
  0x6d   : > { %1634 = dma.done.wait (%p2369_p6), %s201_s23, 8192  }
  0x6e   : > { %1636 = vsyncadd (%p2369_p6), %s201_s23, 4294959104  ;;  %v432_v0 = vld [vmem:[%s1954_s5 + $0x8] sm:$0xff]  ;;  %v434_v1 = vld [vmem:[%s1954_s5 + $0x18] sm:$0xff]  ;;  %s226_s27 = sand.u32 1, %s1639_s9   ;;  %p2370_p7 = scmp.ne.s32.totalorder %s2363_s25, 0 }
  0x6f   : > { %v431_v2 = vld [vmem:[%s1954_s5] sm:$0xff]  ;;  %v1302_v3 = vpack.c.bf16 %v434_v1, %v432_v0  ;;  %v433_v4 = vld [vmem:[%s1954_s5 + $0x10] sm:$0xff]  ;;  %v436_v5 = vld [vmem:[%s1954_s5 + $0x28] sm:$0xff]  ;;  %s1290_s6 = sshll.u32 %s226_s27, 9  ;;  %s1293_s9 = sshll.u32 (%p2370_p7), %s1671_s17, 1 }
  0x70   : > { %v438_v6 = vld [vmem:[%s1954_s5 + $0x38] sm:$0xff]  ;;  %v1304_v7 = vpack.c.bf16 %v433_v4, %v431_v2  ;;  %v435_v9 = vld [vmem:[%s1954_s5 + $0x20] sm:$0xff]  ;;  %v437_v10 = vld [vmem:[%s1954_s5 + $0x30] sm:$0xff]  ;;  %s2089_s11 = scalar_lea.vmem [#allocation7], %s1290_s6  ;;  %s1398_s8 = smul.u32 (%p2370_p7), 192, %s1675_s18 }
  0x71   : > { %v1306_v8 = vpack.c.bf16 %v438_v6, %v436_v5  ;;  %1303 = vmatprep.subr.bf16.mxu0 %v1302_v3  ;;  %1366 = vmatprep.subr.bf16.mxu1 %v1302_v3  ;;  %v440_v11 = vld [vmem:[%s1954_s5 + $0x48] sm:$0xff]  ;;  %v442_v12 = vld [vmem:[%s1954_s5 + $0x58] sm:$0xff]  ;;  %v1308_v13 = vpack.c.bf16 %v437_v10, %v435_v9  ;;  %v439_v15 = vld [vmem:[%s1954_s5 + $0x40] sm:$0xff]  ;;  %s2371_s18 = sld [smem:[#allocation14_spill]] (%p2370_p7) }
  0x72   : > { %1305 = vmatpush1.bf16.xpose.msra.mxu0 %v1304_v7  ;;  %1382 = vmatpush1.bf16.xpose.msra.mxu1 %v1304_v7  ;;  %v1310_v14 = vpack.c.bf16 %v442_v12, %v440_v11  ;;  %v441_v16 = vld [vmem:[%s1954_s5 + $0x50] sm:$0xff]  ;;  %v444_v17 = vld [vmem:[%s1954_s5 + $0x68] sm:$0xff]  ;;  %v446_v18 = vld [vmem:[%s1954_s5 + $0x78] sm:$0xff]  ;;  %s1021_s25 = sadd.s32 (%p2370_p7), %s1398_s8, %s1293_s9 }
  0x73   : > { %1307 = vmatprep.subr.bf16.mxu0 %v1306_v8  ;;  %1367 = vmatprep.subr.bf16.mxu1 %v1306_v8  ;;  %v1312_v19 = vpack.c.bf16 %v441_v16, %v439_v15  ;;  %v1314_v20 = vpack.c.bf16 %v446_v18, %v444_v17  ;;  %v443_v21 = vld [vmem:[%s1954_s5 + $0x60] sm:$0xff]  ;;  %v445_v22 = vld [vmem:[%s1954_s5 + $0x70] sm:$0xff]  ;;  %v368_v23 = vld [vmem:[%s1947_s0 + $0x8] sm:$0xff]  ;;  %s1295_s26 = sshll.u32 (%p2370_p7), %s1021_s25, 3 }
  0x74   : > { %v400_v24 = vld [vmem:[%s1947_s0 + $0x108] sm:$0xff]  ;;  %v450_v26 = vld [vmem:[%s1954_s5 + $0x98] sm:$0xff]  ;;  %559 = vmatprep.mubr.f32.mxu0 %v368_v23  ;;  %v1316_v27 = vpack.c.bf16 %v445_v22, %v443_v21  ;;  %v447_v29 = vld [vmem:[%s1954_s5 + $0x80] sm:$0xff] }
  0x75   : > { %v448_v25 = vld [vmem:[%s1954_s5 + $0x88] sm:$0xff]  ;;  %655 = vmatprep.mubr.f32.mxu1 %v400_v24  ;;  %v449_v30 = vld [vmem:[%s1954_s5 + $0x90] sm:$0xff]  ;;  %v454_v32 = vld [vmem:[%s1954_s5 + $0xb8] sm:$0xff] }
  0x76   : > { %v1318_v28 = vpack.c.bf16 %v450_v26, %v448_v25  ;;  %v452_v31 = vld [vmem:[%s1954_s5 + $0xa8] sm:$0xff]  ;;  %v1320_v33 = vpack.c.bf16 %v449_v30, %v447_v29  ;;  %v451_v35 = vld [vmem:[%s1954_s5 + $0xa0] sm:$0xff]  ;;  %v453_v36 = vld [vmem:[%s1954_s5 + $0xb0] sm:$0xff] }
  0x77   : > { %v1322_v34 = vpack.c.bf16 %v454_v32, %v452_v31  ;;  %v456_v37 = vld [vmem:[%s1954_s5 + $0xc8] sm:$0xff]  ;;  %v458_v38 = vld [vmem:[%s1954_s5 + $0xd8] sm:$0xff]  ;;  %v1324_v39 = vpack.c.bf16 %v453_v36, %v451_v35  ;;  %v455_v41 = vld [vmem:[%s1954_s5 + $0xc0] sm:$0xff]  ;;  %s2174_s28 = scalar_lea.vmem (%p2370_p7), %s2371_s18, %s1295_s26 }
  0x78   : > { %v1326_v40 = vpack.c.bf16 %v458_v38, %v456_v37  ;;  %v457_v42 = vld [vmem:[%s1954_s5 + $0xd0] sm:$0xff]  ;;  %v460_v43 = vld [vmem:[%s1954_s5 + $0xe8] sm:$0xff]  ;;  %v462_v44 = vld [vmem:[%s1954_s5 + $0xf8] sm:$0xff] }
  0x79   : > { %v1328_v45 = vpack.c.bf16 %v457_v42, %v455_v41  ;;  %v1330_v46 = vpack.c.bf16 %v462_v44, %v460_v43  ;;  %v459_v47 = vld [vmem:[%s1954_s5 + $0xe0] sm:$0xff]  ;;  %v461_v48 = vld [vmem:[%s1954_s5 + $0xf0] sm:$0xff]  ;;  %v464_v49 = vld [vmem:[%s1954_s5 + $0x108] sm:$0xff] }
  0x7a   : > { %1309 = vmatpush1.bf16.xpose.msra.mxu0 %v1308_v13  ;;  %1383 = vmatpush1.bf16.xpose.msra.mxu1 %v1308_v13  ;;  %v466_v50 = vld [vmem:[%s1954_s5 + $0x118] sm:$0xff]  ;;  %v1332_v51 = vpack.c.bf16 %v461_v48, %v459_v47  ;;  %v463_v53 = vld [vmem:[%s1954_s5 + $0x100] sm:$0xff]  ;;  %v465_v54 = vld [vmem:[%s1954_s5 + $0x110] sm:$0xff] }
  0x7b   : > { %1311 = vmatprep.subr.bf16.mxu0 %v1310_v14  ;;  %1368 = vmatprep.subr.bf16.mxu1 %v1310_v14  ;;  %v1334_v52 = vpack.c.bf16 %v466_v50, %v464_v49  ;;  %v468_v55 = vld [vmem:[%s1954_s5 + $0x128] sm:$0xff]  ;;  %v470_v56 = vld [vmem:[%s1954_s5 + $0x138] sm:$0xff]  ;;  %v1336_v57 = vpack.c.bf16 %v465_v54, %v463_v53  ;;  %v467_v59 = vld [vmem:[%s1954_s5 + $0x120] sm:$0xff] }
  0x7c   : > { %v1338_v58 = vpack.c.bf16 %v470_v56, %v468_v55  ;;  %v469_v60 = vld [vmem:[%s1954_s5 + $0x130] sm:$0xff]  ;;  %v472_v61 = vld [vmem:[%s1954_s5 + $0x148] sm:$0xff]  ;;  %v474_v62 = vld [vmem:[%s1954_s5 + $0x158] sm:$0xff] }
  0x7d   : > { %v1340_v63 = vpack.c.bf16 %v469_v60, %v467_v59  ;;  %v1342_v0 = vpack.c.bf16 %v474_v62, %v472_v61  ;;  %v471_v1 = vld [vmem:[%s1954_s5 + $0x140] sm:$0xff]  ;;  %v473_v2 = vld [vmem:[%s1954_s5 + $0x150] sm:$0xff]  ;;  %v476_v3 = vld [vmem:[%s1954_s5 + $0x168] sm:$0xff] }
  0x7e   : > { %v478_v4 = vld [vmem:[%s1954_s5 + $0x178] sm:$0xff]  ;;  %v1344_v5 = vpack.c.bf16 %v473_v2, %v471_v1  ;;  %v475_v7 = vld [vmem:[%s1954_s5 + $0x160] sm:$0xff]  ;;  %v477_v8 = vld [vmem:[%s1954_s5 + $0x170] sm:$0xff] }
  0x7f   : > { %v1346_v6 = vpack.c.bf16 %v478_v4, %v476_v3  ;;  %v480_v9 = vld [vmem:[%s1954_s5 + $0x188] sm:$0xff]  ;;  %v482_v10 = vld [vmem:[%s1954_s5 + $0x198] sm:$0xff]  ;;  %v1348_v11 = vpack.c.bf16 %v477_v8, %v475_v7  ;;  %v479_v13 = vld [vmem:[%s1954_s5 + $0x180] sm:$0xff] }
  0x80   : > { %v1350_v12 = vpack.c.bf16 %v482_v10, %v480_v9  ;;  %v481_v14 = vld [vmem:[%s1954_s5 + $0x190] sm:$0xff]  ;;  %v484_v15 = vld [vmem:[%s1954_s5 + $0x1a8] sm:$0xff]  ;;  %v486_v16 = vld [vmem:[%s1954_s5 + $0x1b8] sm:$0xff] }
  0x81   : > { %v1352_v17 = vpack.c.bf16 %v481_v14, %v479_v13  ;;  %v1354_v18 = vpack.c.bf16 %v486_v16, %v484_v15  ;;  %v488_v21 = vld [vmem:[%s1954_s5 + $0x1c8] sm:$0xff]  ;;  %v490_v22 = vld [vmem:[%s1954_s5 + $0x1d8] sm:$0xff]  ;;  %v487_v25 = vld [vmem:[%s1954_s5 + $0x1c0] sm:$0xff] }
  0x82   : > { %1313 = vmatpush1.bf16.xpose.msra.mxu0 %v1312_v19  ;;  %1384 = vmatpush1.bf16.xpose.msra.mxu1 %v1312_v19  ;;  %v483_v19 = vld [vmem:[%s1954_s5 + $0x1a0] sm:$0xff]  ;;  %v1358_v24 = vpack.c.bf16 %v490_v22, %v488_v21  ;;  %v489_v26 = vld [vmem:[%s1954_s5 + $0x1d0] sm:$0xff]  ;;  %v370_v36 = vld [vmem:[%s1947_s0 + $0x18] sm:$0xff] }
  0x83   : > { %1315 = vmatprep.subr.bf16.mxu0 %v1314_v20  ;;  %1369 = vmatprep.subr.bf16.mxu1 %v1314_v20  ;;  %v485_v20 = vld [vmem:[%s1954_s5 + $0x1b0] sm:$0xff]  ;;  %v1360_v29 = vpack.c.bf16 %v489_v26, %v487_v25  ;;  %v491_v31 = vld [vmem:[%s1954_s5 + $0x1e0] sm:$0xff]  ;;  %v402_v37 = vld [vmem:[%s1947_s0 + $0x118] sm:$0xff] }
  0x84   : > { %v1356_v23 = vpack.c.bf16 %v485_v20, %v483_v19  ;;  %v493_v32 = vld [vmem:[%s1954_s5 + $0x1f0] sm:$0xff]  ;;  %v399_v35 = vld [vmem:[%s1947_s0 + $0x100] sm:$0xff]  ;;  %v404_v41 = vld [vmem:[%s1947_s0 + $0x128] sm:$0xff] }
  0x85   : > { %v369_v38 = vld [vmem:[%s1947_s0 + $0x10] sm:$0xff]  ;;  %v371_v42 = vld [vmem:[%s1947_s0 + $0x20] sm:$0xff]  ;;  %v374_v44 = vld [vmem:[%s1947_s0 + $0x38] sm:$0xff] }
  0x86   : > { %v403_v43 = vld [vmem:[%s1947_s0 + $0x120] sm:$0xff]  ;;  %v405_v47 = vld [vmem:[%s1947_s0 + $0x130] sm:$0xff]  ;;  %v376_v48 = vld [vmem:[%s1947_s0 + $0x48] sm:$0xff] }
  0x87   : > { %v408_v49 = vld [vmem:[%s1947_s0 + $0x148] sm:$0xff]  ;;  %v375_v50 = vld [vmem:[%s1947_s0 + $0x40] sm:$0xff]  ;;  %v410_v53 = vld [vmem:[%s1947_s0 + $0x158] sm:$0xff] }
  0x88   : > { %v377_v54 = vld [vmem:[%s1947_s0 + $0x50] sm:$0xff]  ;;  %v380_v56 = vld [vmem:[%s1947_s0 + $0x68] sm:$0xff]  ;;  %v411_v59 = vld [vmem:[%s1947_s0 + $0x160] sm:$0xff] }
  0x89   : > { %v409_v55 = vld [vmem:[%s1947_s0 + $0x150] sm:$0xff]  ;;  %v382_v60 = vld [vmem:[%s1947_s0 + $0x78] sm:$0xff]  ;;  %v416_v1 = vld [vmem:[%s1947_s0 + $0x188] sm:$0xff] }
  0x8a   : > { %1317 = vmatpush1.bf16.xpose.msra.mxu0 %v1316_v27  ;;  %1385 = vmatpush1.bf16.xpose.msra.mxu1 %v1316_v27  ;;  %v492_v27 = vld [vmem:[%s1954_s5 + $0x1e8] sm:$0xff]  ;;  %v414_v61 = vld [vmem:[%s1947_s0 + $0x178] sm:$0xff]  ;;  %v381_v62 = vld [vmem:[%s1947_s0 + $0x70] sm:$0xff] }
  0x8b   : > { %1319 = vmatprep.subr.bf16.mxu0 %v1318_v28  ;;  %1370 = vmatprep.subr.bf16.mxu1 %v1318_v28  ;;  %v494_v28 = vld [vmem:[%s1954_s5 + $0x1f8] sm:$0xff]  ;;  %v383_v2 = vld [vmem:[%s1947_s0 + $0x80] sm:$0xff]  ;;  %v417_v7 = vld [vmem:[%s1947_s0 + $0x190] sm:$0xff] }
  0x8c   : > { %v1362_v30 = vpack.c.bf16 %v494_v28, %v492_v27  ;;  %v415_v3 = vld [vmem:[%s1947_s0 + $0x180] sm:$0xff]  ;;  %v386_v4 = vld [vmem:[%s1947_s0 + $0x98] sm:$0xff]  ;;  %v388_v8 = vld [vmem:[%s1947_s0 + $0xa8] sm:$0xff] }
  0x8d   : > { %v420_v9 = vld [vmem:[%s1947_s0 + $0x1a8] sm:$0xff]  ;;  %v387_v10 = vld [vmem:[%s1947_s0 + $0xa0] sm:$0xff]  ;;  %v422_v13 = vld [vmem:[%s1947_s0 + $0x1b8] sm:$0xff] }
  0x8e   : > { %v389_v14 = vld [vmem:[%s1947_s0 + $0xb0] sm:$0xff]  ;;  %v392_v16 = vld [vmem:[%s1947_s0 + $0xc8] sm:$0xff]  ;;  %v423_v19 = vld [vmem:[%s1947_s0 + $0x1c0] sm:$0xff] }
  0x8f   : > { %v421_v15 = vld [vmem:[%s1947_s0 + $0x1b0] sm:$0xff]  ;;  %v394_v20 = vld [vmem:[%s1947_s0 + $0xd8] sm:$0xff]  ;;  %v428_v25 = vld [vmem:[%s1947_s0 + $0x1e8] sm:$0xff] }
  0x90   : > { %v426_v21 = vld [vmem:[%s1947_s0 + $0x1d8] sm:$0xff]  ;;  %v393_v22 = vld [vmem:[%s1947_s0 + $0xd0] sm:$0xff]  ;;  %v395_v26 = vld [vmem:[%s1947_s0 + $0xe0] sm:$0xff] }
  0x91   : > { %v427_v27 = vld [vmem:[%s1947_s0 + $0x1e0] sm:$0xff]  ;;  %v398_v28 = vld [vmem:[%s1947_s0 + $0xf8] sm:$0xff] }
  0x92   : > { %1321 = vmatpush1.bf16.xpose.msra.mxu0 %v1320_v33  ;;  %1386 = vmatpush1.bf16.xpose.msra.mxu1 %v1320_v33  ;;  %v1364_v33 = vpack.c.bf16 %v493_v32, %v491_v31  ;;  %v429_v31 = vld [vmem:[%s1947_s0 + $0x1f0] sm:$0xff] }
  0x93   : > { %1323 = vmatprep.subr.bf16.mxu0 %v1322_v34  ;;  %1371 = vmatprep.subr.bf16.mxu1 %v1322_v34  ;;  %v367_v34 = vld [vmem:[%s1947_s0] sm:$0xff] }
  0x9a   : > { %1325 = vmatpush1.bf16.xpose.msra.mxu0 %v1324_v39  ;;  %1387 = vmatpush1.bf16.xpose.msra.mxu1 %v1324_v39  ;;  %v401_v39 = vld [vmem:[%s1947_s0 + $0x110] sm:$0xff] }
  0x9b   : > { %1327 = vmatprep.subr.bf16.mxu0 %v1326_v40  ;;  %1372 = vmatprep.subr.bf16.mxu1 %v1326_v40  ;;  %v372_v40 = vld [vmem:[%s1947_s0 + $0x28] sm:$0xff] }
  0xa2   : > { %1329 = vmatpush1.bf16.xpose.msra.mxu0 %v1328_v45  ;;  %1388 = vmatpush1.bf16.xpose.msra.mxu1 %v1328_v45  ;;  %v406_v45 = vld [vmem:[%s1947_s0 + $0x138] sm:$0xff] }
  0xa3   : > { %1331 = vmatprep.subr.bf16.mxu0 %v1330_v46  ;;  %1373 = vmatprep.subr.bf16.mxu1 %v1330_v46  ;;  %v373_v46 = vld [vmem:[%s1947_s0 + $0x30] sm:$0xff] }
  0xaa   : > { %1333 = vmatpush1.bf16.xpose.msra.mxu0 %v1332_v51  ;;  %1389 = vmatpush1.bf16.xpose.msra.mxu1 %v1332_v51  ;;  %v407_v51 = vld [vmem:[%s1947_s0 + $0x140] sm:$0xff] }
  0xab   : > { %1335 = vmatprep.subr.bf16.mxu0 %v1334_v52  ;;  %1374 = vmatprep.subr.bf16.mxu1 %v1334_v52  ;;  %v378_v52 = vld [vmem:[%s1947_s0 + $0x58] sm:$0xff] }
  0xb2   : > { %1337 = vmatpush1.bf16.xpose.msra.mxu0 %v1336_v57  ;;  %1390 = vmatpush1.bf16.xpose.msra.mxu1 %v1336_v57  ;;  %v412_v57 = vld [vmem:[%s1947_s0 + $0x168] sm:$0xff] }
  0xb3   : > { %1339 = vmatprep.subr.bf16.mxu0 %v1338_v58  ;;  %1375 = vmatprep.subr.bf16.mxu1 %v1338_v58  ;;  %v379_v58 = vld [vmem:[%s1947_s0 + $0x60] sm:$0xff] }
  0xba   : > { %1341 = vmatpush1.bf16.xpose.msra.mxu0 %v1340_v63  ;;  %1391 = vmatpush1.bf16.xpose.msra.mxu1 %v1340_v63  ;;  %v413_v63 = vld [vmem:[%s1947_s0 + $0x170] sm:$0xff] }
  0xbb   : > { %1343 = vmatprep.subr.bf16.mxu0 %v1342_v0  ;;  %1376 = vmatprep.subr.bf16.mxu1 %v1342_v0  ;;  %v384_v0 = vld [vmem:[%s1947_s0 + $0x88] sm:$0xff] }
  0xc2   : > { %1345 = vmatpush1.bf16.xpose.msra.mxu0 %v1344_v5  ;;  %1392 = vmatpush1.bf16.xpose.msra.mxu1 %v1344_v5  ;;  %v418_v5 = vld [vmem:[%s1947_s0 + $0x198] sm:$0xff] }
  0xc3   : > { %1347 = vmatprep.subr.bf16.mxu0 %v1346_v6  ;;  %1377 = vmatprep.subr.bf16.mxu1 %v1346_v6  ;;  %v385_v6 = vld [vmem:[%s1947_s0 + $0x90] sm:$0xff] }
  0xca   : > { %1349 = vmatpush1.bf16.xpose.msra.mxu0 %v1348_v11  ;;  %1393 = vmatpush1.bf16.xpose.msra.mxu1 %v1348_v11  ;;  %v419_v11 = vld [vmem:[%s1947_s0 + $0x1a0] sm:$0xff] }
  0xcb   : > { %1351 = vmatprep.subr.bf16.mxu0 %v1350_v12  ;;  %1378 = vmatprep.subr.bf16.mxu1 %v1350_v12  ;;  %v390_v12 = vld [vmem:[%s1947_s0 + $0xb8] sm:$0xff] }
  0xd2   : > { %1353 = vmatpush1.bf16.xpose.msra.mxu0 %v1352_v17  ;;  %1394 = vmatpush1.bf16.xpose.msra.mxu1 %v1352_v17  ;;  %v424_v17 = vld [vmem:[%s1947_s0 + $0x1c8] sm:$0xff] }
  0xd3   : > { %1355 = vmatprep.subr.bf16.mxu0 %v1354_v18  ;;  %1379 = vmatprep.subr.bf16.mxu1 %v1354_v18  ;;  %v391_v18 = vld [vmem:[%s1947_s0 + $0xc0] sm:$0xff] }
  0xda   : > { %1357 = vmatpush1.bf16.xpose.msra.mxu0 %v1356_v23  ;;  %1395 = vmatpush1.bf16.xpose.msra.mxu1 %v1356_v23  ;;  %v425_v23 = vld [vmem:[%s1947_s0 + $0x1d0] sm:$0xff] }
  0xdb   : > { %1359 = vmatprep.subr.bf16.mxu0 %v1358_v24  ;;  %1380 = vmatprep.subr.bf16.mxu1 %v1358_v24  ;;  %v396_v24 = vld [vmem:[%s1947_s0 + $0xe8] sm:$0xff] }
  0xe2   : > { %1361 = vmatpush1.bf16.xpose.msra.mxu0 %v1360_v29  ;;  %1396 = vmatpush1.bf16.xpose.msra.mxu1 %v1360_v29  ;;  %v430_v29 = vld [vmem:[%s1947_s0 + $0x1f8] sm:$0xff] }
  0xe3   : > { %1363 = vmatprep.subr.bf16.mxu0 %v1362_v30  ;;  %1381 = vmatprep.subr.bf16.mxu1 %v1362_v30  ;;  %v397_v30 = vld [vmem:[%s1947_s0 + $0xf0] sm:$0xff] }
  0xea   : > { %1365 = vmatpush1.bf16.xpose.msra.mxu0 %v1364_v33  ;;  %1397 = vmatpush1.bf16.xpose.msra.mxu1 %v1364_v33 }
  0xf1   : > { %560 = vmatmul.mubr.f32.vlgmr.msra.gmra.mrb[0].mxu0 %v367_v34  ;;  %656 = vmatmul.mubr.f32.vlgmr.msra.gmra.mrb[0].mxu1 %v399_v35 }
  0xf2   : > { %565 = vmatprep.mubr.f32.mxu0 %v370_v36  ;;  %661 = vmatprep.mubr.f32.mxu1 %v402_v37 }
  0xf5   : > { %566 = vmatmul.mubr.f32.gmra.mrb[2].mxu0 %v369_v38  ;;  %662 = vmatmul.mubr.f32.gmra.mrb[2].mxu1 %v401_v39 }
  0xf6   : > { %571 = vmatprep.mubr.f32.mxu0 %v372_v40  ;;  %667 = vmatprep.mubr.f32.mxu1 %v404_v41 }
  0xf9   : > { %572 = vmatmul.mubr.f32.gmra.mrb[4].mxu0 %v371_v42  ;;  %668 = vmatmul.mubr.f32.gmra.mrb[4].mxu1 %v403_v43 }
  0xfa   : > { %577 = vmatprep.mubr.f32.mxu0 %v374_v44  ;;  %673 = vmatprep.mubr.f32.mxu1 %v406_v45 }
  0xfd   : > { %578 = vmatmul.mubr.f32.gmra.mrb[6].mxu0 %v373_v46  ;;  %674 = vmatmul.mubr.f32.gmra.mrb[6].mxu1 %v405_v47 }
  0xfe   : > { %583 = vmatprep.mubr.f32.mxu0 %v376_v48  ;;  %679 = vmatprep.mubr.f32.mxu1 %v408_v49 }
 0x101   : > { %584 = vmatmul.mubr.f32.gmra.mrb[8].mxu0 %v375_v50  ;;  %680 = vmatmul.mubr.f32.gmra.mrb[8].mxu1 %v407_v51 }
 0x102   : > { %589 = vmatprep.mubr.f32.mxu0 %v378_v52  ;;  %685 = vmatprep.mubr.f32.mxu1 %v410_v53 }
 0x105   : > { %590 = vmatmul.mubr.f32.gmra.mrb[10].mxu0 %v377_v54  ;;  %686 = vmatmul.mubr.f32.gmra.mrb[10].mxu1 %v409_v55 }
 0x106   : > { %595 = vmatprep.mubr.f32.mxu0 %v380_v56  ;;  %691 = vmatprep.mubr.f32.mxu1 %v412_v57 }
 0x109   : > { %596 = vmatmul.mubr.f32.gmra.mrb[12].mxu0 %v379_v58  ;;  %692 = vmatmul.mubr.f32.gmra.mrb[12].mxu1 %v411_v59 }
 0x10a   : > { %601 = vmatprep.mubr.f32.mxu0 %v382_v60  ;;  %697 = vmatprep.mubr.f32.mxu1 %v414_v61 }
 0x10d   : > { %602 = vmatmul.mubr.f32.gmra.mrb[14].mxu0 %v381_v62  ;;  %698 = vmatmul.mubr.f32.gmra.mrb[14].mxu1 %v413_v63 }
 0x10e   : > { %607 = vmatprep.mubr.f32.mxu0 %v384_v0  ;;  %703 = vmatprep.mubr.f32.mxu1 %v416_v1 }
 0x111   : > { %608 = vmatmul.mubr.f32.gmra.mrb[16].mxu0 %v383_v2  ;;  %704 = vmatmul.mubr.f32.gmra.mrb[16].mxu1 %v415_v3 }
 0x112   : > { %613 = vmatprep.mubr.f32.mxu0 %v386_v4  ;;  %709 = vmatprep.mubr.f32.mxu1 %v418_v5 }
 0x115   : > { %614 = vmatmul.mubr.f32.gmra.mrb[18].mxu0 %v385_v6  ;;  %710 = vmatmul.mubr.f32.gmra.mrb[18].mxu1 %v417_v7 }
 0x116   : > { %619 = vmatprep.mubr.f32.mxu0 %v388_v8  ;;  %715 = vmatprep.mubr.f32.mxu1 %v420_v9 }
 0x119   : > { %620 = vmatmul.mubr.f32.gmra.mrb[20].mxu0 %v387_v10  ;;  %716 = vmatmul.mubr.f32.gmra.mrb[20].mxu1 %v419_v11 }
 0x11a   : > { %625 = vmatprep.mubr.f32.mxu0 %v390_v12  ;;  %721 = vmatprep.mubr.f32.mxu1 %v422_v13 }
 0x11d   : > { %626 = vmatmul.mubr.f32.gmra.mrb[22].mxu0 %v389_v14  ;;  %722 = vmatmul.mubr.f32.gmra.mrb[22].mxu1 %v421_v15 }
 0x11e   : > { %631 = vmatprep.mubr.f32.mxu0 %v392_v16  ;;  %727 = vmatprep.mubr.f32.mxu1 %v424_v17 }
 0x121   : > { %632 = vmatmul.mubr.f32.gmra.mrb[24].mxu0 %v391_v18  ;;  %728 = vmatmul.mubr.f32.gmra.mrb[24].mxu1 %v423_v19 }
 0x122   : > { %637 = vmatprep.mubr.f32.mxu0 %v394_v20  ;;  %733 = vmatprep.mubr.f32.mxu1 %v426_v21 }
 0x125   : > { %638 = vmatmul.mubr.f32.gmra.mrb[26].mxu0 %v393_v22  ;;  %734 = vmatmul.mubr.f32.gmra.mrb[26].mxu1 %v425_v23 }
 0x126   : > { %643 = vmatprep.mubr.f32.mxu0 %v396_v24  ;;  %739 = vmatprep.mubr.f32.mxu1 %v428_v25 }
 0x129   : > { %644 = vmatmul.mubr.f32.gmra.mrb[28].mxu0 %v395_v26  ;;  %740 = vmatmul.mubr.f32.gmra.mrb[28].mxu1 %v427_v27 }
 0x12a   : > { %649 = vmatprep.mubr.f32.mxu0 %v398_v28  ;;  %745 = vmatprep.mubr.f32.mxu1 %v430_v29 }
 0x12d   : > { %650 = vmatmul.mubr.f32.gmra.mrb[30].mxu0 %v397_v30  ;;  %746 = vmatmul.mubr.f32.gmra.mrb[30].mxu1 %v429_v31 }
 0x1c4   : > { %v561_v32 = vpop.f32.mrb[0].mxu0  ;;  %v657_v33 = vpop.f32.mrb[0].mxu1 }
 0x1c5   : > { %947 = vst [vmem:[%s2089_s11] sm:$0xff] %v561_v32  ;;  %979 = vst [vmem:[%s2089_s11 + $0x100] sm:$0xff] %v657_v33  ;;  %v563_v34 = vpop.f32.mrb[1].mxu0  ;;  %v659_v35 = vpop.f32.mrb[1].mxu1 }
 0x1c6   : > { %948 = vst [vmem:[%s2089_s11 + $0x8] sm:$0xff] %v563_v34  ;;  %980 = vst [vmem:[%s2089_s11 + $0x108] sm:$0xff] %v659_v35 }
 0x1c8   : > { %v567_v36 = vpop.f32.mrb[2].mxu0  ;;  %v663_v37 = vpop.f32.mrb[2].mxu1 }
 0x1c9   : > { %949 = vst [vmem:[%s2089_s11 + $0x10] sm:$0xff] %v567_v36  ;;  %981 = vst [vmem:[%s2089_s11 + $0x110] sm:$0xff] %v663_v37  ;;  %v569_v38 = vpop.f32.mrb[3].mxu0  ;;  %v665_v39 = vpop.f32.mrb[3].mxu1 }
 0x1ca   : > { %950 = vst [vmem:[%s2089_s11 + $0x18] sm:$0xff] %v569_v38  ;;  %982 = vst [vmem:[%s2089_s11 + $0x118] sm:$0xff] %v665_v39 }
 0x1cc   : > { %v573_v40 = vpop.f32.mrb[4].mxu0  ;;  %v669_v41 = vpop.f32.mrb[4].mxu1  ;;  %v1036_v32 = vld [vmem:[%s2089_s11] sm:$0xff] (%p2370_p7) }
 0x1cd   : > { %951 = vst [vmem:[%s2089_s11 + $0x20] sm:$0xff] %v573_v40  ;;  %983 = vst [vmem:[%s2089_s11 + $0x120] sm:$0xff] %v669_v41  ;;  %v575_v42 = vpop.f32.mrb[5].mxu0  ;;  %v671_v43 = vpop.f32.mrb[5].mxu1  ;;  %v1038_v33 = vld [vmem:[%s2089_s11 + $0x8] sm:$0xff] (%p2370_p7) }
 0x1ce   : > { %952 = vst [vmem:[%s2089_s11 + $0x28] sm:$0xff] %v575_v42  ;;  %984 = vst [vmem:[%s2089_s11 + $0x128] sm:$0xff] %v671_v43 }
 0x1cf   : > { %1037 = vst [vmem:[%s2174_s28] sm:$0xff] (%p2370_p7), %v1036_v32  ;;  %1039 = vst [vmem:[%s2174_s28 + $0x8] sm:$0xff] (%p2370_p7), %v1038_v33 }
 0x1d0   : > { %v579_v44 = vpop.f32.mrb[6].mxu0  ;;  %v675_v45 = vpop.f32.mrb[6].mxu1  ;;  %v1040_v34 = vld [vmem:[%s2089_s11 + $0x10] sm:$0xff] (%p2370_p7) }
 0x1d1   : > { %953 = vst [vmem:[%s2089_s11 + $0x30] sm:$0xff] %v579_v44  ;;  %985 = vst [vmem:[%s2089_s11 + $0x130] sm:$0xff] %v675_v45  ;;  %v581_v46 = vpop.f32.mrb[7].mxu0  ;;  %v677_v47 = vpop.f32.mrb[7].mxu1  ;;  %v1042_v35 = vld [vmem:[%s2089_s11 + $0x18] sm:$0xff] (%p2370_p7) }
 0x1d2   : > { %954 = vst [vmem:[%s2089_s11 + $0x38] sm:$0xff] %v581_v46  ;;  %986 = vst [vmem:[%s2089_s11 + $0x138] sm:$0xff] %v677_v47 }
 0x1d3   : > { %1041 = vst [vmem:[%s2174_s28 + $0x30] sm:$0xff] (%p2370_p7), %v1040_v34  ;;  %1043 = vst [vmem:[%s2174_s28 + $0x38] sm:$0xff] (%p2370_p7), %v1042_v35 }
 0x1d4   : > { %v585_v48 = vpop.f32.mrb[8].mxu0  ;;  %v681_v49 = vpop.f32.mrb[8].mxu1  ;;  %v1044_v36 = vld [vmem:[%s2089_s11 + $0x20] sm:$0xff] (%p2370_p7) }
 0x1d5   : > { %955 = vst [vmem:[%s2089_s11 + $0x40] sm:$0xff] %v585_v48  ;;  %987 = vst [vmem:[%s2089_s11 + $0x140] sm:$0xff] %v681_v49  ;;  %v587_v50 = vpop.f32.mrb[9].mxu0  ;;  %v683_v51 = vpop.f32.mrb[9].mxu1  ;;  %v1046_v37 = vld [vmem:[%s2089_s11 + $0x28] sm:$0xff] (%p2370_p7) }
 0x1d6   : > { %956 = vst [vmem:[%s2089_s11 + $0x48] sm:$0xff] %v587_v50  ;;  %988 = vst [vmem:[%s2089_s11 + $0x148] sm:$0xff] %v683_v51 }
 0x1d7   : > { %1045 = vst [vmem:[%s2174_s28 + $0x60] sm:$0xff] (%p2370_p7), %v1044_v36  ;;  %1047 = vst [vmem:[%s2174_s28 + $0x68] sm:$0xff] (%p2370_p7), %v1046_v37 }
 0x1d8   : > { %v591_v52 = vpop.f32.mrb[10].mxu0  ;;  %v687_v53 = vpop.f32.mrb[10].mxu1  ;;  %v1048_v38 = vld [vmem:[%s2089_s11 + $0x30] sm:$0xff] (%p2370_p7) }
 0x1d9   : > { %957 = vst [vmem:[%s2089_s11 + $0x50] sm:$0xff] %v591_v52  ;;  %989 = vst [vmem:[%s2089_s11 + $0x150] sm:$0xff] %v687_v53  ;;  %v593_v54 = vpop.f32.mrb[11].mxu0  ;;  %v689_v55 = vpop.f32.mrb[11].mxu1  ;;  %v1050_v39 = vld [vmem:[%s2089_s11 + $0x38] sm:$0xff] (%p2370_p7) }
 0x1da   : > { %958 = vst [vmem:[%s2089_s11 + $0x58] sm:$0xff] %v593_v54  ;;  %990 = vst [vmem:[%s2089_s11 + $0x158] sm:$0xff] %v689_v55 }
 0x1db   : > { %1049 = vst [vmem:[%s2174_s28 + $0x90] sm:$0xff] (%p2370_p7), %v1048_v38  ;;  %1051 = vst [vmem:[%s2174_s28 + $0x98] sm:$0xff] (%p2370_p7), %v1050_v39 }
 0x1dc   : > { %v597_v56 = vpop.f32.mrb[12].mxu0  ;;  %v693_v57 = vpop.f32.mrb[12].mxu1  ;;  %v1052_v40 = vld [vmem:[%s2089_s11 + $0x40] sm:$0xff] (%p2370_p7) }
 0x1dd   : > { %959 = vst [vmem:[%s2089_s11 + $0x60] sm:$0xff] %v597_v56  ;;  %991 = vst [vmem:[%s2089_s11 + $0x160] sm:$0xff] %v693_v57  ;;  %v599_v58 = vpop.f32.mrb[13].mxu0  ;;  %v695_v59 = vpop.f32.mrb[13].mxu1  ;;  %v1054_v41 = vld [vmem:[%s2089_s11 + $0x48] sm:$0xff] (%p2370_p7) }
 0x1de   : > { %960 = vst [vmem:[%s2089_s11 + $0x68] sm:$0xff] %v599_v58  ;;  %992 = vst [vmem:[%s2089_s11 + $0x168] sm:$0xff] %v695_v59 }
 0x1df   : > { %1053 = vst [vmem:[%s2174_s28 + $0xc0] sm:$0xff] (%p2370_p7), %v1052_v40  ;;  %1055 = vst [vmem:[%s2174_s28 + $0xc8] sm:$0xff] (%p2370_p7), %v1054_v41 }
 0x1e0   : > { %v603_v60 = vpop.f32.mrb[14].mxu0  ;;  %v699_v61 = vpop.f32.mrb[14].mxu1  ;;  %v1056_v42 = vld [vmem:[%s2089_s11 + $0x50] sm:$0xff] (%p2370_p7) }
 0x1e1   : > { %961 = vst [vmem:[%s2089_s11 + $0x70] sm:$0xff] %v603_v60  ;;  %993 = vst [vmem:[%s2089_s11 + $0x170] sm:$0xff] %v699_v61  ;;  %v605_v62 = vpop.f32.mrb[15].mxu0  ;;  %v701_v63 = vpop.f32.mrb[15].mxu1  ;;  %v1058_v43 = vld [vmem:[%s2089_s11 + $0x58] sm:$0xff] (%p2370_p7) }
 0x1e2   : > { %962 = vst [vmem:[%s2089_s11 + $0x78] sm:$0xff] %v605_v62  ;;  %994 = vst [vmem:[%s2089_s11 + $0x178] sm:$0xff] %v701_v63 }
 0x1e3   : > { %1057 = vst [vmem:[%s2174_s28 + $0xf0] sm:$0xff] (%p2370_p7), %v1056_v42  ;;  %1059 = vst [vmem:[%s2174_s28 + $0xf8] sm:$0xff] (%p2370_p7), %v1058_v43 }
 0x1e4   : > { %v609_v0 = vpop.f32.mrb[16].mxu0  ;;  %v705_v1 = vpop.f32.mrb[16].mxu1  ;;  %v1060_v44 = vld [vmem:[%s2089_s11 + $0x60] sm:$0xff] (%p2370_p7) }
 0x1e5   : > { %963 = vst [vmem:[%s2089_s11 + $0x80] sm:$0xff] %v609_v0  ;;  %995 = vst [vmem:[%s2089_s11 + $0x180] sm:$0xff] %v705_v1  ;;  %v611_v2 = vpop.f32.mrb[17].mxu0  ;;  %v707_v3 = vpop.f32.mrb[17].mxu1  ;;  %v1062_v45 = vld [vmem:[%s2089_s11 + $0x68] sm:$0xff] (%p2370_p7)  ;;  %v1100_v0 = vld [vmem:[%s2089_s11 + $0x100] sm:$0xff] (%p2370_p7) }
 0x1e6   : > { %964 = vst [vmem:[%s2089_s11 + $0x88] sm:$0xff] %v611_v2  ;;  %996 = vst [vmem:[%s2089_s11 + $0x188] sm:$0xff] %v707_v3  ;;  %v1102_v1 = vld [vmem:[%s2089_s11 + $0x108] sm:$0xff] (%p2370_p7)  ;;  %v1104_v2 = vld [vmem:[%s2089_s11 + $0x110] sm:$0xff] (%p2370_p7) }
 0x1e7   : > { %1061 = vst [vmem:[%s2174_s28 + $0x120] sm:$0xff] (%p2370_p7), %v1060_v44  ;;  %1063 = vst [vmem:[%s2174_s28 + $0x128] sm:$0xff] (%p2370_p7), %v1062_v45  ;;  %v1106_v3 = vld [vmem:[%s2089_s11 + $0x118] sm:$0xff] (%p2370_p7) }
 0x1e8   : > { %v615_v4 = vpop.f32.mrb[18].mxu0  ;;  %v711_v5 = vpop.f32.mrb[18].mxu1  ;;  %v1064_v46 = vld [vmem:[%s2089_s11 + $0x70] sm:$0xff] (%p2370_p7)  ;;  %1101 = vst [vmem:[%s2174_s28 + $0x300] sm:$0xff] (%p2370_p7), %v1100_v0  ;;  %1103 = vst [vmem:[%s2174_s28 + $0x308] sm:$0xff] (%p2370_p7), %v1102_v1 }
 0x1e9   : > { %965 = vst [vmem:[%s2089_s11 + $0x90] sm:$0xff] %v615_v4  ;;  %997 = vst [vmem:[%s2089_s11 + $0x190] sm:$0xff] %v711_v5  ;;  %v617_v6 = vpop.f32.mrb[19].mxu0  ;;  %v713_v7 = vpop.f32.mrb[19].mxu1  ;;  %v1066_v47 = vld [vmem:[%s2089_s11 + $0x78] sm:$0xff] (%p2370_p7)  ;;  %v1108_v4 = vld [vmem:[%s2089_s11 + $0x120] sm:$0xff] (%p2370_p7) }
 0x1ea   : > { %966 = vst [vmem:[%s2089_s11 + $0x98] sm:$0xff] %v617_v6  ;;  %998 = vst [vmem:[%s2089_s11 + $0x198] sm:$0xff] %v713_v7  ;;  %v1110_v5 = vld [vmem:[%s2089_s11 + $0x128] sm:$0xff] (%p2370_p7)  ;;  %v1112_v6 = vld [vmem:[%s2089_s11 + $0x130] sm:$0xff] (%p2370_p7) }
 0x1eb   : > { %1065 = vst [vmem:[%s2174_s28 + $0x150] sm:$0xff] (%p2370_p7), %v1064_v46  ;;  %1067 = vst [vmem:[%s2174_s28 + $0x158] sm:$0xff] (%p2370_p7), %v1066_v47  ;;  %v1114_v7 = vld [vmem:[%s2089_s11 + $0x138] sm:$0xff] (%p2370_p7) }
 0x1ec   : > { %v621_v8 = vpop.f32.mrb[20].mxu0  ;;  %v717_v9 = vpop.f32.mrb[20].mxu1  ;;  %v1068_v48 = vld [vmem:[%s2089_s11 + $0x80] sm:$0xff] (%p2370_p7)  ;;  %1105 = vst [vmem:[%s2174_s28 + $0x330] sm:$0xff] (%p2370_p7), %v1104_v2  ;;  %1107 = vst [vmem:[%s2174_s28 + $0x338] sm:$0xff] (%p2370_p7), %v1106_v3 }
 0x1ed   : > { %967 = vst [vmem:[%s2089_s11 + $0xa0] sm:$0xff] %v621_v8  ;;  %999 = vst [vmem:[%s2089_s11 + $0x1a0] sm:$0xff] %v717_v9  ;;  %v623_v10 = vpop.f32.mrb[21].mxu0  ;;  %v719_v11 = vpop.f32.mrb[21].mxu1  ;;  %v1070_v49 = vld [vmem:[%s2089_s11 + $0x88] sm:$0xff] (%p2370_p7)  ;;  %v1116_v8 = vld [vmem:[%s2089_s11 + $0x140] sm:$0xff] (%p2370_p7) }
 0x1ee   : > { %968 = vst [vmem:[%s2089_s11 + $0xa8] sm:$0xff] %v623_v10  ;;  %1000 = vst [vmem:[%s2089_s11 + $0x1a8] sm:$0xff] %v719_v11  ;;  %v1118_v9 = vld [vmem:[%s2089_s11 + $0x148] sm:$0xff] (%p2370_p7)  ;;  %v1120_v10 = vld [vmem:[%s2089_s11 + $0x150] sm:$0xff] (%p2370_p7) }
 0x1ef   : > { %1069 = vst [vmem:[%s2174_s28 + $0x180] sm:$0xff] (%p2370_p7), %v1068_v48  ;;  %1071 = vst [vmem:[%s2174_s28 + $0x188] sm:$0xff] (%p2370_p7), %v1070_v49  ;;  %v1122_v11 = vld [vmem:[%s2089_s11 + $0x158] sm:$0xff] (%p2370_p7) }
 0x1f0   : > { %v627_v12 = vpop.f32.mrb[22].mxu0  ;;  %v723_v13 = vpop.f32.mrb[22].mxu1  ;;  %v1072_v50 = vld [vmem:[%s2089_s11 + $0x90] sm:$0xff] (%p2370_p7)  ;;  %1109 = vst [vmem:[%s2174_s28 + $0x360] sm:$0xff] (%p2370_p7), %v1108_v4  ;;  %1111 = vst [vmem:[%s2174_s28 + $0x368] sm:$0xff] (%p2370_p7), %v1110_v5 }
 0x1f1   : > { %969 = vst [vmem:[%s2089_s11 + $0xb0] sm:$0xff] %v627_v12  ;;  %1001 = vst [vmem:[%s2089_s11 + $0x1b0] sm:$0xff] %v723_v13  ;;  %v629_v14 = vpop.f32.mrb[23].mxu0  ;;  %v725_v15 = vpop.f32.mrb[23].mxu1  ;;  %v1074_v51 = vld [vmem:[%s2089_s11 + $0x98] sm:$0xff] (%p2370_p7)  ;;  %v1124_v12 = vld [vmem:[%s2089_s11 + $0x160] sm:$0xff] (%p2370_p7) }
 0x1f2   : > { %970 = vst [vmem:[%s2089_s11 + $0xb8] sm:$0xff] %v629_v14  ;;  %1002 = vst [vmem:[%s2089_s11 + $0x1b8] sm:$0xff] %v725_v15  ;;  %v1126_v13 = vld [vmem:[%s2089_s11 + $0x168] sm:$0xff] (%p2370_p7)  ;;  %v1128_v14 = vld [vmem:[%s2089_s11 + $0x170] sm:$0xff] (%p2370_p7) }
 0x1f3   : > { %1073 = vst [vmem:[%s2174_s28 + $0x1b0] sm:$0xff] (%p2370_p7), %v1072_v50  ;;  %1075 = vst [vmem:[%s2174_s28 + $0x1b8] sm:$0xff] (%p2370_p7), %v1074_v51  ;;  %v1130_v15 = vld [vmem:[%s2089_s11 + $0x178] sm:$0xff] (%p2370_p7) }
 0x1f4   : > { %v633_v16 = vpop.f32.mrb[24].mxu0  ;;  %v729_v17 = vpop.f32.mrb[24].mxu1  ;;  %v1076_v52 = vld [vmem:[%s2089_s11 + $0xa0] sm:$0xff] (%p2370_p7)  ;;  %1113 = vst [vmem:[%s2174_s28 + $0x390] sm:$0xff] (%p2370_p7), %v1112_v6  ;;  %1115 = vst [vmem:[%s2174_s28 + $0x398] sm:$0xff] (%p2370_p7), %v1114_v7 }
 0x1f5   : > { %971 = vst [vmem:[%s2089_s11 + $0xc0] sm:$0xff] %v633_v16  ;;  %1003 = vst [vmem:[%s2089_s11 + $0x1c0] sm:$0xff] %v729_v17  ;;  %v635_v18 = vpop.f32.mrb[25].mxu0  ;;  %v731_v19 = vpop.f32.mrb[25].mxu1  ;;  %v1078_v53 = vld [vmem:[%s2089_s11 + $0xa8] sm:$0xff] (%p2370_p7)  ;;  %v1132_v16 = vld [vmem:[%s2089_s11 + $0x180] sm:$0xff] (%p2370_p7) }
 0x1f6   : > { %972 = vst [vmem:[%s2089_s11 + $0xc8] sm:$0xff] %v635_v18  ;;  %1004 = vst [vmem:[%s2089_s11 + $0x1c8] sm:$0xff] %v731_v19  ;;  %v1134_v17 = vld [vmem:[%s2089_s11 + $0x188] sm:$0xff] (%p2370_p7)  ;;  %v1136_v18 = vld [vmem:[%s2089_s11 + $0x190] sm:$0xff] (%p2370_p7) }
 0x1f7   : > { %1077 = vst [vmem:[%s2174_s28 + $0x1e0] sm:$0xff] (%p2370_p7), %v1076_v52  ;;  %1079 = vst [vmem:[%s2174_s28 + $0x1e8] sm:$0xff] (%p2370_p7), %v1078_v53  ;;  %v1138_v19 = vld [vmem:[%s2089_s11 + $0x198] sm:$0xff] (%p2370_p7) }
 0x1f8   : > { %v639_v20 = vpop.f32.mrb[26].mxu0  ;;  %v735_v21 = vpop.f32.mrb[26].mxu1  ;;  %v1080_v54 = vld [vmem:[%s2089_s11 + $0xb0] sm:$0xff] (%p2370_p7)  ;;  %1117 = vst [vmem:[%s2174_s28 + $0x3c0] sm:$0xff] (%p2370_p7), %v1116_v8  ;;  %1119 = vst [vmem:[%s2174_s28 + $0x3c8] sm:$0xff] (%p2370_p7), %v1118_v9 }
 0x1f9   : > { %973 = vst [vmem:[%s2089_s11 + $0xd0] sm:$0xff] %v639_v20  ;;  %1005 = vst [vmem:[%s2089_s11 + $0x1d0] sm:$0xff] %v735_v21  ;;  %v641_v22 = vpop.f32.mrb[27].mxu0  ;;  %v737_v23 = vpop.f32.mrb[27].mxu1  ;;  %v1082_v55 = vld [vmem:[%s2089_s11 + $0xb8] sm:$0xff] (%p2370_p7)  ;;  %v1140_v20 = vld [vmem:[%s2089_s11 + $0x1a0] sm:$0xff] (%p2370_p7) }
 0x1fa   : > { %974 = vst [vmem:[%s2089_s11 + $0xd8] sm:$0xff] %v641_v22  ;;  %1006 = vst [vmem:[%s2089_s11 + $0x1d8] sm:$0xff] %v737_v23  ;;  %v1142_v21 = vld [vmem:[%s2089_s11 + $0x1a8] sm:$0xff] (%p2370_p7)  ;;  %v1144_v22 = vld [vmem:[%s2089_s11 + $0x1b0] sm:$0xff] (%p2370_p7) }
 0x1fb   : > { %1081 = vst [vmem:[%s2174_s28 + $0x210] sm:$0xff] (%p2370_p7), %v1080_v54  ;;  %1083 = vst [vmem:[%s2174_s28 + $0x218] sm:$0xff] (%p2370_p7), %v1082_v55  ;;  %v1146_v23 = vld [vmem:[%s2089_s11 + $0x1b8] sm:$0xff] (%p2370_p7) }
 0x1fc   : > { %v645_v24 = vpop.f32.mrb[28].mxu0  ;;  %v741_v25 = vpop.f32.mrb[28].mxu1  ;;  %1017 = sbr.rel (!%p2370_p7) target bundleno = 527 (0x20f), region = 48  ;;  %v1084_v56 = vld [vmem:[%s2089_s11 + $0xc0] sm:$0xff] (%p2370_p7)  ;;  %1121 = vst [vmem:[%s2174_s28 + $0x3f0] sm:$0xff] (%p2370_p7), %v1120_v10  ;;  %1123 = vst [vmem:[%s2174_s28 + $0x3f8] sm:$0xff] (%p2370_p7), %v1122_v11 }
 0x1fd   : > { %975 = vst [vmem:[%s2089_s11 + $0xe0] sm:$0xff] %v645_v24  ;;  %1007 = vst [vmem:[%s2089_s11 + $0x1e0] sm:$0xff] %v741_v25  ;;  %v647_v26 = vpop.f32.mrb[29].mxu0  ;;  %v743_v27 = vpop.f32.mrb[29].mxu1  ;;  %v1086_v57 = vld [vmem:[%s2089_s11 + $0xc8] sm:$0xff] (%p2370_p7)  ;;  %v1148_v24 = vld [vmem:[%s2089_s11 + $0x1c0] sm:$0xff] (%p2370_p7) }
 0x1fe   : > { %976 = vst [vmem:[%s2089_s11 + $0xe8] sm:$0xff] %v647_v26  ;;  %1008 = vst [vmem:[%s2089_s11 + $0x1e8] sm:$0xff] %v743_v27  ;;  %v1150_v25 = vld [vmem:[%s2089_s11 + $0x1c8] sm:$0xff] (%p2370_p7) }
 0x1ff   : > { %1085 = vst [vmem:[%s2174_s28 + $0x240] sm:$0xff] (%p2370_p7), %v1084_v56  ;;  %1087 = vst [vmem:[%s2174_s28 + $0x248] sm:$0xff] (%p2370_p7), %v1086_v57 }
 0x200   : > { %v651_v28 = vpop.f32.mrb[30].mxu0  ;;  %v747_v29 = vpop.f32.mrb[30].mxu1  ;;  %v1088_v58 = vld [vmem:[%s2089_s11 + $0xd0] sm:$0xff] (%p2370_p7)  ;;  %1125 = vst [vmem:[%s2174_s28 + $0x420] sm:$0xff] (%p2370_p7), %v1124_v12  ;;  %1127 = vst [vmem:[%s2174_s28 + $0x428] sm:$0xff] (%p2370_p7), %v1126_v13 }
 0x201   : > { %977 = vst [vmem:[%s2089_s11 + $0xf0] sm:$0xff] %v651_v28  ;;  %1009 = vst [vmem:[%s2089_s11 + $0x1f0] sm:$0xff] %v747_v29  ;;  %v653_v30 = vpop.f32.mrb[31].mxu0  ;;  %v749_v31 = vpop.f32.mrb[31].mxu1  ;;  %v1090_v59 = vld [vmem:[%s2089_s11 + $0xd8] sm:$0xff] (%p2370_p7)  ;;  %v1152_v26 = vld [vmem:[%s2089_s11 + $0x1d0] sm:$0xff] (%p2370_p7) }
 0x202   : > { %978 = vst [vmem:[%s2089_s11 + $0xf8] sm:$0xff] %v653_v30  ;;  %1010 = vst [vmem:[%s2089_s11 + $0x1f8] sm:$0xff] %v749_v31  ;;  %v1154_v27 = vld [vmem:[%s2089_s11 + $0x1d8] sm:$0xff] (%p2370_p7) }
 0x203   : > { %1089 = vst [vmem:[%s2174_s28 + $0x270] sm:$0xff] %v1088_v58  ;;  %1091 = vst [vmem:[%s2174_s28 + $0x278] sm:$0xff] %v1090_v59 }
 0x204   : > { %v1092_v60 = vld [vmem:[%s2089_s11 + $0xe0] sm:$0xff]  ;;  %1129 = vst [vmem:[%s2174_s28 + $0x450] sm:$0xff] %v1128_v14  ;;  %1131 = vst [vmem:[%s2174_s28 + $0x458] sm:$0xff] %v1130_v15 }
 0x205   : > { %v1094_v61 = vld [vmem:[%s2089_s11 + $0xe8] sm:$0xff]  ;;  %1093 = vst [vmem:[%s2174_s28 + $0x2a0] sm:$0xff] %v1092_v60  ;;  %1133 = vst [vmem:[%s2174_s28 + $0x480] sm:$0xff] %v1132_v16  ;;  %v1156_v28 = vld [vmem:[%s2089_s11 + $0x1e0] sm:$0xff] }
 0x206   : > { %1095 = vst [vmem:[%s2174_s28 + $0x2a8] sm:$0xff] %v1094_v61  ;;  %1135 = vst [vmem:[%s2174_s28 + $0x488] sm:$0xff] %v1134_v17  ;;  %v1158_v29 = vld [vmem:[%s2089_s11 + $0x1e8] sm:$0xff] }
 0x207   : > { %1137 = vst [vmem:[%s2174_s28 + $0x4b0] sm:$0xff] %v1136_v18  ;;  %1139 = vst [vmem:[%s2174_s28 + $0x4b8] sm:$0xff] %v1138_v19 }
 0x208   : > { %v1096_v62 = vld [vmem:[%s2089_s11 + $0xf0] sm:$0xff]  ;;  %1141 = vst [vmem:[%s2174_s28 + $0x4e0] sm:$0xff] %v1140_v20  ;;  %1143 = vst [vmem:[%s2174_s28 + $0x4e8] sm:$0xff] %v1142_v21 }
 0x209   : > { %v1098_v63 = vld [vmem:[%s2089_s11 + $0xf8] sm:$0xff]  ;;  %1097 = vst [vmem:[%s2174_s28 + $0x2d0] sm:$0xff] %v1096_v62  ;;  %1145 = vst [vmem:[%s2174_s28 + $0x510] sm:$0xff] %v1144_v22  ;;  %v1160_v30 = vld [vmem:[%s2089_s11 + $0x1f0] sm:$0xff] }
 0x20a   : > { %1099 = vst [vmem:[%s2174_s28 + $0x2d8] sm:$0xff] %v1098_v63  ;;  %1147 = vst [vmem:[%s2174_s28 + $0x518] sm:$0xff] %v1146_v23  ;;  %v1162_v31 = vld [vmem:[%s2089_s11 + $0x1f8] sm:$0xff] }
 0x20b   : > { %1149 = vst [vmem:[%s2174_s28 + $0x540] sm:$0xff] %v1148_v24  ;;  %1151 = vst [vmem:[%s2174_s28 + $0x548] sm:$0xff] %v1150_v25 }
 0x20c   : > { %1153 = vst [vmem:[%s2174_s28 + $0x570] sm:$0xff] %v1152_v26  ;;  %1155 = vst [vmem:[%s2174_s28 + $0x578] sm:$0xff] %v1154_v27 }
 0x20d   : > { %1157 = vst [vmem:[%s2174_s28 + $0x5a0] sm:$0xff] %v1156_v28  ;;  %1159 = vst [vmem:[%s2174_s28 + $0x5a8] sm:$0xff] %v1158_v29 }
 0x20e   : > { %1161 = vst [vmem:[%s2174_s28 + $0x5d0] sm:$0xff] %v1160_v30  ;;  %1163 = vst [vmem:[%s2174_s28 + $0x5d8] sm:$0xff] %v1162_v31 }
 0x20f PF: > { %s18_s21 = sadd.s32 1, %s1687_s21   ;;  %s2373_s14 = sld [smem:[#allocation12_spill]] }
 0x210   : > { %p2293_p10 = scmp.ge.s32.totalorder %s18_s21, 8   ;;  %s2374_s30 = sld [smem:[#allocation10_spill]] }
 0x211   : > { %s2375_s4 = sld [smem:[#allocation11_spill]]  ;;  %s2376_s9 = smov %s1643_s10 }
 0x212   : > { %s2377_s10 = smov %s1894_s3  ;;  %s2378_s11 = smov %s1651_s12 }
 0x213   : > { %s2379_s12 = smov %s1655_s13  ;;  %s2384_s17 = smov %s1679_s19 }
 0x214   : > { %s2385_s18 = smov %s1683_s20  ;;  %17 = sbr.rel (!%p2293_p10) target bundleno = 13 (0xd), region = 112 }
 0x215   : > { %s2380_s13 = smov %s2373_s14  ;;  %s2381_s14 = smov %s1663_s15 }
 0x216   : > { %s2382_s15 = smov %s1667_s16  ;;  %s2383_s16 = smov %s1891_s22 }
 0x217   : > { %s2386_s19 = smov %s2374_s30  ;;  %s2387_s20 = smov %s2375_s4 }
 0x21b   :  { %1179 = vsyncpa [#allocation4], 1 }
 0x21c   :  { %1181 = vsyncpa [#allocation4 + $0x1], 1 }
 0x21d   :  { %1182 = vsyncpa [#allocation6], 1 }
 0x21e   :  { %1184 = vsyncpa [#allocation6 + $0x1], 1 }

// kernel: causal_self_attention_forward.4
= control target key start
LH: loop header
LB: loop body
LE: loop exit
PB: predicated region body
PF: predicated region fallthrough
CT: control target
= control target key end

     0   :  { %s11329_s0 = inlined_call_operand.vmem [shape: f32[2,256,768], index: 0, kind: input, shape index: {}, may-alias: {0,1,2}]   ;;  %s11330_s1 = inlined_call_operand.vmem [shape: f32[2,256,768], index: 1, kind: input, shape index: {}, may-alias: {0,1,2}]   ;;  %s11331_s2 = inlined_call_operand.vmem [shape: f32[2,256,768], index: 2, kind: input, shape index: {}, may-alias: {0,1,2}]   ;;  %s11332_s3 = inlined_call_operand.vmem [shape: f32[2,256,256], index: 3, kind: output, shape index: {}]  }
   0x1   :  { %11463 = sst [smem:[#allocation117_spill]] %s11329_s0 }
   0x2   :  { %s7870_s12 = smov 0   ;;  %s7872_s13 = smov 0  }
   0x3   :  { %s7874_s14 = smov 0   ;;  %s7876_s15 = smov 0  }
   0x4   :  { %s7878_s16 = smov 0   ;;  %s7880_s17 = smov 0  }
   0x5   :  { %s7882_s18 = smov 0   ;;  %s7884_s19 = smov 0  }
   0x6   :  { %s7886_s20 = smov 0   ;;  %s7888_s21 = smov 0  }
   0x7   :  { %s7890_s22 = smov 0  }
   0x8 LB: > { %s25_s23 = sadd.s32 1, %s7830_s19  ;;  %s28_s24 = sadd.s32 1, %s7834_s20  ;;  %s7842_s22 = sphi %s7890_s22, %s13_s22   ;;  %s7838_s21 = sphi %s7888_s21, %s11897_s21   ;;  %s7834_s20 = sphi %s7886_s20, %s11896_s20   ;;  %s7830_s19 = sphi %s7884_s19, %s11895_s19   ;;  %s7826_s18 = sphi %s7882_s18, %s11894_s18   ;;  %s7822_s17 = sphi %s7880_s17, %s11893_s17   ;;  %s7818_s16 = sphi %s7878_s16, %s11892_s16   ;;  %s7814_s15 = sphi %s7876_s15, %s11891_s15   ;;  %s7810_s14 = sphi %s7874_s14, %s11890_s14   ;;  %s7806_s13 = sphi %s7872_s13, %s11889_s13   ;;  %s7802_s12 = sphi %s7870_s12, %s11888_s12  }
   0x9   : > { %p26_p0 = scmp.ge.s32.totalorder %s25_s23, 2  ;;  %p48_p1 = scmp.ne.s32.totalorder %s7814_s15, %s7810_s14 }
   0xa   : > { %p49_p2 = scmp.eq.s32.totalorder %s7842_s22, 0  ;;  %s32_s25 = sadd.s32 1, %s7838_s21 }
   0xb   : > { %s11899_s23 = smov (%p26_p0, %s25_s23), 0  ;;  %s11901_s24 = smov (!%p26_p0, %s28_s24), %s7834_s20 }
   0xc   : > { %p30_p3 = scmp.ge.s32.totalorder %s11901_s24, 2  ;;  %p7934_p4 = por %p49_p2, %p48_p1 }
   0xd   : > { %p76_p5 = scmp.ne.s32.totalorder %s7806_s13, %s7802_s12  ;;  %s65_s29 = ssub.s32 %s7830_s19, %s11899_s23 }
   0xe   : > { %s11903_s24 = smov (%p30_p3, %s11901_s24), 0  ;;  %s11905_s25 = smov (!%p30_p3, %s32_s25), %s7838_s21 }
   0xf   : > { %p7943_p6 = por %p76_p5, %p49_p2  ;;  %p34_p7 = scmp.ge.s32.totalorder %s11905_s25, 2 }
  0x10   : > { %s37_s28 = ssub.s32 %s7834_s20, %s11903_s24  ;;  %s41_s30 = sadd.s32 1, %s7814_s15 }
  0x11   : > { %s11907_s25 = smov (%p34_p7, %s11905_s25), 0  ;;  %s69_s5 = sadd.s32 1, %s7806_s13 }
  0x12   : > { %11466 = sst [smem:[#allocation8_spill]] %s11907_s25  ;;  %s36_s4 = ssub.s32 %s7838_s21, %s11907_s25 }
  0x13   : > { %s38_s6 = sor.u32 %s37_s28, %s36_s4  ;;  %s66_s7 = sor.u32 %s65_s29, %s36_s4 }
  0x14   : > { %p39_p8 = scmp.eq.s32.totalorder %s38_s6, 0  ;;  %p67_p9 = scmp.eq.s32.totalorder %s66_s7, 0 }
  0x15   : > { %p5875_p10 = scmp.ge.s32.totalorder %s7842_s22, 8 }
  0x16   : > { %s7958_s8 = scalar_select %p39_p8, %s7814_s15, %s41_s30  }
  0x17   : > { %s7961_s9 = scalar_select %p67_p9, %s7806_s13, %s69_s5  }
  0x18   : > { %158 = sbr.rel (%p5875_p10) target bundleno = 105 (0x69), region = 16 }
  0x1f   : > { %161 = sbr.rel (!%p7934_p4) target bundleno = 57 (0x39), region = 20  ;;  %s163_s10 = sand.u32 (%p7934_p4), 1, %s7814_s15  }
  0x20   : > { %s7112_s11 = smul.u32 (%p7934_p4), 96, %s7834_s20  ;;  %s5876_s25 = sshll.u32 (%p7934_p4), %s163_s10, 8 }
  0x21   : > { %s7113_s28 = smul.u32 (%p7934_p4), 192, %s7838_s21  ;;  %s11467_s0 = sld [smem:[#allocation117_spill]] (%p7934_p4) }
  0x22   : > { %s7977_s26 = scalar_lea.vmem (%p7934_p4), [#allocation5], %s5876_s25 }
  0x23   : > { %s169_s29 = sadd.s32 (%p7934_p4), %s7113_s28, %s7112_s11 }
  0x24   : > { %s5879_s4 = sshll.u32 (%p7934_p4), %s169_s29, 3 }
  0x27   : > { %s7972_s5 = scalar_lea.vmem %s11467_s0, %s5879_s4 }
  0x28   : > { %v184_v0 = vld [vmem:[%s7972_s5] sm:$0xff]  ;;  %v186_v1 = vld [vmem:[%s7972_s5 + $0x8] sm:$0xff]  ;;  %v188_v2 = vld [vmem:[%s7972_s5 + $0x30] sm:$0xff] }
  0x29   : > { %185 = vst [vmem:[%s7977_s26] sm:$0xff] %v184_v0  ;;  %187 = vst [vmem:[%s7977_s26 + $0x8] sm:$0xff] %v186_v1  ;;  %v190_v3 = vld [vmem:[%s7972_s5 + $0x38] sm:$0xff]  ;;  %v192_v4 = vld [vmem:[%s7972_s5 + $0x60] sm:$0xff] }
  0x2a   : > { %189 = vst [vmem:[%s7977_s26 + $0x10] sm:$0xff] %v188_v2  ;;  %v194_v5 = vld [vmem:[%s7972_s5 + $0x68] sm:$0xff]  ;;  %191 = vst [vmem:[%s7977_s26 + $0x18] sm:$0xff] %v190_v3  ;;  %v196_v6 = vld [vmem:[%s7972_s5 + $0x90] sm:$0xff] }
  0x2b   : > { %193 = vst [vmem:[%s7977_s26 + $0x20] sm:$0xff] %v192_v4  ;;  %195 = vst [vmem:[%s7977_s26 + $0x28] sm:$0xff] %v194_v5  ;;  %v198_v7 = vld [vmem:[%s7972_s5 + $0x98] sm:$0xff]  ;;  %v200_v8 = vld [vmem:[%s7972_s5 + $0xc0] sm:$0xff] }
  0x2c   : > { %197 = vst [vmem:[%s7977_s26 + $0x30] sm:$0xff] %v196_v6  ;;  %199 = vst [vmem:[%s7977_s26 + $0x38] sm:$0xff] %v198_v7  ;;  %v202_v9 = vld [vmem:[%s7972_s5 + $0xc8] sm:$0xff]  ;;  %v204_v10 = vld [vmem:[%s7972_s5 + $0xf0] sm:$0xff] }
  0x2d   : > { %201 = vst [vmem:[%s7977_s26 + $0x40] sm:$0xff] %v200_v8  ;;  %v206_v11 = vld [vmem:[%s7972_s5 + $0xf8] sm:$0xff]  ;;  %203 = vst [vmem:[%s7977_s26 + $0x48] sm:$0xff] %v202_v9  ;;  %v208_v12 = vld [vmem:[%s7972_s5 + $0x120] sm:$0xff] }
  0x2e   : > { %205 = vst [vmem:[%s7977_s26 + $0x50] sm:$0xff] %v204_v10  ;;  %207 = vst [vmem:[%s7977_s26 + $0x58] sm:$0xff] %v206_v11  ;;  %v210_v13 = vld [vmem:[%s7972_s5 + $0x128] sm:$0xff]  ;;  %v212_v14 = vld [vmem:[%s7972_s5 + $0x150] sm:$0xff] }
  0x2f   : > { %209 = vst [vmem:[%s7977_s26 + $0x60] sm:$0xff] %v208_v12  ;;  %211 = vst [vmem:[%s7977_s26 + $0x68] sm:$0xff] %v210_v13  ;;  %v214_v15 = vld [vmem:[%s7972_s5 + $0x158] sm:$0xff]  ;;  %v216_v16 = vld [vmem:[%s7972_s5 + $0x180] sm:$0xff] }
  0x30   : > { %213 = vst [vmem:[%s7977_s26 + $0x70] sm:$0xff] %v212_v14  ;;  %v218_v17 = vld [vmem:[%s7972_s5 + $0x188] sm:$0xff]  ;;  %215 = vst [vmem:[%s7977_s26 + $0x78] sm:$0xff] %v214_v15  ;;  %v220_v18 = vld [vmem:[%s7972_s5 + $0x1b0] sm:$0xff] }
  0x31   : > { %217 = vst [vmem:[%s7977_s26 + $0x80] sm:$0xff] %v216_v16  ;;  %219 = vst [vmem:[%s7977_s26 + $0x88] sm:$0xff] %v218_v17  ;;  %v222_v19 = vld [vmem:[%s7972_s5 + $0x1b8] sm:$0xff]  ;;  %v224_v20 = vld [vmem:[%s7972_s5 + $0x1e0] sm:$0xff] }
  0x32   : > { %221 = vst [vmem:[%s7977_s26 + $0x90] sm:$0xff] %v220_v18  ;;  %223 = vst [vmem:[%s7977_s26 + $0x98] sm:$0xff] %v222_v19  ;;  %v226_v21 = vld [vmem:[%s7972_s5 + $0x1e8] sm:$0xff]  ;;  %v228_v22 = vld [vmem:[%s7972_s5 + $0x210] sm:$0xff] }
  0x33   : > { %225 = vst [vmem:[%s7977_s26 + $0xa0] sm:$0xff] %v224_v20  ;;  %v230_v23 = vld [vmem:[%s7972_s5 + $0x218] sm:$0xff]  ;;  %227 = vst [vmem:[%s7977_s26 + $0xa8] sm:$0xff] %v226_v21  ;;  %v232_v24 = vld [vmem:[%s7972_s5 + $0x240] sm:$0xff] }
  0x34   : > { %229 = vst [vmem:[%s7977_s26 + $0xb0] sm:$0xff] %v228_v22  ;;  %231 = vst [vmem:[%s7977_s26 + $0xb8] sm:$0xff] %v230_v23  ;;  %v234_v25 = vld [vmem:[%s7972_s5 + $0x248] sm:$0xff]  ;;  %v236_v26 = vld [vmem:[%s7972_s5 + $0x270] sm:$0xff] }
  0x35   : > { %233 = vst [vmem:[%s7977_s26 + $0xc0] sm:$0xff] %v232_v24  ;;  %235 = vst [vmem:[%s7977_s26 + $0xc8] sm:$0xff] %v234_v25  ;;  %v238_v27 = vld [vmem:[%s7972_s5 + $0x278] sm:$0xff]  ;;  %v240_v28 = vld [vmem:[%s7972_s5 + $0x2a0] sm:$0xff] }
  0x36   : > { %237 = vst [vmem:[%s7977_s26 + $0xd0] sm:$0xff] %v236_v26  ;;  %v242_v29 = vld [vmem:[%s7972_s5 + $0x2a8] sm:$0xff]  ;;  %239 = vst [vmem:[%s7977_s26 + $0xd8] sm:$0xff] %v238_v27  ;;  %v244_v30 = vld [vmem:[%s7972_s5 + $0x2d0] sm:$0xff] }
  0x37   : > { %241 = vst [vmem:[%s7977_s26 + $0xe0] sm:$0xff] %v240_v28  ;;  %243 = vst [vmem:[%s7977_s26 + $0xe8] sm:$0xff] %v242_v29  ;;  %v246_v31 = vld [vmem:[%s7972_s5 + $0x2d8] sm:$0xff] }
  0x38   : > { %245 = vst [vmem:[%s7977_s26 + $0xf0] sm:$0xff] %v244_v30  ;;  %247 = vst [vmem:[%s7977_s26 + $0xf8] sm:$0xff] %v246_v31 }
  0x39 PF: > { %253 = sbr.rel (!%p7943_p6) target bundleno = 81 (0x51), region = 43  ;;  %s255_s25 = sand.u32 (%p7943_p6), 1, %s7806_s13  }
  0x3a   : > { %s5764_s7 = smul.u32 (%p7943_p6), 96, %s7830_s19  ;;  %s5880_s10 = sshll.u32 (%p7943_p6), %s255_s25, 8 }
  0x3b   : > { %s5765_s11 = smul.u32 (%p7943_p6), 192, %s7838_s21  ;;  %s8053_s5 = scalar_lea.vmem (%p7943_p6), [#allocation6], %s5880_s10 }
  0x3d   : > { %s5766_s28 = sadd.s32 (%p7943_p6), %s5765_s11, %s5764_s7 }
  0x3e   : > { %s5881_s29 = sshll.u32 (%p7943_p6), %s5766_s28, 3 }
  0x3f   : > { %s8048_s30 = scalar_lea.vmem (%p7943_p6), %s11330_s1, %s5881_s29 }
  0x40   : > { %v5882_v32 = vld [vmem:[%s8048_s30 + $0x10] sm:$0xff]  ;;  %v5883_v33 = vld [vmem:[%s8048_s30 + $0x18] sm:$0xff]  ;;  %v5884_v34 = vld [vmem:[%s8048_s30 + $0x40] sm:$0xff] }
  0x41   : > { %278 = vst [vmem:[%s8053_s5] sm:$0xff] %v5882_v32  ;;  %280 = vst [vmem:[%s8053_s5 + $0x8] sm:$0xff] %v5883_v33  ;;  %v5885_v35 = vld [vmem:[%s8048_s30 + $0x48] sm:$0xff]  ;;  %v5886_v36 = vld [vmem:[%s8048_s30 + $0x70] sm:$0xff] }
  0x42   : > { %282 = vst [vmem:[%s8053_s5 + $0x10] sm:$0xff] %v5884_v34  ;;  %v5887_v37 = vld [vmem:[%s8048_s30 + $0x78] sm:$0xff]  ;;  %284 = vst [vmem:[%s8053_s5 + $0x18] sm:$0xff] %v5885_v35  ;;  %v5888_v38 = vld [vmem:[%s8048_s30 + $0xa0] sm:$0xff] }
  0x43   : > { %286 = vst [vmem:[%s8053_s5 + $0x20] sm:$0xff] %v5886_v36  ;;  %288 = vst [vmem:[%s8053_s5 + $0x28] sm:$0xff] %v5887_v37  ;;  %v5889_v39 = vld [vmem:[%s8048_s30 + $0xa8] sm:$0xff]  ;;  %v5890_v40 = vld [vmem:[%s8048_s30 + $0xd0] sm:$0xff] }
  0x44   : > { %290 = vst [vmem:[%s8053_s5 + $0x30] sm:$0xff] %v5888_v38  ;;  %292 = vst [vmem:[%s8053_s5 + $0x38] sm:$0xff] %v5889_v39  ;;  %v5891_v41 = vld [vmem:[%s8048_s30 + $0xd8] sm:$0xff]  ;;  %v5892_v42 = vld [vmem:[%s8048_s30 + $0x100] sm:$0xff] }
  0x45   : > { %294 = vst [vmem:[%s8053_s5 + $0x40] sm:$0xff] %v5890_v40  ;;  %v5893_v43 = vld [vmem:[%s8048_s30 + $0x108] sm:$0xff]  ;;  %296 = vst [vmem:[%s8053_s5 + $0x48] sm:$0xff] %v5891_v41  ;;  %v5894_v44 = vld [vmem:[%s8048_s30 + $0x130] sm:$0xff] }
  0x46   : > { %298 = vst [vmem:[%s8053_s5 + $0x50] sm:$0xff] %v5892_v42  ;;  %300 = vst [vmem:[%s8053_s5 + $0x58] sm:$0xff] %v5893_v43  ;;  %v5895_v45 = vld [vmem:[%s8048_s30 + $0x138] sm:$0xff]  ;;  %v5896_v46 = vld [vmem:[%s8048_s30 + $0x160] sm:$0xff] }
  0x47   : > { %302 = vst [vmem:[%s8053_s5 + $0x60] sm:$0xff] %v5894_v44  ;;  %304 = vst [vmem:[%s8053_s5 + $0x68] sm:$0xff] %v5895_v45  ;;  %v5897_v47 = vld [vmem:[%s8048_s30 + $0x168] sm:$0xff]  ;;  %v5898_v48 = vld [vmem:[%s8048_s30 + $0x190] sm:$0xff] }
  0x48   : > { %306 = vst [vmem:[%s8053_s5 + $0x70] sm:$0xff] %v5896_v46  ;;  %v5899_v49 = vld [vmem:[%s8048_s30 + $0x198] sm:$0xff]  ;;  %308 = vst [vmem:[%s8053_s5 + $0x78] sm:$0xff] %v5897_v47  ;;  %v5900_v50 = vld [vmem:[%s8048_s30 + $0x1c0] sm:$0xff] }
  0x49   : > { %310 = vst [vmem:[%s8053_s5 + $0x80] sm:$0xff] %v5898_v48  ;;  %312 = vst [vmem:[%s8053_s5 + $0x88] sm:$0xff] %v5899_v49  ;;  %v5901_v51 = vld [vmem:[%s8048_s30 + $0x1c8] sm:$0xff]  ;;  %v5902_v52 = vld [vmem:[%s8048_s30 + $0x1f0] sm:$0xff] }
  0x4a   : > { %314 = vst [vmem:[%s8053_s5 + $0x90] sm:$0xff] %v5900_v50  ;;  %316 = vst [vmem:[%s8053_s5 + $0x98] sm:$0xff] %v5901_v51  ;;  %v5903_v53 = vld [vmem:[%s8048_s30 + $0x1f8] sm:$0xff]  ;;  %v5904_v54 = vld [vmem:[%s8048_s30 + $0x220] sm:$0xff] }
  0x4b   : > { %318 = vst [vmem:[%s8053_s5 + $0xa0] sm:$0xff] %v5902_v52  ;;  %v5905_v55 = vld [vmem:[%s8048_s30 + $0x228] sm:$0xff]  ;;  %320 = vst [vmem:[%s8053_s5 + $0xa8] sm:$0xff] %v5903_v53  ;;  %v5906_v56 = vld [vmem:[%s8048_s30 + $0x250] sm:$0xff] }
  0x4c   : > { %322 = vst [vmem:[%s8053_s5 + $0xb0] sm:$0xff] %v5904_v54  ;;  %324 = vst [vmem:[%s8053_s5 + $0xb8] sm:$0xff] %v5905_v55  ;;  %v5907_v57 = vld [vmem:[%s8048_s30 + $0x258] sm:$0xff]  ;;  %v5908_v58 = vld [vmem:[%s8048_s30 + $0x280] sm:$0xff] }
  0x4d   : > { %326 = vst [vmem:[%s8053_s5 + $0xc0] sm:$0xff] %v5906_v56  ;;  %328 = vst [vmem:[%s8053_s5 + $0xc8] sm:$0xff] %v5907_v57  ;;  %v5909_v59 = vld [vmem:[%s8048_s30 + $0x288] sm:$0xff]  ;;  %v5910_v60 = vld [vmem:[%s8048_s30 + $0x2b0] sm:$0xff] }
  0x4e   : > { %330 = vst [vmem:[%s8053_s5 + $0xd0] sm:$0xff] %v5908_v58  ;;  %v5911_v61 = vld [vmem:[%s8048_s30 + $0x2b8] sm:$0xff]  ;;  %332 = vst [vmem:[%s8053_s5 + $0xd8] sm:$0xff] %v5909_v59  ;;  %v5912_v62 = vld [vmem:[%s8048_s30 + $0x2e0] sm:$0xff] }
  0x4f   : > { %334 = vst [vmem:[%s8053_s5 + $0xe0] sm:$0xff] %v5910_v60  ;;  %336 = vst [vmem:[%s8053_s5 + $0xe8] sm:$0xff] %v5911_v61  ;;  %v5913_v63 = vld [vmem:[%s8048_s30 + $0x2e8] sm:$0xff] }
  0x50   : > { %338 = vst [vmem:[%s8053_s5 + $0xf0] sm:$0xff] %v5912_v62  ;;  %340 = vst [vmem:[%s8053_s5 + $0xf8] sm:$0xff] %v5913_v63 }
  0x51 PF: > { %346 = sbr.rel (!%p7943_p6) target bundleno = 105 (0x69), region = 66  ;;  %s348_s26 = sand.u32 (%p7943_p6), 1, %s7806_s13  }
  0x52   : > { %s5772_s25 = smul.u32 (%p7943_p6), 96, %s7830_s19  ;;  %s5914_s7 = sshll.u32 (%p7943_p6), %s348_s26, 8 }
  0x53   : > { %s5773_s10 = smul.u32 (%p7943_p6), 192, %s7838_s21  ;;  %s8129_s27 = scalar_lea.vmem (%p7943_p6), [#allocation7], %s5914_s7 }
  0x55   : > { %s5774_s11 = sadd.s32 (%p7943_p6), %s5773_s10, %s5772_s25 }
  0x56   : > { %s5915_s28 = sshll.u32 (%p7943_p6), %s5774_s11, 3 }
  0x57   : > { %s8124_s6 = scalar_lea.vmem (%p7943_p6), %s11331_s2, %s5915_s28 }
  0x58   : > { %v5916_v0 = vld [vmem:[%s8124_s6 + $0x20] sm:$0xff]  ;;  %v5917_v1 = vld [vmem:[%s8124_s6 + $0x28] sm:$0xff]  ;;  %v5918_v2 = vld [vmem:[%s8124_s6 + $0x50] sm:$0xff] }
  0x59   : > { %371 = vst [vmem:[%s8129_s27] sm:$0xff] %v5916_v0  ;;  %373 = vst [vmem:[%s8129_s27 + $0x8] sm:$0xff] %v5917_v1  ;;  %v5919_v3 = vld [vmem:[%s8124_s6 + $0x58] sm:$0xff]  ;;  %v5920_v4 = vld [vmem:[%s8124_s6 + $0x80] sm:$0xff] }
  0x5a   : > { %375 = vst [vmem:[%s8129_s27 + $0x10] sm:$0xff] %v5918_v2  ;;  %v5921_v5 = vld [vmem:[%s8124_s6 + $0x88] sm:$0xff]  ;;  %377 = vst [vmem:[%s8129_s27 + $0x18] sm:$0xff] %v5919_v3  ;;  %v5922_v6 = vld [vmem:[%s8124_s6 + $0xb0] sm:$0xff] }
  0x5b   : > { %379 = vst [vmem:[%s8129_s27 + $0x20] sm:$0xff] %v5920_v4  ;;  %381 = vst [vmem:[%s8129_s27 + $0x28] sm:$0xff] %v5921_v5  ;;  %v5923_v7 = vld [vmem:[%s8124_s6 + $0xb8] sm:$0xff]  ;;  %v5924_v8 = vld [vmem:[%s8124_s6 + $0xe0] sm:$0xff] }
  0x5c   : > { %383 = vst [vmem:[%s8129_s27 + $0x30] sm:$0xff] %v5922_v6  ;;  %385 = vst [vmem:[%s8129_s27 + $0x38] sm:$0xff] %v5923_v7  ;;  %v5925_v9 = vld [vmem:[%s8124_s6 + $0xe8] sm:$0xff]  ;;  %v5926_v10 = vld [vmem:[%s8124_s6 + $0x110] sm:$0xff] }
  0x5d   : > { %387 = vst [vmem:[%s8129_s27 + $0x40] sm:$0xff] %v5924_v8  ;;  %v5927_v11 = vld [vmem:[%s8124_s6 + $0x118] sm:$0xff]  ;;  %389 = vst [vmem:[%s8129_s27 + $0x48] sm:$0xff] %v5925_v9  ;;  %v5928_v12 = vld [vmem:[%s8124_s6 + $0x140] sm:$0xff] }
  0x5e   : > { %391 = vst [vmem:[%s8129_s27 + $0x50] sm:$0xff] %v5926_v10  ;;  %393 = vst [vmem:[%s8129_s27 + $0x58] sm:$0xff] %v5927_v11  ;;  %v5929_v13 = vld [vmem:[%s8124_s6 + $0x148] sm:$0xff]  ;;  %v5930_v14 = vld [vmem:[%s8124_s6 + $0x170] sm:$0xff] }
  0x5f   : > { %395 = vst [vmem:[%s8129_s27 + $0x60] sm:$0xff] %v5928_v12  ;;  %397 = vst [vmem:[%s8129_s27 + $0x68] sm:$0xff] %v5929_v13  ;;  %v5931_v15 = vld [vmem:[%s8124_s6 + $0x178] sm:$0xff]  ;;  %v5932_v16 = vld [vmem:[%s8124_s6 + $0x1a0] sm:$0xff] }
  0x60   : > { %399 = vst [vmem:[%s8129_s27 + $0x70] sm:$0xff] %v5930_v14  ;;  %v5933_v17 = vld [vmem:[%s8124_s6 + $0x1a8] sm:$0xff]  ;;  %401 = vst [vmem:[%s8129_s27 + $0x78] sm:$0xff] %v5931_v15  ;;  %v5934_v18 = vld [vmem:[%s8124_s6 + $0x1d0] sm:$0xff] }
  0x61   : > { %403 = vst [vmem:[%s8129_s27 + $0x80] sm:$0xff] %v5932_v16  ;;  %405 = vst [vmem:[%s8129_s27 + $0x88] sm:$0xff] %v5933_v17  ;;  %v5935_v19 = vld [vmem:[%s8124_s6 + $0x1d8] sm:$0xff]  ;;  %v5936_v20 = vld [vmem:[%s8124_s6 + $0x200] sm:$0xff] }
  0x62   : > { %407 = vst [vmem:[%s8129_s27 + $0x90] sm:$0xff] %v5934_v18  ;;  %409 = vst [vmem:[%s8129_s27 + $0x98] sm:$0xff] %v5935_v19  ;;  %v5937_v21 = vld [vmem:[%s8124_s6 + $0x208] sm:$0xff]  ;;  %v5938_v22 = vld [vmem:[%s8124_s6 + $0x230] sm:$0xff] }
  0x63   : > { %411 = vst [vmem:[%s8129_s27 + $0xa0] sm:$0xff] %v5936_v20  ;;  %v5939_v23 = vld [vmem:[%s8124_s6 + $0x238] sm:$0xff]  ;;  %413 = vst [vmem:[%s8129_s27 + $0xa8] sm:$0xff] %v5937_v21  ;;  %v5940_v24 = vld [vmem:[%s8124_s6 + $0x260] sm:$0xff] }
  0x64   : > { %415 = vst [vmem:[%s8129_s27 + $0xb0] sm:$0xff] %v5938_v22  ;;  %417 = vst [vmem:[%s8129_s27 + $0xb8] sm:$0xff] %v5939_v23  ;;  %v5941_v25 = vld [vmem:[%s8124_s6 + $0x268] sm:$0xff]  ;;  %v5942_v26 = vld [vmem:[%s8124_s6 + $0x290] sm:$0xff] }
  0x65   : > { %419 = vst [vmem:[%s8129_s27 + $0xc0] sm:$0xff] %v5940_v24  ;;  %421 = vst [vmem:[%s8129_s27 + $0xc8] sm:$0xff] %v5941_v25  ;;  %v5943_v27 = vld [vmem:[%s8124_s6 + $0x298] sm:$0xff]  ;;  %v5944_v28 = vld [vmem:[%s8124_s6 + $0x2c0] sm:$0xff] }
  0x66   : > { %423 = vst [vmem:[%s8129_s27 + $0xd0] sm:$0xff] %v5942_v26  ;;  %v5945_v29 = vld [vmem:[%s8124_s6 + $0x2c8] sm:$0xff]  ;;  %425 = vst [vmem:[%s8129_s27 + $0xd8] sm:$0xff] %v5943_v27  ;;  %v5946_v30 = vld [vmem:[%s8124_s6 + $0x2f0] sm:$0xff] }
  0x67   : > { %427 = vst [vmem:[%s8129_s27 + $0xe0] sm:$0xff] %v5944_v28  ;;  %429 = vst [vmem:[%s8129_s27 + $0xe8] sm:$0xff] %v5945_v29  ;;  %v5947_v31 = vld [vmem:[%s8124_s6 + $0x2f8] sm:$0xff] }
  0x68   : > { %431 = vst [vmem:[%s8129_s27 + $0xf0] sm:$0xff] %v5946_v30  ;;  %433 = vst [vmem:[%s8129_s27 + $0xf8] sm:$0xff] %v5947_v31 }
  0x69 PF: > { %p5948_p11 = scmp.ge.s32.totalorder %s7842_s22, 1  ;;  %p438_p12 = scmp.lt.s32.totalorder %s7842_s22, 9 }
  0x6b   : > { %p439_p13 = pnand %p5948_p11, %p438_p12 }
  0x6d   : > { %442 = sbr.rel (%p439_p13) target bundleno = 3133 (0xc3d), region = 89 }
  0x74   : > { %s445_s30 = sand.u32 1, %s7810_s14   ;;  %s452_s5 = sand.u32 1, %s7802_s12  }
  0x75   : > { %s5949_s26 = sshll.u32 %s445_s30, 8  ;;  %s5950_s25 = sshll.u32 %s452_s5, 8 }
  0x76   : > { %s5952_s7 = sshll.u32 %s7822_s17, 4  ;;  %p499_p0 = scmp.lt.s32.totalorder %s7826_s18, 1 }
  0x77   : > { %p501_p1 = scmp.lt.s32.totalorder %s5952_s7, 31  ;;  %s8204_s0 = scalar_lea.vmem [#allocation5], %s5949_s26 }
  0x78   : > { %s11909_s18 = smov (!%p499_p0, %s7826_s18), 1  ;;  %s8206_s14 = scalar_lea.vmem [#allocation6], %s5950_s25 }
  0x79   : > { %s11911_s7 = smov (!%p501_p1, %s5952_s7), 31  ;;  %s5954_s10 = sshll.u32 %s11909_s18, 6 }
  0x7a   : > { %s5953_s11 = sshll.u32 %s11911_s7, 1  ;;  %s8208_s12 = scalar_lea.vmem [#allocation7], %s5950_s25 }
  0x7b   : > { %s505_s28 = sadd.s32 %s5954_s10, %s5953_s11  ;;  %p5956_p2 = scmp.ne.s32.totalorder %s7818_s16, 0 }
  0x7c   : > { %s5955_s29 = sshll.u32 %s505_s28, 3  ;;  %vm513_vm0 = vcmask (!%p5956_p2), 7168   ;;  %vm642_vm1 = vcmask (!%p5956_p2), 523264   ;;  %v7844_v32 = vmov (!%p5956_p2), -inf   ;;  %v7845_v33 = vmov (!%p5956_p2), 0.0  }
  0x7d   : > { %s8202_s27 = scalar_lea.vmem %s11332_s3, %s5955_s29  ;;  %512 = sbr.rel (%p5956_p2) target bundleno = 221 (0xdd), region = 105  ;;  %514 = vst.msk [vmem:[#allocation2] sm:$0xff] (!%p5956_p2), %vm513_vm0, %v7844_v32  ;;  %515 = vst.msk [vmem:[#allocation2 + $0x8] sm:$0xff] (!%p5956_p2), %vm513_vm0, %v7844_v32 }
  0x7e   : > { %516 = vst.msk [vmem:[#allocation2 + $0x10] sm:$0xff] (!%p5956_p2), %vm513_vm0, %v7844_v32  ;;  %517 = vst.msk [vmem:[#allocation2 + $0x18] sm:$0xff] (!%p5956_p2), %vm513_vm0, %v7844_v32 }
  0x7f   : > { %518 = vst.msk [vmem:[#allocation2 + $0x20] sm:$0xff] (!%p5956_p2), %vm513_vm0, %v7844_v32  ;;  %519 = vst.msk [vmem:[#allocation2 + $0x28] sm:$0xff] (!%p5956_p2), %vm513_vm0, %v7844_v32 }
  0x80   : > { %520 = vst.msk [vmem:[#allocation2 + $0x30] sm:$0xff] (!%p5956_p2), %vm513_vm0, %v7844_v32  ;;  %521 = vst.msk [vmem:[#allocation2 + $0x38] sm:$0xff] (!%p5956_p2), %vm513_vm0, %v7844_v32 }
  0x81   : > { %522 = vst.msk [vmem:[#allocation2 + $0x40] sm:$0xff] (!%p5956_p2), %vm513_vm0, %v7844_v32  ;;  %523 = vst.msk [vmem:[#allocation2 + $0x48] sm:$0xff] (!%p5956_p2), %vm513_vm0, %v7844_v32 }
  0x82   : > { %524 = vst.msk [vmem:[#allocation2 + $0x50] sm:$0xff] (!%p5956_p2), %vm513_vm0, %v7844_v32  ;;  %525 = vst.msk [vmem:[#allocation2 + $0x58] sm:$0xff] (!%p5956_p2), %vm513_vm0, %v7844_v32 }
  0x83   : > { %526 = vst.msk [vmem:[#allocation2 + $0x60] sm:$0xff] (!%p5956_p2), %vm513_vm0, %v7844_v32  ;;  %527 = vst.msk [vmem:[#allocation2 + $0x68] sm:$0xff] (!%p5956_p2), %vm513_vm0, %v7844_v32 }
  0x84   : > { %528 = vst.msk [vmem:[#allocation2 + $0x70] sm:$0xff] %vm513_vm0, %v7844_v32  ;;  %529 = vst.msk [vmem:[#allocation2 + $0x78] sm:$0xff] %vm513_vm0, %v7844_v32 }
  0x85   : > { %530 = vst.msk [vmem:[#allocation2 + $0x80] sm:$0xff] %vm513_vm0, %v7844_v32  ;;  %531 = vst.msk [vmem:[#allocation2 + $0x88] sm:$0xff] %vm513_vm0, %v7844_v32 }
  0x86   : > { %532 = vst.msk [vmem:[#allocation2 + $0x90] sm:$0xff] %vm513_vm0, %v7844_v32  ;;  %533 = vst.msk [vmem:[#allocation2 + $0x98] sm:$0xff] %vm513_vm0, %v7844_v32 }
  0x87   : > { %534 = vst.msk [vmem:[#allocation2 + $0xa0] sm:$0xff] %vm513_vm0, %v7844_v32  ;;  %535 = vst.msk [vmem:[#allocation2 + $0xa8] sm:$0xff] %vm513_vm0, %v7844_v32 }
  0x88   : > { %536 = vst.msk [vmem:[#allocation2 + $0xb0] sm:$0xff] %vm513_vm0, %v7844_v32  ;;  %537 = vst.msk [vmem:[#allocation2 + $0xb8] sm:$0xff] %vm513_vm0, %v7844_v32 }
  0x89   : > { %538 = vst.msk [vmem:[#allocation2 + $0xc0] sm:$0xff] %vm513_vm0, %v7844_v32  ;;  %539 = vst.msk [vmem:[#allocation2 + $0xc8] sm:$0xff] %vm513_vm0, %v7844_v32 }
  0x8a   : > { %540 = vst.msk [vmem:[#allocation2 + $0xd0] sm:$0xff] %vm513_vm0, %v7844_v32  ;;  %541 = vst.msk [vmem:[#allocation2 + $0xd8] sm:$0xff] %vm513_vm0, %v7844_v32 }
  0x8b   : > { %542 = vst.msk [vmem:[#allocation2 + $0xe0] sm:$0xff] %vm513_vm0, %v7844_v32  ;;  %543 = vst.msk [vmem:[#allocation2 + $0xe8] sm:$0xff] %vm513_vm0, %v7844_v32 }
  0x8c   : > { %544 = vst.msk [vmem:[#allocation2 + $0xf0] sm:$0xff] %vm513_vm0, %v7844_v32  ;;  %545 = vst.msk [vmem:[#allocation2 + $0xf8] sm:$0xff] %vm513_vm0, %v7844_v32 }
  0x8d   : > { %546 = vst.msk [vmem:[#allocation2 + $0x100] sm:$0xff] %vm513_vm0, %v7844_v32  ;;  %547 = vst.msk [vmem:[#allocation2 + $0x108] sm:$0xff] %vm513_vm0, %v7844_v32 }
  0x8e   : > { %548 = vst.msk [vmem:[#allocation2 + $0x110] sm:$0xff] %vm513_vm0, %v7844_v32  ;;  %549 = vst.msk [vmem:[#allocation2 + $0x118] sm:$0xff] %vm513_vm0, %v7844_v32 }
  0x8f   : > { %550 = vst.msk [vmem:[#allocation2 + $0x120] sm:$0xff] %vm513_vm0, %v7844_v32  ;;  %551 = vst.msk [vmem:[#allocation2 + $0x128] sm:$0xff] %vm513_vm0, %v7844_v32 }
  0x90   : > { %552 = vst.msk [vmem:[#allocation2 + $0x130] sm:$0xff] %vm513_vm0, %v7844_v32  ;;  %553 = vst.msk [vmem:[#allocation2 + $0x138] sm:$0xff] %vm513_vm0, %v7844_v32 }
  0x91   : > { %554 = vst.msk [vmem:[#allocation2 + $0x140] sm:$0xff] %vm513_vm0, %v7844_v32  ;;  %555 = vst.msk [vmem:[#allocation2 + $0x148] sm:$0xff] %vm513_vm0, %v7844_v32 }
  0x92   : > { %556 = vst.msk [vmem:[#allocation2 + $0x150] sm:$0xff] %vm513_vm0, %v7844_v32  ;;  %557 = vst.msk [vmem:[#allocation2 + $0x158] sm:$0xff] %vm513_vm0, %v7844_v32 }
  0x93   : > { %558 = vst.msk [vmem:[#allocation2 + $0x160] sm:$0xff] %vm513_vm0, %v7844_v32  ;;  %559 = vst.msk [vmem:[#allocation2 + $0x168] sm:$0xff] %vm513_vm0, %v7844_v32 }
  0x94   : > { %560 = vst.msk [vmem:[#allocation2 + $0x170] sm:$0xff] %vm513_vm0, %v7844_v32  ;;  %561 = vst.msk [vmem:[#allocation2 + $0x178] sm:$0xff] %vm513_vm0, %v7844_v32 }
  0x95   : > { %562 = vst.msk [vmem:[#allocation2 + $0x180] sm:$0xff] %vm513_vm0, %v7844_v32  ;;  %563 = vst.msk [vmem:[#allocation2 + $0x188] sm:$0xff] %vm513_vm0, %v7844_v32 }
  0x96   : > { %564 = vst.msk [vmem:[#allocation2 + $0x190] sm:$0xff] %vm513_vm0, %v7844_v32  ;;  %565 = vst.msk [vmem:[#allocation2 + $0x198] sm:$0xff] %vm513_vm0, %v7844_v32 }
  0x97   : > { %566 = vst.msk [vmem:[#allocation2 + $0x1a0] sm:$0xff] %vm513_vm0, %v7844_v32  ;;  %567 = vst.msk [vmem:[#allocation2 + $0x1a8] sm:$0xff] %vm513_vm0, %v7844_v32 }
  0x98   : > { %568 = vst.msk [vmem:[#allocation2 + $0x1b0] sm:$0xff] %vm513_vm0, %v7844_v32  ;;  %569 = vst.msk [vmem:[#allocation2 + $0x1b8] sm:$0xff] %vm513_vm0, %v7844_v32 }
  0x99   : > { %570 = vst.msk [vmem:[#allocation2 + $0x1c0] sm:$0xff] %vm513_vm0, %v7844_v32  ;;  %571 = vst.msk [vmem:[#allocation2 + $0x1c8] sm:$0xff] %vm513_vm0, %v7844_v32 }
  0x9a   : > { %572 = vst.msk [vmem:[#allocation2 + $0x1d0] sm:$0xff] %vm513_vm0, %v7844_v32  ;;  %573 = vst.msk [vmem:[#allocation2 + $0x1d8] sm:$0xff] %vm513_vm0, %v7844_v32 }
  0x9b   : > { %574 = vst.msk [vmem:[#allocation2 + $0x1e0] sm:$0xff] %vm513_vm0, %v7844_v32  ;;  %575 = vst.msk [vmem:[#allocation2 + $0x1e8] sm:$0xff] %vm513_vm0, %v7844_v32 }
  0x9c   : > { %576 = vst.msk [vmem:[#allocation2 + $0x1f0] sm:$0xff] %vm513_vm0, %v7844_v32  ;;  %577 = vst.msk [vmem:[#allocation2 + $0x1f8] sm:$0xff] %vm513_vm0, %v7844_v32 }
  0x9d   : > { %578 = vst.msk [vmem:[#allocation3] sm:$0xff] %vm513_vm0, %v7845_v33  ;;  %579 = vst.msk [vmem:[#allocation3 + $0x8] sm:$0xff] %vm513_vm0, %v7845_v33 }
  0x9e   : > { %580 = vst.msk [vmem:[#allocation3 + $0x10] sm:$0xff] %vm513_vm0, %v7845_v33  ;;  %581 = vst.msk [vmem:[#allocation3 + $0x18] sm:$0xff] %vm513_vm0, %v7845_v33 }
  0x9f   : > { %582 = vst.msk [vmem:[#allocation3 + $0x20] sm:$0xff] %vm513_vm0, %v7845_v33  ;;  %583 = vst.msk [vmem:[#allocation3 + $0x28] sm:$0xff] %vm513_vm0, %v7845_v33 }
  0xa0   : > { %584 = vst.msk [vmem:[#allocation3 + $0x30] sm:$0xff] %vm513_vm0, %v7845_v33  ;;  %585 = vst.msk [vmem:[#allocation3 + $0x38] sm:$0xff] %vm513_vm0, %v7845_v33 }
  0xa1   : > { %586 = vst.msk [vmem:[#allocation3 + $0x40] sm:$0xff] %vm513_vm0, %v7845_v33  ;;  %587 = vst.msk [vmem:[#allocation3 + $0x48] sm:$0xff] %vm513_vm0, %v7845_v33 }
  0xa2   : > { %588 = vst.msk [vmem:[#allocation3 + $0x50] sm:$0xff] %vm513_vm0, %v7845_v33  ;;  %589 = vst.msk [vmem:[#allocation3 + $0x58] sm:$0xff] %vm513_vm0, %v7845_v33 }
  0xa3   : > { %590 = vst.msk [vmem:[#allocation3 + $0x60] sm:$0xff] %vm513_vm0, %v7845_v33  ;;  %591 = vst.msk [vmem:[#allocation3 + $0x68] sm:$0xff] %vm513_vm0, %v7845_v33 }
  0xa4   : > { %592 = vst.msk [vmem:[#allocation3 + $0x70] sm:$0xff] %vm513_vm0, %v7845_v33  ;;  %593 = vst.msk [vmem:[#allocation3 + $0x78] sm:$0xff] %vm513_vm0, %v7845_v33 }
  0xa5   : > { %594 = vst.msk [vmem:[#allocation3 + $0x80] sm:$0xff] %vm513_vm0, %v7845_v33  ;;  %595 = vst.msk [vmem:[#allocation3 + $0x88] sm:$0xff] %vm513_vm0, %v7845_v33 }
  0xa6   : > { %596 = vst.msk [vmem:[#allocation3 + $0x90] sm:$0xff] %vm513_vm0, %v7845_v33  ;;  %597 = vst.msk [vmem:[#allocation3 + $0x98] sm:$0xff] %vm513_vm0, %v7845_v33 }
  0xa7   : > { %598 = vst.msk [vmem:[#allocation3 + $0xa0] sm:$0xff] %vm513_vm0, %v7845_v33  ;;  %599 = vst.msk [vmem:[#allocation3 + $0xa8] sm:$0xff] %vm513_vm0, %v7845_v33 }
  0xa8   : > { %600 = vst.msk [vmem:[#allocation3 + $0xb0] sm:$0xff] %vm513_vm0, %v7845_v33  ;;  %601 = vst.msk [vmem:[#allocation3 + $0xb8] sm:$0xff] %vm513_vm0, %v7845_v33 }
  0xa9   : > { %602 = vst.msk [vmem:[#allocation3 + $0xc0] sm:$0xff] %vm513_vm0, %v7845_v33  ;;  %603 = vst.msk [vmem:[#allocation3 + $0xc8] sm:$0xff] %vm513_vm0, %v7845_v33 }
  0xaa   : > { %604 = vst.msk [vmem:[#allocation3 + $0xd0] sm:$0xff] %vm513_vm0, %v7845_v33  ;;  %605 = vst.msk [vmem:[#allocation3 + $0xd8] sm:$0xff] %vm513_vm0, %v7845_v33 }
  0xab   : > { %606 = vst.msk [vmem:[#allocation3 + $0xe0] sm:$0xff] %vm513_vm0, %v7845_v33  ;;  %607 = vst.msk [vmem:[#allocation3 + $0xe8] sm:$0xff] %vm513_vm0, %v7845_v33 }
  0xac   : > { %608 = vst.msk [vmem:[#allocation3 + $0xf0] sm:$0xff] %vm513_vm0, %v7845_v33  ;;  %609 = vst.msk [vmem:[#allocation3 + $0xf8] sm:$0xff] %vm513_vm0, %v7845_v33 }
  0xad   : > { %610 = vst.msk [vmem:[#allocation3 + $0x100] sm:$0xff] %vm513_vm0, %v7845_v33  ;;  %611 = vst.msk [vmem:[#allocation3 + $0x108] sm:$0xff] %vm513_vm0, %v7845_v33 }
  0xae   : > { %612 = vst.msk [vmem:[#allocation3 + $0x110] sm:$0xff] %vm513_vm0, %v7845_v33  ;;  %613 = vst.msk [vmem:[#allocation3 + $0x118] sm:$0xff] %vm513_vm0, %v7845_v33 }
  0xaf   : > { %614 = vst.msk [vmem:[#allocation3 + $0x120] sm:$0xff] %vm513_vm0, %v7845_v33  ;;  %615 = vst.msk [vmem:[#allocation3 + $0x128] sm:$0xff] %vm513_vm0, %v7845_v33 }
  0xb0   : > { %616 = vst.msk [vmem:[#allocation3 + $0x130] sm:$0xff] %vm513_vm0, %v7845_v33  ;;  %617 = vst.msk [vmem:[#allocation3 + $0x138] sm:$0xff] %vm513_vm0, %v7845_v33 }
  0xb1   : > { %618 = vst.msk [vmem:[#allocation3 + $0x140] sm:$0xff] %vm513_vm0, %v7845_v33  ;;  %619 = vst.msk [vmem:[#allocation3 + $0x148] sm:$0xff] %vm513_vm0, %v7845_v33 }
  0xb2   : > { %620 = vst.msk [vmem:[#allocation3 + $0x150] sm:$0xff] %vm513_vm0, %v7845_v33  ;;  %621 = vst.msk [vmem:[#allocation3 + $0x158] sm:$0xff] %vm513_vm0, %v7845_v33 }
  0xb3   : > { %622 = vst.msk [vmem:[#allocation3 + $0x160] sm:$0xff] %vm513_vm0, %v7845_v33  ;;  %623 = vst.msk [vmem:[#allocation3 + $0x168] sm:$0xff] %vm513_vm0, %v7845_v33 }
  0xb4   : > { %624 = vst.msk [vmem:[#allocation3 + $0x170] sm:$0xff] %vm513_vm0, %v7845_v33  ;;  %625 = vst.msk [vmem:[#allocation3 + $0x178] sm:$0xff] %vm513_vm0, %v7845_v33 }
  0xb5   : > { %626 = vst.msk [vmem:[#allocation3 + $0x180] sm:$0xff] %vm513_vm0, %v7845_v33  ;;  %627 = vst.msk [vmem:[#allocation3 + $0x188] sm:$0xff] %vm513_vm0, %v7845_v33 }
  0xb6   : > { %628 = vst.msk [vmem:[#allocation3 + $0x190] sm:$0xff] %vm513_vm0, %v7845_v33  ;;  %629 = vst.msk [vmem:[#allocation3 + $0x198] sm:$0xff] %vm513_vm0, %v7845_v33 }
  0xb7   : > { %630 = vst.msk [vmem:[#allocation3 + $0x1a0] sm:$0xff] %vm513_vm0, %v7845_v33  ;;  %631 = vst.msk [vmem:[#allocation3 + $0x1a8] sm:$0xff] %vm513_vm0, %v7845_v33 }
  0xb8   : > { %632 = vst.msk [vmem:[#allocation3 + $0x1b0] sm:$0xff] %vm513_vm0, %v7845_v33  ;;  %633 = vst.msk [vmem:[#allocation3 + $0x1b8] sm:$0xff] %vm513_vm0, %v7845_v33 }
  0xb9   : > { %634 = vst.msk [vmem:[#allocation3 + $0x1c0] sm:$0xff] %vm513_vm0, %v7845_v33  ;;  %635 = vst.msk [vmem:[#allocation3 + $0x1c8] sm:$0xff] %vm513_vm0, %v7845_v33 }
  0xba   : > { %636 = vst.msk [vmem:[#allocation3 + $0x1d0] sm:$0xff] %vm513_vm0, %v7845_v33  ;;  %637 = vst.msk [vmem:[#allocation3 + $0x1d8] sm:$0xff] %vm513_vm0, %v7845_v33 }
  0xbb   : > { %638 = vst.msk [vmem:[#allocation3 + $0x1e0] sm:$0xff] %vm513_vm0, %v7845_v33  ;;  %639 = vst.msk [vmem:[#allocation3 + $0x1e8] sm:$0xff] %vm513_vm0, %v7845_v33 }
  0xbc   : > { %640 = vst.msk [vmem:[#allocation3 + $0x1f0] sm:$0xff] %vm513_vm0, %v7845_v33  ;;  %641 = vst.msk [vmem:[#allocation3 + $0x1f8] sm:$0xff] %vm513_vm0, %v7845_v33 }
  0xbd   : > { %643 = vst.msk [vmem:[#allocation4] sm:$0xff] %vm642_vm1, %v7845_v33  ;;  %644 = vst.msk [vmem:[#allocation4 + $0x8] sm:$0xff] %vm642_vm1, %v7845_v33 }
  0xbe   : > { %645 = vst.msk [vmem:[#allocation4 + $0x10] sm:$0xff] %vm642_vm1, %v7845_v33  ;;  %646 = vst.msk [vmem:[#allocation4 + $0x18] sm:$0xff] %vm642_vm1, %v7845_v33 }
  0xbf   : > { %647 = vst.msk [vmem:[#allocation4 + $0x20] sm:$0xff] %vm642_vm1, %v7845_v33  ;;  %648 = vst.msk [vmem:[#allocation4 + $0x28] sm:$0xff] %vm642_vm1, %v7845_v33 }
  0xc0   : > { %649 = vst.msk [vmem:[#allocation4 + $0x30] sm:$0xff] %vm642_vm1, %v7845_v33  ;;  %650 = vst.msk [vmem:[#allocation4 + $0x38] sm:$0xff] %vm642_vm1, %v7845_v33 }
  0xc1   : > { %651 = vst.msk [vmem:[#allocation4 + $0x40] sm:$0xff] %vm642_vm1, %v7845_v33  ;;  %652 = vst.msk [vmem:[#allocation4 + $0x48] sm:$0xff] %vm642_vm1, %v7845_v33 }
  0xc2   : > { %653 = vst.msk [vmem:[#allocation4 + $0x50] sm:$0xff] %vm642_vm1, %v7845_v33  ;;  %654 = vst.msk [vmem:[#allocation4 + $0x58] sm:$0xff] %vm642_vm1, %v7845_v33 }
  0xc3   : > { %655 = vst.msk [vmem:[#allocation4 + $0x60] sm:$0xff] %vm642_vm1, %v7845_v33  ;;  %656 = vst.msk [vmem:[#allocation4 + $0x68] sm:$0xff] %vm642_vm1, %v7845_v33 }
  0xc4   : > { %657 = vst.msk [vmem:[#allocation4 + $0x70] sm:$0xff] %vm642_vm1, %v7845_v33  ;;  %658 = vst.msk [vmem:[#allocation4 + $0x78] sm:$0xff] %vm642_vm1, %v7845_v33 }
  0xc5   : > { %659 = vst.msk [vmem:[#allocation4 + $0x80] sm:$0xff] %vm642_vm1, %v7845_v33  ;;  %660 = vst.msk [vmem:[#allocation4 + $0x88] sm:$0xff] %vm642_vm1, %v7845_v33 }
  0xc6   : > { %661 = vst.msk [vmem:[#allocation4 + $0x90] sm:$0xff] %vm642_vm1, %v7845_v33  ;;  %662 = vst.msk [vmem:[#allocation4 + $0x98] sm:$0xff] %vm642_vm1, %v7845_v33 }
  0xc7   : > { %663 = vst.msk [vmem:[#allocation4 + $0xa0] sm:$0xff] %vm642_vm1, %v7845_v33  ;;  %664 = vst.msk [vmem:[#allocation4 + $0xa8] sm:$0xff] %vm642_vm1, %v7845_v33 }
  0xc8   : > { %665 = vst.msk [vmem:[#allocation4 + $0xb0] sm:$0xff] %vm642_vm1, %v7845_v33  ;;  %666 = vst.msk [vmem:[#allocation4 + $0xb8] sm:$0xff] %vm642_vm1, %v7845_v33 }
  0xc9   : > { %667 = vst.msk [vmem:[#allocation4 + $0xc0] sm:$0xff] %vm642_vm1, %v7845_v33  ;;  %668 = vst.msk [vmem:[#allocation4 + $0xc8] sm:$0xff] %vm642_vm1, %v7845_v33 }
  0xca   : > { %669 = vst.msk [vmem:[#allocation4 + $0xd0] sm:$0xff] %vm642_vm1, %v7845_v33  ;;  %670 = vst.msk [vmem:[#allocation4 + $0xd8] sm:$0xff] %vm642_vm1, %v7845_v33 }
  0xcb   : > { %671 = vst.msk [vmem:[#allocation4 + $0xe0] sm:$0xff] %vm642_vm1, %v7845_v33  ;;  %672 = vst.msk [vmem:[#allocation4 + $0xe8] sm:$0xff] %vm642_vm1, %v7845_v33 }
  0xcc   : > { %673 = vst.msk [vmem:[#allocation4 + $0xf0] sm:$0xff] %vm642_vm1, %v7845_v33  ;;  %674 = vst.msk [vmem:[#allocation4 + $0xf8] sm:$0xff] %vm642_vm1, %v7845_v33 }
  0xcd   : > { %675 = vst.msk [vmem:[#allocation4 + $0x100] sm:$0xff] %vm642_vm1, %v7845_v33  ;;  %676 = vst.msk [vmem:[#allocation4 + $0x108] sm:$0xff] %vm642_vm1, %v7845_v33 }
  0xce   : > { %677 = vst.msk [vmem:[#allocation4 + $0x110] sm:$0xff] %vm642_vm1, %v7845_v33  ;;  %678 = vst.msk [vmem:[#allocation4 + $0x118] sm:$0xff] %vm642_vm1, %v7845_v33 }
  0xcf   : > { %679 = vst.msk [vmem:[#allocation4 + $0x120] sm:$0xff] %vm642_vm1, %v7845_v33  ;;  %680 = vst.msk [vmem:[#allocation4 + $0x128] sm:$0xff] %vm642_vm1, %v7845_v33 }
  0xd0   : > { %681 = vst.msk [vmem:[#allocation4 + $0x130] sm:$0xff] %vm642_vm1, %v7845_v33  ;;  %682 = vst.msk [vmem:[#allocation4 + $0x138] sm:$0xff] %vm642_vm1, %v7845_v33 }
  0xd1   : > { %683 = vst.msk [vmem:[#allocation4 + $0x140] sm:$0xff] %vm642_vm1, %v7845_v33  ;;  %684 = vst.msk [vmem:[#allocation4 + $0x148] sm:$0xff] %vm642_vm1, %v7845_v33 }
  0xd2   : > { %685 = vst.msk [vmem:[#allocation4 + $0x150] sm:$0xff] %vm642_vm1, %v7845_v33  ;;  %686 = vst.msk [vmem:[#allocation4 + $0x158] sm:$0xff] %vm642_vm1, %v7845_v33 }
  0xd3   : > { %687 = vst.msk [vmem:[#allocation4 + $0x160] sm:$0xff] %vm642_vm1, %v7845_v33  ;;  %688 = vst.msk [vmem:[#allocation4 + $0x168] sm:$0xff] %vm642_vm1, %v7845_v33 }
  0xd4   : > { %689 = vst.msk [vmem:[#allocation4 + $0x170] sm:$0xff] %vm642_vm1, %v7845_v33  ;;  %690 = vst.msk [vmem:[#allocation4 + $0x178] sm:$0xff] %vm642_vm1, %v7845_v33 }
  0xd5   : > { %691 = vst.msk [vmem:[#allocation4 + $0x180] sm:$0xff] %vm642_vm1, %v7845_v33  ;;  %692 = vst.msk [vmem:[#allocation4 + $0x188] sm:$0xff] %vm642_vm1, %v7845_v33 }
  0xd6   : > { %693 = vst.msk [vmem:[#allocation4 + $0x190] sm:$0xff] %vm642_vm1, %v7845_v33  ;;  %694 = vst.msk [vmem:[#allocation4 + $0x198] sm:$0xff] %vm642_vm1, %v7845_v33 }
  0xd7   : > { %695 = vst.msk [vmem:[#allocation4 + $0x1a0] sm:$0xff] %vm642_vm1, %v7845_v33  ;;  %696 = vst.msk [vmem:[#allocation4 + $0x1a8] sm:$0xff] %vm642_vm1, %v7845_v33 }
  0xd8   : > { %697 = vst.msk [vmem:[#allocation4 + $0x1b0] sm:$0xff] %vm642_vm1, %v7845_v33  ;;  %698 = vst.msk [vmem:[#allocation4 + $0x1b8] sm:$0xff] %vm642_vm1, %v7845_v33 }
  0xd9   : > { %699 = vst.msk [vmem:[#allocation4 + $0x1c0] sm:$0xff] %vm642_vm1, %v7845_v33  ;;  %700 = vst.msk [vmem:[#allocation4 + $0x1c8] sm:$0xff] %vm642_vm1, %v7845_v33 }
  0xda   : > { %701 = vst.msk [vmem:[#allocation4 + $0x1d0] sm:$0xff] %vm642_vm1, %v7845_v33  ;;  %702 = vst.msk [vmem:[#allocation4 + $0x1d8] sm:$0xff] %vm642_vm1, %v7845_v33 }
  0xdb   : > { %703 = vst.msk [vmem:[#allocation4 + $0x1e0] sm:$0xff] %vm642_vm1, %v7845_v33  ;;  %704 = vst.msk [vmem:[#allocation4 + $0x1e8] sm:$0xff] %vm642_vm1, %v7845_v33 }
  0xdc   : > { %705 = vst.msk [vmem:[#allocation4 + $0x1f0] sm:$0xff] %vm642_vm1, %v7845_v33  ;;  %706 = vst.msk [vmem:[#allocation4 + $0x1f8] sm:$0xff] %vm642_vm1, %v7845_v33 }
  0xdd PF: > { %v8596_v34 = vld [vmem:[%s8206_s14] sm:$0xff]  ;;  %v8599_v35 = vld [vmem:[%s8206_s14 + $0x10] sm:$0xff]  ;;  %vm771_vm2 = vcmask 523264   ;;  %vm1333_vm4 = vcmask 7168   ;;  %s7847_s17 = smov 64   ;;  %p6085_p3 = scmp.ne.s32.totalorder %s7818_s16, 1 }
  0xde   : > { %v8602_v36 = vld [vmem:[%s8206_s14 + $0x20] sm:$0xff]  ;;  %v6792_v37 = vpack.c.bf16 %v8599_v35, %v8596_v34  ;;  %vm8608_vm3 = vmpackc.low %vm771_vm2, %vm771_vm2  ;;  %v8613_v39 = vld [vmem:[%s8206_s14 + $0x30] sm:$0xff]  ;;  %vm5226_vm5 = vcmask (!%p6085_p3), 1048064  }
  0xdf   : > { %v6798_v40 = vpack.c.bf16 %v8613_v39, %v8602_v36  ;;  %v707_v41 = vld [vmem:[%s8204_s0] sm:$0xff]  ;;  %v8628_v43 = vld [vmem:[%s8206_s14 + $0x50] sm:$0xff] }
  0xe0   : > { %6794 = vmatprep.subr.msk.bf16.mxu0 %vm8608_vm3, %v6792_v37  ;;  %v8625_v42 = vld [vmem:[%s8206_s14 + $0x40] sm:$0xff]  ;;  %v8630_v44 = vmul.f32 0.125, %v707_v41  ;;  %v8644_v47 = vld [vmem:[%s8206_s14 + $0x70] sm:$0xff] }
  0xe1   : > { %6797 = vmatpush3.bf16.xpose.msk.msra.mxu0 %vm8608_vm3, %v6792_v37  ;;  %v6804_v45 = vpack.c.bf16 %v8628_v43, %v8625_v42  ;;  %v8641_v46 = vld [vmem:[%s8206_s14 + $0x60] sm:$0xff]  ;;  %v8656_v50 = vld [vmem:[%s8206_s14 + $0x90] sm:$0xff] }
  0xe2   : > { %6800 = vmatprep.subr.msk.bf16.mxu0 %vm8608_vm3, %v6798_v40  ;;  %6376 = vmatprep.mubr.msk.f32.mxu0 %vm771_vm2, %v8630_v44  ;;  %v6810_v48 = vpack.c.bf16 %v8644_v47, %v8641_v46  ;;  %v8653_v49 = vld [vmem:[%s8206_s14 + $0x80] sm:$0xff]  ;;  %v8668_v53 = vld [vmem:[%s8206_s14 + $0xb0] sm:$0xff] }
  0xe3   : > { %v6816_v51 = vpack.c.bf16 %v8656_v50, %v8653_v49  ;;  %v8665_v52 = vld [vmem:[%s8206_s14 + $0xa0] sm:$0xff]  ;;  %v8680_v56 = vld [vmem:[%s8206_s14 + $0xd0] sm:$0xff] }
  0xe4   : > { %v6822_v54 = vpack.c.bf16 %v8668_v53, %v8665_v52  ;;  %v8677_v55 = vld [vmem:[%s8206_s14 + $0xc0] sm:$0xff]  ;;  %v8692_v59 = vld [vmem:[%s8206_s14 + $0xf0] sm:$0xff] }
  0xe5   : > { %v6828_v57 = vpack.c.bf16 %v8680_v56, %v8677_v55  ;;  %v8689_v58 = vld [vmem:[%s8206_s14 + $0xe0] sm:$0xff]  ;;  %v708_v61 = vld [vmem:[%s8204_s0 + $0x10] sm:$0xff] }
  0xe6   : > { %v6834_v60 = vpack.c.bf16 %v8692_v59, %v8689_v58  ;;  %v709_v62 = vld [vmem:[%s8204_s0 + $0x20] sm:$0xff]  ;;  %v8704_v63 = vmul.f32 0.125, %v708_v61  ;;  %v710_v1 = vld [vmem:[%s8204_s0 + $0x30] sm:$0xff] }
  0xe7   : > { %v8706_v0 = vmul.f32 0.125, %v709_v62  ;;  %v711_v2 = vld [vmem:[%s8204_s0 + $0x40] sm:$0xff]  ;;  %v8712_v3 = vmul.f32 0.125, %v710_v1  ;;  %v712_v5 = vld [vmem:[%s8204_s0 + $0x50] sm:$0xff] }
  0xe8   : > { %v8716_v4 = vmul.f32 0.125, %v711_v2  ;;  %v713_v6 = vld [vmem:[%s8204_s0 + $0x60] sm:$0xff]  ;;  %v8722_v7 = vmul.f32 0.125, %v712_v5  ;;  %v714_v9 = vld [vmem:[%s8204_s0 + $0x70] sm:$0xff] }
  0xe9   : > { %6803 = vmatpush3.bf16.xpose.msk.msra.mxu0 %vm8608_vm3, %v6798_v40  ;;  %v8726_v8 = vmul.f32 0.125, %v713_v6  ;;  %v715_v10 = vld [vmem:[%s8204_s0 + $0x80] sm:$0xff]  ;;  %v8732_v11 = vmul.f32 0.125, %v714_v9  ;;  %v716_v13 = vld [vmem:[%s8204_s0 + $0x90] sm:$0xff] }
  0xea   : > { %6806 = vmatprep.subr.msk.bf16.mxu0 %vm8608_vm3, %v6804_v45  ;;  %v8736_v12 = vmul.f32 0.125, %v715_v10  ;;  %v717_v14 = vld [vmem:[%s8204_s0 + $0xa0] sm:$0xff]  ;;  %v8742_v15 = vmul.f32 0.125, %v716_v13  ;;  %v718_v17 = vld [vmem:[%s8204_s0 + $0xb0] sm:$0xff] }
  0xeb   : > { %v8746_v16 = vmul.f32 0.125, %v717_v14  ;;  %v719_v18 = vld [vmem:[%s8204_s0 + $0xc0] sm:$0xff]  ;;  %v8752_v19 = vmul.f32 0.125, %v718_v17  ;;  %v720_v21 = vld [vmem:[%s8204_s0 + $0xd0] sm:$0xff] }
  0xec   : > { %v8756_v20 = vmul.f32 0.125, %v719_v18  ;;  %v721_v22 = vld [vmem:[%s8204_s0 + $0xe0] sm:$0xff]  ;;  %v8762_v23 = vmul.f32 0.125, %v720_v21  ;;  %v722_v25 = vld [vmem:[%s8204_s0 + $0xf0] sm:$0xff] }
  0xed   : > { %v8766_v24 = vmul.f32 0.125, %v721_v22  ;;  %v8771_v26 = vmul.f32 0.125, %v722_v25  ;;  %v8826_v62 = vld [vmem:[%s8208_s12] sm:$0xff]  ;;  %v8829_v1 = vld [vmem:[%s8208_s12 + $0x10] sm:$0xff] }
  0xee   : > { %v8832_v2 = vld [vmem:[%s8208_s12 + $0x20] sm:$0xff]  ;;  %v6840_v5 = vpack.c.bf16 %v8829_v1, %v8826_v62  ;;  %v8837_v6 = vld [vmem:[%s8208_s12 + $0x30] sm:$0xff] }
  0xef   : > { %11470 = vst [vmem:[#allocation9_spill] sm:$0xff] %v8832_v2  ;;  %11471 = vst [vmem:[#allocation10_spill] sm:$0xff] %v8837_v6  ;;  %v6844_v9 = vpack.c.bf16 %v8837_v6, %v8832_v2  ;;  %v8842_v10 = vld [vmem:[%s8208_s12 + $0x40] sm:$0xff]  ;;  %v8845_v13 = vld [vmem:[%s8208_s12 + $0x50] sm:$0xff] }
  0xf0   : > { %11472 = vst [vmem:[#allocation11_spill] sm:$0xff] %v8842_v10  ;;  %11473 = vst [vmem:[#allocation12_spill] sm:$0xff] %v8845_v13  ;;  %6841 = vmatprep.subr.bf16.mxu1 %v6840_v5  ;;  %v6848_v14 = vpack.c.bf16 %v8845_v13, %v8842_v10  ;;  %v8850_v17 = vld [vmem:[%s8208_s12 + $0x60] sm:$0xff]  ;;  %v8853_v18 = vld [vmem:[%s8208_s12 + $0x70] sm:$0xff] }
  0xf1   : > { %6809 = vmatpush3.bf16.xpose.msk.msra.mxu0 %vm8608_vm3, %v6804_v45  ;;  %v7846_v45 = vmov 0   ;;  %6843 = vmatpush3.bf16.msra.mxu1 %v6840_v5  ;;  %11474 = vst [vmem:[#allocation13_spill] sm:$0xff] %v8850_v17  ;;  %11475 = vst [vmem:[#allocation14_spill] sm:$0xff] %v8853_v18  ;;  %v6852_v21 = vpack.c.bf16 %v8853_v18, %v8850_v17  ;;  %v8858_v22 = vld [vmem:[%s8208_s12 + $0x80] sm:$0xff]  ;;  %v8861_v25 = vld [vmem:[%s8208_s12 + $0x90] sm:$0xff] }
  0xf2   : > { %6812 = vmatprep.subr.msk.bf16.mxu0 %vm8608_vm3, %v6810_v48  ;;  %7208 = vset.pattern.permute.xlu0 %v7846_v45  ;;  %11476 = vst [vmem:[#allocation15_spill] sm:$0xff] %v8858_v22  ;;  %11477 = vst [vmem:[#allocation16_spill] sm:$0xff] %v8861_v25  ;;  %v8865_v5 = vld [vmem:[#allocation2] sm:$0xff]  ;;  %v8870_v18 = vld [vmem:[#allocation2 + $0x18] sm:$0xff] }
  0xf3   : > { %7209 = vset.pattern.permute.xlu1 %v7846_v45  ;;  %6845 = vmatprep.subr.bf16.mxu1 %v6844_v9  ;;  %v6856_v45 = vpack.c.bf16 %v8861_v25, %v8858_v22  ;;  %11478 = vst [vmem:[#allocation17_spill] sm:$0xff] %v8865_v5  ;;  %11480 = vst [vmem:[#allocation19_spill] sm:$0xff] %v8870_v18  ;;  %v8873_v17 = vld [vmem:[%s8208_s12 + $0xa0] sm:$0xff]  ;;  %v8878_v10 = vld [vmem:[#allocation2 + $0x8] sm:$0xff]  ;;  %v7225_v25 = vpack.i.bf16 %v8644_v47, %v8641_v46 }
  0xf4   : > { %11481 = vst [vmem:[#allocation20_spill] sm:$0xff] %v8873_v17  ;;  %11483 = vst [vmem:[#allocation22_spill] sm:$0xff] %v8878_v10  ;;  %v8907_v46 = vld [vmem:[#allocation2 + $0x20] sm:$0xff] }
  0xf5   : > { %6847 = vmatpush3.bf16.msra.mxu1 %v6844_v9 }
  0xf6   : > { %6849 = vmatprep.subr.bf16.mxu1 %v6848_v14 }
  0xf9   : > { %6815 = vmatpush3.bf16.xpose.msk.msra.mxu0 %vm8608_vm3, %v6810_v48  ;;  %6851 = vmatpush3.bf16.msra.mxu1 %v6848_v14  ;;  %v8876_v14 = vld [vmem:[%s8208_s12 + $0xb0] sm:$0xff] }
  0xfa   : > { %6818 = vmatprep.subr.msk.bf16.mxu0 %vm8608_vm3, %v6816_v51  ;;  %6853 = vmatprep.subr.bf16.mxu1 %v6852_v21  ;;  %11482 = vst [vmem:[#allocation21_spill] sm:$0xff] %v8876_v14 }
  0xfd   : > { %6855 = vmatpush3.bf16.msra.mxu1 %v6852_v21  ;;  %v6860_v21 = vpack.c.bf16 %v8876_v14, %v8873_v17  ;;  %v8895_v14 = vld [vmem:[#allocation2 + $0x10] sm:$0xff] }
  0xfe   : > { %6857 = vmatprep.subr.bf16.mxu1 %v6856_v45  ;;  %11486 = vst [vmem:[#allocation25_spill] sm:$0xff] %v8895_v14 }
 0x101   : > { %6821 = vmatpush3.bf16.xpose.msk.msra.mxu0 %vm8608_vm3, %v6816_v51  ;;  %6859 = vmatpush3.bf16.msra.mxu1 %v6856_v45  ;;  %v8898_v45 = vld [vmem:[%s8208_s12 + $0xc0] sm:$0xff] }
 0x102   : > { %6824 = vmatprep.subr.msk.bf16.mxu0 %vm8608_vm3, %v6822_v54  ;;  %6861 = vmatprep.subr.bf16.mxu1 %v6860_v21 }
 0x105   : > { %6863 = vmatpush3.bf16.msra.mxu1 %v6860_v21 }
 0x109   : > { %6827 = vmatpush3.bf16.xpose.msk.msra.mxu0 %vm8608_vm3, %v6822_v54 }
 0x10a   : > { %6830 = vmatprep.subr.msk.bf16.mxu0 %vm8608_vm3, %v6828_v57 }
 0x111   : > { %6833 = vmatpush3.bf16.xpose.msk.msra.mxu0 %vm8608_vm3, %v6828_v57 }
 0x112   : > { %6836 = vmatprep.subr.msk.bf16.mxu0 %vm8608_vm3, %v6834_v60 }
 0x119   : > { %6839 = vmatpush3.bf16.xpose.msk.msra.mxu0 %vm8608_vm3, %v6834_v60 }
 0x120   : > { %6377 = vmatmul.mubr.msk.f32.vlgmr.msra.gmra.mrb[0].mxu0 %vm771_vm2, %v8704_v63 }
 0x121   : > { %6379 = vmatprep.mubr.msk.f32.mxu0 %vm771_vm2, %v8706_v0 }
 0x124   : > { %6380 = vmatmul.mubr.msk.f32.gmra.mrb[2].mxu0 %vm771_vm2, %v8712_v3 }
 0x125   : > { %6382 = vmatprep.mubr.msk.f32.mxu0 %vm771_vm2, %v8716_v4 }
 0x128   : > { %6383 = vmatmul.mubr.msk.f32.gmra.mrb[4].mxu0 %vm771_vm2, %v8722_v7 }
 0x129   : > { %6385 = vmatprep.mubr.msk.f32.mxu0 %vm771_vm2, %v8726_v8 }
 0x12c   : > { %6386 = vmatmul.mubr.msk.f32.gmra.mrb[6].mxu0 %vm771_vm2, %v8732_v11 }
 0x12d   : > { %6388 = vmatprep.mubr.msk.f32.mxu0 %vm771_vm2, %v8736_v12 }
 0x130   : > { %6389 = vmatmul.mubr.msk.f32.gmra.mrb[8].mxu0 %vm771_vm2, %v8742_v15 }
 0x131   : > { %6391 = vmatprep.mubr.msk.f32.mxu0 %vm771_vm2, %v8746_v16 }
 0x134   : > { %6392 = vmatmul.mubr.msk.f32.gmra.mrb[10].mxu0 %vm771_vm2, %v8752_v19 }
 0x135   : > { %6394 = vmatprep.mubr.msk.f32.mxu0 %vm771_vm2, %v8756_v20 }
 0x138   : > { %6395 = vmatmul.mubr.msk.f32.gmra.mrb[12].mxu0 %vm771_vm2, %v8762_v23 }
 0x139   : > { %6397 = vmatprep.mubr.msk.f32.mxu0 %vm771_vm2, %v8766_v24 }
 0x13c   : > { %6398 = vmatmul.mubr.msk.f32.gmra.mrb[14].mxu0 %vm771_vm2, %v8771_v26 }
 0x1f3   : > { %v8777_v27 = vpop.f32.mrb[0].mxu0 }
 0x1f4   : > { %v8779_v28 = vpop.f32.mrb[1].mxu0 }
 0x1f5   : > { %1029 = vmax.xlane.f32.xlu0 %v8779_v28 }
 0x1f7   : > { %v8782_v29 = vpop.f32.mrb[2].mxu0 }
 0x1f8   : > { %1035 = vmax.xlane.f32.xlu1 %v8782_v29  ;;  %v8785_v30 = vpop.f32.mrb[3].mxu0 }
 0x1f9   : > { %1031 = vmax.xlane.f32.xlu0 %v8777_v27 }
 0x1fb   : > { %v8788_v31 = vpop.f32.mrb[4].mxu0 }
 0x1fc   : > { %1033 = vmax.xlane.f32.xlu1 %v8785_v30  ;;  %v8791_v32 = vpop.f32.mrb[5].mxu0 }
 0x1fd   : > { %1037 = vmax.xlane.f32.xlu0 %v8791_v32 }
 0x1ff   : > { %v8794_v33 = vpop.f32.mrb[6].mxu0 }
 0x200   : > { %1039 = vmax.xlane.f32.xlu1 %v8788_v31  ;;  %v8797_v37 = vpop.f32.mrb[7].mxu0 }
 0x201   : > { %1041 = vmax.xlane.f32.xlu0 %v8797_v37 }
 0x203   : > { %v8800_v40 = vpop.f32.mrb[8].mxu0 }
 0x204   : > { %1043 = vmax.xlane.f32.xlu1 %v8794_v33  ;;  %v8803_v41 = vpop.f32.mrb[9].mxu0 }
 0x205   : > { %1045 = vmax.xlane.f32.xlu0 %v8803_v41 }
 0x207   : > { %v8806_v48 = vpop.f32.mrb[10].mxu0 }
 0x208   : > { %1047 = vmax.xlane.f32.xlu1 %v8800_v40  ;;  %v8809_v51 = vpop.f32.mrb[11].mxu0 }
 0x209   : > { %1049 = vmax.xlane.f32.xlu0 %v8809_v51 }
 0x20b   : > { %v8812_v54 = vpop.f32.mrb[12].mxu0 }
 0x20c   : > { %1051 = vmax.xlane.f32.xlu1 %v8806_v48  ;;  %v8815_v57 = vpop.f32.mrb[13].mxu0 }
 0x20d   : > { %1053 = vmax.xlane.f32.xlu0 %v8815_v57 }
 0x20f   : > { %v8818_v60 = vpop.f32.mrb[14].mxu0 }
 0x210   : > { %v8820_v61 = vpop.f32.mrb[15].mxu0  ;;  %1055 = vmax.xlane.f32.xlu1 %v8812_v54 }
 0x211   : > { %1057 = vmax.xlane.f32.xlu0 %v8820_v61 }
 0x214   : > { %1059 = vmax.xlane.f32.xlu1 %v8818_v60 }
 0x282   : > { %v1030_v9 = vpop.xlane.xlu0 %1029 }
 0x283   : > { %v8868_v13 = vmax.f32 %v8865_v5, %v1030_v9  ;;  %v8901_v5 = vld [vmem:[%s8208_s12 + $0xd0] sm:$0xff] }
 0x284   : > { %11487 = vst [vmem:[#allocation26_spill] sm:$0xff] %v8901_v5  ;;  %v6864_v47 = vpack.c.bf16 %v8901_v5, %v8898_v45 }
 0x285   : > { %11479 = vst [vmem:[#allocation18_spill] sm:$0xff] %v8868_v13  ;;  %1639 = vst.msk [vmem:[#allocation2] sm:$0xff] %vm1333_vm4, %v8868_v13  ;;  %v1036_v9 = vpop.xlane.xlu1 %1035  ;;  %1127 = vperm.xlu0 %7208, %v8868_v13  }
 0x286   : > { %v8890_v22 = vmax.f32 %v8870_v18, %v1036_v9  ;;  %v1032_v6 = vpop.xlane.xlu0 %1031  ;;  %v7210_v9 = vpack.i.bf16 %v8599_v35, %v8596_v34  ;;  %6865 = vmatprep.subr.bf16.mxu1 %v6864_v47  ;;  %v8937_v35 = vld [vmem:[#allocation2 + $0x30] sm:$0xff] }
 0x287   : > { %v8893_v2 = vmax.f32 %v8878_v10, %v1032_v6  ;;  %v8925_v6 = vld [vmem:[#allocation2 + $0x28] sm:$0xff]  ;;  %6867 = vmatpush3.bf16.msra.mxu1 %v6864_v47  ;;  %v8928_v10 = vld [vmem:[%s8208_s12 + $0xe0] sm:$0xff] }
 0x288   : > { %11484 = vst [vmem:[#allocation23_spill] sm:$0xff] %v8890_v22  ;;  %1642 = vst.msk [vmem:[#allocation2 + $0x18] sm:$0xff] %vm1333_vm4, %v8890_v22 }
 0x289   : > { %11485 = vst [vmem:[#allocation24_spill] sm:$0xff] %v8893_v2  ;;  %1640 = vst.msk [vmem:[#allocation2 + $0x8] sm:$0xff] %vm1333_vm4, %v8893_v2  ;;  %v1034_v21 = vpop.xlane.xlu1 %1033  ;;  %1132 = vperm.xlu1 %7209, %v8893_v2   ;;  %7226 = vrot.lane.b32.xlu0 %v7225_v25, %s7847_s17  ;;  %v8931_v2 = vld [vmem:[%s8208_s12 + $0xf0] sm:$0xff] }
 0x28a   : > { %v8920_v13 = vmax.f32 %v8895_v14, %v1034_v21  ;;  %v1038_v18 = vpop.xlane.xlu0 %1037  ;;  %11488 = vst [vmem:[#allocation27_spill] sm:$0xff] %v8925_v6  ;;  %11489 = vst [vmem:[#allocation28_spill] sm:$0xff] %v8931_v2  ;;  %v6868_v25 = vpack.c.bf16 %v8931_v2, %v8928_v10  ;;  %v7215_v21 = vpack.i.bf16 %v8613_v39, %v8602_v36  ;;  %v8954_v2 = vld [vmem:[#allocation2 + $0x38] sm:$0xff] }
 0x28b   : > { %v8923_v17 = vmax.f32 %v8907_v46, %v1038_v18  ;;  %11491 = vst [vmem:[#allocation30_spill] sm:$0xff] %v8954_v2  ;;  %v8973_v18 = vld [vmem:[#allocation2 + $0x48] sm:$0xff] }
 0x28c   : > { %1641 = vst.msk [vmem:[#allocation2 + $0x10] sm:$0xff] %vm1333_vm4, %v8920_v13  ;;  %6869 = vmatprep.subr.bf16.mxu1 %v6868_v25  ;;  %11493 = vst [vmem:[#allocation32_spill] sm:$0xff] %v8973_v18 }
 0x28d   : > { %1643 = vst.msk [vmem:[#allocation2 + $0x20] sm:$0xff] %vm1333_vm4, %v8923_v17  ;;  %v1040_v47 = vpop.xlane.xlu1 %1039  ;;  %7211 = vrot.lane.b32.xlu1 %v7210_v9, %s7847_s17  ;;  %6871 = vmatpush3.bf16.msra.mxu1 %v6868_v25  ;;  %v8960_v9 = vld [vmem:[#allocation2 + $0x40] sm:$0xff] }
 0x28e   : > { %v8949_v34 = vmax.f32 %v8925_v6, %v1040_v47  ;;  %v1042_v14 = vpop.xlane.xlu0 %1041  ;;  %11492 = vst [vmem:[#allocation31_spill] sm:$0xff] %v8960_v9 }
 0x28f   : > { %v8952_v5 = vmax.f32 %v8937_v35, %v1042_v14  ;;  %v7220_v14 = vpack.i.bf16 %v8628_v43, %v8625_v42  ;;  %v9002_v42 = vld [vmem:[#allocation2 + $0x60] sm:$0xff] }
 0x290   : > { %1644 = vst.msk [vmem:[#allocation2 + $0x28] sm:$0xff] %vm1333_vm4, %v8949_v34 }
 0x291   : > { %11490 = vst [vmem:[#allocation29_spill] sm:$0xff] %v8952_v5  ;;  %1645 = vst.msk [vmem:[#allocation2 + $0x30] sm:$0xff] %vm1333_vm4, %v8952_v5  ;;  %v1044_v39 = vpop.xlane.xlu1 %1043  ;;  %7216 = vrot.lane.b32.xlu1 %v7215_v21, %s7847_s17  ;;  %1157 = vperm.xlu0 %7208, %v8952_v5   ;;  %v8982_v21 = vld [vmem:[#allocation2 + $0x50] sm:$0xff] }
 0x292   : > { %v8971_v25 = vmax.f32 %v8954_v2, %v1044_v39  ;;  %v1046_v47 = vpop.xlane.xlu0 %1045  ;;  %11494 = vst [vmem:[#allocation33_spill] sm:$0xff] %v8982_v21 }
 0x293   : > { %v8976_v6 = vmax.f32 %v8960_v9, %v1046_v47  ;;  %v8992_v47 = vld [vmem:[#allocation2 + $0x58] sm:$0xff]  ;;  %v9015_v9 = vld [vmem:[#allocation2 + $0x68] sm:$0xff] }
 0x294   : > { %1646 = vst.msk [vmem:[#allocation2 + $0x38] sm:$0xff] %vm1333_vm4, %v8971_v25  ;;  %11496 = vst [vmem:[#allocation35_spill] sm:$0xff] %v8992_v47 }
 0x295   : > { %v1048_v5 = vpop.xlane.xlu1 %1047  ;;  %1647 = vst.msk [vmem:[#allocation2 + $0x40] sm:$0xff] %vm1333_vm4, %v8976_v6  ;;  %7221 = vrot.lane.b32.xlu1 %v7220_v14, %s7847_s17  ;;  %11498 = vst [vmem:[#allocation37_spill] sm:$0xff] %v9015_v9 }
 0x296   : > { %v8990_v43 = vmax.f32 %v8973_v18, %v1048_v5  ;;  %v1050_v39 = vpop.xlane.xlu0 %1049  ;;  %v9022_v5 = vld [vmem:[#allocation2 + $0x70] sm:$0xff] }
 0x297   : > { %v8995_v36 = vmax.f32 %v8982_v21, %v1050_v39 }
 0x298   : > { %11495 = vst [vmem:[#allocation34_spill] sm:$0xff] %v8990_v43  ;;  %1648 = vst.msk [vmem:[#allocation2 + $0x48] sm:$0xff] %vm1333_vm4, %v8990_v43  ;;  %1172 = vperm.xlu0 %7208, %v8990_v43  }
 0x299   : > { %v1052_v14 = vpop.xlane.xlu1 %1051  ;;  %1649 = vst.msk [vmem:[#allocation2 + $0x50] sm:$0xff] %vm1333_vm4, %v8995_v36  ;;  %1142 = vperm.xlu1 %7209, %v8890_v22  }
 0x29a   : > { %v9010_v39 = vmax.f32 %v8992_v47, %v1052_v14  ;;  %v1054_v2 = vpop.xlane.xlu0 %1053  ;;  %v9035_v47 = vld [vmem:[#allocation2 + $0x78] sm:$0xff]  ;;  %v11522_v14 = vld [vmem:[#allocation13_spill] sm:$0xff] }
 0x29b   : > { %v9013_v18 = vmax.f32 %v9002_v42, %v1054_v2 }
 0x29c   : > { %11497 = vst [vmem:[#allocation36_spill] sm:$0xff] %v9010_v39  ;;  %1650 = vst.msk [vmem:[#allocation2 + $0x58] sm:$0xff] %vm1333_vm4, %v9010_v39  ;;  %1182 = vperm.xlu0 %7208, %v9010_v39   ;;  %v7245_v39 = vpack.i.bf16 %v8692_v59, %v8689_v58 }
 0x29d   : > { %1651 = vst.msk [vmem:[#allocation2 + $0x60] sm:$0xff] %vm1333_vm4, %v9013_v18  ;;  %1137 = vperm.xlu1 %7209, %v8920_v13   ;;  %v1056_v2 = vpop.xlane.xlu1 %1055 }
 0x29e   : > { %v1058_v21 = vpop.xlane.xlu0 %1057  ;;  %v9030_v22 = vmax.f32 %v9015_v9, %v1056_v2  ;;  %v7235_v9 = vpack.i.bf16 %v8668_v53, %v8665_v52  ;;  %v7230_v52 = vpack.i.bf16 %v8656_v50, %v8653_v49  ;;  %v7240_v53 = vpack.i.bf16 %v8680_v56, %v8677_v55 }
 0x29f   : > { %v9033_v43 = vmax.f32 %v9022_v5, %v1058_v21 }
 0x2a0   : > { %1187 = vperm.xlu0 %7208, %v9013_v18   ;;  %1652 = vst.msk [vmem:[#allocation2 + $0x68] sm:$0xff] %vm1333_vm4, %v9030_v22 }
 0x2a1   : > { %1152 = vperm.xlu1 %7209, %v8949_v34   ;;  %1653 = vst.msk [vmem:[#allocation2 + $0x70] sm:$0xff] %vm1333_vm4, %v9033_v43  ;;  %v1060_v21 = vpop.xlane.xlu1 %1059 }
 0x2a2   : > { %v9048_v2 = vmax.f32 %v9035_v47, %v1060_v21 }
 0x2a4   : > { %11499 = vst [vmem:[#allocation38_spill] sm:$0xff] %v9048_v2  ;;  %1197 = vperm.xlu0 %7208, %v9033_v43   ;;  %1654 = vst.msk [vmem:[#allocation2 + $0x78] sm:$0xff] %vm1333_vm4, %v9048_v2 }
 0x2a5   : > { %1147 = vperm.xlu1 %7209, %v8923_v17  }
 0x2a8   : > { %7236 = vrot.lane.b32.xlu0 %v7235_v9, %s7847_s17 }
 0x2a9   : > { %1162 = vperm.xlu1 %7209, %v8971_v25  }
 0x2ac   : > { %7246 = vrot.lane.b32.xlu0 %v7245_v39, %s7847_s17 }
 0x2ad   : > { %1167 = vperm.xlu1 %7209, %v8976_v6  }
 0x2b0   : > { %1737 = vrot.lane.b32.xlu0 %v8704_v63, %s7847_s17 }
 0x2b1   : > { %1177 = vperm.xlu1 %7209, %v8995_v36  }
 0x2b4   : > { %1741 = vrot.lane.b32.xlu0 %v8712_v3, %s7847_s17 }
 0x2b5   : > { %7231 = vrot.lane.b32.xlu1 %v7230_v52, %s7847_s17 }
 0x2b8   : > { %1745 = vrot.lane.b32.xlu0 %v8722_v7, %s7847_s17 }
 0x2b9   : > { %1192 = vperm.xlu1 %7209, %v9030_v22  }
 0x2bc   : > { %1749 = vrot.lane.b32.xlu0 %v8732_v11, %s7847_s17 }
 0x2bd   : > { %1202 = vperm.xlu1 %7209, %v9048_v2  }
 0x2c0   : > { %1753 = vrot.lane.b32.xlu0 %v8742_v15, %s7847_s17 }
 0x2c1   : > { %7241 = vrot.lane.b32.xlu1 %v7240_v53, %s7847_s17 }
 0x2c4   : > { %1757 = vrot.lane.b32.xlu0 %v8752_v19, %s7847_s17 }
 0x2c5   : > { %1735 = vrot.lane.b32.xlu1 %v8630_v44, %s7847_s17 }
 0x2c8   : > { %1761 = vrot.lane.b32.xlu0 %v8762_v23, %s7847_s17 }
 0x2c9   : > { %1739 = vrot.lane.b32.xlu1 %v8706_v0, %s7847_s17 }
 0x2cc   : > { %1765 = vrot.lane.b32.xlu0 %v8771_v26, %s7847_s17 }
 0x2cd   : > { %1743 = vrot.lane.b32.xlu1 %v8716_v4, %s7847_s17 }
 0x2d1   : > { %1747 = vrot.lane.b32.xlu1 %v8726_v8, %s7847_s17 }
 0x2d5   : > { %1751 = vrot.lane.b32.xlu1 %v8736_v12, %s7847_s17 }
 0x2d9   : > { %1755 = vrot.lane.b32.xlu1 %v8746_v16, %s7847_s17 }
 0x2dd   : > { %1759 = vrot.lane.b32.xlu1 %v8756_v20, %s7847_s17 }
 0x2e1   : > { %1763 = vrot.lane.b32.xlu1 %v8766_v24, %s7847_s17 }
 0x304   : > { %v1128_v44 = vpop.permute.xlu0 %1127 }
 0x305   : > { %v1205_v49 = vsub.f32 %v8779_v28, %v1128_v44 }
 0x307   : > { %v1221_v50 = vmul.f32 1.442695, %v1205_v49 }
 0x308   : > { %v1133_v55 = vpop.permute.xlu1 %1132  ;;  %v7227_v4 = vpop.permute.xlu0 %7226 }
 0x309   : > { %7370 = vpow2.f32 %v1221_v50  ;;  %v1206_v56 = vsub.f32 %v8777_v27, %v1133_v55  ;;  %v7229_v55 = vunpack.i.h.bf16 %v7227_v4 }
 0x30b   : > { %v1223_v58 = vmul.f32 1.442695, %v1206_v56  ;;  %v7228_v56 = vunpack.i.l.bf16 %v7227_v4 }
 0x30c   : > { %v7212_v59 = vpop.permute.xlu1 %7211 }
 0x30d   : > { %7372 = vpow2.f32 %v1223_v58  ;;  %v7214_v63 = vunpack.i.h.bf16 %v7212_v59  ;;  %v7213_v0 = vunpack.i.l.bf16 %v7212_v59 }
 0x30f   : > { %v6872_v3 = vpack.c.bf16 %v7214_v63, %v7213_v0 }
 0x310   : > { %v7217_v7 = vpop.permute.xlu1 %7216  ;;  %v1158_v16 = vpop.permute.xlu0 %1157 }
 0x311   : > { %6874 = vmatprep.subr.msk.bf16.mxu1 %vm8608_vm3, %v6872_v3  ;;  %v7219_v11 = vunpack.i.h.bf16 %v7217_v7  ;;  %v7218_v12 = vunpack.i.l.bf16 %v7217_v7  ;;  %v1211_v50 = vsub.f32 %v8797_v37, %v1158_v16  ;;  %v6890_v7 = vpack.c.bf16 %v7229_v55, %v7228_v56 }
 0x313   : > { %v9109_v8 = vpop.eup %7370  ;;  %v6878_v20 = vpack.c.bf16 %v7219_v11, %v7218_v12  ;;  %v1233_v0 = vmul.f32 1.442695, %v1211_v50 }
 0x314   : > { %v7222_v15 = vpop.permute.xlu1 %7221  ;;  %6432 = vmatprep.mubr.f32.mxu1 %v9109_v8 }
 0x315   : > { %v7224_v27 = vunpack.i.h.bf16 %v7222_v15  ;;  %v7223_v28 = vunpack.i.l.bf16 %v7222_v15 }
 0x317   : > { %v9112_v19 = vpop.eup %7372  ;;  %v1173_v24 = vpop.permute.xlu0 %1172  ;;  %v6884_v53 = vpack.c.bf16 %v7224_v27, %v7223_v28 }
 0x318   : > { %v1143_v23 = vpop.permute.xlu1 %1142  ;;  %6433 = vmatmul.mubr.f32.vlgmr.msra.gmra.mrb[0].mxu1 %v9112_v19 }
 0x319   : > { %6877 = vmatpush3.bf16.xpose.msk.msra.mxu1 %vm8608_vm3, %v6872_v3  ;;  %v1208_v26 = vsub.f32 %v8782_v29, %v1143_v23 }
 0x31a   : > { %6880 = vmatprep.subr.msk.bf16.mxu1 %vm8608_vm3, %v6878_v20 }
 0x31b   : > { %v1227_v21 = vmul.f32 1.442695, %v1208_v26  ;;  %v1183_v44 = vpop.permute.xlu0 %1182 }
 0x31c   : > { %v1138_v9 = vpop.permute.xlu1 %1137 }
 0x31d   : > { %v1207_v39 = vsub.f32 %v8785_v30, %v1138_v9 }
 0x31f   : > { %v1225_v52 = vmul.f32 1.442695, %v1207_v39  ;;  %v1188_v59 = vpop.permute.xlu0 %1187 }
 0x320   : > { %v1153_v49 = vpop.permute.xlu1 %1152  ;;  %v1217_v23 = vsub.f32 %v8815_v57, %v1188_v59 }
 0x321   : > { %7374 = vpow2.f32 %v1225_v52  ;;  %6883 = vmatpush3.bf16.xpose.msk.msra.mxu1 %vm8608_vm3, %v6878_v20  ;;  %v1210_v29 = vsub.f32 %v8788_v31, %v1153_v49  ;;  %v1214_v31 = vsub.f32 %v8800_v40, %v1173_v24  ;;  %v1216_v20 = vsub.f32 %v8806_v48, %v1183_v44 }
 0x322   : > { %7376 = vpow2.f32 %v1227_v21  ;;  %6886 = vmatprep.subr.msk.bf16.mxu1 %vm8608_vm3, %v6884_v53 }
 0x323   : > { %v1231_v63 = vmul.f32 1.442695, %v1210_v29  ;;  %v1198_v15 = vpop.permute.xlu0 %1197  ;;  %v1239_v40 = vmul.f32 1.442695, %v1214_v31  ;;  %v1243_v9 = vmul.f32 1.442695, %v1216_v20 }
 0x324   : > { %v1148_v30 = vpop.permute.xlu1 %1147  ;;  %v1219_v29 = vsub.f32 %v8820_v61, %v1198_v15 }
 0x325   : > { %v1209_v58 = vsub.f32 %v8791_v32, %v1148_v30 }
 0x326   : > { %v1249_v59 = vmul.f32 1.442695, %v1219_v29 }
 0x327   : > { %v1229_v3 = vmul.f32 1.442695, %v1209_v58  ;;  %v7237_v27 = vpop.permute.xlu0 %7236 }
 0x328   : > { %v1163_v11 = vpop.permute.xlu1 %1162  ;;  %v7239_v52 = vunpack.i.h.bf16 %v7237_v27 }
 0x329   : > { %7378 = vpow2.f32 %v1229_v3  ;;  %v1212_v12 = vsub.f32 %v8794_v33, %v1163_v11  ;;  %6889 = vmatpush3.bf16.xpose.msk.msra.mxu1 %vm8608_vm3, %v6884_v53  ;;  %v7238_v53 = vunpack.i.l.bf16 %v7237_v27 }
 0x32a   : > { %7380 = vpow2.f32 %v1231_v63  ;;  %6892 = vmatprep.subr.msk.bf16.mxu1 %vm8608_vm3, %v6890_v7 }
 0x32b   : > { %v9134_v37 = vpop.eup %7374  ;;  %7382 = vpow2.f32 %v1233_v0  ;;  %v1235_v32 = vmul.f32 1.442695, %v1212_v12  ;;  %v6902_v56 = vpack.c.bf16 %v7239_v52, %v7238_v53 }
 0x32c   : > { %v9136_v4 = vpop.eup %7376  ;;  %v1168_v16 = vpop.permute.xlu1 %1167  ;;  %6435 = vmatprep.mubr.f32.mxu1 %v9134_v37 }
 0x32d   : > { %7384 = vpow2.f32 %v1235_v32  ;;  %v1213_v33 = vsub.f32 %v8803_v41, %v1168_v16  ;;  %6436 = vmatmul.mubr.f32.gmra.mrb[2].mxu1 %v9136_v4  ;;  %v1245_v41 = vmul.f32 1.442695, %v1217_v23  ;;  %v7247_v32 = vpop.permute.xlu0 %7246 }
 0x32e   : > { %v7248_v20 = vunpack.i.l.bf16 %v7247_v32 }
 0x32f   : > { %v1237_v24 = vmul.f32 1.442695, %v1213_v33 }
 0x330   : > { %v1178_v26 = vpop.permute.xlu1 %1177 }
 0x331   : > { %7386 = vpow2.f32 %v1237_v24  ;;  %v1215_v28 = vsub.f32 %v8809_v51, %v1178_v26  ;;  %6895 = vmatpush3.bf16.xpose.msk.msra.mxu1 %vm8608_vm3, %v6890_v7 }
 0x332   : > { %7388 = vpow2.f32 %v1239_v40  ;;  %v7249_v40 = vunpack.i.h.bf16 %v7247_v32  ;;  %v11502_v32 = vld [vmem:[#allocation11_spill] sm:$0xff] }
 0x333   : > { %v9146_v39 = vpop.eup %7378  ;;  %v1241_v21 = vmul.f32 1.442695, %v1215_v28  ;;  %v1738_v28 = vpop.permute.xlu0 %1737 }
 0x334   : > { %v9148_v48 = vpop.eup %7380  ;;  %v7232_v57 = vpop.permute.xlu1 %7231  ;;  %6438 = vmatprep.mubr.f32.mxu1 %v9146_v39  ;;  %v6914_v24 = vpack.c.bf16 %v7249_v40, %v7248_v20 }
 0x335   : > { %v9151_v44 = vpop.eup %7382  ;;  %7390 = vpow2.f32 %v1241_v21  ;;  %v7234_v51 = vunpack.i.h.bf16 %v7232_v57  ;;  %v7233_v49 = vunpack.i.l.bf16 %v7232_v57  ;;  %6439 = vmatmul.mubr.f32.gmra.mrb[4].mxu1 %v9148_v48 }
 0x336   : > { %7392 = vpow2.f32 %v1243_v9  ;;  %6441 = vmatprep.mubr.f32.mxu1 %v9151_v44 }
 0x337   : > { %v9156_v50 = vpop.eup %7384  ;;  %7394 = vpow2.f32 %v1245_v41  ;;  %v6896_v55 = vpack.c.bf16 %v7234_v51, %v7233_v49  ;;  %v1742_v21 = vpop.permute.xlu0 %1741 }
 0x338   : > { %v1193_v30 = vpop.permute.xlu1 %1192 }
 0x339   : > { %v1218_v58 = vsub.f32 %v8812_v54, %v1193_v30  ;;  %6442 = vmatmul.mubr.f32.gmra.mrb[6].mxu1 %v9156_v50  ;;  %6898 = vmatprep.subr.msk.bf16.mxu1 %vm8608_vm3, %v6896_v55 }
 0x33a   : > { %6901 = vmatpush3.bf16.xpose.msk.msra.mxu1 %vm8608_vm3, %v6896_v55 }
 0x33b   : > { %v9164_v61 = vpop.eup %7386  ;;  %v1247_v63 = vmul.f32 1.442695, %v1218_v58  ;;  %6904 = vmatprep.subr.msk.bf16.mxu1 %vm8608_vm3, %v6902_v56  ;;  %v1746_v53 = vpop.permute.xlu0 %1745 }
 0x33c   : > { %v9168_v0 = vpop.eup %7388  ;;  %v1203_v3 = vpop.permute.xlu1 %1202  ;;  %6444 = vmatprep.mubr.f32.mxu1 %v9164_v61 }
 0x33d   : > { %7396 = vpow2.f32 %v1247_v63  ;;  %v1220_v54 = vsub.f32 %v8818_v60, %v1203_v3  ;;  %6445 = vmatmul.mubr.f32.gmra.mrb[8].mxu1 %v9168_v0  ;;  %v7250_v3 = vpack.i.bf16 %v8829_v1, %v8826_v62 }
 0x33e   : > { %7398 = vpow2.f32 %v1249_v59 }
 0x33f   : > { %v9173_v7 = vpop.eup %7390  ;;  %v1251_v11 = vmul.f32 1.442695, %v1220_v54  ;;  %v1750_v51 = vpop.permute.xlu0 %1749  ;;  %7251 = vrot.lane.b32.xlu0 %v7250_v3, %s7847_s17  ;;  %v11500_v54 = vld [vmem:[#allocation9_spill] sm:$0xff] }
 0x340   : > { %v9175_v12 = vpop.eup %7392  ;;  %6447 = vmatprep.mubr.f32.mxu1 %v9173_v7  ;;  %v7242_v31 = vpop.permute.xlu1 %7241 }
 0x341   : > { %v9178_v15 = vpop.eup %7394  ;;  %7400 = vpow2.f32 %v1251_v11  ;;  %6448 = vmatmul.mubr.f32.gmra.mrb[10].mxu1 %v9175_v12  ;;  %v7244_v16 = vunpack.i.h.bf16 %v7242_v31  ;;  %v7243_v33 = vunpack.i.l.bf16 %v7242_v31  ;;  %v11501_v11 = vld [vmem:[#allocation10_spill] sm:$0xff] }
 0x342   : > { %6450 = vmatprep.mubr.f32.mxu1 %v9178_v15  ;;  %6907 = vmatpush3.bf16.xpose.msk.msra.mxu1 %vm8608_vm3, %v6902_v56  ;;  %v7255_v31 = vpack.i.bf16 %v11501_v11, %v11500_v54 }
 0x343   : > { %v6908_v60 = vpack.c.bf16 %v7244_v16, %v7243_v33  ;;  %v1754_v29 = vpop.permute.xlu0 %1753  ;;  %v11503_v16 = vld [vmem:[#allocation12_spill] sm:$0xff] }
 0x344   : > { %v1736_v26 = vpop.permute.xlu1 %1735  ;;  %7256 = vrot.lane.b32.xlu1 %v7255_v31, %s7847_s17  ;;  %v7260_v33 = vpack.i.bf16 %v11503_v16, %v11502_v32 }
 0x345   : > { %6910 = vmatprep.subr.msk.bf16.mxu1 %vm8608_vm3, %v6908_v60 }
 0x346   : > { %7261 = vrot.lane.b32.xlu0 %v7260_v33, %s7847_s17 }
 0x347   : > { %v9186_v23 = vpop.eup %7396  ;;  %v1758_v56 = vpop.permute.xlu0 %1757 }
 0x348   : > { %v9188_v27 = vpop.eup %7398  ;;  %6451 = vmatmul.mubr.f32.gmra.mrb[12].mxu1 %v9186_v23  ;;  %v1740_v41 = vpop.permute.xlu1 %1739 }
 0x349   : > { %6453 = vmatprep.mubr.f32.mxu1 %v9188_v27 }
 0x34a   : > { %6913 = vmatpush3.bf16.xpose.msk.msra.mxu1 %vm8608_vm3, %v6908_v60 }
 0x34b   : > { %v9194_v9 = vpop.eup %7400  ;;  %6916 = vmatprep.subr.msk.bf16.mxu1 %vm8608_vm3, %v6914_v24  ;;  %v1762_v58 = vpop.permute.xlu0 %1761 }
 0x34c   : > { %6454 = vmatmul.mubr.f32.gmra.mrb[14].mxu1 %v9194_v9  ;;  %v1744_v52 = vpop.permute.xlu1 %1743 }
 0x34d   : > { %6488 = vmatprep.mubr.msk.f32.mxu1 %vm771_vm2, %v1736_v26 }
 0x34f   : > { %v1766_v63 = vpop.permute.xlu0 %1765 }
 0x350   : > { %v1748_v57 = vpop.permute.xlu1 %1747 }
 0x352   : > { %6919 = vmatpush3.bf16.xpose.msk.msra.mxu1 %vm8608_vm3, %v6914_v24 }
 0x354   : > { %v1752_v49 = vpop.permute.xlu1 %1751 }
 0x358   : > { %v1756_v55 = vpop.permute.xlu1 %1755 }
 0x359   : > { %6489 = vmatmul.mubr.msk.f32.vlgmr.msra.gmra.mrb[16].mxu1 %vm771_vm2, %v1738_v28 }
 0x35a   : > { %6491 = vmatprep.mubr.msk.f32.mxu1 %vm771_vm2, %v1740_v41 }
 0x35c   : > { %v1760_v30 = vpop.permute.xlu1 %1759 }
 0x35d   : > { %6492 = vmatmul.mubr.msk.f32.gmra.mrb[18].mxu1 %vm771_vm2, %v1742_v21 }
 0x35e   : > { %6494 = vmatprep.mubr.msk.f32.mxu1 %vm771_vm2, %v1744_v52 }
 0x360   : > { %v1764_v59 = vpop.permute.xlu1 %1763 }
 0x361   : > { %6495 = vmatmul.mubr.msk.f32.gmra.mrb[20].mxu1 %vm771_vm2, %v1746_v53 }
 0x362   : > { %6497 = vmatprep.mubr.msk.f32.mxu1 %vm771_vm2, %v1748_v57 }
 0x365   : > { %6498 = vmatmul.mubr.msk.f32.gmra.mrb[22].mxu1 %vm771_vm2, %v1750_v51 }
 0x366   : > { %6500 = vmatprep.mubr.msk.f32.mxu1 %vm771_vm2, %v1752_v49 }
 0x369   : > { %6501 = vmatmul.mubr.msk.f32.gmra.mrb[24].mxu1 %vm771_vm2, %v1754_v29 }
 0x36a   : > { %6503 = vmatprep.mubr.msk.f32.mxu1 %vm771_vm2, %v1756_v55 }
 0x36d   : > { %6504 = vmatmul.mubr.msk.f32.gmra.mrb[26].mxu1 %vm771_vm2, %v1758_v56 }
 0x36e   : > { %6506 = vmatprep.mubr.msk.f32.mxu1 %vm771_vm2, %v1760_v30 }
 0x371   : > { %6507 = vmatmul.mubr.msk.f32.gmra.mrb[28].mxu1 %vm771_vm2, %v1762_v58 }
 0x372   : > { %6509 = vmatprep.mubr.msk.f32.mxu1 %vm771_vm2, %v1764_v59 }
 0x375   : > { %6510 = vmatmul.mubr.msk.f32.gmra.mrb[30].mxu1 %vm771_vm2, %v1766_v63 }
 0x3b1   : > { %v7252_v20 = vpop.permute.xlu0 %7251 }
 0x3b2   : > { %v7254_v24 = vunpack.i.h.bf16 %v7252_v20  ;;  %v7253_v26 = vunpack.i.l.bf16 %v7252_v20 }
 0x3b4   : > { %v6920_v62 = vpack.c.bf16 %v7254_v24, %v7253_v26 }
 0x3b6   : > { %v7257_v1 = vpop.permute.xlu1 %7256  ;;  %6921 = vmatprep.subr.bf16.mxu0 %v6920_v62 }
 0x3b7   : > { %v7259_v28 = vunpack.i.h.bf16 %v7257_v1  ;;  %v7258_v41 = vunpack.i.l.bf16 %v7257_v1  ;;  %6923 = vmatpush3.bf16.msra.mxu0 %v6920_v62 }
 0x3b8   : > { %v7262_v57 = vpop.permute.xlu0 %7261 }
 0x3b9   : > { %v6924_v21 = vpack.c.bf16 %v7259_v28, %v7258_v41  ;;  %v7264_v51 = vunpack.i.h.bf16 %v7262_v57  ;;  %v7263_v49 = vunpack.i.l.bf16 %v7262_v57  ;;  %v11521_v57 = vld [vmem:[#allocation16_spill] sm:$0xff] }
 0x3bb   : > { %6925 = vmatprep.subr.bf16.mxu0 %v6924_v21  ;;  %v6928_v29 = vpack.c.bf16 %v7264_v51, %v7263_v49 }
 0x3bc   : > { %6927 = vmatpush3.bf16.msra.mxu0 %v6924_v21  ;;  %v11520_v21 = vld [vmem:[#allocation15_spill] sm:$0xff] }
 0x3bd   : > { %6929 = vmatprep.subr.bf16.mxu0 %v6928_v29  ;;  %v7270_v51 = vpack.i.bf16 %v11521_v57, %v11520_v21 }
 0x3c0   : > { %6931 = vmatpush3.bf16.msra.mxu0 %v6928_v29 }
 0x3eb   : > { %v9226_v60 = vpop.f32.mrb[0].mxu1 }
 0x3ec   : > { %11504 = vst [vmem:[#allocation9_spill] sm:$0xff] %v9226_v60  ;;  %v9228_v40 = vpop.f32.mrb[1].mxu1 }
 0x3ed   : > { %11505 = vst [vmem:[#allocation10_spill] sm:$0xff] %v9228_v40 }
 0x400   : > { %v9230_v52 = vpop.f32.mrb[2].mxu1 }
 0x401   : > { %11506 = vst [vmem:[#allocation11_spill] sm:$0xff] %v9230_v52  ;;  %v9232_v53 = vpop.f32.mrb[3].mxu1  ;;  %v11528_v52 = vld [vmem:[#allocation26_spill] sm:$0xff] }
 0x402   : > { %11507 = vst [vmem:[#allocation12_spill] sm:$0xff] %v9232_v53 }
 0x408   : > { %v9234_v55 = vpop.f32.mrb[4].mxu1 }
 0x409   : > { %11508 = vst [vmem:[#allocation39_spill] sm:$0xff] %v9234_v55  ;;  %v9236_v56 = vpop.f32.mrb[5].mxu1 }
 0x40a   : > { %11509 = vst [vmem:[#allocation40_spill] sm:$0xff] %v9236_v56 }
 0x40c   : > { %v9238_v30 = vpop.f32.mrb[6].mxu1 }
 0x40d   : > { %11510 = vst [vmem:[#allocation41_spill] sm:$0xff] %v9238_v30  ;;  %v9240_v58 = vpop.f32.mrb[7].mxu1 }
 0x40e   : > { %11511 = vst [vmem:[#allocation42_spill] sm:$0xff] %v9240_v58  ;;  %v11530_v58 = vld [vmem:[#allocation21_spill] sm:$0xff] }
 0x410   : > { %v9242_v59 = vpop.f32.mrb[8].mxu1 }
 0x411   : > { %11512 = vst [vmem:[#allocation43_spill] sm:$0xff] %v9242_v59  ;;  %v9244_v63 = vpop.f32.mrb[9].mxu1 }
 0x412   : > { %11513 = vst [vmem:[#allocation44_spill] sm:$0xff] %v9244_v63  ;;  %v7280_v63 = vpack.i.bf16 %v11528_v52, %v8898_v45  ;;  %v11531_v52 = vld [vmem:[#allocation28_spill] sm:$0xff] }
 0x413   : > { %v7285_v60 = vpack.i.bf16 %v11531_v52, %v8928_v10  ;;  %v9371_v52 = vld [vmem:[#allocation2 + $0xb0] sm:$0xff] }
 0x414   : > { %v9246_v3 = vpop.f32.mrb[10].mxu1  ;;  %11540 = vst [vmem:[#allocation55_spill] sm:$0xff] %v9371_v52 }
 0x415   : > { %11514 = vst [vmem:[#allocation45_spill] sm:$0xff] %v9246_v3  ;;  %v9248_v54 = vpop.f32.mrb[11].mxu1 }
 0x416   : > { %11515 = vst [vmem:[#allocation46_spill] sm:$0xff] %v9248_v54 }
 0x41b   : > { %v9250_v11 = vpop.f32.mrb[12].mxu1 }
 0x41c   : > { %11516 = vst [vmem:[#allocation47_spill] sm:$0xff] %v9250_v11  ;;  %v9252_v31 = vpop.f32.mrb[13].mxu1 }
 0x41d   : > { %11517 = vst [vmem:[#allocation48_spill] sm:$0xff] %v9252_v31 }
 0x41f   : > { %v9254_v32 = vpop.f32.mrb[14].mxu1 }
 0x420   : > { %11518 = vst [vmem:[#allocation49_spill] sm:$0xff] %v9254_v32  ;;  %v9256_v16 = vpop.f32.mrb[15].mxu1  ;;  %v11523_v32 = vld [vmem:[#allocation14_spill] sm:$0xff] }
 0x421   : > { %11519 = vst [vmem:[#allocation50_spill] sm:$0xff] %v9256_v16  ;;  %v7265_v11 = vpack.i.bf16 %v11523_v32, %v11522_v14  ;;  %v9312_v14 = vld [vmem:[#allocation2 + $0x88] sm:$0xff] }
 0x422   : > { %11524 = vst [vmem:[#allocation15_spill] sm:$0xff] %v9312_v14 }
 0x42c   : > { %v9258_v33 = vpop.f32.mrb[16].mxu1 }
 0x42d   : > { %2043 = vmax.xlane.f32.xlu0 %v9258_v33  ;;  %v9261_v20 = vpop.f32.mrb[17].mxu1 }
 0x42e   : > { %2041 = vmax.xlane.f32.xlu1 %v9261_v20 }
 0x430   : > { %v9264_v24 = vpop.f32.mrb[18].mxu1 }
 0x431   : > { %v9266_v26 = vpop.f32.mrb[19].mxu1 }
 0x434   : > { %v9268_v62 = vpop.f32.mrb[20].mxu1 }
 0x435   : > { %v9270_v1 = vpop.f32.mrb[21].mxu1 }
 0x438   : > { %v9272_v28 = vpop.f32.mrb[22].mxu1 }
 0x439   : > { %v9274_v41 = vpop.f32.mrb[23].mxu1 }
 0x43c   : > { %v9278_v49 = vpop.f32.mrb[24].mxu1 }
 0x43d   : > { %v9280_v29 = vpop.f32.mrb[25].mxu1 }
 0x43f   : > { %7271 = vrot.lane.b32.xlu1 %v7270_v51, %s7847_s17 }
 0x440   : > { %v9285_v3 = vpop.f32.mrb[26].mxu1 }
 0x441   : > { %v9287_v59 = vpop.f32.mrb[27].mxu1 }
 0x443   : > { %7266 = vrot.lane.b32.xlu0 %v7265_v11, %s7847_s17  ;;  %v9314_v11 = vld [vmem:[#allocation2 + $0x80] sm:$0xff] }
 0x444   : > { %v9290_v16 = vpop.f32.mrb[28].mxu1  ;;  %11525 = vst [vmem:[#allocation16_spill] sm:$0xff] %v9314_v11 }
 0x445   : > { %v9292_v30 = vpop.f32.mrb[29].mxu1 }
 0x448   : > { %v9294_v21 = vpop.f32.mrb[30].mxu1 }
 0x449   : > { %v9296_v57 = vpop.f32.mrb[31].mxu1 }
 0x462   : > { %2045 = vmax.xlane.f32.xlu0 %v9266_v26 }
 0x463   : > { %2047 = vmax.xlane.f32.xlu1 %v9264_v24 }
 0x466   : > { %2049 = vmax.xlane.f32.xlu0 %v9270_v1 }
 0x467   : > { %2051 = vmax.xlane.f32.xlu1 %v9268_v62 }
 0x46a   : > { %2053 = vmax.xlane.f32.xlu0 %v9274_v41 }
 0x46b   : > { %2055 = vmax.xlane.f32.xlu1 %v9272_v28 }
 0x46e   : > { %2057 = vmax.xlane.f32.xlu0 %v9280_v29 }
 0x46f   : > { %2059 = vmax.xlane.f32.xlu1 %v9278_v49 }
 0x472   : > { %2061 = vmax.xlane.f32.xlu0 %v9287_v59 }
 0x473   : > { %2063 = vmax.xlane.f32.xlu1 %v9285_v3 }
 0x476   : > { %2065 = vmax.xlane.f32.xlu0 %v9292_v30 }
 0x477   : > { %2067 = vmax.xlane.f32.xlu1 %v9290_v16 }
 0x47b   : > { %2071 = vmax.xlane.f32.xlu1 %v9294_v21 }
 0x47f   : > { %2069 = vmax.xlane.f32.xlu1 %v9296_v57 }
 0x4ba   : > { %v2044_v32 = vpop.xlane.xlu0 %2043 }
 0x4bb   : > { %v9317_v51 = vmax.f32 %v9312_v14, %v2044_v32  ;;  %v2042_v31 = vpop.xlane.xlu1 %2041 }
 0x4bc   : > { %v9320_v55 = vmax.f32 %v9314_v11, %v2042_v31  ;;  %v11529_v31 = vld [vmem:[#allocation20_spill] sm:$0xff] }
 0x4bd   : > { %11526 = vst [vmem:[#allocation13_spill] sm:$0xff] %v9317_v51  ;;  %2717 = vst.msk [vmem:[#allocation2 + $0x88] sm:$0xff] %vm1333_vm4, %v9317_v51  ;;  %2144 = vperm.xlu1 %7209, %v9317_v51   ;;  %v7275_v54 = vpack.i.bf16 %v11530_v58, %v11529_v31  ;;  %v9341_v58 = vld [vmem:[#allocation2 + $0x90] sm:$0xff] }
 0x4be   : > { %11527 = vst [vmem:[#allocation14_spill] sm:$0xff] %v9320_v55  ;;  %2716 = vst.msk [vmem:[#allocation2 + $0x80] sm:$0xff] %vm1333_vm4, %v9320_v55  ;;  %v7267_v32 = vpop.permute.xlu0 %7266  ;;  %2139 = vperm.xlu0 %7208, %v9320_v55   ;;  %v9431_v55 = vld [vmem:[#allocation2 + $0xe0] sm:$0xff] }
 0x4bf   : > { %v7269_v56 = vunpack.i.h.bf16 %v7267_v32  ;;  %v7268_v53 = vunpack.i.l.bf16 %v7267_v32  ;;  %v7272_v14 = vpop.permute.xlu1 %7271  ;;  %11532 = vst [vmem:[#allocation26_spill] sm:$0xff] %v9341_v58  ;;  %v9343_v32 = vld [vmem:[#allocation2 + $0x98] sm:$0xff]  ;;  %11552 = vst [vmem:[#allocation67_spill] sm:$0xff] %v9431_v55 }
 0x4c0   : > { %v7274_v40 = vunpack.i.h.bf16 %v7272_v14  ;;  %v7273_v51 = vunpack.i.l.bf16 %v7272_v14  ;;  %11533 = vst [vmem:[#allocation20_spill] sm:$0xff] %v9343_v32 }
 0x4c1   : > { %v6932_v2 = vpack.c.bf16 %v7269_v56, %v7268_v53  ;;  %7281 = vrot.lane.b32.xlu1 %v7280_v63, %s7847_s17  ;;  %v9351_v63 = vld [vmem:[#allocation2 + $0xa0] sm:$0xff] }
 0x4c2   : > { %v6936_v45 = vpack.c.bf16 %v7274_v40, %v7273_v51  ;;  %7276 = vrot.lane.b32.xlu0 %v7275_v54, %s7847_s17  ;;  %11536 = vst [vmem:[#allocation51_spill] sm:$0xff] %v9351_v63 }
 0x4c3   : > { %6933 = vmatprep.subr.bf16.mxu0 %v6932_v2 }
 0x4c4   : > { %6935 = vmatpush3.bf16.msra.mxu0 %v6932_v2  ;;  %v9358_v2 = vld [vmem:[#allocation2 + $0xa8] sm:$0xff] }
 0x4c5   : > { %6937 = vmatprep.subr.bf16.mxu0 %v6936_v45  ;;  %11537 = vst [vmem:[#allocation52_spill] sm:$0xff] %v9358_v2 }
 0x4c6   : > { %7286 = vrot.lane.b32.xlu0 %v7285_v60, %s7847_s17 }
 0x4c8   : > { %6939 = vmatpush3.bf16.msra.mxu0 %v6936_v45 }
 0x4ef   : > { %v2046_v14 = vpop.xlane.xlu0 %2045 }
 0x4f0   : > { %v9346_v53 = vmax.f32 %v9341_v58, %v2046_v14  ;;  %v2048_v40 = vpop.xlane.xlu1 %2047 }
 0x4f1   : > { %v9349_v56 = vmax.f32 %v9343_v32, %v2048_v40  ;;  %v9378_v40 = vld [vmem:[#allocation2 + $0xb8] sm:$0xff] }
 0x4f2   : > { %11534 = vst [vmem:[#allocation21_spill] sm:$0xff] %v9346_v53  ;;  %2718 = vst.msk [vmem:[#allocation2 + $0x90] sm:$0xff] %vm1333_vm4, %v9346_v53  ;;  %2149 = vperm.xlu1 %7209, %v9346_v53   ;;  %v9411_v53 = vld [vmem:[#allocation2 + $0xd0] sm:$0xff] }
 0x4f3   : > { %11535 = vst [vmem:[#allocation28_spill] sm:$0xff] %v9349_v56  ;;  %2719 = vst.msk [vmem:[#allocation2 + $0x98] sm:$0xff] %vm1333_vm4, %v9349_v56  ;;  %v2050_v54 = vpop.xlane.xlu0 %2049  ;;  %2154 = vperm.xlu0 %7208, %v9349_v56   ;;  %v9391_v56 = vld [vmem:[#allocation2 + $0xc0] sm:$0xff] }
 0x4f4   : > { %v9366_v51 = vmax.f32 %v9351_v63, %v2050_v54  ;;  %v2052_v31 = vpop.xlane.xlu1 %2051  ;;  %11541 = vst [vmem:[#allocation56_spill] sm:$0xff] %v9378_v40  ;;  %11544 = vst [vmem:[#allocation59_spill] sm:$0xff] %v9391_v56  ;;  %v9398_v54 = vld [vmem:[#allocation2 + $0xc8] sm:$0xff] }
 0x4f5   : > { %v9369_v45 = vmax.f32 %v9358_v2, %v2052_v31  ;;  %11545 = vst [vmem:[#allocation60_spill] sm:$0xff] %v9398_v54  ;;  %11548 = vst [vmem:[#allocation63_spill] sm:$0xff] %v9411_v53  ;;  %v11577_v63 = vld [vmem:[#allocation18_spill] sm:$0xff] }
 0x4f6   : > { %11538 = vst [vmem:[#allocation53_spill] sm:$0xff] %v9366_v51  ;;  %2720 = vst.msk [vmem:[#allocation2 + $0xa0] sm:$0xff] %vm1333_vm4, %v9366_v51  ;;  %2159 = vperm.xlu1 %7209, %v9366_v51  }
 0x4f7   : > { %11539 = vst [vmem:[#allocation54_spill] sm:$0xff] %v9369_v45  ;;  %2721 = vst.msk [vmem:[#allocation2 + $0xa8] sm:$0xff] %vm1333_vm4, %v9369_v45  ;;  %v2054_v31 = vpop.xlane.xlu0 %2053  ;;  %2164 = vperm.xlu0 %7208, %v9369_v45  }
 0x4f8   : > { %v9386_v60 = vmax.f32 %v9371_v52, %v2054_v31  ;;  %v2056_v10 = vpop.xlane.xlu1 %2055  ;;  %v9418_v31 = vld [vmem:[#allocation2 + $0xd8] sm:$0xff]  ;;  %v11573_v52 = vld [vmem:[#allocation25_spill] sm:$0xff] }
 0x4f9   : > { %v9389_v14 = vmax.f32 %v9378_v40, %v2056_v10  ;;  %11549 = vst [vmem:[#allocation64_spill] sm:$0xff] %v9418_v31  ;;  %v11574_v51 = vsub.f32 %v11573_v52, %v8920_v13  ;;  %v2742_v52 = vld [vmem:[%s8204_s0 + $0xa8] sm:$0xff] }
 0x4fa   : > { %11542 = vst [vmem:[#allocation57_spill] sm:$0xff] %v9386_v60  ;;  %2722 = vst.msk [vmem:[#allocation2 + $0xb0] sm:$0xff] %vm1333_vm4, %v9386_v60  ;;  %2169 = vperm.xlu1 %7209, %v9386_v60  }
 0x4fb   : > { %11543 = vst [vmem:[#allocation58_spill] sm:$0xff] %v9389_v14  ;;  %2723 = vst.msk [vmem:[#allocation2 + $0xb8] sm:$0xff] %vm1333_vm4, %v9389_v14  ;;  %v2058_v10 = vpop.xlane.xlu0 %2057  ;;  %2174 = vperm.xlu0 %7208, %v9389_v14  }
 0x4fc   : > { %v9406_v45 = vmax.f32 %v9391_v56, %v2058_v10  ;;  %v2060_v32 = vpop.xlane.xlu1 %2059  ;;  %v9438_v10 = vld [vmem:[#allocation2 + $0xe8] sm:$0xff] }
 0x4fd   : > { %v9409_v2 = vmax.f32 %v9398_v54, %v2060_v32  ;;  %11553 = vst [vmem:[#allocation68_spill] sm:$0xff] %v9438_v10  ;;  %v2738_v56 = vld [vmem:[%s8204_s0 + $0x68] sm:$0xff] }
 0x4fe   : > { %11546 = vst [vmem:[#allocation61_spill] sm:$0xff] %v9406_v45  ;;  %2724 = vst.msk [vmem:[#allocation2 + $0xc0] sm:$0xff] %vm1333_vm4, %v9406_v45  ;;  %2179 = vperm.xlu1 %7209, %v9406_v45  }
 0x4ff   : > { %11547 = vst [vmem:[#allocation62_spill] sm:$0xff] %v9409_v2  ;;  %2725 = vst.msk [vmem:[#allocation2 + $0xc8] sm:$0xff] %vm1333_vm4, %v9409_v2  ;;  %v2062_v32 = vpop.xlane.xlu0 %2061  ;;  %2184 = vperm.xlu0 %7208, %v9409_v2  }
 0x500   : > { %v9426_v14 = vmax.f32 %v9411_v53, %v2062_v32  ;;  %v2064_v58 = vpop.xlane.xlu1 %2063  ;;  %v9456_v32 = vld [vmem:[#allocation2 + $0xf8] sm:$0xff] }
 0x501   : > { %v9429_v40 = vmax.f32 %v9418_v31, %v2064_v58  ;;  %11556 = vst [vmem:[#allocation71_spill] sm:$0xff] %v9456_v32  ;;  %v11571_v53 = vld [vmem:[#allocation24_spill] sm:$0xff] }
 0x502   : > { %11550 = vst [vmem:[#allocation65_spill] sm:$0xff] %v9426_v14  ;;  %2726 = vst.msk [vmem:[#allocation2 + $0xd0] sm:$0xff] %vm1333_vm4, %v9426_v14  ;;  %2189 = vperm.xlu1 %7209, %v9426_v14   ;;  %v9466_v14 = vld [vmem:[#allocation2 + $0xf0] sm:$0xff] }
 0x503   : > { %11551 = vst [vmem:[#allocation66_spill] sm:$0xff] %v9429_v40  ;;  %2727 = vst.msk [vmem:[#allocation2 + $0xd8] sm:$0xff] %vm1333_vm4, %v9429_v40  ;;  %2194 = vperm.xlu0 %7208, %v9429_v40   ;;  %v2066_v58 = vpop.xlane.xlu0 %2065 }
 0x504   : > { %v9446_v2 = vmax.f32 %v9431_v55, %v2066_v58  ;;  %v2068_v11 = vpop.xlane.xlu1 %2067  ;;  %11558 = vst [vmem:[#allocation73_spill] sm:$0xff] %v9466_v14  ;;  %v11570_v55 = vld [vmem:[#allocation22_spill] sm:$0xff]  ;;  %v11728_v38 = vld [vmem:[#allocation68_spill] sm:$0xff] }
 0x505   : > { %v9449_v54 = vmax.f32 %v9438_v10, %v2068_v11  ;;  %v11572_v45 = vsub.f32 %v11570_v55, %v11571_v53  ;;  %v1097_v55 = vmul.f32 1.442695, %v11574_v51  ;;  %v2740_v53 = vld [vmem:[%s8204_s0 + $0x88] sm:$0xff]  ;;  %v11576_v51 = vld [vmem:[#allocation17_spill] sm:$0xff] }
 0x506   : > { %11554 = vst [vmem:[#allocation69_spill] sm:$0xff] %v9446_v2  ;;  %2728 = vst.msk [vmem:[#allocation2 + $0xe0] sm:$0xff] %vm1333_vm4, %v9446_v2  ;;  %2199 = vperm.xlu1 %7209, %v9446_v2  }
 0x507   : > { %11555 = vst [vmem:[#allocation70_spill] sm:$0xff] %v9449_v54  ;;  %2729 = vst.msk [vmem:[#allocation2 + $0xe8] sm:$0xff] %vm1333_vm4, %v9449_v54  ;;  %2204 = vperm.xlu0 %7208, %v9449_v54  }
 0x508   : > { %v2072_v11 = vpop.xlane.xlu1 %2071 }
 0x509   : > { %v9464_v58 = vmax.f32 %v9456_v32, %v2072_v11 }
 0x50b   : > { %11557 = vst [vmem:[#allocation72_spill] sm:$0xff] %v9464_v58  ;;  %2731 = vst.msk [vmem:[#allocation2 + $0xf8] sm:$0xff] %vm1333_vm4, %v9464_v58  ;;  %2214 = vperm.xlu0 %7208, %v9464_v58  }
 0x50c   : > { %v2070_v40 = vpop.xlane.xlu1 %2069 }
 0x50d   : > { %v9474_v10 = vmax.f32 %v9466_v14, %v2070_v40 }
 0x50f   : > { %11559 = vst [vmem:[#allocation74_spill] sm:$0xff] %v9474_v10  ;;  %2730 = vst.msk [vmem:[#allocation2 + $0xf0] sm:$0xff] %vm1333_vm4, %v9474_v10  ;;  %2209 = vperm.xlu1 %7209, %v9474_v10  }
 0x52a   : > { %1287 = vadd.xlane.f32.xlu0 %v9112_v19 }
 0x52e   : > { %1289 = vadd.xlane.f32.xlu0 %v9134_v37 }
 0x532   : > { %1293 = vadd.xlane.f32.xlu0 %v9146_v39 }
 0x533   : > { %1285 = vadd.xlane.f32.xlu1 %v9109_v8 }
 0x536   : > { %1297 = vadd.xlane.f32.xlu0 %v9151_v44 }
 0x537   : > { %1291 = vadd.xlane.f32.xlu1 %v9136_v4 }
 0x53a   : > { %1301 = vadd.xlane.f32.xlu0 %v9164_v61 }
 0x53b   : > { %1295 = vadd.xlane.f32.xlu1 %v9148_v48 }
 0x53c   : > { %v2145_v40 = vpop.permute.xlu1 %2144 }
 0x53d   : > { %v2140_v11 = vpop.permute.xlu0 %2139  ;;  %v2218_v19 = vsub.f32 %v9258_v33, %v2145_v40  ;;  %v9498_v40 = vld [vmem:[%s8206_s14 + $0x8] sm:$0xff] }
 0x53e   : > { %v2217_v31 = vsub.f32 %v9261_v20, %v2140_v11  ;;  %1305 = vadd.xlane.f32.xlu0 %v9173_v7  ;;  %v9501_v11 = vld [vmem:[%s8206_s14 + $0x18] sm:$0xff] }
 0x53f   : > { %1299 = vadd.xlane.f32.xlu1 %v9156_v50  ;;  %v2235_v48 = vmul.f32 1.442695, %v2218_v19 }
 0x540   : > { %v2233_v37 = vmul.f32 1.442695, %v2217_v31  ;;  %v7282_v8 = vpop.permute.xlu1 %7281 }
 0x541   : > { %v7277_v39 = vpop.permute.xlu0 %7276  ;;  %v7284_v44 = vunpack.i.h.bf16 %v7282_v8  ;;  %v7283_v54 = vunpack.i.l.bf16 %v7282_v8 }
 0x542   : > { %7402 = vpow2.f32 %v2233_v37  ;;  %v7279_v4 = vunpack.i.h.bf16 %v7277_v39  ;;  %v7278_v61 = vunpack.i.l.bf16 %v7277_v39  ;;  %1309 = vadd.xlane.f32.xlu0 %v9178_v15  ;;  %v9531_v37 = vld [vmem:[%s8206_s14 + $0x58] sm:$0xff]  ;;  %v9540_v39 = vld [vmem:[%s8206_s14 + $0x68] sm:$0xff] }
 0x543   : > { %1303 = vadd.xlane.f32.xlu1 %v9168_v0  ;;  %v6944_v20 = vpack.c.bf16 %v7284_v44, %v7283_v54  ;;  %7404 = vpow2.f32 %v2235_v48  ;;  %v9519_v54 = vld [vmem:[%s8206_s14 + $0x38] sm:$0xff] }
 0x544   : > { %v6940_v7 = vpack.c.bf16 %v7279_v4, %v7278_v61  ;;  %v9543_v44 = vld [vmem:[%s8206_s14 + $0x78] sm:$0xff]  ;;  %v9552_v61 = vld [vmem:[%s8206_s14 + $0x88] sm:$0xff] }
 0x545   : > { %v7287_v33 = vpop.permute.xlu0 %7286  ;;  %v6970_v4 = vpack.c.bf16 %v9543_v44, %v9540_v39  ;;  %v9555_v48 = vld [vmem:[%s8206_s14 + $0x98] sm:$0xff] }
 0x546   : > { %6941 = vmatprep.subr.bf16.mxu0 %v6940_v7  ;;  %1313 = vadd.xlane.f32.xlu0 %v9188_v27  ;;  %v7289_v50 = vunpack.i.h.bf16 %v7287_v33  ;;  %v7288_v31 = vunpack.i.l.bf16 %v7287_v33  ;;  %v6952_v27 = vpack.c.bf16 %v9501_v11, %v9498_v40 }
 0x547   : > { %6943 = vmatpush3.bf16.msra.mxu0 %v6940_v7  ;;  %1307 = vadd.xlane.f32.xlu1 %v9175_v12  ;;  %v6976_v7 = vpack.c.bf16 %v9555_v48, %v9552_v61 }
 0x548   : > { %6945 = vmatprep.subr.bf16.mxu0 %v6944_v20  ;;  %v6948_v15 = vpack.c.bf16 %v7289_v50, %v7288_v31  ;;  %v9565_v31 = vld [vmem:[%s8206_s14 + $0xa8] sm:$0xff] }
 0x54b   : > { %1311 = vadd.xlane.f32.xlu1 %v9186_v23  ;;  %6947 = vmatpush3.bf16.msra.mxu0 %v6944_v20  ;;  %v9516_v23 = vld [vmem:[%s8206_s14 + $0x28] sm:$0xff] }
 0x54c   : > { %v9504_v0 = vpop.eup %7402  ;;  %6949 = vmatprep.subr.bf16.mxu0 %v6948_v15  ;;  %v6958_v19 = vpack.c.bf16 %v9519_v54, %v9516_v23 }
 0x54d   : > { %6544 = vmatprep.mubr.f32.mxu0 %v9504_v0  ;;  %v9512_v12 = vpop.eup %7404 }
 0x54e   : > { %11560 = vst [vmem:[#allocation75_spill] sm:$0xff] %v9512_v12 }
 0x54f   : > { %1315 = vadd.xlane.f32.xlu1 %v9194_v9  ;;  %6951 = vmatpush3.bf16.msra.mxu0 %v6948_v15  ;;  %v9528_v9 = vld [vmem:[%s8206_s14 + $0x48] sm:$0xff]  ;;  %v9568_v15 = vld [vmem:[%s8206_s14 + $0xb8] sm:$0xff] }
 0x550   : > { %6954 = vmatprep.subr.msk.bf16.mxu0 %vm8608_vm3, %v6952_v27  ;;  %v6964_v8 = vpack.c.bf16 %v9531_v37, %v9528_v9 }
 0x552   : > { %6545 = vmatmul.mubr.f32.vlgmr.msra.gmra.mrb[16].mxu0 %v9512_v12 }
 0x558   : > { %6957 = vmatpush3.bf16.xpose.msk.msra.mxu0 %vm8608_vm3, %v6952_v27 }
 0x559   : > { %6960 = vmatprep.subr.msk.bf16.mxu0 %vm8608_vm3, %v6958_v19 }
 0x560   : > { %6963 = vmatpush3.bf16.xpose.msk.msra.mxu0 %vm8608_vm3, %v6958_v19 }
 0x561   : > { %6966 = vmatprep.subr.msk.bf16.mxu0 %vm8608_vm3, %v6964_v8 }
 0x568   : > { %6969 = vmatpush3.bf16.xpose.msk.msra.mxu0 %vm8608_vm3, %v6964_v8 }
 0x569   : > { %6972 = vmatprep.subr.msk.bf16.mxu0 %vm8608_vm3, %v6970_v4 }
 0x570   : > { %6975 = vmatpush3.bf16.xpose.msk.msra.mxu0 %vm8608_vm3, %v6970_v4  ;;  %v6982_v4 = vpack.c.bf16 %v9568_v15, %v9565_v31 }
 0x571   : > { %v2150_v20 = vpop.permute.xlu1 %2149  ;;  %6978 = vmatprep.subr.msk.bf16.mxu0 %vm8608_vm3, %v6976_v7 }
 0x572   : > { %v2219_v33 = vsub.f32 %v9266_v26, %v2150_v20  ;;  %v2155_v50 = vpop.permute.xlu0 %2154 }
 0x573   : > { %v2220_v27 = vsub.f32 %v9264_v24, %v2155_v50 }
 0x574   : > { %v2237_v19 = vmul.f32 1.442695, %v2219_v33 }
 0x575   : > { %v2239_v8 = vmul.f32 1.442695, %v2220_v27  ;;  %v2160_v58 = vpop.permute.xlu1 %2159 }
 0x576   : > { %7406 = vpow2.f32 %v2237_v19  ;;  %v2221_v32 = vsub.f32 %v9270_v1, %v2160_v58  ;;  %v2165_v10 = vpop.permute.xlu0 %2164  ;;  %v9581_v19 = vld [vmem:[%s8206_s14 + $0xc8] sm:$0xff]  ;;  %v9584_v1 = vld [vmem:[%s8206_s14 + $0xd8] sm:$0xff] }
 0x577   : > { %7408 = vpow2.f32 %v2239_v8  ;;  %v2222_v26 = vsub.f32 %v9268_v62, %v2165_v10 }
 0x578   : > { %v2241_v20 = vmul.f32 1.442695, %v2221_v32  ;;  %6981 = vmatpush3.bf16.xpose.msk.msra.mxu0 %vm8608_vm3, %v6976_v7  ;;  %v6988_v7 = vpack.c.bf16 %v9584_v1, %v9581_v19 }
 0x579   : > { %v2243_v24 = vmul.f32 1.442695, %v2222_v26  ;;  %v2170_v33 = vpop.permute.xlu1 %2169  ;;  %6984 = vmatprep.subr.msk.bf16.mxu0 %vm8608_vm3, %v6982_v4 }
 0x57a   : > { %7410 = vpow2.f32 %v2241_v20  ;;  %v2223_v50 = vsub.f32 %v9274_v41, %v2170_v33  ;;  %v2175_v27 = vpop.permute.xlu0 %2174 }
 0x57b   : > { %7412 = vpow2.f32 %v2243_v24  ;;  %v2224_v62 = vsub.f32 %v9272_v28, %v2175_v27 }
 0x57c   : > { %v2245_v10 = vmul.f32 1.442695, %v2223_v50 }
 0x57d   : > { %v2247_v32 = vmul.f32 1.442695, %v2224_v62  ;;  %v2180_v58 = vpop.permute.xlu1 %2179  ;;  %v9606_v62 = vld [vmem:[%s8206_s14 + $0xf8] sm:$0xff] }
 0x57e   : > { %7414 = vpow2.f32 %v2245_v10  ;;  %v2225_v8 = vsub.f32 %v9280_v29, %v2180_v58  ;;  %v2185_v26 = vpop.permute.xlu0 %2184 }
 0x57f   : > { %7416 = vpow2.f32 %v2247_v32  ;;  %v2226_v41 = vsub.f32 %v9278_v49, %v2185_v26  ;;  %v9603_v49 = vld [vmem:[%s8206_s14 + $0xe8] sm:$0xff] }
 0x580   : > { %v9591_v20 = vpop.eup %7406  ;;  %v2249_v24 = vmul.f32 1.442695, %v2225_v8  ;;  %6987 = vmatpush3.bf16.xpose.msk.msra.mxu0 %vm8608_vm3, %v6982_v4 }
 0x581   : > { %v9595_v28 = vpop.eup %7408  ;;  %v2251_v33 = vmul.f32 1.442695, %v2226_v41  ;;  %v2190_v50 = vpop.permute.xlu1 %2189  ;;  %6547 = vmatprep.mubr.f32.mxu0 %v9591_v20  ;;  %6990 = vmatprep.subr.msk.bf16.mxu0 %vm8608_vm3, %v6988_v7 }
 0x582   : > { %7418 = vpow2.f32 %v2249_v24  ;;  %v2227_v29 = vsub.f32 %v9287_v59, %v2190_v50  ;;  %v2195_v27 = vpop.permute.xlu0 %2194  ;;  %6548 = vmatmul.mubr.f32.gmra.mrb[18].mxu0 %v9595_v28  ;;  %v6994_v59 = vpack.c.bf16 %v9606_v62, %v9603_v49 }
 0x583   : > { %7420 = vpow2.f32 %v2251_v33  ;;  %v2228_v4 = vsub.f32 %v9285_v3, %v2195_v27 }
 0x584   : > { %v9609_v10 = vpop.eup %7410  ;;  %v2253_v32 = vmul.f32 1.442695, %v2227_v29 }
 0x585   : > { %11561 = vst [vmem:[#allocation76_spill] sm:$0xff] %v9609_v10  ;;  %v9611_v58 = vpop.eup %7412  ;;  %v2255_v8 = vmul.f32 1.442695, %v2228_v4  ;;  %v2200_v26 = vpop.permute.xlu1 %2199  ;;  %6550 = vmatprep.mubr.f32.mxu0 %v9609_v10 }
 0x586   : > { %7422 = vpow2.f32 %v2253_v32  ;;  %v2229_v41 = vsub.f32 %v9292_v30, %v2200_v26  ;;  %v2205_v24 = vpop.permute.xlu0 %2204  ;;  %6551 = vmatmul.mubr.f32.gmra.mrb[20].mxu0 %v9611_v58 }
 0x587   : > { %7424 = vpow2.f32 %v2255_v8  ;;  %v2230_v3 = vsub.f32 %v9290_v16, %v2205_v24 }
 0x588   : > { %v9619_v33 = vpop.eup %7414  ;;  %v2257_v50 = vmul.f32 1.442695, %v2229_v41  ;;  %6993 = vmatpush3.bf16.xpose.msk.msra.mxu0 %vm8608_vm3, %v6988_v7 }
 0x589   : > { %11562 = vst [vmem:[#allocation77_spill] sm:$0xff] %v9619_v33  ;;  %v9623_v29 = vpop.eup %7416  ;;  %v2259_v27 = vmul.f32 1.442695, %v2230_v3  ;;  %6553 = vmatprep.mubr.f32.mxu0 %v9619_v33  ;;  %6996 = vmatprep.subr.msk.bf16.mxu0 %vm8608_vm3, %v6994_v59 }
 0x58a   : > { %7426 = vpow2.f32 %v2257_v50  ;;  %v2215_v30 = vpop.permute.xlu0 %2214  ;;  %6554 = vmatmul.mubr.f32.gmra.mrb[22].mxu0 %v9623_v29 }
 0x58b   : > { %7428 = vpow2.f32 %v2259_v27  ;;  %v2232_v4 = vsub.f32 %v9294_v21, %v2215_v30  ;;  %v2733_v27 = vld [vmem:[%s8204_s0 + $0x18] sm:$0xff] }
 0x58c   : > { %v9629_v16 = vpop.eup %7418 }
 0x58d   : > { %11563 = vst [vmem:[#allocation78_spill] sm:$0xff] %v9629_v16  ;;  %v9632_v32 = vpop.eup %7420  ;;  %6556 = vmatprep.mubr.f32.mxu0 %v9629_v16  ;;  %v2263_v41 = vmul.f32 1.442695, %v2232_v4  ;;  %v2734_v4 = vld [vmem:[%s8204_s0 + $0x28] sm:$0xff] }
 0x58e   : > { %v2210_v7 = vpop.permute.xlu1 %2209  ;;  %6557 = vmatmul.mubr.f32.gmra.mrb[24].mxu0 %v9632_v32 }
 0x58f   : > { %v2231_v8 = vsub.f32 %v9296_v57, %v2210_v7 }
 0x590   : > { %v9637_v26 = vpop.eup %7422  ;;  %6999 = vmatpush3.bf16.xpose.msk.msra.mxu0 %vm8608_vm3, %v6994_v59  ;;  %v2732_v59 = vld [vmem:[%s8204_s0 + $0x8] sm:$0xff] }
 0x591   : > { %11564 = vst [vmem:[#allocation79_spill] sm:$0xff] %v9637_v26  ;;  %v9641_v24 = vpop.eup %7424  ;;  %v2261_v21 = vmul.f32 1.442695, %v2231_v8  ;;  %6559 = vmatprep.mubr.f32.mxu0 %v9637_v26  ;;  %v9652_v50 = vmul.f32 0.125, %v2732_v59  ;;  %v9662_v8 = vmul.f32 0.125, %v2733_v27  ;;  %v2736_v59 = vld [vmem:[%s8204_s0 + $0x48] sm:$0xff] }
 0x592   : > { %11565 = vst [vmem:[#allocation80_spill] sm:$0xff] %v9641_v24  ;;  %6560 = vmatmul.mubr.f32.gmra.mrb[26].mxu0 %v9641_v24  ;;  %v9676_v2 = vmul.f32 0.125, %v2736_v59  ;;  %v2737_v27 = vld [vmem:[%s8204_s0 + $0x58] sm:$0xff] }
 0x593   : > { %7430 = vpow2.f32 %v2261_v21  ;;  %v2735_v21 = vld [vmem:[%s8204_s0 + $0x38] sm:$0xff]  ;;  %v9685_v60 = vmul.f32 0.125, %v2737_v27  ;;  %v9702_v27 = vmul.f32 0.125, %v2740_v53  ;;  %v9718_v53 = vmul.f32 0.125, %v2742_v52 }
 0x594   : > { %v9645_v3 = vpop.eup %7426  ;;  %7432 = vpow2.f32 %v2263_v41  ;;  %v9666_v41 = vmul.f32 0.125, %v2734_v4  ;;  %v9672_v14 = vmul.f32 0.125, %v2735_v21  ;;  %v1095_v4 = vmul.f32 1.442695, %v11572_v45  ;;  %v2739_v59 = vld [vmem:[%s8204_s0 + $0x78] sm:$0xff] }
 0x595   : > { %11566 = vst [vmem:[#allocation81_spill] sm:$0xff] %v9645_v3  ;;  %v9647_v57 = vpop.eup %7428  ;;  %6562 = vmatprep.mubr.f32.mxu0 %v9645_v3  ;;  %v9689_v21 = vmul.f32 0.125, %v2738_v56  ;;  %v9698_v45 = vmul.f32 0.125, %v2739_v59  ;;  %v2741_v56 = vld [vmem:[%s8204_s0 + $0x98] sm:$0xff] }
 0x596   : > { %11567 = vst [vmem:[#allocation82_spill] sm:$0xff] %v9647_v57  ;;  %6563 = vmatmul.mubr.f32.gmra.mrb[28].mxu0 %v9647_v57  ;;  %7434 = vpow2.f32 %v1095_v4  ;;  %v11575_v4 = vsub.f32 %v8907_v46, %v8923_v17  ;;  %v9714_v59 = vmul.f32 0.125, %v2741_v56  ;;  %v11579_v17 = vld [vmem:[#allocation29_spill] sm:$0xff] }
 0x597   : > { %7436 = vpow2.f32 %v1097_v55  ;;  %v2743_v55 = vld [vmem:[%s8204_s0 + $0xb8] sm:$0xff]  ;;  %v11580_v46 = vsub.f32 %v8937_v35, %v11579_v17 }
 0x598   : > { %v1101_v13 = vmul.f32 1.442695, %v11575_v4  ;;  %v9732_v52 = vmul.f32 0.125, %v2743_v55  ;;  %v2745_v35 = vld [vmem:[%s8204_s0 + $0xd8] sm:$0xff] }
 0x599   : > { %v1105_v4 = vmul.f32 1.442695, %v11580_v46  ;;  %v2746_v46 = vld [vmem:[%s8204_s0 + $0xe8] sm:$0xff] }
 0x59a   : > { %7438 = vpow2.f32 %v1101_v13 }
 0x59d   : > { %v9655_v30 = vpop.eup %7430 }
 0x59e   : > { %11568 = vst [vmem:[#allocation83_spill] sm:$0xff] %v9655_v30  ;;  %v9658_v7 = vpop.eup %7432  ;;  %6565 = vmatprep.mubr.f32.mxu0 %v9655_v30  ;;  %v11578_v30 = vsub.f32 %v11576_v51, %v11577_v63  ;;  %v2744_v63 = vld [vmem:[%s8204_s0 + $0xc8] sm:$0xff]  ;;  %v11582_v51 = vld [vmem:[#allocation23_spill] sm:$0xff] }
 0x59f   : > { %11569 = vst [vmem:[#allocation84_spill] sm:$0xff] %v9658_v7  ;;  %6566 = vmatmul.mubr.f32.gmra.mrb[30].mxu0 %v9658_v7  ;;  %v1254_v7 = vld [vmem:[#allocation3 + $0x8] sm:$0xff]  ;;  %v9736_v13 = vmul.f32 0.125, %v2744_v63  ;;  %v1255_v63 = vld [vmem:[#allocation3 + $0x10] sm:$0xff] }
 0x5a0   : > { %6600 = vmatprep.mubr.msk.f32.mxu0 %vm771_vm2, %v9652_v50  ;;  %v1093_v3 = vmul.f32 1.442695, %v11578_v30  ;;  %v11581_v30 = vld [vmem:[#allocation19_spill] sm:$0xff]  ;;  %v9728_v56 = vpop.eup %7434 }
 0x5a1   : > { %v11583_v26 = vsub.f32 %v11581_v30, %v11582_v51  ;;  %11584 = vst [vmem:[#allocation22_spill] sm:$0xff] %v9728_v56  ;;  %v11587_v30 = vld [vmem:[#allocation27_spill] sm:$0xff]  ;;  %v1270_v55 = vmul.f32 %v9728_v56, %v1254_v7  ;;  %v9747_v57 = vpop.eup %7436 }
 0x5a2   : > { %7440 = vpow2.f32 %v1093_v3  ;;  %v11585_v3 = vld [vmem:[#allocation31_spill] sm:$0xff]  ;;  %v11588_v51 = vsub.f32 %v11587_v30, %v8949_v34  ;;  %11589 = vst [vmem:[#allocation24_spill] sm:$0xff] %v9747_v57  ;;  %v11590_v34 = vld [vmem:[#allocation33_spill] sm:$0xff] }
 0x5a3   : > { %6601 = vmatmul.mubr.msk.f32.vlgmr.msra.gmra.mrb[32].mxu0 %vm771_vm2, %v9662_v8  ;;  %v1099_v16 = vmul.f32 1.442695, %v11583_v26  ;;  %7442 = vpow2.f32 %v1105_v4  ;;  %v11586_v17 = vsub.f32 %v11585_v3, %v8976_v6  ;;  %v9751_v4 = vmul.f32 0.125, %v2745_v35 }
 0x5a4   : > { %6603 = vmatprep.mubr.msk.f32.mxu0 %vm771_vm2, %v9666_v41  ;;  %v1103_v33 = vmul.f32 1.442695, %v11588_v51  ;;  %v9755_v6 = vmul.f32 0.125, %v2746_v46  ;;  %v11591_v7 = vsub.f32 %v11590_v34, %v8995_v36  ;;  %v9766_v35 = vpop.eup %7438  ;;  %v1257_v46 = vld [vmem:[#allocation3 + $0x20] sm:$0xff] }
 0x5a5   : > { %v1109_v26 = vmul.f32 1.442695, %v11586_v17  ;;  %7444 = vpow2.f32 %v1099_v16  ;;  %v2747_v16 = vld [vmem:[%s8204_s0 + $0xf8] sm:$0xff]  ;;  %v11592_v17 = vld [vmem:[#allocation30_spill] sm:$0xff]  ;;  %11594 = vst [vmem:[#allocation25_spill] sm:$0xff] %v9766_v35  ;;  %v1253_v34 = vld [vmem:[#allocation3] sm:$0xff] }
 0x5a6   : > { %v1113_v3 = vmul.f32 1.442695, %v11591_v7  ;;  %v11593_v30 = vsub.f32 %v11592_v17, %v8971_v25  ;;  %v11595_v25 = vsub.f32 %v9002_v42, %v9013_v18  ;;  %v11597_v7 = vld [vmem:[#allocation34_spill] sm:$0xff]  ;;  %s7849_s0 = smov (!%p6085_p3), 64  }
 0x5a7   : > { %6604 = vmatmul.mubr.msk.f32.gmra.mrb[34].mxu0 %vm771_vm2, %v9672_v14  ;;  %7446 = vpow2.f32 %v1109_v26  ;;  %v9770_v26 = vmul.f32 0.125, %v2747_v16  ;;  %v1273_v16 = vmul.f32 %v9766_v35, %v1257_v46 }
 0x5a8   : > { %6606 = vmatprep.mubr.msk.f32.mxu0 %vm771_vm2, %v9676_v2  ;;  %7448 = vpow2.f32 %v1103_v33  ;;  %v1107_v51 = vmul.f32 1.442695, %v11593_v30 }
 0x5a9   : > { %7450 = vpow2.f32 %v1113_v3 }
 0x5aa   : > { %7452 = vpow2.f32 %v1107_v51  ;;  %v1256_v51 = vld [vmem:[#allocation3 + $0x18] sm:$0xff] }
 0x5ab   : > { %6607 = vmatmul.mubr.msk.f32.gmra.mrb[36].mxu0 %vm771_vm2, %v9685_v60 }
 0x5ac   : > { %6609 = vmatprep.mubr.msk.f32.mxu0 %vm771_vm2, %v9689_v21  ;;  %v9772_v36 = vpop.eup %7440 }
 0x5ad   : > { %v9784_v56 = vpop.eup %7442 }
 0x5af   : > { %6610 = vmatmul.mubr.msk.f32.gmra.mrb[38].mxu0 %vm771_vm2, %v9698_v45  ;;  %v9789_v18 = vpop.eup %7444 }
 0x5b0   : > { %6612 = vmatprep.mubr.msk.f32.mxu0 %vm771_vm2, %v9702_v27  ;;  %11599 = vst [vmem:[#allocation17_spill] sm:$0xff] %v9789_v18 }
 0x5b1   : > { %v9799_v12 = vpop.eup %7446 }
 0x5b2   : > { %11604 = vst [vmem:[#allocation18_spill] sm:$0xff] %v9799_v12 }
 0x5b3   : > { %6613 = vmatmul.mubr.msk.f32.gmra.mrb[40].mxu0 %vm771_vm2, %v9714_v59 }
 0x5b4   : > { %6615 = vmatprep.mubr.msk.f32.mxu0 %vm771_vm2, %v9718_v53 }
 0x5b7   : > { %v1288_v10 = vpop.xlane.xlu0 %1287  ;;  %6616 = vmatmul.mubr.msk.f32.gmra.mrb[42].mxu0 %vm771_vm2, %v9732_v52 }
 0x5b8   : > { %v1318_v24 = vadd.f32 %v1288_v10, %v1270_v55  ;;  %6618 = vmatprep.mubr.msk.f32.mxu0 %vm771_vm2, %v9736_v13  ;;  %v1271_v10 = vmul.f32 %v9747_v57, %v1255_v63  ;;  %v11596_v63 = vld [vmem:[#allocation32_spill] sm:$0xff]  ;;  %v1259_v57 = vld [vmem:[#allocation3 + $0x30] sm:$0xff] }
 0x5b9   : > { %v11598_v17 = vsub.f32 %v11596_v63, %v11597_v7  ;;  %v11601_v63 = vld [vmem:[#allocation35_spill] sm:$0xff]  ;;  %v11602_v7 = vld [vmem:[#allocation36_spill] sm:$0xff]  ;;  %v1275_v35 = vmul.f32 %v9784_v56, %v1259_v57 }
 0x5ba   : > { %1335 = vst.msk [vmem:[#allocation3 + $0x8] sm:$0xff] %vm1333_vm4, %v1318_v24  ;;  %v1117_v24 = vmul.f32 1.442695, %v11595_v25 }
 0x5bb   : > { %v1290_v55 = vpop.xlane.xlu0 %1289  ;;  %6619 = vmatmul.mubr.msk.f32.gmra.mrb[44].mxu0 %vm771_vm2, %v9751_v4  ;;  %v1111_v30 = vmul.f32 1.442695, %v11598_v17  ;;  %v11603_v17 = vsub.f32 %v11601_v63, %v11602_v7  ;;  %v1263_v7 = vld [vmem:[#allocation3 + $0x50] sm:$0xff] }
 0x5bc   : > { %v1319_v33 = vadd.f32 %v1290_v55, %v1271_v10  ;;  %6621 = vmatprep.mubr.msk.f32.mxu0 %vm771_vm2, %v9755_v6  ;;  %v1269_v55 = vmul.f32 %v9772_v36, %v1253_v34  ;;  %7454 = vpow2.f32 %v1117_v24  ;;  %v1272_v24 = vmul.f32 %v9789_v18, %v1256_v51  ;;  %v2785_v18 = vld [vmem:[%s8208_s12 + $0x58] sm:$0xff] }
 0x5bd   : > { %7456 = vpow2.f32 %v1111_v30  ;;  %v1115_v34 = vmul.f32 1.442695, %v11603_v17 }
 0x5be   : > { %1336 = vst.msk [vmem:[#allocation3 + $0x10] sm:$0xff] %vm1333_vm4, %v1319_v33  ;;  %v11600_v33 = vsub.f32 %v9022_v5, %v9033_v43  ;;  %v9803_v43 = vpop.eup %7448 }
 0x5bf   : > { %v1294_v10 = vpop.xlane.xlu0 %1293  ;;  %6622 = vmatmul.mubr.msk.f32.gmra.mrb[46].mxu0 %vm771_vm2, %v9770_v26  ;;  %11605 = vst [vmem:[#allocation29_spill] sm:$0xff] %v9803_v43  ;;  %v9810_v63 = vpop.eup %7450 }
 0x5c0   : > { %v1321_v42 = vadd.f32 %v1294_v10, %v1273_v16  ;;  %v1286_v3 = vpop.xlane.xlu1 %1285  ;;  %v1121_v25 = vmul.f32 1.442695, %v11600_v33  ;;  %v1261_v10 = vld [vmem:[#allocation3 + $0x40] sm:$0xff]  ;;  %11608 = vst [vmem:[#allocation19_spill] sm:$0xff] %v9810_v63  ;;  %v9814_v17 = vpop.eup %7452 }
 0x5c1   : > { %v1317_v46 = vadd.f32 %v1286_v3, %v1269_v55  ;;  %v1258_v55 = vld [vmem:[#allocation3 + $0x28] sm:$0xff]  ;;  %v11606_v33 = vld [vmem:[#allocation37_spill] sm:$0xff]  ;;  %11609 = vst [vmem:[#allocation23_spill] sm:$0xff] %v9814_v17 }
 0x5c2   : > { %1338 = vst.msk [vmem:[#allocation3 + $0x20] sm:$0xff] %vm1333_vm4, %v1321_v42  ;;  %7458 = vpow2.f32 %v1121_v25  ;;  %v11607_v42 = vsub.f32 %v11606_v33, %v9030_v22  ;;  %v11610_v22 = vld [vmem:[#allocation38_spill] sm:$0xff] }
 0x5c3   : > { %1334 = vst.msk [vmem:[#allocation3] sm:$0xff] %vm1333_vm4, %v1317_v46  ;;  %v1298_v16 = vpop.xlane.xlu0 %1297  ;;  %7460 = vpow2.f32 %v1115_v34  ;;  %v1277_v46 = vmul.f32 %v9799_v12, %v1261_v10  ;;  %v1279_v10 = vmul.f32 %v9810_v63, %v1263_v7  ;;  %v2784_v63 = vld [vmem:[%s8208_s12 + $0x48] sm:$0xff]  ;;  %v2787_v12 = vld [vmem:[%s8208_s12 + $0x78] sm:$0xff] }
 0x5c4   : > { %v1323_v5 = vadd.f32 %v1298_v16, %v1275_v35  ;;  %v1292_v30 = vpop.xlane.xlu1 %1291  ;;  %v1119_v57 = vmul.f32 1.442695, %v11607_v42  ;;  %v1274_v35 = vmul.f32 %v9803_v43, %v1258_v55  ;;  %v1260_v16 = vld [vmem:[#allocation3 + $0x38] sm:$0xff]  ;;  %v1265_v42 = vld [vmem:[#allocation3 + $0x60] sm:$0xff] }
 0x5c5   : > { %v1320_v3 = vadd.f32 %v1292_v30, %v1272_v24  ;;  %v1276_v33 = vmul.f32 %v9814_v17, %v1260_v16  ;;  %v1267_v16 = vld [vmem:[#allocation3 + $0x70] sm:$0xff]  ;;  %v2783_v43 = vld [vmem:[%s8208_s12 + $0x38] sm:$0xff] }
 0x5c6   : > { %1340 = vst.msk [vmem:[#allocation3 + $0x30] sm:$0xff] %vm1333_vm4, %v1323_v5  ;;  %7462 = vpow2.f32 %v1119_v57  ;;  %v11611_v5 = vsub.f32 %v9035_v47, %v11610_v22 }
 0x5c7   : > { %1337 = vst.msk [vmem:[#allocation3 + $0x18] sm:$0xff] %vm1333_vm4, %v1320_v3  ;;  %v1302_v51 = vpop.xlane.xlu0 %1301  ;;  %v9821_v3 = vpop.eup %7454 }
 0x5c8   : > { %v1325_v25 = vadd.f32 %v1302_v51, %v1277_v46  ;;  %v1296_v34 = vpop.xlane.xlu1 %1295  ;;  %v1123_v30 = vmul.f32 1.442695, %v11611_v5  ;;  %11612 = vst [vmem:[#allocation31_spill] sm:$0xff] %v9821_v3  ;;  %v9825_v46 = vpop.eup %7456  ;;  %v1281_v47 = vmul.f32 %v9821_v3, %v1265_v42  ;;  %v2782_v3 = vld [vmem:[%s8208_s12 + $0x28] sm:$0xff] }
 0x5c9   : > { %v1322_v24 = vadd.f32 %v1296_v34, %v1274_v35  ;;  %11613 = vst [vmem:[#allocation27_spill] sm:$0xff] %v9825_v46  ;;  %v1262_v35 = vld [vmem:[#allocation3 + $0x48] sm:$0xff] }
 0x5ca   : > { %1342 = vst.msk [vmem:[#allocation3 + $0x40] sm:$0xff] %vm1333_vm4, %v1325_v25  ;;  %7464 = vpow2.f32 %v1123_v30 }
 0x5cb   : > { %1339 = vst.msk [vmem:[#allocation3 + $0x28] sm:$0xff] %vm1333_vm4, %v1322_v24  ;;  %v1306_v55 = vpop.xlane.xlu0 %1305  ;;  %v1278_v24 = vmul.f32 %v9825_v46, %v1262_v35 }
 0x5cc   : > { %v1327_v51 = vadd.f32 %v1306_v55, %v1279_v10  ;;  %v1300_v57 = vpop.xlane.xlu1 %1299  ;;  %v9829_v7 = vpop.eup %7458  ;;  %v1264_v55 = vld [vmem:[#allocation3 + $0x58] sm:$0xff] }
 0x5cd   : > { %v1324_v34 = vadd.f32 %v1300_v57, %v1276_v33  ;;  %11614 = vst [vmem:[#allocation33_spill] sm:$0xff] %v9829_v7  ;;  %v9833_v22 = vpop.eup %7460  ;;  %v1283_v30 = vmul.f32 %v9829_v7, %v1267_v16  ;;  %v1268_v16 = vld [vmem:[#allocation3 + $0x78] sm:$0xff] }
 0x5ce   : > { %1344 = vst.msk [vmem:[#allocation3 + $0x50] sm:$0xff] %vm1333_vm4, %v1327_v51  ;;  %11615 = vst [vmem:[#allocation30_spill] sm:$0xff] %v9833_v22  ;;  %v1280_v42 = vmul.f32 %v9833_v22, %v1264_v55  ;;  %v2781_v22 = vld [vmem:[%s8208_s12 + $0x18] sm:$0xff] }
 0x5cf   : > { %1341 = vst.msk [vmem:[#allocation3 + $0x38] sm:$0xff] %vm1333_vm4, %v1324_v34  ;;  %v1310_v25 = vpop.xlane.xlu0 %1309  ;;  %v1266_v34 = vld [vmem:[#allocation3 + $0x68] sm:$0xff] }
 0x5d0   : > { %v1329_v5 = vadd.f32 %v1310_v25, %v1281_v47  ;;  %v1304_v10 = vpop.xlane.xlu1 %1303  ;;  %v9839_v51 = vpop.eup %7462 }
 0x5d1   : > { %v1326_v17 = vadd.f32 %v1304_v10, %v1278_v24  ;;  %11616 = vst [vmem:[#allocation32_spill] sm:$0xff] %v9839_v51  ;;  %v1282_v47 = vmul.f32 %v9839_v51, %v1266_v34 }
 0x5d2   : > { %1346 = vst.msk [vmem:[#allocation3 + $0x60] sm:$0xff] %vm1333_vm4, %v1329_v5 }
 0x5d3   : > { %1343 = vst.msk [vmem:[#allocation3 + $0x48] sm:$0xff] %vm1333_vm4, %v1326_v17  ;;  %v1314_v33 = vpop.xlane.xlu0 %1313 }
 0x5d4   : > { %v1331_v57 = vadd.f32 %v1314_v33, %v1283_v30  ;;  %v1308_v35 = vpop.xlane.xlu1 %1307  ;;  %v9844_v25 = vpop.eup %7464 }
 0x5d5   : > { %v1328_v46 = vadd.f32 %v1308_v35, %v1280_v42  ;;  %11617 = vst [vmem:[#allocation34_spill] sm:$0xff] %v9844_v25  ;;  %v1284_v5 = vmul.f32 %v9844_v25, %v1268_v16 }
 0x5d6   : > { %1348 = vst.msk [vmem:[#allocation3 + $0x70] sm:$0xff] %vm1333_vm4, %v1331_v57 }
 0x5d7   : > { %1345 = vst.msk [vmem:[#allocation3 + $0x58] sm:$0xff] %vm1333_vm4, %v1328_v46 }
 0x5d8   : > { %v1312_v24 = vpop.xlane.xlu1 %1311 }
 0x5d9   : > { %v1330_v17 = vadd.f32 %v1312_v24, %v1282_v47 }
 0x5db   : > { %1347 = vst.msk [vmem:[#allocation3 + $0x68] sm:$0xff] %vm1333_vm4, %v1330_v17 }
 0x5dc   : > { %v1316_v10 = vpop.xlane.xlu1 %1315 }
 0x5dd   : > { %v1332_v55 = vadd.f32 %v1316_v10, %v1284_v5 }
 0x5df   : > { %1349 = vst.msk [vmem:[#allocation3 + $0x78] sm:$0xff] %vm1333_vm4, %v1332_v55 }
 0x625   : > { %v9849_v30 = vpop.f32.mrb[16].mxu0 }
 0x626   : > { %11618 = vst [vmem:[#allocation35_spill] sm:$0xff] %v9849_v30  ;;  %v9851_v33 = vpop.f32.mrb[17].mxu0 }
 0x627   : > { %11619 = vst [vmem:[#allocation36_spill] sm:$0xff] %v9851_v33 }
 0x655   : > { %v9853_v46 = vpop.f32.mrb[18].mxu0 }
 0x656   : > { %11620 = vst [vmem:[#allocation37_spill] sm:$0xff] %v9853_v46  ;;  %v9855_v42 = vpop.f32.mrb[19].mxu0 }
 0x657   : > { %11621 = vst [vmem:[#allocation38_spill] sm:$0xff] %v9855_v42 }
 0x659   : > { %v9857_v57 = vpop.f32.mrb[20].mxu0 }
 0x65a   : > { %11622 = vst [vmem:[#allocation85_spill] sm:$0xff] %v9857_v57  ;;  %v9859_v35 = vpop.f32.mrb[21].mxu0 }
 0x65b   : > { %11623 = vst [vmem:[#allocation86_spill] sm:$0xff] %v9859_v35 }
 0x65d   : > { %v9861_v34 = vpop.f32.mrb[22].mxu0 }
 0x65e   : > { %11624 = vst [vmem:[#allocation87_spill] sm:$0xff] %v9861_v34  ;;  %v9863_v47 = vpop.f32.mrb[23].mxu0 }
 0x65f   : > { %11625 = vst [vmem:[#allocation88_spill] sm:$0xff] %v9863_v47 }
 0x661   : > { %v9865_v24 = vpop.f32.mrb[24].mxu0 }
 0x662   : > { %11626 = vst [vmem:[#allocation89_spill] sm:$0xff] %v9865_v24  ;;  %v9867_v16 = vpop.f32.mrb[25].mxu0 }
 0x663   : > { %11627 = vst [vmem:[#allocation90_spill] sm:$0xff] %v9867_v16 }
 0x665   : > { %v9869_v17 = vpop.f32.mrb[26].mxu0 }
 0x666   : > { %11628 = vst [vmem:[#allocation91_spill] sm:$0xff] %v9869_v17  ;;  %v9871_v5 = vpop.f32.mrb[27].mxu0 }
 0x667   : > { %11629 = vst [vmem:[#allocation92_spill] sm:$0xff] %v9871_v5 }
 0x669   : > { %v9873_v10 = vpop.f32.mrb[28].mxu0 }
 0x66a   : > { %11630 = vst [vmem:[#allocation93_spill] sm:$0xff] %v9873_v10  ;;  %v9875_v55 = vpop.f32.mrb[29].mxu0 }
 0x66b   : > { %11631 = vst [vmem:[#allocation94_spill] sm:$0xff] %v9875_v55 }
 0x672   : > { %v9877_v46 = vpop.f32.mrb[30].mxu0 }
 0x673   : > { %11632 = vst [vmem:[#allocation95_spill] sm:$0xff] %v9877_v46  ;;  %v9879_v57 = vpop.f32.mrb[31].mxu0 }
 0x674   : > { %11633 = vst [vmem:[#allocation96_spill] sm:$0xff] %v9879_v57 }
 0x676   : > { %v9881_v42 = vpop.f32.mrb[32].mxu0 }
 0x677   : > { %3056 = vmax.xlane.f32.xlu1 %v9881_v42  ;;  %v9884_v34 = vpop.f32.mrb[33].mxu0 }
 0x678   : > { %3054 = vmax.xlane.f32.xlu0 %v9884_v34 }
 0x67a   : > { %v9887_v24 = vpop.f32.mrb[34].mxu0 }
 0x67b   : > { %3060 = vmax.xlane.f32.xlu1 %v9887_v24  ;;  %v9890_v17 = vpop.f32.mrb[35].mxu0 }
 0x67e   : > { %v9892_v10 = vpop.f32.mrb[36].mxu0 }
 0x67f   : > { %3058 = vmax.xlane.f32.xlu1 %v9890_v17  ;;  %v9895_v46 = vpop.f32.mrb[37].mxu0 }
 0x682   : > { %v9897_v57 = vpop.f32.mrb[38].mxu0 }
 0x683   : > { %3064 = vmax.xlane.f32.xlu1 %v9892_v10  ;;  %v9900_v55 = vpop.f32.mrb[39].mxu0 }
 0x686   : > { %v9902_v5 = vpop.f32.mrb[40].mxu0 }
 0x687   : > { %3062 = vmax.xlane.f32.xlu1 %v9895_v46  ;;  %v9905_v33 = vpop.f32.mrb[41].mxu0 }
 0x68a   : > { %v9907_v16 = vpop.f32.mrb[42].mxu0 }
 0x68b   : > { %11634 = vst [vmem:[#allocation97_spill] sm:$0xff] %v9907_v16  ;;  %3066 = vmax.xlane.f32.xlu1 %v9900_v55  ;;  %v9910_v47 = vpop.f32.mrb[43].mxu0 }
 0x68c   : > { %11635 = vst [vmem:[#allocation98_spill] sm:$0xff] %v9910_v47 }
 0x68e   : > { %1368 = vperm.xlu0 %7208, %v9772_v36   ;;  %v9913_v35 = vpop.f32.mrb[44].mxu0  ;;  %v2780_v36 = vld [vmem:[%s8208_s12 + $0x8] sm:$0xff] }
 0x68f   : > { %11636 = vst [vmem:[#allocation99_spill] sm:$0xff] %v9913_v35  ;;  %3072 = vmax.xlane.f32.xlu1 %v9902_v5  ;;  %v9916_v30 = vpop.f32.mrb[45].mxu0  ;;  %v7000_v7 = vpack.c.bf16 %v2781_v22, %v2780_v36  ;;  %v9944_v36 = vld [vmem:[#allocation2 + $0x100] sm:$0xff] }
 0x690   : > { %11637 = vst [vmem:[#allocation100_spill] sm:$0xff] %v9916_v30 }
 0x691   : > { %7001 = vmatprep.subr.bf16.mxu1 %v7000_v7 }
 0x692   : > { %v9918_v25 = vpop.f32.mrb[46].mxu0  ;;  %7003 = vmatpush3.bf16.msra.mxu1 %v7000_v7  ;;  %v9940_v7 = vld [vmem:[#allocation2 + $0x108] sm:$0xff] }
 0x693   : > { %11638 = vst [vmem:[#allocation101_spill] sm:$0xff] %v9918_v25  ;;  %3070 = vmax.xlane.f32.xlu1 %v9905_v33  ;;  %v9921_v51 = vpop.f32.mrb[47].mxu0 }
 0x694   : > { %11639 = vst [vmem:[#allocation102_spill] sm:$0xff] %v9921_v51 }
 0x697   : > { %3076 = vmax.xlane.f32.xlu1 %v9907_v16  ;;  %v2789_v16 = vld [vmem:[%s8208_s12 + $0x98] sm:$0xff] }
 0x69b   : > { %3074 = vmax.xlane.f32.xlu1 %v9910_v47  ;;  %v7008_v47 = vpack.c.bf16 %v2785_v18, %v2784_v63 }
 0x69f   : > { %3080 = vmax.xlane.f32.xlu1 %v9913_v35  ;;  %v7004_v35 = vpack.c.bf16 %v2783_v43, %v2782_v3  ;;  %v2790_v43 = vld [vmem:[%s8208_s12 + $0xa8] sm:$0xff]  ;;  %v2791_v3 = vld [vmem:[%s8208_s12 + $0xb8] sm:$0xff] }
 0x6a0   : > { %v7020_v18 = vpack.c.bf16 %v2791_v3, %v2790_v43  ;;  %v7295_v43 = vpack.i.bf16 %v9519_v54, %v9516_v23  ;;  %v2792_v3 = vld [vmem:[%s8208_s12 + $0xc8] sm:$0xff]  ;;  %v1350_v23 = vld [vmem:[#allocation4] sm:$0xff]  ;;  %v7300_v54 = vpack.i.bf16 %v9531_v37, %v9528_v9 }
 0x6a1   : > { %7005 = vmatprep.subr.bf16.mxu1 %v7004_v35  ;;  %v11643_v37 = vld [vmem:[#allocation10_spill] sm:$0xff] }
 0x6a2   : > { %7007 = vmatpush3.bf16.msra.mxu1 %v7004_v35 }
 0x6a3   : > { %3078 = vmax.xlane.f32.xlu1 %v9916_v30  ;;  %7009 = vmatprep.subr.bf16.mxu1 %v7008_v47  ;;  %v2788_v30 = vld [vmem:[%s8208_s12 + $0x88] sm:$0xff] }
 0x6a4   : > { %v7016_v22 = vpack.c.bf16 %v2789_v16, %v2788_v30 }
 0x6a6   : > { %7011 = vmatpush3.bf16.msra.mxu1 %v7008_v47  ;;  %v7290_v47 = vpack.i.bf16 %v9501_v11, %v9498_v40  ;;  %v9973_v11 = vld [vmem:[#allocation2 + $0x110] sm:$0xff] }
 0x6a7   : > { %3084 = vmax.xlane.f32.xlu1 %v9918_v25  ;;  %v2786_v25 = vld [vmem:[%s8208_s12 + $0x68] sm:$0xff] }
 0x6ab   : > { %3082 = vmax.xlane.f32.xlu1 %v9921_v51  ;;  %v7012_v51 = vpack.c.bf16 %v2787_v12, %v2786_v25 }
 0x6ad   : > { %3068 = vmax.xlane.f32.xlu0 %v9897_v57  ;;  %7013 = vmatprep.subr.bf16.mxu1 %v7012_v51 }
 0x6ae   : > { %7015 = vmatpush3.bf16.msra.mxu1 %v7012_v51  ;;  %v9952_v51 = vld [vmem:[#allocation2 + $0x118] sm:$0xff] }
 0x6af   : > { %7017 = vmatprep.subr.bf16.mxu1 %v7016_v22  ;;  %11641 = vst [vmem:[#allocation104_spill] sm:$0xff] %v9952_v51 }
 0x6b2   : > { %7019 = vmatpush3.bf16.msra.mxu1 %v7016_v22 }
 0x6b3   : > { %7021 = vmatprep.subr.bf16.mxu1 %v7020_v18 }
 0x6b6   : > { %7023 = vmatpush3.bf16.msra.mxu1 %v7020_v18 }
 0x704   : > { %v3057_v63 = vpop.xlane.xlu1 %3056 }
 0x705   : > { %v9947_v35 = vmax.f32 %v9940_v7, %v3057_v63  ;;  %v3055_v12 = vpop.xlane.xlu0 %3054  ;;  %v2793_v63 = vld [vmem:[%s8208_s12 + $0xd8] sm:$0xff] }
 0x706   : > { %v9950_v25 = vmax.f32 %v9944_v36, %v3055_v12  ;;  %v7024_v40 = vpack.c.bf16 %v2793_v63, %v2792_v3  ;;  %v2794_v3 = vld [vmem:[%s8208_s12 + $0xe8] sm:$0xff]  ;;  %v2795_v63 = vld [vmem:[%s8208_s12 + $0xf8] sm:$0xff] }
 0x707   : > { %3666 = vst.msk [vmem:[#allocation2 + $0x108] sm:$0xff] %vm1333_vm4, %v9947_v35  ;;  %3157 = vperm.xlu1 %7209, %v9947_v35  }
 0x708   : > { %11640 = vst [vmem:[#allocation103_spill] sm:$0xff] %v9950_v25  ;;  %3665 = vst.msk [vmem:[#allocation2 + $0x100] sm:$0xff] %vm1333_vm4, %v9950_v25  ;;  %v3061_v22 = vpop.xlane.xlu1 %3060  ;;  %3152 = vperm.xlu0 %7208, %v9950_v25   ;;  %7025 = vmatprep.subr.bf16.mxu1 %v7024_v40  ;;  %v9990_v25 = vld [vmem:[#allocation2 + $0x128] sm:$0xff] }
 0x709   : > { %v9971_v12 = vmax.f32 %v9952_v51, %v3061_v22  ;;  %v7305_v22 = vpack.i.bf16 %v9543_v44, %v9540_v39  ;;  %7027 = vmatpush3.bf16.msra.mxu1 %v7024_v40  ;;  %v7028_v51 = vpack.c.bf16 %v2795_v63, %v2794_v3  ;;  %v10025_v63 = vld [vmem:[#allocation2 + $0x148] sm:$0xff]  ;;  %v10054_v40 = vld [vmem:[#allocation2 + $0x150] sm:$0xff] }
 0x70a   : > { %11651 = vst [vmem:[#allocation112_spill] sm:$0xff] %v10054_v40 }
 0x70b   : > { %3668 = vst.msk [vmem:[#allocation2 + $0x118] sm:$0xff] %vm1333_vm4, %v9971_v12  ;;  %7291 = vrot.lane.b32.xlu1 %v7290_v47, %s7847_s17  ;;  %7029 = vmatprep.subr.bf16.mxu1 %v7028_v51 }
 0x70c   : > { %v3059_v18 = vpop.xlane.xlu1 %3058  ;;  %7296 = vrot.lane.b32.xlu0 %v7295_v43, %s7847_s17 }
 0x70d   : > { %v9988_v16 = vmax.f32 %v9973_v11, %v3059_v18  ;;  %v1369_v30 = vpop.permute.xlu0 %1368  ;;  %7031 = vmatpush3.bf16.msra.mxu1 %v7028_v51  ;;  %v10045_v18 = vld [vmem:[#allocation2 + $0x158] sm:$0xff] }
 0x70e   : > { %v1446_v47 = vmul.f32 %v1369_v30, %v1350_v23  ;;  %v10003_v30 = vld [vmem:[#allocation2 + $0x120] sm:$0xff]  ;;  %11649 = vst [vmem:[#allocation110_spill] sm:$0xff] %v10045_v18 }
 0x70f   : > { %11642 = vst [vmem:[#allocation105_spill] sm:$0xff] %v9988_v16  ;;  %3667 = vst.msk [vmem:[#allocation2 + $0x110] sm:$0xff] %vm1333_vm4, %v9988_v16  ;;  %7301 = vrot.lane.b32.xlu1 %v7300_v54, %s7847_s17  ;;  %v10014_v54 = vld [vmem:[#allocation2 + $0x130] sm:$0xff] }
 0x710   : > { %v1607_v39 = vadd.f32 %v11643_v37, %v1446_v47  ;;  %v3065_v44 = vpop.xlane.xlu1 %3064  ;;  %7306 = vrot.lane.b32.xlu0 %v7305_v22, %s7847_s17  ;;  %11644 = vst [vmem:[#allocation10_spill] sm:$0xff] %v10003_v30  ;;  %11646 = vst [vmem:[#allocation107_spill] sm:$0xff] %v10014_v54 }
 0x711   : > { %v10000_v43 = vmax.f32 %v9990_v25, %v3065_v44  ;;  %v10035_v44 = vld [vmem:[#allocation2 + $0x140] sm:$0xff] }
 0x712   : > { %1623 = vst.msk [vmem:[#allocation4] sm:$0xff] %vm771_vm2, %v1607_v39  ;;  %11648 = vst [vmem:[#allocation109_spill] sm:$0xff] %v10035_v44 }
 0x713   : > { %3670 = vst.msk [vmem:[#allocation2 + $0x128] sm:$0xff] %vm1333_vm4, %v10000_v43  ;;  %3162 = vperm.xlu1 %7209, %v9988_v16   ;;  %v10098_v16 = vld [vmem:[#allocation2 + $0x138] sm:$0xff] }
 0x714   : > { %v3063_v23 = vpop.xlane.xlu1 %3062  ;;  %3167 = vperm.xlu0 %7208, %v9971_v12  }
 0x715   : > { %v10012_v51 = vmax.f32 %v10003_v30, %v3063_v23 }
 0x717   : > { %11645 = vst [vmem:[#allocation106_spill] sm:$0xff] %v10012_v51  ;;  %3669 = vst.msk [vmem:[#allocation2 + $0x120] sm:$0xff] %vm1333_vm4, %v10012_v51  ;;  %3177 = vperm.xlu1 %7209, %v10000_v43  }
 0x718   : > { %3172 = vperm.xlu0 %7208, %v10012_v51   ;;  %v3067_v22 = vpop.xlane.xlu1 %3066 }
 0x719   : > { %v10023_v3 = vmax.f32 %v10014_v54, %v3067_v22 }
 0x71b   : > { %11647 = vst [vmem:[#allocation108_spill] sm:$0xff] %v10023_v3  ;;  %3671 = vst.msk [vmem:[#allocation2 + $0x130] sm:$0xff] %vm1333_vm4, %v10023_v3 }
 0x71c   : > { %3182 = vperm.xlu0 %7208, %v10023_v3   ;;  %v3073_v37 = vpop.xlane.xlu1 %3072 }
 0x71d   : > { %v10033_v39 = vmax.f32 %v10025_v63, %v3073_v37 }
 0x71f   : > { %3674 = vst.msk [vmem:[#allocation2 + $0x148] sm:$0xff] %vm1333_vm4, %v10033_v39 }
 0x720   : > { %3197 = vperm.xlu0 %7208, %v10033_v39   ;;  %v3071_v22 = vpop.xlane.xlu1 %3070 }
 0x721   : > { %v10043_v47 = vmax.f32 %v10035_v44, %v3071_v22  ;;  %v10064_v44 = vld [vmem:[#allocation2 + $0x168] sm:$0xff] }
 0x722   : > { %11652 = vst [vmem:[#allocation113_spill] sm:$0xff] %v10064_v44 }
 0x723   : > { %3673 = vst.msk [vmem:[#allocation2 + $0x140] sm:$0xff] %vm1333_vm4, %v10043_v47 }
 0x724   : > { %v3077_v9 = vpop.xlane.xlu1 %3076 }
 0x725   : > { %v10052_v23 = vmax.f32 %v10045_v18, %v3077_v9  ;;  %v10073_v18 = vld [vmem:[#allocation2 + $0x160] sm:$0xff]  ;;  %v10082_v9 = vld [vmem:[#allocation2 + $0x178] sm:$0xff] }
 0x726   : > { %11653 = vst [vmem:[#allocation114_spill] sm:$0xff] %v10073_v18  ;;  %11655 = vst [vmem:[#allocation116_spill] sm:$0xff] %v10082_v9 }
 0x727   : > { %11650 = vst [vmem:[#allocation111_spill] sm:$0xff] %v10052_v23  ;;  %3676 = vst.msk [vmem:[#allocation2 + $0x158] sm:$0xff] %vm1333_vm4, %v10052_v23  ;;  %3207 = vperm.xlu0 %7208, %v10052_v23  }
 0x728   : > { %v3075_v22 = vpop.xlane.xlu1 %3074 }
 0x729   : > { %v10062_v37 = vmax.f32 %v10054_v40, %v3075_v22 }
 0x72b   : > { %3675 = vst.msk [vmem:[#allocation2 + $0x150] sm:$0xff] %vm1333_vm4, %v10062_v37 }
 0x72c   : > { %v3081_v54 = vpop.xlane.xlu1 %3080 }
 0x72d   : > { %v10071_v3 = vmax.f32 %v10064_v44, %v3081_v54  ;;  %v10092_v44 = vld [vmem:[#allocation2 + $0x170] sm:$0xff] }
 0x72f   : > { %3678 = vst.msk [vmem:[#allocation2 + $0x168] sm:$0xff] %vm1333_vm4, %v10071_v3 }
 0x730   : > { %v3079_v22 = vpop.xlane.xlu1 %3078 }
 0x731   : > { %v10080_v51 = vmax.f32 %v10073_v18, %v3079_v22  ;;  %v7315_v22 = vpack.i.bf16 %v9568_v15, %v9565_v31  ;;  %v7310_v31 = vpack.i.bf16 %v9555_v48, %v9552_v61  ;;  %v7320_v15 = vpack.i.bf16 %v9584_v1, %v9581_v19 }
 0x733   : > { %11654 = vst [vmem:[#allocation115_spill] sm:$0xff] %v10080_v51  ;;  %3677 = vst.msk [vmem:[#allocation2 + $0x160] sm:$0xff] %vm1333_vm4, %v10080_v51  ;;  %3212 = vperm.xlu0 %7208, %v10080_v51   ;;  %v3735_v51 = vld [vmem:[%s8208_s12 + $0x68] sm:$0xff] }
 0x734   : > { %v3085_v54 = vpop.xlane.xlu1 %3084 }
 0x735   : > { %v10090_v23 = vmax.f32 %v10082_v9, %v3085_v54 }
 0x737   : > { %3680 = vst.msk [vmem:[#allocation2 + $0x178] sm:$0xff] %vm1333_vm4, %v10090_v23 }
 0x738   : > { %v3083_v30 = vpop.xlane.xlu1 %3082 }
 0x739   : > { %v10101_v40 = vmax.f32 %v10092_v44, %v3083_v30  ;;  %v7325_v30 = vpack.i.bf16 %v9606_v62, %v9603_v49 }
 0x73a   : > { %v3069_v18 = vpop.xlane.xlu0 %3068 }
 0x73b   : > { %3679 = vst.msk [vmem:[#allocation2 + $0x170] sm:$0xff] %vm1333_vm4, %v10101_v40  ;;  %v10108_v54 = vmax.f32 %v10098_v16, %v3069_v18  ;;  %3222 = vperm.xlu0 %7208, %v10101_v40  }
 0x73d   : > { %v3109_v9 = vsub.f32 %v10098_v16, %v10108_v54  ;;  %3672 = vst.msk [vmem:[#allocation2 + $0x138] sm:$0xff] %vm1333_vm4, %v10108_v54  ;;  %3187 = vperm.xlu1 %7209, %v10108_v54  }
 0x73f   : > { %7316 = vrot.lane.b32.xlu0 %v7315_v22, %s7847_s17 }
 0x741   : > { %3192 = vperm.xlu1 %7209, %v10043_v47  }
 0x743   : > { %7326 = vrot.lane.b32.xlu0 %v7325_v30, %s7847_s17  ;;  %v11658_v30 = vld [vmem:[#allocation76_spill] sm:$0xff] }
 0x745   : > { %3202 = vperm.xlu1 %7209, %v10062_v37  }
 0x747   : > { %3763 = vrot.lane.b32.xlu0 %v9662_v8, %s7847_s17 }
 0x749   : > { %7311 = vrot.lane.b32.xlu1 %v7310_v31, %s7847_s17 }
 0x74b   : > { %3767 = vrot.lane.b32.xlu0 %v9672_v14, %s7847_s17 }
 0x74d   : > { %3217 = vperm.xlu1 %7209, %v10071_v3  }
 0x74f   : > { %3771 = vrot.lane.b32.xlu0 %v9685_v60, %s7847_s17 }
 0x751   : > { %3227 = vperm.xlu1 %7209, %v10090_v23  }
 0x753   : > { %3775 = vrot.lane.b32.xlu0 %v9698_v45, %s7847_s17 }
 0x755   : > { %7321 = vrot.lane.b32.xlu1 %v7320_v15, %s7847_s17  ;;  %v11659_v15 = vld [vmem:[#allocation82_spill] sm:$0xff] }
 0x757   : > { %3779 = vrot.lane.b32.xlu0 %v9714_v59, %s7847_s17 }
 0x759   : > { %3761 = vrot.lane.b32.xlu1 %v9652_v50, %s7847_s17 }
 0x75b   : > { %3783 = vrot.lane.b32.xlu0 %v9732_v52, %s7847_s17 }
 0x75d   : > { %3765 = vrot.lane.b32.xlu1 %v9666_v41, %s7847_s17 }
 0x75f   : > { %3787 = vrot.lane.b32.xlu0 %v9751_v4, %s7847_s17 }
 0x761   : > { %3769 = vrot.lane.b32.xlu1 %v9676_v2, %s7847_s17 }
 0x763   : > { %3791 = vrot.lane.b32.xlu0 %v9770_v26, %s7847_s17 }
 0x765   : > { %3773 = vrot.lane.b32.xlu1 %v9689_v21, %s7847_s17 }
 0x769   : > { %3777 = vrot.lane.b32.xlu1 %v9702_v27, %s7847_s17 }
 0x76d   : > { %3781 = vrot.lane.b32.xlu1 %v9718_v53, %s7847_s17 }
 0x771   : > { %3785 = vrot.lane.b32.xlu1 %v9736_v13, %s7847_s17 }
 0x775   : > { %3789 = vrot.lane.b32.xlu1 %v9755_v6, %s7847_s17 }
 0x782   : > { %2298 = vadd.xlane.f32.xlu0 %v9504_v0 }
 0x786   : > { %2302 = vadd.xlane.f32.xlu0 %v9591_v20  ;;  %v3158_v2 = vpop.permute.xlu1 %3157 }
 0x787   : > { %v3231_v60 = vsub.f32 %v9881_v42, %v3158_v2  ;;  %v3153_v14 = vpop.permute.xlu0 %3152 }
 0x788   : > { %v3230_v61 = vsub.f32 %v9884_v34, %v3153_v14  ;;  %v11660_v14 = vld [vmem:[#allocation77_spill] sm:$0xff] }
 0x789   : > { %v3248_v48 = vmul.f32 1.442695, %v3231_v60 }
 0x78a   : > { %v3246_v19 = vmul.f32 1.442695, %v3230_v61  ;;  %2304 = vadd.xlane.f32.xlu0 %v9595_v28  ;;  %v7292_v1 = vpop.permute.xlu1 %7291 }
 0x78b   : > { %v7294_v49 = vunpack.i.h.bf16 %v7292_v1  ;;  %v7293_v62 = vunpack.i.l.bf16 %v7292_v1  ;;  %v7297_v50 = vpop.permute.xlu0 %7296  ;;  %v11662_v1 = vld [vmem:[#allocation78_spill] sm:$0xff] }
 0x78c   : > { %7466 = vpow2.f32 %v3246_v19  ;;  %v7299_v41 = vunpack.i.h.bf16 %v7297_v50  ;;  %v7298_v21 = vunpack.i.l.bf16 %v7297_v50 }
 0x78d   : > { %7468 = vpow2.f32 %v3248_v48  ;;  %v7032_v8 = vpack.c.bf16 %v7294_v49, %v7293_v62 }
 0x78e   : > { %2308 = vadd.xlane.f32.xlu0 %v9611_v58  ;;  %v7302_v0 = vpop.permute.xlu1 %7301  ;;  %v7038_v13 = vpack.c.bf16 %v7299_v41, %v7298_v21  ;;  %v11665_v41 = vld [vmem:[#allocation83_spill] sm:$0xff] }
 0x78f   : > { %v7307_v20 = vpop.permute.xlu0 %7306  ;;  %7034 = vmatprep.subr.msk.bf16.mxu1 %vm8608_vm3, %v7032_v8  ;;  %v7303_v18 = vunpack.i.l.bf16 %v7302_v0 }
 0x790   : > { %v7309_v48 = vunpack.i.h.bf16 %v7307_v20  ;;  %v7308_v19 = vunpack.i.l.bf16 %v7307_v20  ;;  %v11664_v20 = vld [vmem:[#allocation81_spill] sm:$0xff] }
 0x792   : > { %2312 = vadd.xlane.f32.xlu0 %v9623_v29  ;;  %v3163_v45 = vpop.permute.xlu1 %3162  ;;  %v7050_v62 = vpack.c.bf16 %v7309_v48, %v7308_v19  ;;  %v11676_v48 = vld [vmem:[#allocation17_spill] sm:$0xff] }
 0x793   : > { %v3232_v28 = vsub.f32 %v9890_v17, %v3163_v45  ;;  %v3168_v27 = vpop.permute.xlu0 %3167  ;;  %v11657_v17 = vld [vmem:[#allocation80_spill] sm:$0xff] }
 0x794   : > { %v3233_v59 = vsub.f32 %v9887_v24, %v3168_v27  ;;  %v11656_v24 = vld [vmem:[#allocation75_spill] sm:$0xff] }
 0x795   : > { %v3250_v53 = vmul.f32 1.442695, %v3232_v28  ;;  %v11666_v28 = vld [vmem:[#allocation24_spill] sm:$0xff] }
 0x796   : > { %v10175_v52 = vpop.eup %7466  ;;  %v3252_v58 = vmul.f32 1.442695, %v3233_v59  ;;  %2316 = vadd.xlane.f32.xlu0 %v9632_v32  ;;  %v3178_v4 = vpop.permute.xlu1 %3177  ;;  %v11667_v59 = vld [vmem:[#allocation25_spill] sm:$0xff] }
 0x797   : > { %v10178_v6 = vpop.eup %7468  ;;  %7470 = vpow2.f32 %v3250_v53  ;;  %v3235_v26 = vsub.f32 %v9892_v10, %v3178_v4  ;;  %6656 = vmatprep.mubr.f32.mxu1 %v10175_v52  ;;  %v3173_v29 = vpop.permute.xlu0 %3172  ;;  %v7304_v10 = vunpack.i.h.bf16 %v7302_v0 }
 0x798   : > { %7472 = vpow2.f32 %v3252_v58  ;;  %v3234_v42 = vsub.f32 %v9895_v46, %v3173_v29  ;;  %6657 = vmatmul.mubr.f32.vlgmr.msra.gmra.mrb[32].mxu1 %v10178_v6 }
 0x799   : > { %v3256_v34 = vmul.f32 1.442695, %v3235_v26  ;;  %7037 = vmatpush3.bf16.xpose.msk.msra.mxu1 %vm8608_vm3, %v7032_v8  ;;  %2300 = vadd.xlane.f32.xlu1 %v11656_v24  ;;  %v7044_v2 = vpack.c.bf16 %v7304_v10, %v7303_v18  ;;  %v11663_v8 = vld [vmem:[#allocation79_spill] sm:$0xff]  ;;  %v11668_v24 = vld [vmem:[#allocation97_spill] sm:$0xff]  ;;  %v11670_v10 = vld [vmem:[#allocation100_spill] sm:$0xff] }
 0x79a   : > { %v3254_v32 = vmul.f32 1.442695, %v3234_v42  ;;  %2320 = vadd.xlane.f32.xlu0 %v11657_v17  ;;  %7040 = vmatprep.subr.msk.bf16.mxu1 %vm8608_vm3, %v7038_v13  ;;  %v11669_v17 = vld [vmem:[#allocation22_spill] sm:$0xff] }
 0x79b   : > { %v3183_v22 = vpop.permute.xlu0 %3182 }
 0x79c   : > { %7474 = vpow2.f32 %v3254_v32  ;;  %v3236_v46 = vsub.f32 %v9900_v55, %v3183_v22  ;;  %v11661_v55 = vld [vmem:[#allocation84_spill] sm:$0xff] }
 0x79d   : > { %7476 = vpow2.f32 %v3256_v34  ;;  %2306 = vadd.xlane.f32.xlu1 %v11658_v30 }
 0x79e   : > { %v3258_v31 = vmul.f32 1.442695, %v3236_v46  ;;  %2324 = vadd.xlane.f32.xlu0 %v11659_v15  ;;  %v11671_v46 = vld [vmem:[#allocation15_spill] sm:$0xff] }
 0x79f   : > { %v3198_v21 = vpop.permute.xlu0 %3197 }
 0x7a0   : > { %7478 = vpow2.f32 %v3258_v31  ;;  %v3239_v58 = vsub.f32 %v9902_v5, %v3198_v21  ;;  %v11674_v31 = vld [vmem:[#allocation18_spill] sm:$0xff]  ;;  %v11679_v21 = vld [vmem:[#allocation53_spill] sm:$0xff] }
 0x7a1   : > { %v10193_v60 = vpop.eup %7470  ;;  %7043 = vmatpush3.bf16.xpose.msk.msra.mxu1 %vm8608_vm3, %v7038_v13  ;;  %2310 = vadd.xlane.f32.xlu1 %v11660_v14 }
 0x7a2   : > { %v10198_v61 = vpop.eup %7472  ;;  %2328 = vadd.xlane.f32.xlu0 %v11661_v55  ;;  %6659 = vmatprep.mubr.f32.mxu1 %v10193_v60  ;;  %v3264_v34 = vmul.f32 1.442695, %v3239_v58  ;;  %v11682_v58 = vld [vmem:[#allocation29_spill] sm:$0xff] }
 0x7a3   : > { %6660 = vmatmul.mubr.f32.gmra.mrb[34].mxu1 %v10198_v61  ;;  %7046 = vmatprep.subr.msk.bf16.mxu1 %vm8608_vm3, %v7044_v2 }
 0x7a5   : > { %2314 = vadd.xlane.f32.xlu1 %v11662_v1 }
 0x7a6   : > { %v10206_v49 = vpop.eup %7474  ;;  %v3208_v45 = vpop.permute.xlu0 %3207 }
 0x7a7   : > { %v10208_v50 = vpop.eup %7476  ;;  %6662 = vmatprep.mubr.f32.mxu1 %v10206_v49  ;;  %v3241_v32 = vsub.f32 %v11668_v24, %v3208_v45  ;;  %v11684_v24 = vld [vmem:[#allocation57_spill] sm:$0xff] }
 0x7a8   : > { %6663 = vmatmul.mubr.f32.gmra.mrb[36].mxu1 %v10208_v50 }
 0x7a9   : > { %7049 = vmatpush3.bf16.xpose.msk.msra.mxu1 %vm8608_vm3, %v7044_v2  ;;  %2318 = vadd.xlane.f32.xlu1 %v11663_v8  ;;  %v11675_v2 = vld [vmem:[#allocation98_spill] sm:$0xff]  ;;  %v11677_v8 = vld [vmem:[#allocation19_spill] sm:$0xff] }
 0x7aa   : > { %v10215_v0 = vpop.eup %7478  ;;  %7052 = vmatprep.subr.msk.bf16.mxu1 %vm8608_vm3, %v7050_v62 }
 0x7ab   : > { %6665 = vmatprep.mubr.f32.mxu1 %v10215_v0 }
 0x7ad   : > { %2322 = vadd.xlane.f32.xlu1 %v11664_v20 }
 0x7b1   : > { %7055 = vmatpush3.bf16.xpose.msk.msra.mxu1 %vm8608_vm3, %v7050_v62  ;;  %2326 = vadd.xlane.f32.xlu1 %v11665_v41  ;;  %v11678_v41 = vld [vmem:[#allocation51_spill] sm:$0xff] }
 0x7b2   : > { %v3213_v27 = vpop.permute.xlu0 %3212  ;;  %v11680_v45 = vsub.f32 %v11678_v41, %v11679_v21  ;;  %v11696_v41 = vld [vmem:[#allocation14_spill] sm:$0xff] }
 0x7b3   : > { %v3242_v18 = vsub.f32 %v11670_v10, %v3213_v27  ;;  %v11686_v10 = vld [vmem:[#allocation31_spill] sm:$0xff] }
 0x7b5   : > { %v3270_v19 = vmul.f32 1.442695, %v3242_v18 }
 0x7b8   : > { %1378 = vperm.xlu0 %7208, %v11666_v28   ;;  %v2113_v28 = vmul.f32 1.442695, %v11680_v45 }
 0x7ba   : > { %v3223_v26 = vpop.permute.xlu0 %3222 }
 0x7bc   : > { %1388 = vperm.xlu0 %7208, %v11667_v59   ;;  %v3188_v53 = vpop.permute.xlu1 %3187 }
 0x7bd   : > { %v3237_v13 = vsub.f32 %v9897_v57, %v3188_v53  ;;  %v11672_v57 = vld [vmem:[#allocation13_spill] sm:$0xff]  ;;  %v11681_v53 = vld [vmem:[#allocation102_spill] sm:$0xff] }
 0x7be   : > { %v11673_v30 = vsub.f32 %v11671_v46, %v11672_v57  ;;  %v11688_v57 = vld [vmem:[#allocation23_spill] sm:$0xff] }
 0x7bf   : > { %v3260_v4 = vmul.f32 1.442695, %v3237_v13  ;;  %v3244_v13 = vsub.f32 %v11681_v53, %v3223_v26 }
 0x7c0   : > { %1398 = vperm.xlu0 %7208, %v9784_v56   ;;  %v3193_v29 = vpop.permute.xlu1 %3192  ;;  %v2107_v5 = vmul.f32 1.442695, %v11673_v30  ;;  %v7317_v56 = vpop.permute.xlu0 %7316 }
 0x7c1   : > { %7480 = vpow2.f32 %v3260_v4  ;;  %v3238_v42 = vsub.f32 %v9905_v33, %v3193_v29  ;;  %v3268_v33 = vmul.f32 1.442695, %v3241_v32  ;;  %v7319_v1 = vunpack.i.h.bf16 %v7317_v56 }
 0x7c2   : > { %1373 = vperm.xlu1 %7209, %v11669_v17   ;;  %v7318_v62 = vunpack.i.l.bf16 %v7317_v56  ;;  %v3274_v26 = vmul.f32 1.442695, %v3244_v13  ;;  %v11690_v56 = vld [vmem:[#allocation61_spill] sm:$0xff]  ;;  %v11698_v13 = vld [vmem:[#allocation63_spill] sm:$0xff] }
 0x7c3   : > { %v3262_v22 = vmul.f32 1.442695, %v3238_v42 }
 0x7c4   : > { %1408 = vperm.xlu0 %7208, %v11674_v31   ;;  %v3203_v15 = vpop.permute.xlu1 %3202  ;;  %v7062_v42 = vpack.c.bf16 %v7319_v1, %v7318_v62  ;;  %v11694_v62 = vld [vmem:[#allocation27_spill] sm:$0xff] }
 0x7c5   : > { %7482 = vpow2.f32 %v3262_v22  ;;  %v3240_v14 = vsub.f32 %v11675_v2, %v3203_v15  ;;  %v11687_v22 = vld [vmem:[#allocation99_spill] sm:$0xff] }
 0x7c6   : > { %7484 = vpow2.f32 %v3264_v34  ;;  %1383 = vperm.xlu1 %7209, %v11676_v48   ;;  %v11683_v34 = vld [vmem:[#allocation55_spill] sm:$0xff] }
 0x7c7   : > { %v3266_v55 = vmul.f32 1.442695, %v3240_v14  ;;  %7486 = vpow2.f32 %v2107_v5  ;;  %v11685_v32 = vsub.f32 %v11683_v34, %v11684_v24  ;;  %v11689_v15 = vld [vmem:[#allocation59_spill] sm:$0xff] }
 0x7c8   : > { %1418 = vperm.xlu0 %7208, %v11677_v8   ;;  %v7312_v20 = vpop.permute.xlu1 %7311  ;;  %v11691_v2 = vsub.f32 %v11689_v15, %v11690_v56  ;;  %v11705_v15 = vld [vmem:[#allocation67_spill] sm:$0xff]  ;;  %v11706_v56 = vld [vmem:[#allocation69_spill] sm:$0xff] }
 0x7c9   : > { %7488 = vpow2.f32 %v3266_v55  ;;  %v7314_v27 = vunpack.i.h.bf16 %v7312_v20  ;;  %v7313_v59 = vunpack.i.l.bf16 %v7312_v20  ;;  %v2117_v17 = vmul.f32 1.442695, %v11685_v32  ;;  %v11695_v20 = vld [vmem:[#allocation16_spill] sm:$0xff] }
 0x7ca   : > { %7490 = vpow2.f32 %v3268_v33  ;;  %1393 = vperm.xlu1 %7209, %v11682_v58   ;;  %v2121_v14 = vmul.f32 1.442695, %v11691_v2  ;;  %v11692_v33 = vld [vmem:[#allocation33_spill] sm:$0xff]  ;;  %v11697_v21 = vsub.f32 %v11695_v20, %v11696_v41  ;;  %v11707_v2 = vsub.f32 %v11705_v15, %v11706_v56  ;;  %v11710_v41 = vld [vmem:[#allocation28_spill] sm:$0xff] }
 0x7cb   : > { %v10245_v4 = vpop.eup %7480  ;;  %7492 = vpow2.f32 %v3270_v19  ;;  %v7056_v29 = vpack.c.bf16 %v7314_v27, %v7313_v59  ;;  %v11693_v19 = vld [vmem:[#allocation101_spill] sm:$0xff] }
 0x7cc   : > { %1428 = vperm.xlu0 %7208, %v11686_v10   ;;  %6666 = vmatmul.mubr.f32.gmra.mrb[38].mxu1 %v10245_v4  ;;  %v3218_v18 = vpop.permute.xlu1 %3217  ;;  %7494 = vpow2.f32 %v2113_v28  ;;  %v2105_v45 = vmul.f32 1.442695, %v11697_v21  ;;  %v11699_v58 = vld [vmem:[#allocation65_spill] sm:$0xff]  ;;  %v7327_v10 = vpop.permute.xlu0 %7326 }
 0x7cd   : > { %v3243_v46 = vsub.f32 %v11687_v22, %v3218_v18  ;;  %7058 = vmatprep.subr.msk.bf16.mxu1 %vm8608_vm3, %v7056_v29  ;;  %7496 = vpow2.f32 %v2117_v17  ;;  %v11701_v17 = vld [vmem:[#allocation30_spill] sm:$0xff] }
 0x7ce   : > { %1403 = vperm.xlu1 %7209, %v11688_v57   ;;  %7061 = vmatpush3.bf16.xpose.msk.msra.mxu1 %vm8608_vm3, %v7056_v29  ;;  %v11700_v29 = vsub.f32 %v11698_v13, %v11699_v58  ;;  %v11702_v22 = vld [vmem:[#allocation26_spill] sm:$0xff] }
 0x7cf   : > { %v10258_v30 = vpop.eup %7482  ;;  %v3272_v5 = vmul.f32 1.442695, %v3243_v46  ;;  %7064 = vmatprep.subr.msk.bf16.mxu1 %vm8608_vm3, %v7062_v42  ;;  %v11703_v46 = vld [vmem:[#allocation21_spill] sm:$0xff]  ;;  %v11713_v13 = vld [vmem:[#allocation74_spill] sm:$0xff] }
 0x7d0   : > { %v10262_v31 = vpop.eup %7484  ;;  %1438 = vperm.xlu0 %7208, %v11692_v33   ;;  %6668 = vmatprep.mubr.f32.mxu1 %v10258_v30  ;;  %v3228_v48 = vpop.permute.xlu1 %3227  ;;  %v2125_v34 = vmul.f32 1.442695, %v11700_v29  ;;  %v7329_v33 = vunpack.i.h.bf16 %v7327_v10 }
 0x7d1   : > { %7498 = vpow2.f32 %v3272_v5  ;;  %v3245_v55 = vsub.f32 %v11693_v19, %v3228_v48  ;;  %6669 = vmatmul.mubr.f32.gmra.mrb[40].mxu1 %v10262_v31  ;;  %v10271_v1 = vpop.eup %7486  ;;  %v7328_v48 = vunpack.i.l.bf16 %v7327_v10 }
 0x7d2   : > { %7500 = vpow2.f32 %v3274_v26  ;;  %1413 = vperm.xlu1 %7209, %v11694_v62   ;;  %v11704_v26 = vsub.f32 %v11702_v22, %v11703_v46  ;;  %v11716_v22 = vld [vmem:[#allocation52_spill] sm:$0xff]  ;;  %v11717_v46 = vld [vmem:[#allocation54_spill] sm:$0xff] }
 0x7d3   : > { %v10274_v8 = vpop.eup %7488  ;;  %v3276_v28 = vmul.f32 1.442695, %v3245_v55  ;;  %7502 = vpow2.f32 %v2121_v14  ;;  %v2129_v14 = vmul.f32 1.442695, %v11707_v2  ;;  %v11708_v55 = vld [vmem:[#allocation32_spill] sm:$0xff] }
 0x7d4   : > { %v10279_v27 = vpop.eup %7490  ;;  %2386 = vperm.xlu0 %7208, %v10271_v1   ;;  %6671 = vmatprep.mubr.f32.mxu1 %v10274_v8  ;;  %v7322_v59 = vpop.permute.xlu1 %7321  ;;  %v2109_v57 = vmul.f32 1.442695, %v11704_v26  ;;  %v11718_v26 = vsub.f32 %v11716_v22, %v11717_v46  ;;  %v11725_v22 = vld [vmem:[#allocation64_spill] sm:$0xff]  ;;  %v11726_v46 = vld [vmem:[#allocation66_spill] sm:$0xff] }
 0x7d5   : > { %v10283_v53 = vpop.eup %7492  ;;  %7504 = vpow2.f32 %v3276_v28  ;;  %6672 = vmatmul.mubr.f32.gmra.mrb[42].mxu1 %v10279_v27  ;;  %v7324_v24 = vunpack.i.h.bf16 %v7322_v59  ;;  %v7323_v32 = vunpack.i.l.bf16 %v7322_v59  ;;  %v11712_v59 = vld [vmem:[#allocation73_spill] sm:$0xff] }
 0x7d6   : > { %1423 = vperm.xlu1 %7209, %v11701_v17   ;;  %6674 = vmatprep.mubr.f32.mxu1 %v10283_v53  ;;  %v10291_v18 = vpop.eup %7494  ;;  %7506 = vpow2.f32 %v2105_v45  ;;  %v11714_v58 = vsub.f32 %v11712_v59, %v11713_v13  ;;  %v11715_v17 = vld [vmem:[#allocation34_spill] sm:$0xff] }
 0x7d7   : > { %7067 = vmatpush3.bf16.xpose.msk.msra.mxu1 %vm8608_vm3, %v7062_v42  ;;  %v7068_v5 = vpack.c.bf16 %v7324_v24, %v7323_v32  ;;  %7508 = vpow2.f32 %v2125_v34  ;;  %v10304_v19 = vpop.eup %7496  ;;  %v11709_v42 = vld [vmem:[#allocation20_spill] sm:$0xff]  ;;  %v7074_v34 = vpack.c.bf16 %v7329_v33, %v7328_v48  ;;  %v3764_v24 = vpop.permute.xlu0 %3763 }
 0x7d8   : > { %2401 = vperm.xlu0 %7208, %v10291_v18   ;;  %v3762_v62 = vpop.permute.xlu1 %3761  ;;  %7510 = vpow2.f32 %v2109_v57  ;;  %v11711_v21 = vsub.f32 %v11709_v42, %v11710_v41  ;;  %v2133_v29 = vmul.f32 1.442695, %v11714_v58  ;;  %v2115_v57 = vmul.f32 1.442695, %v11718_v26 }
 0x7d9   : > { %7070 = vmatprep.subr.msk.bf16.mxu1 %vm8608_vm3, %v7068_v5  ;;  %7512 = vpow2.f32 %v2129_v14  ;;  %v11719_v14 = vld [vmem:[#allocation56_spill] sm:$0xff]  ;;  %v11727_v26 = vsub.f32 %v11725_v22, %v11726_v46 }
 0x7da   : > { %1433 = vperm.xlu1 %7209, %v11708_v55   ;;  %v2111_v45 = vmul.f32 1.442695, %v11711_v21  ;;  %v11732_v22 = vld [vmem:[#allocation72_spill] sm:$0xff] }
 0x7db   : > { %v10307_v20 = vpop.eup %7498  ;;  %v3768_v55 = vpop.permute.xlu0 %3767 }
 0x7dc   : > { %v10312_v28 = vpop.eup %7500  ;;  %2411 = vperm.xlu0 %7208, %v10304_v19   ;;  %6675 = vmatmul.mubr.f32.gmra.mrb[44].mxu1 %v10307_v20  ;;  %7514 = vpow2.f32 %v2111_v45  ;;  %v3766_v15 = vpop.permute.xlu1 %3765  ;;  %v11723_v45 = vld [vmem:[#allocation62_spill] sm:$0xff] }
 0x7dd   : > { %6677 = vmatprep.mubr.f32.mxu1 %v10312_v28  ;;  %v10320_v32 = vpop.eup %7502  ;;  %7516 = vpow2.f32 %v2133_v29 }
 0x7de   : > { %1443 = vperm.xlu1 %7209, %v11715_v17   ;;  %7518 = vpow2.f32 %v2115_v57  ;;  %v2127_v57 = vmul.f32 1.442695, %v11727_v26 }
 0x7df   : > { %v10323_v10 = vpop.eup %7504  ;;  %7073 = vmatpush3.bf16.xpose.msk.msra.mxu1 %vm8608_vm3, %v7068_v5  ;;  %v11720_v5 = vld [vmem:[#allocation58_spill] sm:$0xff]  ;;  %v3772_v29 = vpop.permute.xlu0 %3771 }
 0x7e0   : > { %2421 = vperm.xlu0 %7208, %v10320_v32   ;;  %6678 = vmatmul.mubr.f32.gmra.mrb[46].mxu1 %v10323_v10  ;;  %v10332_v56 = vpop.eup %7506  ;;  %v11721_v33 = vsub.f32 %v11719_v14, %v11720_v5  ;;  %v3770_v41 = vpop.permute.xlu1 %3769 }
 0x7e1   : > { %7076 = vmatprep.subr.msk.bf16.mxu1 %vm8608_vm3, %v7074_v34  ;;  %6712 = vmatprep.mubr.msk.f32.mxu1 %vm771_vm2, %v3762_v62  ;;  %v10338_v2 = vpop.eup %7508  ;;  %v11722_v62 = vld [vmem:[#allocation60_spill] sm:$0xff] }
 0x7e2   : > { %2381 = vperm.xlu1 %7209, %v10332_v56   ;;  %v2119_v48 = vmul.f32 1.442695, %v11721_v33  ;;  %v10344_v42 = vpop.eup %7510  ;;  %v11724_v59 = vsub.f32 %v11722_v62, %v11723_v45 }
 0x7e3   : > { %v10347_v21 = vpop.eup %7512  ;;  %v3776_v62 = vpop.permute.xlu0 %3775 }
 0x7e4   : > { %2431 = vperm.xlu0 %7208, %v10338_v2   ;;  %7520 = vpow2.f32 %v2119_v48  ;;  %v2123_v13 = vmul.f32 1.442695, %v11724_v59  ;;  %v3774_v14 = vpop.permute.xlu1 %3773 }
 0x7e6   : > { %2391 = vperm.xlu1 %7209, %v10344_v42   ;;  %v10355_v58 = vpop.eup %7514  ;;  %7522 = vpow2.f32 %v2123_v13  ;;  %v11731_v13 = vld [vmem:[#allocation71_spill] sm:$0xff] }
 0x7e7   : > { %7079 = vmatpush3.bf16.xpose.msk.msra.mxu1 %vm8608_vm3, %v7074_v34  ;;  %v10358_v17 = vpop.eup %7516  ;;  %7524 = vpow2.f32 %v2127_v57  ;;  %v11729_v34 = vld [vmem:[#allocation70_spill] sm:$0xff]  ;;  %v11733_v46 = vsub.f32 %v11731_v13, %v11732_v22  ;;  %v3780_v57 = vpop.permute.xlu0 %3779  ;;  %v2268_v22 = vld [vmem:[#allocation3 + $0x90] sm:$0xff] }
 0x7e8   : > { %2441 = vperm.xlu0 %7208, %v10347_v21   ;;  %v7519_v5 = vpop.eup %7518  ;;  %v11730_v33 = vsub.f32 %v11728_v38, %v11729_v34  ;;  %v3778_v59 = vpop.permute.xlu1 %3777 }
 0x7e9   : > { %v2135_v26 = vmul.f32 1.442695, %v11733_v46 }
 0x7ea   : > { %2396 = vperm.xlu1 %7209, %v10355_v58   ;;  %v2131_v48 = vmul.f32 1.442695, %v11730_v33 }
 0x7ec   : > { %2451 = vperm.xlu0 %7208, %v10358_v17   ;;  %7526 = vpow2.f32 %v2131_v48 }
 0x7ed   : > { %7528 = vpow2.f32 %v2135_v26  ;;  %v2284_v26 = vmul.f32 %v10344_v42, %v2268_v22  ;;  %v2273_v42 = vld [vmem:[#allocation3 + $0xb8] sm:$0xff] }
 0x7ee   : > { %6713 = vmatmul.mubr.msk.f32.vlgmr.msra.gmra.mrb[48].mxu1 %vm771_vm2, %v3764_v24  ;;  %2406 = vperm.xlu1 %7209, %v7519_v5   ;;  %v7521_v45 = vpop.eup %7520 }
 0x7ef   : > { %6715 = vmatprep.mubr.msk.f32.mxu1 %vm771_vm2, %v3766_v15  ;;  %v3782_v15 = vpop.permute.xlu1 %3781 }
 0x7f0   : > { %v7523_v24 = vpop.eup %7522 }
 0x7f1   : > { %v7525_v38 = vpop.eup %7524 }
 0x7f2   : > { %6716 = vmatmul.mubr.msk.f32.gmra.mrb[50].mxu1 %vm771_vm2, %v3768_v55  ;;  %2416 = vperm.xlu1 %7209, %v7521_v45   ;;  %v3784_v55 = vpop.permute.xlu0 %3783 }
 0x7f3   : > { %6718 = vmatprep.mubr.msk.f32.mxu1 %vm771_vm2, %v3770_v41  ;;  %v3786_v41 = vpop.permute.xlu1 %3785 }
 0x7f6   : > { %6719 = vmatmul.mubr.msk.f32.gmra.mrb[52].mxu1 %vm771_vm2, %v3772_v29  ;;  %2426 = vperm.xlu1 %7209, %v7523_v24   ;;  %v10378_v34 = vpop.eup %7526 }
 0x7f7   : > { %6721 = vmatprep.mubr.msk.f32.mxu1 %vm771_vm2, %v3774_v14  ;;  %v10383_v29 = vpop.eup %7528  ;;  %v3788_v14 = vpop.permute.xlu0 %3787 }
 0x7f8   : > { %v3790_v33 = vpop.permute.xlu1 %3789 }
 0x7fa   : > { %6722 = vmatmul.mubr.msk.f32.gmra.mrb[54].mxu1 %vm771_vm2, %v3776_v62  ;;  %2436 = vperm.xlu1 %7209, %v7525_v38   ;;  %v2266_v62 = vld [vmem:[#allocation3 + $0x80] sm:$0xff] }
 0x7fb   : > { %6724 = vmatprep.mubr.msk.f32.mxu1 %vm771_vm2, %v3778_v59  ;;  %v3792_v48 = vpop.permute.xlu0 %3791  ;;  %v2282_v59 = vmul.f32 %v10332_v56, %v2266_v62  ;;  %v2271_v56 = vld [vmem:[#allocation3 + $0xa8] sm:$0xff] }
 0x7fe   : > { %6725 = vmatmul.mubr.msk.f32.gmra.mrb[56].mxu1 %vm771_vm2, %v3780_v57  ;;  %2446 = vperm.xlu1 %7209, %v10378_v34  }
 0x7ff   : > { %6727 = vmatprep.mubr.msk.f32.mxu1 %vm771_vm2, %v3782_v15  ;;  %v2269_v15 = vld [vmem:[#allocation3 + $0x98] sm:$0xff] }
 0x802   : > { %6728 = vmatmul.mubr.msk.f32.gmra.mrb[58].mxu1 %vm771_vm2, %v3784_v55  ;;  %2456 = vperm.xlu1 %7209, %v10383_v29  }
 0x803   : > { %6730 = vmatprep.mubr.msk.f32.mxu1 %vm771_vm2, %v3786_v41 }
 0x806   : > { %6731 = vmatmul.mubr.msk.f32.gmra.mrb[60].mxu1 %vm771_vm2, %v3788_v14  ;;  %v2287_v14 = vmul.f32 %v7519_v5, %v2271_v56  ;;  %v2272_v56 = vld [vmem:[#allocation3 + $0xb0] sm:$0xff] }
 0x807   : > { %6733 = vmatprep.mubr.msk.f32.mxu1 %vm771_vm2, %v3790_v33 }
 0x80a   : > { %6734 = vmatmul.mubr.msk.f32.gmra.mrb[62].mxu1 %vm771_vm2, %v3792_v48 }
 0x80b   : > { %3313 = vadd.xlane.f32.xlu0 %v10178_v6  ;;  %v2285_v6 = vmul.f32 %v10355_v58, %v2269_v15  ;;  %v2275_v58 = vld [vmem:[#allocation3 + $0xc8] sm:$0xff] }
 0x80f   : > { %v2299_v13 = vpop.xlane.xlu0 %2298  ;;  %3311 = vadd.xlane.f32.xlu0 %v10175_v52 }
 0x810   : > { %v2330_v46 = vadd.f32 %v2299_v13, %v2282_v59  ;;  %v2267_v13 = vld [vmem:[#allocation3 + $0x88] sm:$0xff] }
 0x812   : > { %2346 = vst.msk [vmem:[#allocation3 + $0x80] sm:$0xff] %vm1333_vm4, %v2330_v46  ;;  %v2277_v46 = vld [vmem:[#allocation3 + $0xd8] sm:$0xff] }
 0x813   : > { %v2303_v57 = vpop.xlane.xlu0 %2302  ;;  %3317 = vadd.xlane.f32.xlu0 %v10198_v61  ;;  %v2289_v61 = vmul.f32 %v7521_v45, %v2273_v42  ;;  %v2293_v45 = vmul.f32 %v7525_v38, %v2277_v46  ;;  %v2281_v38 = vld [vmem:[#allocation3 + $0xf8] sm:$0xff] }
 0x814   : > { %v2332_v55 = vadd.f32 %v2303_v57, %v2284_v26  ;;  %v2283_v26 = vmul.f32 %v10271_v1, %v2267_v13  ;;  %v2270_v57 = vld [vmem:[#allocation3 + $0xa0] sm:$0xff]  ;;  %v2297_v42 = vmul.f32 %v10383_v29, %v2281_v38  ;;  %v1352_v29 = vld [vmem:[#allocation4 + $0x10] sm:$0xff]  ;;  %v11736_v38 = vld [vmem:[#allocation42_spill] sm:$0xff] }
 0x815   : > { %v2278_v13 = vld [vmem:[#allocation3 + $0xe0] sm:$0xff] }
 0x816   : > { %2348 = vst.msk [vmem:[#allocation3 + $0x90] sm:$0xff] %vm1333_vm4, %v2332_v55  ;;  %v2279_v55 = vld [vmem:[#allocation3 + $0xe8] sm:$0xff] }
 0x817   : > { %v2305_v41 = vpop.xlane.xlu0 %2304  ;;  %3321 = vadd.xlane.f32.xlu0 %v10208_v50  ;;  %v2291_v50 = vmul.f32 %v7523_v24, %v2275_v58  ;;  %v2286_v24 = vmul.f32 %v10291_v18, %v2270_v57  ;;  %v2276_v58 = vld [vmem:[#allocation3 + $0xd0] sm:$0xff] }
 0x818   : > { %v2333_v52 = vadd.f32 %v2305_v41, %v2285_v6  ;;  %v2295_v41 = vmul.f32 %v10378_v34, %v2279_v55  ;;  %v2280_v57 = vld [vmem:[#allocation3 + $0xf0] sm:$0xff] }
 0x819   : > { %v1356_v55 = vld [vmem:[#allocation4 + $0x30] sm:$0xff] }
 0x81a   : > { %2349 = vst.msk [vmem:[#allocation3 + $0x98] sm:$0xff] %vm1333_vm4, %v2333_v52 }
 0x81b   : > { %v2309_v33 = vpop.xlane.xlu0 %2308  ;;  %3325 = vadd.xlane.f32.xlu0 %v10245_v4 }
 0x81c   : > { %v2335_v48 = vadd.f32 %v2309_v33, %v2287_v14  ;;  %v2288_v33 = vmul.f32 %v10304_v19, %v2272_v56 }
 0x81e   : > { %2351 = vst.msk [vmem:[#allocation3 + $0xa8] sm:$0xff] %vm1333_vm4, %v2335_v48 }
 0x81f   : > { %v2313_v62 = vpop.xlane.xlu0 %2312  ;;  %3329 = vadd.xlane.f32.xlu0 %v10262_v31 }
 0x820   : > { %v2337_v59 = vadd.f32 %v2313_v62, %v2289_v61 }
 0x822   : > { %2353 = vst.msk [vmem:[#allocation3 + $0xb8] sm:$0xff] %vm1333_vm4, %v2337_v59 }
 0x823   : > { %v2317_v22 = vpop.xlane.xlu0 %2316 }
 0x824   : > { %v2339_v5 = vadd.f32 %v2317_v22, %v2291_v50 }
 0x826   : > { %2355 = vst.msk [vmem:[#allocation3 + $0xc8] sm:$0xff] %vm1333_vm4, %v2339_v5  ;;  %3315 = vadd.xlane.f32.xlu1 %v10193_v60  ;;  %v2301_v4 = vpop.xlane.xlu1 %2300 }
 0x827   : > { %v2331_v15 = vadd.f32 %v2301_v4, %v2283_v26  ;;  %v2321_v31 = vpop.xlane.xlu0 %2320  ;;  %v11734_v26 = vld [vmem:[#allocation12_spill] sm:$0xff] }
 0x828   : > { %v2341_v6 = vadd.f32 %v2321_v31, %v2293_v45 }
 0x829   : > { %2347 = vst.msk [vmem:[#allocation3 + $0x88] sm:$0xff] %vm1333_vm4, %v2331_v15 }
 0x82a   : > { %2357 = vst.msk [vmem:[#allocation3 + $0xd8] sm:$0xff] %vm1333_vm4, %v2341_v6  ;;  %3319 = vadd.xlane.f32.xlu1 %v10206_v49  ;;  %v2307_v1 = vpop.xlane.xlu1 %2306  ;;  %v2274_v49 = vld [vmem:[#allocation3 + $0xc0] sm:$0xff]  ;;  %v11735_v6 = vld [vmem:[#allocation40_spill] sm:$0xff] }
 0x82b   : > { %v2334_v60 = vadd.f32 %v2307_v1, %v2286_v24  ;;  %v2325_v52 = vpop.xlane.xlu0 %2324  ;;  %v2290_v62 = vmul.f32 %v10320_v32, %v2274_v49  ;;  %v2294_v32 = vmul.f32 %v10347_v21, %v2278_v13  ;;  %v1353_v49 = vld [vmem:[#allocation4 + $0x18] sm:$0xff]  ;;  %v11739_v13 = vld [vmem:[#allocation11_spill] sm:$0xff] }
 0x82c   : > { %v2343_v14 = vadd.f32 %v2325_v52, %v2295_v41  ;;  %v1358_v52 = vld [vmem:[#allocation4 + $0x40] sm:$0xff] }
 0x82d   : > { %2350 = vst.msk [vmem:[#allocation3 + $0xa0] sm:$0xff] %vm1333_vm4, %v2334_v60  ;;  %v1351_v60 = vld [vmem:[#allocation4 + $0x8] sm:$0xff] }
 0x82e   : > { %2359 = vst.msk [vmem:[#allocation3 + $0xe8] sm:$0xff] %vm1333_vm4, %v2343_v14  ;;  %3323 = vadd.xlane.f32.xlu1 %v10215_v0  ;;  %v2311_v18 = vpop.xlane.xlu1 %2310  ;;  %v2292_v0 = vmul.f32 %v10338_v2, %v2276_v58 }
 0x82f   : > { %v2336_v48 = vadd.f32 %v2311_v18, %v2288_v33  ;;  %v2329_v61 = vpop.xlane.xlu0 %2328 }
 0x830   : > { %v2345_v34 = vadd.f32 %v2329_v61, %v2297_v42 }
 0x831   : > { %2352 = vst.msk [vmem:[#allocation3 + $0xb0] sm:$0xff] %vm1333_vm4, %v2336_v48  ;;  %v11737_v48 = vld [vmem:[#allocation9_spill] sm:$0xff] }
 0x832   : > { %2361 = vst.msk [vmem:[#allocation3 + $0xf8] sm:$0xff] %vm1333_vm4, %v2345_v34  ;;  %3327 = vadd.xlane.f32.xlu1 %v10258_v30  ;;  %v2315_v19 = vpop.xlane.xlu1 %2314  ;;  %v1354_v30 = vld [vmem:[#allocation4 + $0x20] sm:$0xff]  ;;  %v1360_v34 = vld [vmem:[#allocation4 + $0x50] sm:$0xff] }
 0x833   : > { %v2338_v59 = vadd.f32 %v2315_v19, %v2290_v62  ;;  %v11738_v62 = vld [vmem:[#allocation44_spill] sm:$0xff] }
 0x835   : > { %2354 = vst.msk [vmem:[#allocation3 + $0xc0] sm:$0xff] %vm1333_vm4, %v2338_v59 }
 0x836   : > { %3331 = vadd.xlane.f32.xlu1 %v10274_v8  ;;  %v2319_v50 = vpop.xlane.xlu1 %2318  ;;  %v2296_v8 = vmul.f32 %v10358_v17, %v2280_v57  ;;  %v1357_v57 = vld [vmem:[#allocation4 + $0x38] sm:$0xff] }
 0x837   : > { %v2340_v22 = vadd.f32 %v2319_v50, %v2292_v0  ;;  %v1379_v46 = vpop.permute.xlu0 %1378  ;;  %v1355_v50 = vld [vmem:[#allocation4 + $0x28] sm:$0xff] }
 0x838   : > { %v1448_v5 = vmul.f32 %v1379_v46, %v1352_v29  ;;  %v1362_v46 = vld [vmem:[#allocation4 + $0x60] sm:$0xff] }
 0x839   : > { %2356 = vst.msk [vmem:[#allocation3 + $0xd0] sm:$0xff] %vm1333_vm4, %v2340_v22 }
 0x83a   : > { %v1609_v4 = vadd.f32 %v11734_v26, %v1448_v5  ;;  %v2323_v45 = vpop.xlane.xlu1 %2322  ;;  %v11740_v5 = vld [vmem:[#allocation46_spill] sm:$0xff] }
 0x83b   : > { %v2342_v15 = vadd.f32 %v2323_v45, %v2294_v32  ;;  %v1389_v31 = vpop.permute.xlu0 %1388 }
 0x83c   : > { %1625 = vst.msk [vmem:[#allocation4 + $0x10] sm:$0xff] %vm771_vm2, %v1609_v4  ;;  %v1450_v2 = vmul.f32 %v1389_v31, %v1354_v30 }
 0x83d   : > { %2358 = vst.msk [vmem:[#allocation3 + $0xe0] sm:$0xff] %vm1333_vm4, %v2342_v15  ;;  %v11741_v15 = vld [vmem:[#allocation39_spill] sm:$0xff] }
 0x83e   : > { %v1611_v24 = vadd.f32 %v11735_v6, %v1450_v2  ;;  %v2327_v1 = vpop.xlane.xlu1 %2326  ;;  %v1364_v2 = vld [vmem:[#allocation4 + $0x70] sm:$0xff] }
 0x83f   : > { %v2344_v41 = vadd.f32 %v2327_v1, %v2296_v8  ;;  %v1399_v21 = vpop.permute.xlu0 %1398  ;;  %v11742_v8 = vld [vmem:[#allocation48_spill] sm:$0xff] }
 0x840   : > { %1627 = vst.msk [vmem:[#allocation4 + $0x20] sm:$0xff] %vm771_vm2, %v1611_v24  ;;  %v1452_v56 = vmul.f32 %v1399_v21, %v1356_v55  ;;  %v1359_v21 = vld [vmem:[#allocation4 + $0x48] sm:$0xff] }
 0x841   : > { %2360 = vst.msk [vmem:[#allocation3 + $0xf0] sm:$0xff] %vm1333_vm4, %v2344_v41 }
 0x842   : > { %v1613_v14 = vadd.f32 %v11736_v38, %v1452_v56  ;;  %v1374_v33 = vpop.permute.xlu1 %1373  ;;  %v11743_v56 = vld [vmem:[#allocation41_spill] sm:$0xff]  ;;  %v11744_v38 = vld [vmem:[#allocation50_spill] sm:$0xff] }
 0x843   : > { %v1447_v18 = vmul.f32 %v1374_v33, %v1351_v60  ;;  %v1409_v42 = vpop.permute.xlu0 %1408 }
 0x844   : > { %1629 = vst.msk [vmem:[#allocation4 + $0x30] sm:$0xff] %vm771_vm2, %v1613_v14  ;;  %v1454_v17 = vmul.f32 %v1409_v42, %v1358_v52  ;;  %v2364_v52 = vld [vmem:[#allocation4 + $0x88] sm:$0xff] }
 0x845   : > { %v1608_v61 = vadd.f32 %v11737_v48, %v1447_v18  ;;  %v11745_v48 = vld [vmem:[#allocation43_spill] sm:$0xff] }
 0x846   : > { %v1615_v19 = vadd.f32 %v11738_v62, %v1454_v17  ;;  %v1384_v58 = vpop.permute.xlu1 %1383  ;;  %v11746_v62 = vld [vmem:[#allocation35_spill] sm:$0xff] }
 0x847   : > { %1624 = vst.msk [vmem:[#allocation4 + $0x8] sm:$0xff] %vm771_vm2, %v1608_v61  ;;  %v1449_v59 = vmul.f32 %v1384_v58, %v1353_v49  ;;  %v1419_v0 = vpop.permute.xlu0 %1418  ;;  %v1361_v49 = vld [vmem:[#allocation4 + $0x58] sm:$0xff] }
 0x848   : > { %1631 = vst.msk [vmem:[#allocation4 + $0x40] sm:$0xff] %vm771_vm2, %v1615_v19  ;;  %v1456_v29 = vmul.f32 %v1419_v0, %v1360_v34  ;;  %v2367_v34 = vld [vmem:[#allocation4 + $0xa0] sm:$0xff] }
 0x849   : > { %v1610_v22 = vadd.f32 %v11739_v13, %v1449_v59  ;;  %v11747_v13 = vld [vmem:[#allocation45_spill] sm:$0xff] }
 0x84a   : > { %v1617_v32 = vadd.f32 %v11740_v5, %v1456_v29  ;;  %v1394_v30 = vpop.permute.xlu1 %1393  ;;  %v11748_v5 = vld [vmem:[#allocation86_spill] sm:$0xff] }
 0x84b   : > { %1626 = vst.msk [vmem:[#allocation4 + $0x18] sm:$0xff] %vm771_vm2, %v1610_v22  ;;  %v1451_v26 = vmul.f32 %v1394_v30, %v1355_v50  ;;  %v1429_v4 = vpop.permute.xlu0 %1428  ;;  %v1363_v50 = vld [vmem:[#allocation4 + $0x68] sm:$0xff] }
 0x84c   : > { %1633 = vst.msk [vmem:[#allocation4 + $0x50] sm:$0xff] %vm771_vm2, %v1617_v32  ;;  %v1458_v45 = vmul.f32 %v1429_v4, %v1362_v46  ;;  %v2369_v46 = vld [vmem:[#allocation4 + $0xb0] sm:$0xff] }
 0x84d   : > { %v1612_v31 = vadd.f32 %v11741_v15, %v1451_v26  ;;  %v11749_v15 = vld [vmem:[#allocation47_spill] sm:$0xff] }
 0x84e   : > { %v1619_v55 = vadd.f32 %v11742_v8, %v1458_v45  ;;  %v1404_v6 = vpop.permute.xlu1 %1403  ;;  %v11750_v8 = vld [vmem:[#allocation88_spill] sm:$0xff] }
 0x84f   : > { %1628 = vst.msk [vmem:[#allocation4 + $0x28] sm:$0xff] %vm771_vm2, %v1612_v31  ;;  %v1453_v24 = vmul.f32 %v1404_v6, %v1357_v57  ;;  %v1439_v1 = vpop.permute.xlu0 %1438  ;;  %v1365_v57 = vld [vmem:[#allocation4 + $0x78] sm:$0xff] }
 0x850   : > { %1635 = vst.msk [vmem:[#allocation4 + $0x60] sm:$0xff] %vm771_vm2, %v1619_v55  ;;  %v1460_v41 = vmul.f32 %v1439_v1, %v1364_v2  ;;  %v2371_v2 = vld [vmem:[#allocation4 + $0xc0] sm:$0xff] }
 0x851   : > { %v1614_v60 = vadd.f32 %v11743_v56, %v1453_v24  ;;  %v11751_v56 = vld [vmem:[#allocation49_spill] sm:$0xff] }
 0x852   : > { %v1621_v14 = vadd.f32 %v11744_v38, %v1460_v41  ;;  %v1414_v33 = vpop.permute.xlu1 %1413  ;;  %v11752_v38 = vld [vmem:[#allocation90_spill] sm:$0xff] }
 0x853   : > { %1630 = vst.msk [vmem:[#allocation4 + $0x38] sm:$0xff] %vm771_vm2, %v1614_v60  ;;  %v1455_v18 = vmul.f32 %v1414_v33, %v1359_v21  ;;  %v2387_v42 = vpop.permute.xlu0 %2386  ;;  %v2363_v21 = vld [vmem:[#allocation4 + $0x80] sm:$0xff] }
 0x854   : > { %1637 = vst.msk [vmem:[#allocation4 + $0x70] sm:$0xff] %vm771_vm2, %v1621_v14  ;;  %v2460_v17 = vmul.f32 %v2387_v42, %v2364_v52  ;;  %v2373_v52 = vld [vmem:[#allocation4 + $0xd0] sm:$0xff] }
 0x855   : > { %v1616_v61 = vadd.f32 %v11745_v48, %v1455_v18  ;;  %v11753_v48 = vld [vmem:[#allocation36_spill] sm:$0xff] }
 0x856   : > { %v2685_v19 = vadd.f32 %v11746_v62, %v2460_v17  ;;  %v1424_v58 = vpop.permute.xlu1 %1423  ;;  %v11754_v62 = vld [vmem:[#allocation92_spill] sm:$0xff] }
 0x857   : > { %1632 = vst.msk [vmem:[#allocation4 + $0x48] sm:$0xff] %vm771_vm2, %v1616_v61  ;;  %v1457_v59 = vmul.f32 %v1424_v58, %v1361_v49  ;;  %v2402_v0 = vpop.permute.xlu0 %2401  ;;  %v2365_v49 = vld [vmem:[#allocation4 + $0x90] sm:$0xff] }
 0x858   : > { %2701 = vst.msk [vmem:[#allocation4 + $0x88] sm:$0xff] %vm771_vm2, %v2685_v19  ;;  %v2463_v29 = vmul.f32 %v2402_v0, %v2367_v34  ;;  %v2375_v34 = vld [vmem:[#allocation4 + $0xe0] sm:$0xff] }
 0x859   : > { %v1618_v22 = vadd.f32 %v11747_v13, %v1457_v59  ;;  %v11755_v13 = vld [vmem:[#allocation38_spill] sm:$0xff] }
 0x85a   : > { %v2688_v32 = vadd.f32 %v11748_v5, %v2463_v29  ;;  %v1434_v30 = vpop.permute.xlu1 %1433  ;;  %v11756_v5 = vld [vmem:[#allocation94_spill] sm:$0xff] }
 0x85b   : > { %1634 = vst.msk [vmem:[#allocation4 + $0x58] sm:$0xff] %vm771_vm2, %v1618_v22  ;;  %v1459_v26 = vmul.f32 %v1434_v30, %v1363_v50  ;;  %v2412_v4 = vpop.permute.xlu0 %2411  ;;  %v2366_v50 = vld [vmem:[#allocation4 + $0x98] sm:$0xff] }
 0x85c   : > { %2704 = vst.msk [vmem:[#allocation4 + $0xa0] sm:$0xff] %vm771_vm2, %v2688_v32  ;;  %v2465_v45 = vmul.f32 %v2412_v4, %v2369_v46  ;;  %v2377_v46 = vld [vmem:[#allocation4 + $0xf0] sm:$0xff] }
 0x85d   : > { %v1620_v31 = vadd.f32 %v11749_v15, %v1459_v26 }
 0x85e   : > { %v2690_v55 = vadd.f32 %v11750_v8, %v2465_v45  ;;  %v1444_v6 = vpop.permute.xlu1 %1443 }
 0x85f   : > { %1636 = vst.msk [vmem:[#allocation4 + $0x68] sm:$0xff] %vm771_vm2, %v1620_v31  ;;  %v1461_v24 = vmul.f32 %v1444_v6, %v1365_v57  ;;  %v2422_v1 = vpop.permute.xlu0 %2421  ;;  %v2368_v31 = vld [vmem:[#allocation4 + $0xa8] sm:$0xff] }
 0x860   : > { %2706 = vst.msk [vmem:[#allocation4 + $0xb0] sm:$0xff] %vm771_vm2, %v2690_v55  ;;  %v2467_v41 = vmul.f32 %v2422_v1, %v2371_v2  ;;  %v11759_v2 = vld [vmem:[#allocation37_spill] sm:$0xff]  ;;  %v11760_v55 = vld [vmem:[#allocation96_spill] sm:$0xff] }
 0x861   : > { %v1622_v60 = vadd.f32 %v11751_v56, %v1461_v24 }
 0x862   : > { %v2692_v14 = vadd.f32 %v11752_v38, %v2467_v41  ;;  %v2382_v33 = vpop.permute.xlu1 %2381  ;;  %v2370_v41 = vld [vmem:[#allocation4 + $0xb8] sm:$0xff]  ;;  %v2372_v38 = vld [vmem:[#allocation4 + $0xc8] sm:$0xff] }
 0x863   : > { %1638 = vst.msk [vmem:[#allocation4 + $0x78] sm:$0xff] %vm771_vm2, %v1622_v60  ;;  %v2459_v18 = vmul.f32 %v2382_v33, %v2363_v21  ;;  %v2432_v42 = vpop.permute.xlu0 %2431  ;;  %v11761_v21 = vld [vmem:[#allocation85_spill] sm:$0xff] }
 0x864   : > { %2708 = vst.msk [vmem:[#allocation4 + $0xc0] sm:$0xff] %vm771_vm2, %v2692_v14  ;;  %v2469_v17 = vmul.f32 %v2432_v42, %v2373_v52  ;;  %v11762_v14 = vld [vmem:[#allocation87_spill] sm:$0xff] }
 0x865   : > { %v2684_v61 = vadd.f32 %v11753_v48, %v2459_v18  ;;  %v2374_v48 = vld [vmem:[#allocation4 + $0xd8] sm:$0xff] }
 0x866   : > { %v2694_v19 = vadd.f32 %v11754_v62, %v2469_v17  ;;  %v2392_v58 = vpop.permute.xlu1 %2391 }
 0x867   : > { %2700 = vst.msk [vmem:[#allocation4 + $0x80] sm:$0xff] %vm771_vm2, %v2684_v61  ;;  %v2461_v59 = vmul.f32 %v2392_v58, %v2365_v49  ;;  %v2442_v0 = vpop.permute.xlu0 %2441  ;;  %v11765_v61 = vld [vmem:[#allocation89_spill] sm:$0xff] }
 0x868   : > { %2710 = vst.msk [vmem:[#allocation4 + $0xd0] sm:$0xff] %vm771_vm2, %v2694_v19  ;;  %v2471_v29 = vmul.f32 %v2442_v0, %v2375_v34  ;;  %v2376_v0 = vld [vmem:[#allocation4 + $0xe8] sm:$0xff] }
 0x869   : > { %v2686_v22 = vadd.f32 %v11755_v13, %v2461_v59 }
 0x86a   : > { %v2696_v32 = vadd.f32 %v11756_v5, %v2471_v29  ;;  %v2397_v30 = vpop.permute.xlu1 %2396  ;;  %v11768_v29 = vld [vmem:[#allocation91_spill] sm:$0xff]  ;;  %v11769_v5 = vld [vmem:[#allocation93_spill] sm:$0xff] }
 0x86b   : > { %2702 = vst.msk [vmem:[#allocation4 + $0x90] sm:$0xff] %vm771_vm2, %v2686_v22  ;;  %v2462_v26 = vmul.f32 %v2397_v30, %v2366_v50  ;;  %v2452_v4 = vpop.permute.xlu0 %2451  ;;  %v10475_v45 = vpop.f32.mrb[32].mxu1 }
 0x86c   : > { %11757 = vst [vmem:[#allocation75_spill] sm:$0xff] %v10475_v45  ;;  %2712 = vst.msk [vmem:[#allocation4 + $0xe0] sm:$0xff] %vm771_vm2, %v2696_v32  ;;  %v2473_v57 = vmul.f32 %v2452_v4, %v2377_v46  ;;  %v10478_v15 = vpop.f32.mrb[33].mxu1  ;;  %v2378_v46 = vld [vmem:[#allocation4 + $0xf8] sm:$0xff]  ;;  %v11770_v4 = vld [vmem:[#allocation95_spill] sm:$0xff] }
 0x86d   : > { %11758 = vst [vmem:[#allocation80_spill] sm:$0xff] %v10478_v15  ;;  %v2687_v8 = vadd.f32 %v11759_v2, %v2462_v26  ;;  %v10762_v45 = vld [vmem:[#allocation2 + $0x1d0] sm:$0xff] }
 0x86e   : > { %v2698_v6 = vadd.f32 %v11760_v55, %v2473_v57  ;;  %v2407_v24 = vpop.permute.xlu1 %2406 }
 0x86f   : > { %2703 = vst.msk [vmem:[#allocation4 + $0x98] sm:$0xff] %vm771_vm2, %v2687_v8  ;;  %v2464_v1 = vmul.f32 %v2407_v24, %v2368_v31  ;;  %v11771_v31 = vsub.f32 %v9940_v7, %v9947_v35  ;;  %v11772_v8 = vld [vmem:[#allocation103_spill] sm:$0xff]  ;;  %v11774_v24 = vld [vmem:[#allocation104_spill] sm:$0xff]  ;;  %v3280_v7 = vld [vmem:[#allocation3 + $0x108] sm:$0xff]  ;;  %v3132_v35 = vmul.f32 1.442695, %v3109_v9 }
 0x870   : > { %2714 = vst.msk [vmem:[#allocation4 + $0xf0] sm:$0xff] %vm771_vm2, %v2698_v6  ;;  %v11773_v55 = vsub.f32 %v9944_v36, %v11772_v8  ;;  %v3282_v9 = vld [vmem:[#allocation3 + $0x118] sm:$0xff] }
 0x871   : > { %v2689_v56 = vadd.f32 %v11761_v21, %v2464_v1  ;;  %v3120_v2 = vmul.f32 1.442695, %v11771_v31  ;;  %v11775_v1 = vsub.f32 %v11774_v24, %v9971_v12  ;;  %v11776_v21 = vsub.f32 %v9990_v25, %v10000_v43  ;;  %v3279_v12 = vld [vmem:[#allocation3 + $0x100] sm:$0xff]  ;;  %v11788_v24 = vld [vmem:[#allocation107_spill] sm:$0xff] }
 0x872   : > { %v2417_v60 = vpop.permute.xlu1 %2416  ;;  %v3118_v6 = vmul.f32 1.442695, %v11773_v55 }
 0x873   : > { %2705 = vst.msk [vmem:[#allocation4 + $0xa8] sm:$0xff] %vm771_vm2, %v2689_v56  ;;  %v2466_v52 = vmul.f32 %v2417_v60, %v2370_v41  ;;  %7530 = vpow2.f32 %v3120_v2  ;;  %v3124_v41 = vmul.f32 1.442695, %v11775_v1  ;;  %v3128_v56 = vmul.f32 1.442695, %v11776_v21  ;;  %v11789_v1 = vld [vmem:[#allocation108_spill] sm:$0xff] }
 0x874   : > { %7532 = vpow2.f32 %v3118_v6  ;;  %v3288_v6 = vld [vmem:[#allocation3 + $0x148] sm:$0xff] }
 0x875   : > { %v2691_v33 = vadd.f32 %v11762_v14, %v2466_v52  ;;  %7534 = vpow2.f32 %v3124_v41  ;;  %v11790_v41 = vsub.f32 %v11788_v24, %v11789_v1 }
 0x876   : > { %v10487_v18 = vpop.f32.mrb[34].mxu1  ;;  %v2427_v42 = vpop.permute.xlu1 %2426  ;;  %7536 = vpow2.f32 %v3128_v56 }
 0x877   : > { %11763 = vst [vmem:[#allocation76_spill] sm:$0xff] %v10487_v18  ;;  %2707 = vst.msk [vmem:[#allocation4 + $0xb8] sm:$0xff] %vm771_vm2, %v2691_v33  ;;  %v2468_v17 = vmul.f32 %v2427_v42, %v2372_v38  ;;  %v10490_v49 = vpop.f32.mrb[35].mxu1  ;;  %v11777_v33 = vsub.f32 %v10025_v63, %v10033_v39  ;;  %7538 = vpow2.f32 %v3132_v35  ;;  %v3130_v21 = vmul.f32 1.442695, %v11790_v41  ;;  %v3289_v41 = vld [vmem:[#allocation3 + $0x150] sm:$0xff] }
 0x878   : > { %11764 = vst [vmem:[#allocation82_spill] sm:$0xff] %v10490_v49 }
 0x879   : > { %v2693_v34 = vadd.f32 %v11765_v61, %v2468_v17  ;;  %v3136_v25 = vmul.f32 1.442695, %v11777_v33 }
 0x87a   : > { %v2437_v62 = vpop.permute.xlu1 %2436 }
 0x87b   : > { %2709 = vst.msk [vmem:[#allocation4 + $0xc8] sm:$0xff] %vm771_vm2, %v2693_v34  ;;  %v2470_v19 = vmul.f32 %v2437_v62, %v2374_v48  ;;  %v10494_v58 = vpop.f32.mrb[36].mxu1  ;;  %7540 = vpow2.f32 %v3136_v25  ;;  %v3284_v34 = vld [vmem:[#allocation3 + $0x128] sm:$0xff]  ;;  %v11780_v62 = vld [vmem:[#allocation105_spill] sm:$0xff] }
 0x87c   : > { %11766 = vst [vmem:[#allocation77_spill] sm:$0xff] %v10494_v58  ;;  %v10496_v59 = vpop.f32.mrb[37].mxu1  ;;  %v3743_v58 = vld [vmem:[%s8208_s12 + $0xe8] sm:$0xff] }
 0x87d   : > { %11767 = vst [vmem:[#allocation84_spill] sm:$0xff] %v10496_v59  ;;  %v2695_v50 = vadd.f32 %v11768_v29, %v2470_v19  ;;  %v10516_v60 = vpop.eup %7530  ;;  %v11781_v19 = vsub.f32 %v9973_v11, %v11780_v62  ;;  %v3744_v59 = vld [vmem:[%s8208_s12 + $0xf8] sm:$0xff] }
 0x87e   : > { %v2447_v13 = vpop.permute.xlu1 %2446  ;;  %v3296_v36 = vmul.f32 %v10516_v60, %v3280_v7  ;;  %v10522_v52 = vpop.eup %7532 }
 0x87f   : > { %2711 = vst.msk [vmem:[#allocation4 + $0xd8] sm:$0xff] %vm771_vm2, %v2695_v50  ;;  %v2472_v22 = vmul.f32 %v2447_v13, %v2376_v0  ;;  %v3295_v43 = vmul.f32 %v10522_v52, %v3279_v12  ;;  %v10529_v42 = vpop.eup %7534  ;;  %v3122_v0 = vmul.f32 1.442695, %v11781_v19 }
 0x880   : > { %v3298_v48 = vmul.f32 %v10529_v42, %v3282_v9  ;;  %v10535_v61 = vpop.eup %7536 }
 0x881   : > { %v2697_v32 = vadd.f32 %v11769_v5, %v2472_v22  ;;  %v3300_v50 = vmul.f32 %v10535_v61, %v3284_v34  ;;  %v10544_v13 = vpop.eup %7538  ;;  %v3286_v5 = vld [vmem:[#allocation3 + $0x138] sm:$0xff]  ;;  %7542 = vpow2.f32 %v3122_v0  ;;  %v3283_v0 = vld [vmem:[#allocation3 + $0x120] sm:$0xff] }
 0x882   : > { %v2457_v30 = vpop.permute.xlu1 %2456  ;;  %v3302_v11 = vmul.f32 %v10544_v13, %v3286_v5 }
 0x883   : > { %2713 = vst.msk [vmem:[#allocation4 + $0xe8] sm:$0xff] %vm771_vm2, %v2697_v32  ;;  %v2474_v26 = vmul.f32 %v2457_v30, %v2378_v46  ;;  %v11783_v32 = vld [vmem:[#allocation10_spill] sm:$0xff] }
 0x884   : > { %v11784_v30 = vld [vmem:[#allocation106_spill] sm:$0xff] }
 0x885   : > { %v2699_v57 = vadd.f32 %v11770_v4, %v2474_v26  ;;  %v11785_v26 = vsub.f32 %v11783_v32, %v11784_v30  ;;  %v10555_v2 = vpop.eup %7540  ;;  %v3285_v32 = vld [vmem:[#allocation3 + $0x130] sm:$0xff] }
 0x886   : > { %v3304_v35 = vmul.f32 %v10555_v2, %v3288_v6 }
 0x887   : > { %2715 = vst.msk [vmem:[#allocation4 + $0xf8] sm:$0xff] %vm771_vm2, %v2699_v57  ;;  %v3126_v4 = vmul.f32 1.442695, %v11785_v26 }
 0x889   : > { %7544 = vpow2.f32 %v3126_v4 }
 0x88a   : > { %7546 = vpow2.f32 %v3130_v21 }
 0x88b   : > { %v10569_v25 = vpop.eup %7542 }
 0x893   : > { %v10580_v62 = vpop.eup %7544 }
 0x894   : > { %v10588_v5 = vpop.eup %7546 }
 0x895   : > { %v3301_v26 = vmul.f32 %v10588_v5, %v3285_v32 }
 0x898   : > { %v3314_v38 = vpop.xlane.xlu0 %3313 }
 0x899   : > { %v3344_v14 = vadd.f32 %v3314_v38, %v3296_v36  ;;  %v11792_v38 = vld [vmem:[#allocation109_spill] sm:$0xff] }
 0x89a   : > { %v11793_v12 = vsub.f32 %v11792_v38, %v10043_v47 }
 0x89b   : > { %3360 = vst.msk [vmem:[#allocation3 + $0x108] sm:$0xff] %vm1333_vm4, %v3344_v14 }
 0x89c   : > { %v3312_v16 = vpop.xlane.xlu0 %3311  ;;  %v3134_v14 = vmul.f32 1.442695, %v11793_v12 }
 0x89d   : > { %v3343_v54 = vadd.f32 %v3312_v16, %v3295_v43  ;;  %v3281_v16 = vld [vmem:[#allocation3 + $0x110] sm:$0xff] }
 0x89e   : > { %7548 = vpow2.f32 %v3134_v14  ;;  %v3297_v34 = vmul.f32 %v10569_v25, %v3281_v16 }
 0x89f   : > { %3359 = vst.msk [vmem:[#allocation3 + $0x100] sm:$0xff] %vm1333_vm4, %v3343_v54  ;;  %v10532_v17 = vpop.f32.mrb[38].mxu1  ;;  %v11796_v54 = vld [vmem:[#allocation112_spill] sm:$0xff] }
 0x8a0   : > { %11778 = vst [vmem:[#allocation78_spill] sm:$0xff] %v10532_v17  ;;  %v3318_v63 = vpop.xlane.xlu0 %3317  ;;  %v10537_v39 = vpop.f32.mrb[39].mxu1 }
 0x8a1   : > { %11779 = vst [vmem:[#allocation79_spill] sm:$0xff] %v10537_v39  ;;  %v3346_v29 = vadd.f32 %v3318_v63, %v3298_v48  ;;  %v11797_v48 = vsub.f32 %v11796_v54, %v10062_v37  ;;  %v10764_v39 = vld [vmem:[#allocation2 + $0x1d8] sm:$0xff] }
 0x8a2   : > { %11815 = vst [vmem:[#allocation61_spill] sm:$0xff] %v10764_v39 }
 0x8a3   : > { %3362 = vst.msk [vmem:[#allocation3 + $0x118] sm:$0xff] %vm1333_vm4, %v3346_v29  ;;  %v3138_v63 = vmul.f32 1.442695, %v11797_v48 }
 0x8a4   : > { %v3322_v22 = vpop.xlane.xlu0 %3321  ;;  %v10546_v46 = vpop.f32.mrb[40].mxu1 }
 0x8a5   : > { %11782 = vst [vmem:[#allocation81_spill] sm:$0xff] %v10546_v46  ;;  %v3348_v57 = vadd.f32 %v3322_v22, %v3300_v50  ;;  %v10551_v31 = vpop.f32.mrb[41].mxu1  ;;  %7550 = vpow2.f32 %v3138_v63  ;;  %v3299_v22 = vmul.f32 %v10580_v62, %v3283_v0 }
 0x8a6   : > { %11786 = vst [vmem:[#allocation83_spill] sm:$0xff] %v10551_v31  ;;  %v10740_v31 = vld [vmem:[#allocation2 + $0x1c8] sm:$0xff] }
 0x8a7   : > { %3364 = vst.msk [vmem:[#allocation3 + $0x128] sm:$0xff] %vm1333_vm4, %v3348_v57 }
 0x8a8   : > { %v3326_v8 = vpop.xlane.xlu0 %3325  ;;  %v10557_v55 = vpop.f32.mrb[42].mxu1 }
 0x8a9   : > { %11787 = vst [vmem:[#allocation24_spill] sm:$0xff] %v10557_v55  ;;  %v3350_v56 = vadd.f32 %v3326_v8, %v3302_v11  ;;  %v10562_v7 = vpop.f32.mrb[43].mxu1  ;;  %v10592_v4 = vpop.eup %7548  ;;  %v3287_v11 = vld [vmem:[#allocation3 + $0x140] sm:$0xff]  ;;  %v3740_v55 = vld [vmem:[%s8208_s12 + $0xb8] sm:$0xff] }
 0x8aa   : > { %11791 = vst [vmem:[#allocation25_spill] sm:$0xff] %v10562_v7  ;;  %v3303_v6 = vmul.f32 %v10592_v4, %v3287_v11 }
 0x8ab   : > { %3366 = vst.msk [vmem:[#allocation3 + $0x138] sm:$0xff] %vm1333_vm4, %v3350_v56 }
 0x8ac   : > { %v3330_v36 = vpop.xlane.xlu0 %3329 }
 0x8ad   : > { %v3352_v33 = vadd.f32 %v3330_v36, %v3304_v35 }
 0x8af   : > { %3368 = vst.msk [vmem:[#allocation3 + $0x148] sm:$0xff] %vm1333_vm4, %v3352_v33  ;;  %v10572_v43 = vpop.f32.mrb[44].mxu1  ;;  %v10596_v24 = vpop.eup %7550 }
 0x8b0   : > { %11794 = vst [vmem:[#allocation97_spill] sm:$0xff] %v10572_v43  ;;  %v10574_v9 = vpop.f32.mrb[45].mxu1  ;;  %v3305_v36 = vmul.f32 %v10596_v24, %v3289_v41  ;;  %v3730_v41 = vld [vmem:[%s8208_s12 + $0x18] sm:$0xff] }
 0x8b1   : > { %11795 = vst [vmem:[#allocation22_spill] sm:$0xff] %v10574_v9  ;;  %v3742_v43 = vld [vmem:[%s8208_s12 + $0xd8] sm:$0xff]  ;;  %v3739_v9 = vld [vmem:[%s8208_s12 + $0xa8] sm:$0xff] }
 0x8b3   : > { %v10582_v47 = vpop.f32.mrb[46].mxu1  ;;  %v3316_v19 = vpop.xlane.xlu1 %3315 }
 0x8b4   : > { %11798 = vst [vmem:[#allocation100_spill] sm:$0xff] %v10582_v47  ;;  %v3345_v29 = vadd.f32 %v3316_v19, %v3297_v34  ;;  %v10584_v50 = vpop.f32.mrb[47].mxu1  ;;  %v3736_v47 = vld [vmem:[%s8208_s12 + $0x78] sm:$0xff] }
 0x8b5   : > { %11799 = vst [vmem:[#allocation15_spill] sm:$0xff] %v10584_v50 }
 0x8b6   : > { %3361 = vst.msk [vmem:[#allocation3 + $0x110] sm:$0xff] %vm1333_vm4, %v3345_v29 }
 0x8b7   : > { %v3320_v37 = vpop.xlane.xlu1 %3319 }
 0x8b8   : > { %v3347_v30 = vadd.f32 %v3320_v37, %v3299_v22 }
 0x8ba   : > { %3363 = vst.msk [vmem:[#allocation3 + $0x120] sm:$0xff] %vm1333_vm4, %v3347_v30 }
 0x8bb   : > { %v3324_v57 = vpop.xlane.xlu1 %3323 }
 0x8bc   : > { %v3349_v8 = vadd.f32 %v3324_v57, %v3301_v26  ;;  %v3731_v26 = vld [vmem:[%s8208_s12 + $0x28] sm:$0xff]  ;;  %v3732_v57 = vld [vmem:[%s8208_s12 + $0x38] sm:$0xff] }
 0x8bd   : > { %v7335_v11 = vpack.i.bf16 %v3732_v57, %v3731_v26  ;;  %v7345_v26 = vpack.i.bf16 %v3736_v47, %v3735_v51  ;;  %v3741_v57 = vld [vmem:[%s8208_s12 + $0xc8] sm:$0xff] }
 0x8be   : > { %3365 = vst.msk [vmem:[#allocation3 + $0x130] sm:$0xff] %vm1333_vm4, %v3349_v8  ;;  %v3733_v8 = vld [vmem:[%s8208_s12 + $0x48] sm:$0xff]  ;;  %v7360_v7 = vpack.i.bf16 %v3742_v43, %v3741_v57  ;;  %v10720_v57 = vld [vmem:[#allocation2 + $0x1b8] sm:$0xff]  ;;  %v10742_v43 = vld [vmem:[#allocation2 + $0x1c0] sm:$0xff] }
 0x8bf   : > { %v3328_v1 = vpop.xlane.xlu1 %3327 }
 0x8c0   : > { %v3351_v21 = vadd.f32 %v3328_v1, %v3303_v6  ;;  %v3734_v6 = vld [vmem:[%s8208_s12 + $0x58] sm:$0xff]  ;;  %v3729_v1 = vld [vmem:[%s8208_s12 + $0x8] sm:$0xff] }
 0x8c1   : > { %v10598_v56 = vpop.f32.mrb[48].mxu1 }
 0x8c2   : > { %11800 = vst [vmem:[#allocation13_spill] sm:$0xff] %v10598_v56  ;;  %3367 = vst.msk [vmem:[#allocation3 + $0x140] sm:$0xff] %vm1333_vm4, %v3351_v21  ;;  %4069 = vmax.xlane.f32.xlu0 %v10598_v56  ;;  %v10602_v35 = vpop.f32.mrb[49].mxu1  ;;  %v7340_v21 = vpack.i.bf16 %v3734_v6, %v3733_v8  ;;  %v10670_v8 = vld [vmem:[#allocation2 + $0x188] sm:$0xff]  ;;  %v10672_v6 = vld [vmem:[#allocation2 + $0x180] sm:$0xff] }
 0x8c3   : > { %4067 = vmax.xlane.f32.xlu1 %v10602_v35  ;;  %v3332_v38 = vpop.xlane.xlu1 %3331 }
 0x8c4   : > { %v3353_v12 = vadd.f32 %v3332_v38, %v3305_v36  ;;  %v7330_v36 = vpack.i.bf16 %v3730_v41, %v3729_v1  ;;  %v3737_v38 = vld [vmem:[%s8208_s12 + $0x88] sm:$0xff] }
 0x8c5   : > { %v10606_v14 = vpop.f32.mrb[50].mxu1 }
 0x8c6   : > { %11801 = vst [vmem:[#allocation18_spill] sm:$0xff] %v10606_v14  ;;  %3369 = vst.msk [vmem:[#allocation3 + $0x150] sm:$0xff] %vm1333_vm4, %v3353_v12  ;;  %v10609_v33 = vpop.f32.mrb[51].mxu1  ;;  %v3738_v12 = vld [vmem:[%s8208_s12 + $0x98] sm:$0xff] }
 0x8c7   : > { %11802 = vst [vmem:[#allocation98_spill] sm:$0xff] %v10609_v33  ;;  %4073 = vmax.xlane.f32.xlu1 %v10606_v14  ;;  %4071 = vmax.xlane.f32.xlu0 %v10609_v33  ;;  %v7350_v50 = vpack.i.bf16 %v3738_v12, %v3737_v38  ;;  %v10700_v12 = vld [vmem:[#allocation2 + $0x1a8] sm:$0xff] }
 0x8c9   : > { %v10613_v16 = vpop.f32.mrb[52].mxu1 }
 0x8ca   : > { %11803 = vst [vmem:[#allocation17_spill] sm:$0xff] %v10613_v16  ;;  %v10615_v54 = vpop.f32.mrb[53].mxu1 }
 0x8cb   : > { %11804 = vst [vmem:[#allocation19_spill] sm:$0xff] %v10615_v54  ;;  %4077 = vmax.xlane.f32.xlu1 %v10613_v16  ;;  %4075 = vmax.xlane.f32.xlu0 %v10615_v54 }
 0x8cd   : > { %v10619_v48 = vpop.f32.mrb[54].mxu1 }
 0x8ce   : > { %11805 = vst [vmem:[#allocation51_spill] sm:$0xff] %v10619_v48  ;;  %v10621_v63 = vpop.f32.mrb[55].mxu1 }
 0x8cf   : > { %11806 = vst [vmem:[#allocation53_spill] sm:$0xff] %v10621_v63  ;;  %4081 = vmax.xlane.f32.xlu1 %v10619_v48  ;;  %4079 = vmax.xlane.f32.xlu0 %v10621_v63 }
 0x8d1   : > { %v10625_v34 = vpop.f32.mrb[56].mxu1 }
 0x8d2   : > { %11807 = vst [vmem:[#allocation102_spill] sm:$0xff] %v10625_v34  ;;  %v10627_v19 = vpop.f32.mrb[57].mxu1 }
 0x8d3   : > { %11808 = vst [vmem:[#allocation29_spill] sm:$0xff] %v10627_v19  ;;  %4085 = vmax.xlane.f32.xlu1 %v10625_v34  ;;  %4083 = vmax.xlane.f32.xlu0 %v10627_v19 }
 0x8d5   : > { %v10631_v0 = vpop.f32.mrb[58].mxu1 }
 0x8d6   : > { %11809 = vst [vmem:[#allocation55_spill] sm:$0xff] %v10631_v0  ;;  %v10633_v29 = vpop.f32.mrb[59].mxu1 }
 0x8d7   : > { %11810 = vst [vmem:[#allocation57_spill] sm:$0xff] %v10633_v29  ;;  %4087 = vmax.xlane.f32.xlu0 %v10633_v29  ;;  %4089 = vmax.xlane.f32.xlu1 %v10631_v0  ;;  %v10802_v0 = vld [vmem:[#allocation2 + $0x1f0] sm:$0xff]  ;;  %v10804_v29 = vld [vmem:[#allocation2 + $0x1f8] sm:$0xff] }
 0x8d8   : > { %11819 = vst [vmem:[#allocation16_spill] sm:$0xff] %v10802_v0  ;;  %11820 = vst [vmem:[#allocation14_spill] sm:$0xff] %v10804_v29 }
 0x8d9   : > { %v10637_v22 = vpop.f32.mrb[60].mxu1 }
 0x8da   : > { %11811 = vst [vmem:[#allocation31_spill] sm:$0xff] %v10637_v22  ;;  %v10639_v37 = vpop.f32.mrb[61].mxu1 }
 0x8db   : > { %11812 = vst [vmem:[#allocation99_spill] sm:$0xff] %v10639_v37  ;;  %4091 = vmax.xlane.f32.xlu0 %v10639_v37  ;;  %4093 = vmax.xlane.f32.xlu1 %v10637_v22  ;;  %v10782_v22 = vld [vmem:[#allocation2 + $0x1e0] sm:$0xff]  ;;  %v10784_v37 = vld [vmem:[#allocation2 + $0x1e8] sm:$0xff] }
 0x8dc   : > { %11817 = vst [vmem:[#allocation101_spill] sm:$0xff] %v10784_v37 }
 0x8dd   : > { %v10643_v32 = vpop.f32.mrb[62].mxu1 }
 0x8de   : > { %11813 = vst [vmem:[#allocation23_spill] sm:$0xff] %v10643_v32  ;;  %v10645_v30 = vpop.f32.mrb[63].mxu1 }
 0x8df   : > { %11814 = vst [vmem:[#allocation59_spill] sm:$0xff] %v10645_v30  ;;  %4095 = vmax.xlane.f32.xlu0 %v10645_v30  ;;  %4097 = vmax.xlane.f32.xlu1 %v10643_v32 }
 0x8f0   : > { %7336 = vrot.lane.b32.xlu1 %v7335_v11, %s7847_s17  ;;  %v7355_v11 = vpack.i.bf16 %v3740_v55, %v3739_v9  ;;  %v10685_v55 = vld [vmem:[#allocation2 + $0x198] sm:$0xff]  ;;  %v10722_v9 = vld [vmem:[#allocation2 + $0x1b0] sm:$0xff] }
 0x8f4   : > { %7341 = vrot.lane.b32.xlu1 %v7340_v21, %s7847_s17 }
 0x8f5   : > { %7331 = vrot.lane.b32.xlu0 %v7330_v36, %s7847_s17 }
 0x8f8   : > { %7351 = vrot.lane.b32.xlu1 %v7350_v50, %s7847_s17 }
 0x8f9   : > { %7346 = vrot.lane.b32.xlu0 %v7345_v26, %s7847_s17  ;;  %v10702_v26 = vld [vmem:[#allocation2 + $0x1a0] sm:$0xff] }
 0x8fc   : > { %7361 = vrot.lane.b32.xlu1 %v7360_v7, %s7847_s17  ;;  %v10687_v7 = vld [vmem:[#allocation2 + $0x190] sm:$0xff] }
 0x8fd   : > { %7356 = vrot.lane.b32.xlu0 %v7355_v11, %s7847_s17 }
 0x94f   : > { %v4070_v1 = vpop.xlane.xlu0 %4069 }
 0x950   : > { %v10675_v51 = vmax.f32 %v10670_v8, %v4070_v1  ;;  %v4068_v47 = vpop.xlane.xlu1 %4067 }
 0x951   : > { %v10678_v41 = vmax.f32 %v10672_v6, %v4068_v47 }
 0x952   : > { %4743 = vst.msk [vmem:[#allocation2 + $0x188] sm:$0xff] %vm1333_vm4, %v10675_v51  ;;  %4170 = vperm.xlu1 %7209, %v10675_v51  }
 0x953   : > { %4742 = vst.msk [vmem:[#allocation2 + $0x180] sm:$0xff] %vm1333_vm4, %v10678_v41  ;;  %4165 = vperm.xlu0 %7208, %v10678_v41  }
 0x954   : > { %v4074_v50 = vpop.xlane.xlu1 %4073  ;;  %v4072_v21 = vpop.xlane.xlu0 %4071 }
 0x955   : > { %v10695_v36 = vmax.f32 %v10685_v55, %v4074_v50  ;;  %v10698_v38 = vmax.f32 %v10687_v7, %v4072_v21 }
 0x957   : > { %4745 = vst.msk [vmem:[#allocation2 + $0x198] sm:$0xff] %vm1333_vm4, %v10695_v36  ;;  %4744 = vst.msk [vmem:[#allocation2 + $0x190] sm:$0xff] %vm1333_vm4, %v10698_v38  ;;  %4175 = vperm.xlu1 %7209, %v10698_v38   ;;  %4180 = vperm.xlu0 %7208, %v10695_v36  }
 0x958   : > { %v4078_v1 = vpop.xlane.xlu1 %4077  ;;  %v4076_v47 = vpop.xlane.xlu0 %4075 }
 0x959   : > { %v10715_v50 = vmax.f32 %v10700_v12, %v4078_v1  ;;  %v10718_v21 = vmax.f32 %v10702_v26, %v4076_v47 }
 0x95b   : > { %4747 = vst.msk [vmem:[#allocation2 + $0x1a8] sm:$0xff] %vm1333_vm4, %v10715_v50  ;;  %4746 = vst.msk [vmem:[#allocation2 + $0x1a0] sm:$0xff] %vm1333_vm4, %v10718_v21  ;;  %4190 = vperm.xlu1 %7209, %v10715_v50   ;;  %4185 = vperm.xlu0 %7208, %v10718_v21  }
 0x95c   : > { %v4082_v1 = vpop.xlane.xlu1 %4081  ;;  %v4080_v47 = vpop.xlane.xlu0 %4079 }
 0x95d   : > { %v10735_v46 = vmax.f32 %v10720_v57, %v4082_v1  ;;  %v10738_v11 = vmax.f32 %v10722_v9, %v4080_v47 }
 0x95f   : > { %4749 = vst.msk [vmem:[#allocation2 + $0x1b8] sm:$0xff] %vm1333_vm4, %v10735_v46  ;;  %4748 = vst.msk [vmem:[#allocation2 + $0x1b0] sm:$0xff] %vm1333_vm4, %v10738_v11  ;;  %4195 = vperm.xlu1 %7209, %v10738_v11   ;;  %4200 = vperm.xlu0 %7208, %v10735_v46  }
 0x960   : > { %v4086_v1 = vpop.xlane.xlu1 %4085  ;;  %v4084_v47 = vpop.xlane.xlu0 %4083 }
 0x961   : > { %v10757_v18 = vmax.f32 %v10740_v31, %v4086_v1  ;;  %v10760_v17 = vmax.f32 %v10742_v43, %v4084_v47  ;;  %v7365_v1 = vpack.i.bf16 %v3744_v59, %v3743_v58 }
 0x963   : > { %4751 = vst.msk [vmem:[#allocation2 + $0x1c8] sm:$0xff] %vm1333_vm4, %v10757_v18  ;;  %4750 = vst.msk [vmem:[#allocation2 + $0x1c0] sm:$0xff] %vm1333_vm4, %v10760_v17  ;;  %4210 = vperm.xlu1 %7209, %v10757_v18   ;;  %4205 = vperm.xlu0 %7208, %v10760_v17  }
 0x964   : > { %v4088_v47 = vpop.xlane.xlu0 %4087  ;;  %v4090_v32 = vpop.xlane.xlu1 %4089 }
 0x965   : > { %v10777_v30 = vmax.f32 %v10762_v45, %v4088_v47  ;;  %v10780_v49 = vmax.f32 %v10764_v39, %v4090_v32 }
 0x967   : > { %11816 = vst [vmem:[#allocation33_spill] sm:$0xff] %v10780_v49  ;;  %4752 = vst.msk [vmem:[#allocation2 + $0x1d0] sm:$0xff] %vm1333_vm4, %v10777_v30  ;;  %4215 = vperm.xlu1 %7209, %v10777_v30   ;;  %7366 = vrot.lane.b32.xlu0 %v7365_v1, %s7847_s17 }
 0x968   : > { %4753 = vst.msk [vmem:[#allocation2 + $0x1d8] sm:$0xff] %vm1333_vm4, %v10780_v49  ;;  %v4092_v59 = vpop.xlane.xlu0 %4091  ;;  %v4094_v32 = vpop.xlane.xlu1 %4093 }
 0x969   : > { %v10797_v47 = vmax.f32 %v10782_v22, %v4092_v59  ;;  %v10800_v15 = vmax.f32 %v10784_v37, %v4094_v32 }
 0x96b   : > { %11818 = vst [vmem:[#allocation27_spill] sm:$0xff] %v10800_v15  ;;  %4754 = vst.msk [vmem:[#allocation2 + $0x1e0] sm:$0xff] %vm1333_vm4, %v10797_v47  ;;  %4225 = vperm.xlu1 %7209, %v10797_v47   ;;  %4220 = vperm.xlu0 %7208, %v10780_v49  }
 0x96c   : > { %4755 = vst.msk [vmem:[#allocation2 + $0x1e8] sm:$0xff] %vm1333_vm4, %v10800_v15  ;;  %v4096_v32 = vpop.xlane.xlu0 %4095  ;;  %v4098_v58 = vpop.xlane.xlu1 %4097 }
 0x96d   : > { %v10817_v34 = vmax.f32 %v10802_v0, %v4096_v32  ;;  %v10820_v1 = vmax.f32 %v10804_v29, %v4098_v58 }
 0x96f   : > { %11821 = vst [vmem:[#allocation63_spill] sm:$0xff] %v10817_v34  ;;  %4756 = vst.msk [vmem:[#allocation2 + $0x1f0] sm:$0xff] %vm1333_vm4, %v10817_v34  ;;  %4230 = vperm.xlu0 %7208, %v10800_v15   ;;  %4235 = vperm.xlu1 %7209, %v10817_v34  }
 0x970   : > { %4757 = vst.msk [vmem:[#allocation2 + $0x1f8] sm:$0xff] %vm1333_vm4, %v10820_v1  ;;  %v7332_v32 = vpop.permute.xlu0 %7331  ;;  %v7337_v48 = vpop.permute.xlu1 %7336 }
 0x971   : > { %v7334_v58 = vunpack.i.h.bf16 %v7332_v32  ;;  %v7333_v63 = vunpack.i.l.bf16 %v7332_v32  ;;  %v7339_v16 = vunpack.i.h.bf16 %v7337_v48  ;;  %v7338_v54 = vunpack.i.l.bf16 %v7337_v48 }
 0x973   : > { %4240 = vperm.xlu0 %7208, %v10820_v1   ;;  %v7080_v19 = vpack.c.bf16 %v7334_v58, %v7333_v63  ;;  %v7084_v0 = vpack.c.bf16 %v7339_v16, %v7338_v54 }
 0x974   : > { %v7342_v14 = vpop.permute.xlu1 %7341  ;;  %v7347_v33 = vpop.permute.xlu0 %7346 }
 0x975   : > { %7081 = vmatprep.subr.bf16.mxu0 %v7080_v19  ;;  %v7344_v34 = vunpack.i.h.bf16 %v7342_v14  ;;  %v7343_v56 = vunpack.i.l.bf16 %v7342_v14  ;;  %v7349_v29 = vunpack.i.h.bf16 %v7347_v33  ;;  %v7348_v15 = vunpack.i.l.bf16 %v7347_v33 }
 0x976   : > { %7083 = vmatpush3.bf16.msra.mxu0 %v7080_v19  ;;  %v11825_v19 = vld [vmem:[#allocation113_spill] sm:$0xff] }
 0x977   : > { %v7088_v59 = vpack.c.bf16 %v7344_v34, %v7343_v56  ;;  %7085 = vmatprep.subr.bf16.mxu0 %v7084_v0  ;;  %v7092_v49 = vpack.c.bf16 %v7349_v29, %v7348_v15  ;;  %v11822_v15 = vld [vmem:[#allocation110_spill] sm:$0xff] }
 0x978   : > { %v7352_v37 = vpop.permute.xlu1 %7351  ;;  %v7357_v39 = vpop.permute.xlu0 %7356 }
 0x979   : > { %v7354_v32 = vunpack.i.h.bf16 %v7352_v37  ;;  %v7353_v48 = vunpack.i.l.bf16 %v7352_v37  ;;  %v7359_v16 = vunpack.i.h.bf16 %v7357_v39  ;;  %v7358_v54 = vunpack.i.l.bf16 %v7357_v39 }
 0x97a   : > { %7087 = vmatpush3.bf16.msra.mxu0 %v7084_v0 }
 0x97b   : > { %7089 = vmatprep.subr.bf16.mxu0 %v7088_v59  ;;  %v7096_v63 = vpack.c.bf16 %v7354_v32, %v7353_v48  ;;  %v7100_v14 = vpack.c.bf16 %v7359_v16, %v7358_v54  ;;  %v11843_v48 = vsub.f32 %v10740_v31, %v10757_v18  ;;  %v11845_v18 = vld [vmem:[#allocation61_spill] sm:$0xff] }
 0x97c   : > { %v7362_v58 = vpop.permute.xlu1 %7361  ;;  %v11846_v31 = vld [vmem:[#allocation33_spill] sm:$0xff] }
 0x97d   : > { %v7364_v56 = vunpack.i.h.bf16 %v7362_v58  ;;  %v7363_v34 = vunpack.i.l.bf16 %v7362_v58 }
 0x97e   : > { %7091 = vmatpush3.bf16.msra.mxu0 %v7088_v59  ;;  %v11841_v59 = vsub.f32 %v10720_v57, %v10735_v46  ;;  %v11844_v46 = vsub.f32 %v10782_v22, %v10797_v47 }
 0x97f   : > { %7093 = vmatprep.subr.bf16.mxu0 %v7092_v49  ;;  %v7104_v33 = vpack.c.bf16 %v7364_v56, %v7363_v34 }
 0x980   : > { %v4145_v32 = vmul.f32 1.442695, %v11841_v59  ;;  %v4155_v57 = vmul.f32 1.442695, %v11844_v46  ;;  %v11857_v46 = vld [vmem:[#allocation51_spill] sm:$0xff] }
 0x982   : > { %7095 = vmatpush3.bf16.msra.mxu0 %v7092_v49  ;;  %v11823_v49 = vld [vmem:[#allocation111_spill] sm:$0xff] }
 0x983   : > { %7097 = vmatprep.subr.bf16.mxu0 %v7096_v63  ;;  %v11824_v39 = vsub.f32 %v11822_v15, %v11823_v49  ;;  %v11849_v49 = vld [vmem:[#allocation27_spill] sm:$0xff] }
 0x986   : > { %7099 = vmatpush3.bf16.msra.mxu0 %v7096_v63  ;;  %v4149_v63 = vmul.f32 1.442695, %v11843_v48 }
 0x987   : > { %7101 = vmatprep.subr.bf16.mxu0 %v7100_v14 }
 0x98a   : > { %7103 = vmatpush3.bf16.msra.mxu0 %v7100_v14  ;;  %v11847_v14 = vsub.f32 %v11845_v18, %v11846_v31 }
 0x98b   : > { %7105 = vmatprep.subr.bf16.mxu0 %v7104_v33 }
 0x98c   : > { %v4153_v56 = vmul.f32 1.442695, %v11847_v14 }
 0x98e   : > { %7107 = vmatpush3.bf16.msra.mxu0 %v7104_v33 }
 0x992   : > { %3335 = vadd.xlane.f32.xlu0 %v10283_v53  ;;  %v3140_v53 = vmul.f32 1.442695, %v11824_v39 }
 0x993   : > { %3333 = vadd.xlane.f32.xlu1 %v10279_v27  ;;  %v11826_v27 = vsub.f32 %v11825_v19, %v10071_v3  ;;  %v11832_v3 = vsub.f32 %v10092_v44, %v10101_v40  ;;  %v11835_v40 = vsub.f32 %v10687_v7, %v10698_v38 }
 0x994   : > { %7552 = vpow2.f32 %v3140_v53 }
 0x995   : > { %v4135_v44 = vmul.f32 1.442695, %v11835_v40 }
 0x996   : > { %3337 = vadd.xlane.f32.xlu0 %v10307_v20  ;;  %v3144_v20 = vmul.f32 1.442695, %v11826_v27 }
 0x997   : > { %3339 = vadd.xlane.f32.xlu1 %v10312_v28  ;;  %v11827_v28 = vld [vmem:[#allocation114_spill] sm:$0xff] }
 0x998   : > { %7554 = vpow2.f32 %v3144_v20 }
 0x99a   : > { %3341 = vadd.xlane.f32.xlu0 %v10323_v10  ;;  %v11828_v10 = vld [vmem:[#allocation115_spill] sm:$0xff] }
 0x9a8   : > { %3394 = vperm.xlu1 %7209, %v10522_v52   ;;  %v11829_v52 = vsub.f32 %v11827_v28, %v11828_v10  ;;  %v11851_v10 = vld [vmem:[#allocation13_spill] sm:$0xff] }
 0x9ac   : > { %3404 = vperm.xlu1 %7209, %v10569_v25   ;;  %v3142_v25 = vmul.f32 1.442695, %v11829_v52 }
 0x9ae   : > { %7556 = vpow2.f32 %v3142_v25  ;;  %v11852_v25 = vld [vmem:[#allocation98_spill] sm:$0xff] }
 0x9b0   : > { %3399 = vperm.xlu0 %7208, %v10516_v60   ;;  %3409 = vperm.xlu1 %7209, %v10529_v42   ;;  %v11830_v60 = vld [vmem:[#allocation116_spill] sm:$0xff] }
 0x9b1   : > { %v11831_v42 = vsub.f32 %v11830_v60, %v10090_v23  ;;  %v11834_v23 = vsub.f32 %v10672_v6, %v10678_v41  ;;  %v11837_v6 = vsub.f32 %v10685_v55, %v10695_v36  ;;  %v11840_v36 = vsub.f32 %v10742_v43, %v10760_v17 }
 0x9b3   : > { %v3148_v0 = vmul.f32 1.442695, %v11831_v42 }
 0x9b4   : > { %3414 = vperm.xlu0 %7208, %v10580_v62   ;;  %3419 = vperm.xlu1 %7209, %v10535_v61   ;;  %v3146_v62 = vmul.f32 1.442695, %v11832_v3  ;;  %v11833_v61 = vsub.f32 %v10670_v8, %v10675_v51  ;;  %v4137_v51 = vmul.f32 1.442695, %v11837_v6 }
 0x9b5   : > { %7558 = vpow2.f32 %v3148_v0 }
 0x9b6   : > { %v4133_v29 = vmul.f32 1.442695, %v11833_v61  ;;  %7560 = vpow2.f32 %v3146_v62 }
 0x9b8   : > { %3424 = vperm.xlu0 %7208, %v10588_v5   ;;  %3429 = vperm.xlu1 %7209, %v10544_v13   ;;  %v4131_v5 = vmul.f32 1.442695, %v11834_v23  ;;  %v10869_v13 = vpop.eup %7552  ;;  %7562 = vpow2.f32 %v4133_v29  ;;  %v11853_v29 = vld [vmem:[#allocation18_spill] sm:$0xff] }
 0x9b9   : > { %v10879_v37 = vpop.eup %7554 }
 0x9ba   : > { %7564 = vpow2.f32 %v4131_v5  ;;  %v10881_v8 = vpop.eup %7556 }
 0x9bb   : > { %7566 = vpow2.f32 %v4135_v44  ;;  %v11854_v44 = vld [vmem:[#allocation19_spill] sm:$0xff] }
 0x9bc   : > { %3434 = vperm.xlu0 %7208, %v10592_v4   ;;  %3439 = vperm.xlu1 %7209, %v10555_v2   ;;  %v11836_v2 = vsub.f32 %v10702_v26, %v10718_v21  ;;  %v11839_v26 = vsub.f32 %v10700_v12, %v10715_v50  ;;  %v4147_v21 = vmul.f32 1.442695, %v11840_v36  ;;  %v11842_v12 = vsub.f32 %v10762_v45, %v10777_v30  ;;  %v11856_v36 = vld [vmem:[#allocation53_spill] sm:$0xff] }
 0x9be   : > { %v4139_v4 = vmul.f32 1.442695, %v11836_v2  ;;  %v4141_v55 = vmul.f32 1.442695, %v11839_v26  ;;  %v4151_v50 = vmul.f32 1.442695, %v11842_v12 }
 0x9bf   : > { %v10891_v7 = vpop.eup %7558 }
 0x9c0   : > { %3444 = vperm.xlu0 %7208, %v10596_v24   ;;  %3449 = vperm.xlu1 %7209, %v10869_v13   ;;  %7568 = vpow2.f32 %v4139_v4  ;;  %v11838_v24 = vsub.f32 %v10722_v9, %v10738_v11  ;;  %v10893_v38 = vpop.eup %7560 }
 0x9c1   : > { %7570 = vpow2.f32 %v4137_v51 }
 0x9c2   : > { %v4143_v41 = vmul.f32 1.442695, %v11838_v24  ;;  %v10903_v9 = vpop.eup %7562 }
 0x9c4   : > { %3454 = vperm.xlu0 %7208, %v10881_v8   ;;  %3459 = vperm.xlu1 %7209, %v10879_v37   ;;  %7572 = vpow2.f32 %v4143_v41  ;;  %v10905_v11 = vpop.eup %7564  ;;  %v11855_v41 = vld [vmem:[#allocation17_spill] sm:$0xff] }
 0x9c5   : > { %7574 = vpow2.f32 %v4141_v55  ;;  %v10915_v17 = vpop.eup %7566 }
 0x9c6   : > { %7576 = vpow2.f32 %v4147_v21 }
 0x9c7   : > { %7578 = vpow2.f32 %v4145_v32 }
 0x9c8   : > { %3464 = vperm.xlu0 %7208, %v10893_v38   ;;  %3469 = vperm.xlu1 %7209, %v10891_v7   ;;  %7580 = vpow2.f32 %v4151_v50 }
 0x9c9   : > { %7582 = vpow2.f32 %v4149_v63 }
 0x9ca   : > { %v10917_v43 = vpop.eup %7568  ;;  %7584 = vpow2.f32 %v4155_v57 }
 0x9cb   : > { %v10927_v30 = vpop.eup %7570 }
 0x9cc   : > { %4412 = vperm.xlu0 %7208, %v10903_v9   ;;  %4407 = vperm.xlu1 %7209, %v10905_v11  }
 0x9ce   : > { %v10929_v54 = vpop.eup %7572 }
 0x9cf   : > { %v10937_v47 = vpop.eup %7574 }
 0x9d0   : > { %4427 = vperm.xlu0 %7208, %v10917_v43   ;;  %4417 = vperm.xlu1 %7209, %v10915_v17   ;;  %v10939_v15 = vpop.eup %7576 }
 0x9d1   : > { %v4171_v45 = vpop.permute.xlu1 %4170  ;;  %v10946_v19 = vpop.eup %7578 }
 0x9d2   : > { %v4166_v16 = vpop.permute.xlu0 %4165  ;;  %v10948_v28 = vpop.eup %7580  ;;  %v4244_v52 = vsub.f32 %v11851_v10, %v4171_v45  ;;  %v11861_v10 = vld [vmem:[#allocation55_spill] sm:$0xff] }
 0x9d3   : > { %v4243_v58 = vsub.f32 %v10602_v35, %v4166_v16  ;;  %v11848_v35 = vld [vmem:[#allocation101_spill] sm:$0xff]  ;;  %v10954_v42 = vpop.eup %7582 }
 0x9d4   : > { %4437 = vperm.xlu0 %7208, %v10929_v54   ;;  %4422 = vperm.xlu1 %7209, %v10927_v30   ;;  %v11850_v39 = vsub.f32 %v11848_v35, %v11849_v49  ;;  %v10956_v62 = vpop.eup %7584  ;;  %v4261_v61 = vmul.f32 1.442695, %v4244_v52  ;;  %v11858_v16 = vld [vmem:[#allocation29_spill] sm:$0xff] }
 0x9d5   : > { %v4259_v22 = vmul.f32 1.442695, %v4243_v58  ;;  %v11860_v35 = vld [vmem:[#allocation57_spill] sm:$0xff] }
 0x9d6   : > { %v4176_v34 = vpop.permute.xlu1 %4175  ;;  %v4181_v33 = vpop.permute.xlu0 %4180  ;;  %v4157_v53 = vmul.f32 1.442695, %v11850_v39 }
 0x9d7   : > { %7586 = vpow2.f32 %v4259_v22  ;;  %v4245_v60 = vsub.f32 %v11852_v25, %v4176_v34  ;;  %v4246_v23 = vsub.f32 %v11853_v29, %v4181_v33 }
 0x9d8   : > { %4447 = vperm.xlu0 %7208, %v10939_v15   ;;  %4432 = vperm.xlu1 %7209, %v10937_v47   ;;  %7588 = vpow2.f32 %v4153_v56  ;;  %v11859_v56 = vld [vmem:[#allocation102_spill] sm:$0xff] }
 0x9d9   : > { %7590 = vpow2.f32 %v4157_v53  ;;  %v4263_v40 = vmul.f32 1.442695, %v4245_v60  ;;  %v4265_v24 = vmul.f32 1.442695, %v4246_v23  ;;  %v11862_v60 = vld [vmem:[#allocation99_spill] sm:$0xff] }
 0x9da   : > { %v4191_v27 = vpop.permute.xlu1 %4190  ;;  %v4186_v20 = vpop.permute.xlu0 %4185  ;;  %7592 = vpow2.f32 %v4261_v61 }
 0x9db   : > { %v4247_v2 = vsub.f32 %v11854_v44, %v4186_v20  ;;  %v4248_v26 = vsub.f32 %v11855_v41, %v4191_v27  ;;  %7594 = vpow2.f32 %v4263_v40  ;;  %v11863_v40 = vld [vmem:[#allocation31_spill] sm:$0xff] }
 0x9dc   : > { %4457 = vperm.xlu0 %7208, %v10948_v28   ;;  %4442 = vperm.xlu1 %7209, %v10946_v19   ;;  %7596 = vpow2.f32 %v4265_v24 }
 0x9dd   : > { %v4267_v55 = vmul.f32 1.442695, %v4247_v2  ;;  %v4269_v63 = vmul.f32 1.442695, %v4248_v26 }
 0x9de   : > { %v4196_v0 = vpop.permute.xlu1 %4195  ;;  %v4201_v3 = vpop.permute.xlu0 %4200 }
 0x9df   : > { %v4249_v21 = vsub.f32 %v11856_v36, %v4196_v0  ;;  %v4250_v57 = vsub.f32 %v11857_v46, %v4201_v3  ;;  %7598 = vpow2.f32 %v4267_v55  ;;  %v11865_v36 = vld [vmem:[#allocation23_spill] sm:$0xff] }
 0x9e0   : > { %4467 = vperm.xlu0 %7208, %v10956_v62   ;;  %4452 = vperm.xlu1 %7209, %v10954_v42   ;;  %7600 = vpow2.f32 %v4269_v63 }
 0x9e1   : > { %v10961_v5 = vpop.eup %7586  ;;  %v4271_v45 = vmul.f32 1.442695, %v4249_v21  ;;  %v4273_v14 = vmul.f32 1.442695, %v4250_v57 }
 0x9e2   : > { %v4211_v4 = vpop.permute.xlu1 %4210  ;;  %6768 = vmatprep.mubr.f32.mxu0 %v10961_v5  ;;  %v4206_v6 = vpop.permute.xlu0 %4205 }
 0x9e3   : > { %v10965_v51 = vpop.eup %7588  ;;  %v4251_v58 = vsub.f32 %v11858_v16, %v4206_v6  ;;  %v4252_v22 = vsub.f32 %v11859_v56, %v4211_v4  ;;  %7602 = vpow2.f32 %v4271_v45  ;;  %v11864_v4 = vld [vmem:[#allocation59_spill] sm:$0xff] }
 0x9e4   : > { %4462 = vperm.xlu1 %7209, %v10965_v51   ;;  %v10970_v12 = vpop.eup %7590  ;;  %7604 = vpow2.f32 %v4273_v14 }
 0x9e5   : > { %v4275_v33 = vmul.f32 1.442695, %v4251_v58  ;;  %v7593_v39 = vpop.eup %7592  ;;  %v4277_v20 = vmul.f32 1.442695, %v4252_v22 }
 0x9e6   : > { %v4216_v59 = vpop.permute.xlu1 %4215  ;;  %v7367_v32 = vpop.permute.xlu0 %7366 }
 0x9e7   : > { %v7369_v50 = vunpack.i.h.bf16 %v7367_v32  ;;  %v7368_v48 = vunpack.i.l.bf16 %v7367_v32  ;;  %v4253_v49 = vsub.f32 %v11860_v35, %v4216_v59  ;;  %v7595_v53 = vpop.eup %7594  ;;  %7606 = vpow2.f32 %v4275_v33 }
 0x9e8   : > { %4472 = vperm.xlu1 %7209, %v10970_v12   ;;  %v7597_v3 = vpop.eup %7596  ;;  %7608 = vpow2.f32 %v4277_v20 }
 0x9e9   : > { %v7108_v18 = vpack.c.bf16 %v7369_v50, %v7368_v48  ;;  %v4279_v25 = vmul.f32 1.442695, %v4253_v49  ;;  %v7599_v29 = vpop.eup %7598  ;;  %v3293_v49 = vld [vmem:[#allocation3 + $0x170] sm:$0xff] }
 0x9ea   : > { %v4221_v31 = vpop.permute.xlu0 %4220  ;;  %v4226_v34 = vpop.permute.xlu1 %4225  ;;  %v3309_v20 = vmul.f32 %v10893_v38, %v3293_v49  ;;  %v3383_v49 = vld [vmem:[#allocation4 + $0x138] sm:$0xff] }
 0x9eb   : > { %7109 = vmatprep.subr.bf16.mxu0 %v7108_v18  ;;  %v4254_v52 = vsub.f32 %v11861_v10, %v4221_v31  ;;  %v4255_v0 = vsub.f32 %v11862_v60, %v4226_v34  ;;  %7610 = vpow2.f32 %v4279_v25  ;;  %v7601_v41 = vpop.eup %7600  ;;  %v3290_v31 = vld [vmem:[#allocation3 + $0x158] sm:$0xff]  ;;  %v3292_v34 = vld [vmem:[#allocation3 + $0x168] sm:$0xff]  ;;  %v11867_v25 = vld [vmem:[#allocation63_spill] sm:$0xff] }
 0x9ec   : > { %7111 = vmatpush3.bf16.msra.mxu0 %v7108_v18  ;;  %v3306_v22 = vmul.f32 %v10869_v13, %v3290_v31  ;;  %v11866_v13 = vld [vmem:[#allocation16_spill] sm:$0xff] }
 0x9ed   : > { %v4281_v23 = vmul.f32 1.442695, %v4254_v52  ;;  %v4283_v2 = vmul.f32 1.442695, %v4255_v0  ;;  %v7603_v26 = vpop.eup %7602  ;;  %v11868_v60 = vsub.f32 %v11866_v13, %v11867_v25  ;;  %v11877_v13 = vld [vmem:[#allocation79_spill] sm:$0xff] }
 0x9ee   : > { %v4231_v27 = vpop.permute.xlu0 %4230  ;;  %v4236_v61 = vpop.permute.xlu1 %4235 }
 0x9ef   : > { %6769 = vmatmul.mubr.f32.vlgmr.msra.gmra.mrb[48].mxu0 %v7593_v39  ;;  %v4256_v44 = vsub.f32 %v11863_v40, %v4231_v27  ;;  %v4257_v6 = vsub.f32 %v11864_v4, %v4236_v61  ;;  %7612 = vpow2.f32 %v4281_v23  ;;  %v7605_v32 = vpop.eup %7604  ;;  %v4159_v0 = vmul.f32 1.442695, %v11868_v60  ;;  %v11869_v61 = vld [vmem:[#allocation14_spill] sm:$0xff]  ;;  %v3376_v40 = vld [vmem:[#allocation4 + $0x100] sm:$0xff] }
 0x9f0   : > { %6771 = vmatprep.mubr.f32.mxu0 %v7595_v53  ;;  %7614 = vpow2.f32 %v4283_v2  ;;  %v3385_v60 = vld [vmem:[#allocation4 + $0x148] sm:$0xff] }
 0x9f1   : > { %v4285_v55 = vmul.f32 1.442695, %v4256_v44  ;;  %v4287_v59 = vmul.f32 1.442695, %v4257_v6  ;;  %v7607_v50 = vpop.eup %7606  ;;  %v3378_v6 = vld [vmem:[#allocation4 + $0x110] sm:$0xff] }
 0x9f2   : > { %v4241_v24 = vpop.permute.xlu0 %4240  ;;  %v7609_v63 = vpop.eup %7608 }
 0x9f3   : > { %6772 = vmatmul.mubr.f32.gmra.mrb[50].mxu0 %v7597_v3  ;;  %v4258_v21 = vsub.f32 %v11865_v36, %v4241_v24  ;;  %7616 = vpow2.f32 %v4285_v55  ;;  %v11871_v24 = vld [vmem:[#allocation80_spill] sm:$0xff]  ;;  %v3377_v55 = vld [vmem:[#allocation4 + $0x108] sm:$0xff] }
 0x9f4   : > { %6774 = vmatprep.mubr.f32.mxu0 %v7599_v29  ;;  %7618 = vpow2.f32 %v4287_v59  ;;  %v11872_v36 = vld [vmem:[#allocation82_spill] sm:$0xff] }
 0x9f5   : > { %v4289_v48 = vmul.f32 1.442695, %v4258_v21  ;;  %v7611_v46 = vpop.eup %7610 }
 0x9f7   : > { %6775 = vmatmul.mubr.f32.gmra.mrb[52].mxu0 %v7601_v41  ;;  %7620 = vpow2.f32 %v4289_v48 }
 0x9f8   : > { %6777 = vmatprep.mubr.f32.mxu0 %v7603_v26  ;;  %7622 = vpow2.f32 %v4159_v0  ;;  %v11878_v0 = vld [vmem:[#allocation78_spill] sm:$0xff] }
 0x9f9   : > { %v7613_v57 = vpop.eup %7612 }
 0x9fa   : > { %v7615_v45 = vpop.eup %7614 }
 0x9fb   : > { %6778 = vmatmul.mubr.f32.gmra.mrb[54].mxu0 %v7605_v32 }
 0x9fc   : > { %6780 = vmatprep.mubr.f32.mxu0 %v7607_v50 }
 0x9fd   : > { %v7617_v16 = vpop.eup %7616 }
 0x9fe   : > { %v7619_v58 = vpop.eup %7618 }
 0x9ff   : > { %4324 = vadd.xlane.f32.xlu0 %v10961_v5  ;;  %6781 = vmatmul.mubr.f32.gmra.mrb[56].mxu0 %v7609_v63  ;;  %v3291_v5 = vld [vmem:[#allocation3 + $0x160] sm:$0xff] }
 0xa00   : > { %6783 = vmatprep.mubr.f32.mxu0 %v7611_v46  ;;  %v3307_v14 = vmul.f32 %v10881_v8, %v3291_v5  ;;  %v3294_v8 = vld [vmem:[#allocation3 + $0x178] sm:$0xff] }
 0xa01   : > { %v7621_v18 = vpop.eup %7620 }
 0xa03   : > { %4330 = vadd.xlane.f32.xlu0 %v7597_v3  ;;  %6784 = vmatmul.mubr.f32.gmra.mrb[58].mxu0 %v7613_v57 }
 0xa04   : > { %6786 = vmatprep.mubr.f32.mxu0 %v7615_v45 }
 0xa07   : > { %4328 = vadd.xlane.f32.xlu0 %v7595_v53  ;;  %6787 = vmatmul.mubr.f32.gmra.mrb[60].mxu0 %v7617_v16  ;;  %v3308_v53 = vmul.f32 %v10879_v37, %v3292_v34  ;;  %v3310_v37 = vmul.f32 %v10891_v7, %v3294_v8  ;;  %v3379_v7 = vld [vmem:[#allocation4 + $0x118] sm:$0xff]  ;;  %v3382_v34 = vld [vmem:[#allocation4 + $0x130] sm:$0xff] }
 0xa08   : > { %6789 = vmatprep.mubr.f32.mxu0 %v7619_v58 }
 0xa0b   : > { %4334 = vadd.xlane.f32.xlu0 %v7601_v41  ;;  %6790 = vmatmul.mubr.f32.gmra.mrb[62].mxu0 %v7621_v18 }
 0xa0c   : > { %4326 = vadd.xlane.f32.xlu1 %v7593_v39 }
 0xa0f   : > { %4338 = vadd.xlane.f32.xlu0 %v7605_v32 }
 0xa10   : > { %4332 = vadd.xlane.f32.xlu1 %v7599_v29  ;;  %v11870_v29 = vsub.f32 %v11869_v61, %v10820_v1 }
 0xa12   : > { %v4161_v23 = vmul.f32 1.442695, %v11870_v29 }
 0xa13   : > { %4342 = vadd.xlane.f32.xlu0 %v7609_v63  ;;  %v3380_v63 = vld [vmem:[#allocation4 + $0x120] sm:$0xff] }
 0xa14   : > { %4336 = vadd.xlane.f32.xlu1 %v7603_v26  ;;  %7624 = vpow2.f32 %v4161_v23 }
 0xa17   : > { %4346 = vadd.xlane.f32.xlu0 %v7613_v57 }
 0xa18   : > { %4340 = vadd.xlane.f32.xlu1 %v7607_v50 }
 0xa1b   : > { %4350 = vadd.xlane.f32.xlu0 %v7617_v16  ;;  %v11004_v16 = vpop.eup %7622 }
 0xa1c   : > { %4344 = vadd.xlane.f32.xlu1 %v7611_v46  ;;  %v11873_v46 = vld [vmem:[#allocation75_spill] sm:$0xff] }
 0xa1e   : > { %v11007_v31 = vpop.eup %7624 }
 0xa1f   : > { %4354 = vadd.xlane.f32.xlu0 %v7621_v18  ;;  %v3336_v56 = vpop.xlane.xlu0 %3335 }
 0xa20   : > { %v3355_v33 = vadd.f32 %v3336_v56, %v3307_v14  ;;  %v3334_v35 = vpop.xlane.xlu1 %3333  ;;  %4348 = vadd.xlane.f32.xlu1 %v7615_v45  ;;  %v3381_v45 = vld [vmem:[#allocation4 + $0x128] sm:$0xff] }
 0xa21   : > { %v3354_v39 = vadd.f32 %v3334_v35, %v3306_v22 }
 0xa22   : > { %3371 = vst.msk [vmem:[#allocation3 + $0x160] sm:$0xff] %vm1333_vm4, %v3355_v33  ;;  %v11875_v33 = vld [vmem:[#allocation84_spill] sm:$0xff] }
 0xa23   : > { %3370 = vst.msk [vmem:[#allocation3 + $0x158] sm:$0xff] %vm1333_vm4, %v3354_v39  ;;  %v3338_v27 = vpop.xlane.xlu0 %3337  ;;  %v11876_v39 = vld [vmem:[#allocation77_spill] sm:$0xff] }
 0xa24   : > { %v3356_v10 = vadd.f32 %v3338_v27, %v3308_v53  ;;  %v3340_v52 = vpop.xlane.xlu1 %3339  ;;  %4352 = vadd.xlane.f32.xlu1 %v7619_v58  ;;  %v11874_v58 = vld [vmem:[#allocation76_spill] sm:$0xff] }
 0xa25   : > { %v3357_v3 = vadd.f32 %v3340_v52, %v3309_v20  ;;  %v3384_v52 = vld [vmem:[#allocation4 + $0x140] sm:$0xff] }
 0xa26   : > { %3372 = vst.msk [vmem:[#allocation3 + $0x168] sm:$0xff] %vm1333_vm4, %v3356_v10 }
 0xa27   : > { %3373 = vst.msk [vmem:[#allocation3 + $0x170] sm:$0xff] %vm1333_vm4, %v3357_v3  ;;  %v3342_v38 = vpop.xlane.xlu0 %3341 }
 0xa28   : > { %v3358_v44 = vadd.f32 %v3342_v38, %v3310_v37  ;;  %v3395_v2 = vpop.permute.xlu1 %3394  ;;  %v11879_v38 = vld [vmem:[#allocation83_spill] sm:$0xff] }
 0xa29   : > { %v3472_v4 = vmul.f32 %v3395_v2, %v3376_v40  ;;  %v3386_v40 = vld [vmem:[#allocation4 + $0x150] sm:$0xff]  ;;  %v3387_v2 = vld [vmem:[#allocation4 + $0x158] sm:$0xff] }
 0xa2a   : > { %3374 = vst.msk [vmem:[#allocation3 + $0x178] sm:$0xff] %vm1333_vm4, %v3358_v44 }
 0xa2b   : > { %v3633_v41 = vadd.f32 %v11871_v24, %v3472_v4  ;;  %v11880_v4 = vld [vmem:[#allocation81_spill] sm:$0xff] }
 0xa2c   : > { %v3405_v1 = vpop.permute.xlu1 %3404 }
 0xa2d   : > { %3649 = vst.msk [vmem:[#allocation4 + $0x100] sm:$0xff] %vm771_vm2, %v3633_v41  ;;  %v3474_v26 = vmul.f32 %v3405_v1, %v3378_v6 }
 0xa2f   : > { %v3635_v21 = vadd.f32 %v11872_v36, %v3474_v26  ;;  %v3400_v59 = vpop.permute.xlu0 %3399 }
 0xa30   : > { %v3473_v32 = vmul.f32 %v3400_v59, %v3377_v55  ;;  %v3410_v50 = vpop.permute.xlu1 %3409  ;;  %v3388_v55 = vld [vmem:[#allocation4 + $0x160] sm:$0xff]  ;;  %v11882_v59 = vld [vmem:[#allocation24_spill] sm:$0xff] }
 0xa31   : > { %3651 = vst.msk [vmem:[#allocation4 + $0x110] sm:$0xff] %vm771_vm2, %v3635_v21  ;;  %v3475_v48 = vmul.f32 %v3410_v50, %v3379_v7  ;;  %v11881_v7 = vld [vmem:[#allocation25_spill] sm:$0xff]  ;;  %v3389_v21 = vld [vmem:[#allocation4 + $0x168] sm:$0xff] }
 0xa32   : > { %v3634_v57 = vadd.f32 %v11873_v46, %v3473_v32 }
 0xa33   : > { %v3636_v18 = vadd.f32 %v11874_v58, %v3475_v48  ;;  %v3415_v5 = vpop.permute.xlu0 %3414 }
 0xa34   : > { %3650 = vst.msk [vmem:[#allocation4 + $0x108] sm:$0xff] %vm771_vm2, %v3634_v57  ;;  %v3476_v14 = vmul.f32 %v3415_v5, %v3380_v63  ;;  %v3420_v56 = vpop.permute.xlu1 %3419  ;;  %v3390_v57 = vld [vmem:[#allocation4 + $0x170] sm:$0xff]  ;;  %v11884_v5 = vld [vmem:[#allocation97_spill] sm:$0xff] }
 0xa35   : > { %3652 = vst.msk [vmem:[#allocation4 + $0x118] sm:$0xff] %vm771_vm2, %v3636_v18  ;;  %v3477_v22 = vmul.f32 %v3420_v56, %v3381_v45  ;;  %4482 = vperm.xlu1 %7209, %v11007_v31   ;;  %4477 = vperm.xlu0 %7208, %v11004_v16   ;;  %v11883_v45 = vld [vmem:[#allocation22_spill] sm:$0xff]  ;;  %v3391_v18 = vld [vmem:[#allocation4 + $0x178] sm:$0xff] }
 0xa36   : > { %v3637_v35 = vadd.f32 %v11875_v33, %v3476_v14 }
 0xa37   : > { %v3638_v53 = vadd.f32 %v11876_v39, %v3477_v22  ;;  %v3425_v27 = vpop.permute.xlu0 %3424  ;;  %v11886_v39 = vld [vmem:[#allocation100_spill] sm:$0xff] }
 0xa38   : > { %3653 = vst.msk [vmem:[#allocation4 + $0x120] sm:$0xff] %vm771_vm2, %v3637_v35  ;;  %v3478_v20 = vmul.f32 %v3425_v27, %v3382_v34  ;;  %v3430_v8 = vpop.permute.xlu1 %3429  ;;  %v11885_v35 = vld [vmem:[#allocation15_spill] sm:$0xff] }
 0xa39   : > { %3654 = vst.msk [vmem:[#allocation4 + $0x128] sm:$0xff] %vm771_vm2, %v3638_v53  ;;  %v3479_v10 = vmul.f32 %v3430_v8, %v3383_v49 }
 0xa3a   : > { %v3639_v25 = vadd.f32 %v11877_v13, %v3478_v20 }
 0xa3b   : > { %v3640_v3 = vadd.f32 %v11878_v0, %v3479_v10  ;;  %v3435_v61 = vpop.permute.xlu0 %3434 }
 0xa3c   : > { %3655 = vst.msk [vmem:[#allocation4 + $0x130] sm:$0xff] %vm771_vm2, %v3639_v25  ;;  %v3480_v29 = vmul.f32 %v3435_v61, %v3384_v52  ;;  %v3440_v23 = vpop.permute.xlu1 %3439 }
 0xa3d   : > { %3656 = vst.msk [vmem:[#allocation4 + $0x138] sm:$0xff] %vm771_vm2, %v3640_v3  ;;  %v3481_v37 = vmul.f32 %v3440_v23, %v3385_v60 }
 0xa3e   : > { %v3641_v44 = vadd.f32 %v11879_v38, %v3480_v29  ;;  %v4292_v29 = vld [vmem:[#allocation3 + $0x180] sm:$0xff]  ;;  %v4295_v38 = vld [vmem:[#allocation3 + $0x198] sm:$0xff] }
 0xa3f   : > { %v3642_v6 = vadd.f32 %v11880_v4, %v3481_v37  ;;  %v3445_v24 = vpop.permute.xlu0 %3444  ;;  %v4308_v37 = vmul.f32 %v10905_v11, %v4292_v29  ;;  %v4311_v4 = vmul.f32 %v10927_v30, %v4295_v38 }
 0xa40   : > { %3657 = vst.msk [vmem:[#allocation4 + $0x140] sm:$0xff] %vm771_vm2, %v3641_v44  ;;  %v3482_v41 = vmul.f32 %v3445_v24, %v3386_v40  ;;  %v3450_v1 = vpop.permute.xlu1 %3449  ;;  %v4294_v24 = vld [vmem:[#allocation3 + $0x190] sm:$0xff] }
 0xa41   : > { %3658 = vst.msk [vmem:[#allocation4 + $0x148] sm:$0xff] %vm771_vm2, %v3642_v6  ;;  %v3483_v26 = vmul.f32 %v3450_v1, %v3387_v2  ;;  %v4310_v1 = vmul.f32 %v10915_v17, %v4294_v24 }
 0xa42   : > { %v3643_v36 = vadd.f32 %v11881_v7, %v3482_v41 }
 0xa43   : > { %v3644_v32 = vadd.f32 %v11882_v59, %v3483_v26  ;;  %v3455_v50 = vpop.permute.xlu0 %3454 }
 0xa44   : > { %3659 = vst.msk [vmem:[#allocation4 + $0x150] sm:$0xff] %vm771_vm2, %v3643_v36  ;;  %v3484_v48 = vmul.f32 %v3455_v50, %v3388_v55  ;;  %v3460_v63 = vpop.permute.xlu1 %3459  ;;  %v4297_v55 = vld [vmem:[#allocation3 + $0x1a8] sm:$0xff] }
 0xa45   : > { %3660 = vst.msk [vmem:[#allocation4 + $0x158] sm:$0xff] %vm771_vm2, %v3644_v32  ;;  %v3485_v46 = vmul.f32 %v3460_v63, %v3389_v21  ;;  %v4293_v36 = vld [vmem:[#allocation3 + $0x188] sm:$0xff]  ;;  %v4313_v21 = vmul.f32 %v10937_v47, %v4297_v55  ;;  %v4299_v32 = vld [vmem:[#allocation3 + $0x1b8] sm:$0xff]  ;;  %v4296_v63 = vld [vmem:[#allocation3 + $0x1a0] sm:$0xff] }
 0xa46   : > { %v3645_v58 = vadd.f32 %v11883_v45, %v3484_v48  ;;  %v4309_v30 = vmul.f32 %v10903_v9, %v4293_v36  ;;  %v4315_v17 = vmul.f32 %v10946_v19, %v4299_v32  ;;  %v4312_v45 = vmul.f32 %v10917_v43, %v4296_v63  ;;  %v4303_v19 = vld [vmem:[#allocation3 + $0x1d8] sm:$0xff]  ;;  %v4306_v36 = vld [vmem:[#allocation3 + $0x1f0] sm:$0xff]  ;;  %v4389_v32 = vld [vmem:[#allocation4 + $0x180] sm:$0xff] }
 0xa47   : > { %v3646_v14 = vadd.f32 %v11884_v5, %v3485_v46  ;;  %v3465_v56 = vpop.permute.xlu0 %3464  ;;  %v4298_v5 = vld [vmem:[#allocation3 + $0x1b0] sm:$0xff]  ;;  %v4319_v43 = vmul.f32 %v10965_v51, %v4303_v19  ;;  %v4307_v51 = vld [vmem:[#allocation3 + $0x1f8] sm:$0xff] }
 0xa48   : > { %3661 = vst.msk [vmem:[#allocation4 + $0x160] sm:$0xff] %vm771_vm2, %v3645_v58  ;;  %v3486_v22 = vmul.f32 %v3465_v56, %v3390_v57  ;;  %v3470_v34 = vpop.permute.xlu1 %3469  ;;  %v4301_v58 = vld [vmem:[#allocation3 + $0x1c8] sm:$0xff]  ;;  %v4395_v19 = vld [vmem:[#allocation4 + $0x1b0] sm:$0xff] }
 0xa49   : > { %3662 = vst.msk [vmem:[#allocation4 + $0x168] sm:$0xff] %vm771_vm2, %v3646_v14  ;;  %v3487_v33 = vmul.f32 %v3470_v34, %v3391_v18  ;;  %v4317_v9 = vmul.f32 %v10954_v42, %v4301_v58  ;;  %v4305_v42 = vld [vmem:[#allocation3 + $0x1e8] sm:$0xff] }
 0xa4a   : > { %v3647_v49 = vadd.f32 %v11885_v35, %v3486_v22  ;;  %v4314_v22 = vmul.f32 %v10929_v54, %v4298_v5  ;;  %v4300_v35 = vld [vmem:[#allocation3 + $0x1c0] sm:$0xff]  ;;  %v4321_v54 = vmul.f32 %v10970_v12, %v4305_v42 }
 0xa4b   : > { %v3648_v53 = vadd.f32 %v11886_v39, %v3487_v33  ;;  %v11037_v27 = vpop.permute.xlu0 %4412  ;;  %v4393_v5 = vld [vmem:[#allocation4 + $0x1a0] sm:$0xff] }
 0xa4c   : > { %3663 = vst.msk [vmem:[#allocation4 + $0x170] sm:$0xff] %vm771_vm2, %v3647_v49  ;;  %v11039_v20 = vpop.permute.xlu1 %4407 }
 0xa4d   : > { %3664 = vst.msk [vmem:[#allocation4 + $0x178] sm:$0xff] %vm771_vm2, %v3648_v53  ;;  %v4316_v53 = vmul.f32 %v10939_v15, %v4300_v35  ;;  %v4323_v15 = vmul.f32 %v11007_v31, %v4307_v51  ;;  %v4390_v31 = vld [vmem:[#allocation4 + $0x188] sm:$0xff] }
 0xa4f   : > { %v11041_v8 = vpop.permute.xlu0 %4427 }
 0xa50   : > { %v11043_v10 = vpop.permute.xlu1 %4417 }
 0xa53   : > { %v11045_v52 = vpop.permute.xlu0 %4437 }
 0xa54   : > { %v11047_v13 = vpop.permute.xlu1 %4422 }
 0xa57   : > { %v11049_v25 = vpop.permute.xlu0 %4447 }
 0xa58   : > { %v11051_v60 = vpop.permute.xlu1 %4432 }
 0xa5b   : > { %v11053_v0 = vpop.permute.xlu0 %4457 }
 0xa5c   : > { %v11055_v3 = vpop.permute.xlu1 %4442 }
 0xa5f   : > { %v11057_v61 = vpop.permute.xlu0 %4467 }
 0xa60   : > { %v11059_v23 = vpop.permute.xlu1 %4452 }
 0xa64   : > { %v11062_v2 = vpop.permute.xlu1 %4462 }
 0xa68   : > { %v11068_v7 = vpop.permute.xlu1 %4472 }
 0xa8c   : > { %v4325_v40 = vpop.xlane.xlu0 %4324 }
 0xa8d   : > { %v4356_v44 = vadd.f32 %v4325_v40, %v4308_v37  ;;  %v4302_v40 = vld [vmem:[#allocation3 + $0x1d0] sm:$0xff] }
 0xa8f   : > { %4372 = vst.msk [vmem:[#allocation3 + $0x180] sm:$0xff] %vm1333_vm4, %v4356_v44 }
 0xa90   : > { %v4331_v6 = vpop.xlane.xlu0 %4330 }
 0xa91   : > { %v4359_v41 = vadd.f32 %v4331_v6, %v4311_v4  ;;  %v4318_v4 = vmul.f32 %v10948_v28, %v4302_v40  ;;  %v4322_v28 = vmul.f32 %v11004_v16, %v4306_v36  ;;  %v4400_v40 = vld [vmem:[#allocation4 + $0x1d8] sm:$0xff] }
 0xa93   : > { %4375 = vst.msk [vmem:[#allocation3 + $0x198] sm:$0xff] %vm1333_vm4, %v4359_v41  ;;  %v4304_v41 = vld [vmem:[#allocation3 + $0x1e0] sm:$0xff] }
 0xa94   : > { %v4329_v26 = vpop.xlane.xlu0 %4328  ;;  %v4320_v55 = vmul.f32 %v10956_v62, %v4304_v41  ;;  %v4485_v62 = vmul.f32 %v11039_v20, %v4389_v32 }
 0xa95   : > { %v4358_v11 = vadd.f32 %v4329_v26, %v4310_v1 }
 0xa97   : > { %4374 = vst.msk [vmem:[#allocation3 + $0x190] sm:$0xff] %vm1333_vm4, %v4358_v11 }
 0xa98   : > { %v4335_v59 = vpop.xlane.xlu0 %4334 }
 0xa99   : > { %v4361_v50 = vadd.f32 %v4335_v59, %v4313_v21  ;;  %v4327_v48 = vpop.xlane.xlu1 %4326 }
 0xa9a   : > { %v4357_v46 = vadd.f32 %v4327_v48, %v4309_v30  ;;  %v4392_v48 = vld [vmem:[#allocation4 + $0x198] sm:$0xff] }
 0xa9b   : > { %4377 = vst.msk [vmem:[#allocation3 + $0x1a8] sm:$0xff] %vm1333_vm4, %v4361_v50  ;;  %v4486_v50 = vmul.f32 %v11037_v27, %v4390_v31  ;;  %v4488_v58 = vmul.f32 %v11047_v13, %v4392_v48  ;;  %v4765_v48 = vld [vmem:[#allocation3 + $0x18] sm:$0xff] (!%p6085_p3) }
 0xa9c   : > { %4373 = vst.msk [vmem:[#allocation3 + $0x188] sm:$0xff] %vm1333_vm4, %v4357_v46  ;;  %v4339_v57 = vpop.xlane.xlu0 %4338  ;;  %v4391_v46 = vld [vmem:[#allocation4 + $0x190] sm:$0xff] }
 0xa9d   : > { %v4363_v18 = vadd.f32 %v4339_v57, %v4315_v17  ;;  %v4333_v47 = vpop.xlane.xlu1 %4332  ;;  %v4487_v16 = vmul.f32 %v11043_v10, %v4391_v46  ;;  %v4763_v46 = vld [vmem:[#allocation3 + $0x8] sm:$0xff] (!%p6085_p3) }
 0xa9e   : > { %v4360_v14 = vadd.f32 %v4333_v47, %v4312_v45 }
 0xa9f   : > { %4379 = vst.msk [vmem:[#allocation3 + $0x1b8] sm:$0xff] %vm1333_vm4, %v4363_v18  ;;  %v4394_v18 = vld [vmem:[#allocation4 + $0x1a8] sm:$0xff] }
 0xaa0   : > { %4376 = vst.msk [vmem:[#allocation3 + $0x1a0] sm:$0xff] %vm1333_vm4, %v4360_v14  ;;  %v4343_v56 = vpop.xlane.xlu0 %4342 }
 0xaa1   : > { %v4365_v34 = vadd.f32 %v4343_v56, %v4317_v9  ;;  %v4337_v33 = vpop.xlane.xlu1 %4336  ;;  %v4490_v9 = vmul.f32 %v11051_v60, %v4394_v18  ;;  %v4489_v56 = vmul.f32 %v11041_v8, %v4393_v5  ;;  %v4770_v18 = vld [vmem:[#allocation3 + $0x40] sm:$0xff] (!%p6085_p3) }
 0xaa2   : > { %v4362_v49 = vadd.f32 %v4337_v33, %v4314_v22  ;;  %v4396_v22 = vld [vmem:[#allocation4 + $0x1b8] sm:$0xff] }
 0xaa3   : > { %4381 = vst.msk [vmem:[#allocation3 + $0x1c8] sm:$0xff] %vm1333_vm4, %v4365_v34  ;;  %v4492_v35 = vmul.f32 %v11055_v3, %v4396_v22 }
 0xaa4   : > { %4378 = vst.msk [vmem:[#allocation3 + $0x1b0] sm:$0xff] %vm1333_vm4, %v4362_v49  ;;  %v4347_v39 = vpop.xlane.xlu0 %4346  ;;  %v4491_v49 = vmul.f32 %v11045_v52, %v4395_v19 }
 0xaa5   : > { %v4367_v29 = vadd.f32 %v4347_v39, %v4319_v43  ;;  %v4341_v37 = vpop.xlane.xlu1 %4340  ;;  %v4398_v43 = vld [vmem:[#allocation4 + $0x1c8] sm:$0xff]  ;;  %v4397_v39 = vld [vmem:[#allocation4 + $0x1c0] sm:$0xff] }
 0xaa6   : > { %v4364_v38 = vadd.f32 %v4341_v37, %v4316_v53  ;;  %v4493_v37 = vmul.f32 %v11049_v25, %v4397_v39 }
 0xaa7   : > { %4383 = vst.msk [vmem:[#allocation3 + $0x1d8] sm:$0xff] %vm1333_vm4, %v4367_v29  ;;  %v4494_v29 = vmul.f32 %v11059_v23, %v4398_v43 }
 0xaa8   : > { %4380 = vst.msk [vmem:[#allocation3 + $0x1c0] sm:$0xff] %vm1333_vm4, %v4364_v38  ;;  %v4351_v44 = vpop.xlane.xlu0 %4350  ;;  %v4399_v38 = vld [vmem:[#allocation4 + $0x1d0] sm:$0xff] }
 0xaa9   : > { %v4369_v6 = vadd.f32 %v4351_v44, %v4321_v54  ;;  %v4345_v24 = vpop.xlane.xlu1 %4344  ;;  %v4495_v51 = vmul.f32 %v11053_v0, %v4399_v38  ;;  %v4403_v0 = vld [vmem:[#allocation4 + $0x1f0] sm:$0xff] }
 0xaaa   : > { %v4366_v1 = vadd.f32 %v4345_v24, %v4318_v4  ;;  %v4496_v4 = vmul.f32 %v11062_v2, %v4400_v40  ;;  %v4401_v24 = vld [vmem:[#allocation4 + $0x1e0] sm:$0xff] }
 0xaab   : > { %4385 = vst.msk [vmem:[#allocation3 + $0x1e8] sm:$0xff] %vm1333_vm4, %v4369_v6  ;;  %v4402_v6 = vld [vmem:[#allocation4 + $0x1e8] sm:$0xff] }
 0xaac   : > { %4382 = vst.msk [vmem:[#allocation3 + $0x1d0] sm:$0xff] %vm1333_vm4, %v4366_v1  ;;  %v4355_v26 = vpop.xlane.xlu0 %4354 }
 0xaad   : > { %v4371_v12 = vadd.f32 %v4355_v26, %v4323_v15  ;;  %v4349_v11 = vpop.xlane.xlu1 %4348  ;;  %v4498_v15 = vmul.f32 %v11068_v7, %v4402_v6  ;;  %v4497_v26 = vmul.f32 %v11057_v61, %v4401_v24 }
 0xaae   : > { %v4368_v21 = vadd.f32 %v4349_v11, %v4320_v55  ;;  %v4404_v55 = vld [vmem:[#allocation4 + $0x1f8] sm:$0xff] }
 0xaaf   : > { %4387 = vst.msk [vmem:[#allocation3 + $0x1f8] sm:$0xff] %vm1333_vm4, %v4371_v12 }
 0xab0   : > { %4384 = vst.msk [vmem:[#allocation3 + $0x1e0] sm:$0xff] %vm1333_vm4, %v4368_v21 }
 0xab1   : > { %v4353_v59 = vpop.xlane.xlu1 %4352 }
 0xab2   : > { %v4370_v30 = vadd.f32 %v4353_v59, %v4322_v28 }
 0xab4   : > { %4386 = vst.msk [vmem:[#allocation3 + $0x1f0] sm:$0xff] %vm1333_vm4, %v4370_v30  ;;  %v4478_v11 = vpop.permute.xlu0 %4477 }
 0xab5   : > { %v4483_v2 = vpop.permute.xlu1 %4482  ;;  %v4499_v30 = vmul.f32 %v4478_v11, %v4403_v0  ;;  %v4970_v0 = vld [vmem:[#allocation3 + $0x80] sm:$0xff] (!%p6085_p3) }
 0xab6   : > { %v4500_v59 = vmul.f32 %v4483_v2, %v4404_v55 }
 0xac2   : > { %v6770_v63 = vpop.f32.mrb[48].mxu0 }
 0xac3   : > { %v4711_v17 = vadd.f32 %v6770_v63, %v4486_v50  ;;  %v4631_v57 = vpop.f32.mrb[49].mxu0  ;;  %v4764_v50 = vld [vmem:[#allocation3 + $0x10] sm:$0xff] (!%p6085_p3)  ;;  %v7848_v63 = vmov (!%p6085_p3), 0  }
 0xac4   : > { %v4710_v45 = vadd.f32 %v4631_v57, %v4485_v62  ;;  %v4762_v62 = vld [vmem:[#allocation3] sm:$0xff] (!%p6085_p3)  ;;  %7627 = vset.pattern.permute.xlu1 (!%p6085_p3), %v7848_v63  ;;  %7626 = vset.pattern.permute.xlu0 (!%p6085_p3), %v7848_v63  ;;  %7628 = vrcp.f32 (!%p6085_p3), %v4764_v50 }
 0xac5   : > { %4727 = vst.msk [vmem:[#allocation4 + $0x188] sm:$0xff] %vm771_vm2, %v4711_v17  ;;  %7630 = vrcp.f32 (!%p6085_p3), %v4762_v62  ;;  %v4767_v17 = vld [vmem:[#allocation3 + $0x28] sm:$0xff] (!%p6085_p3)  ;;  %v4766_v57 = vld [vmem:[#allocation3 + $0x20] sm:$0xff] (!%p6085_p3) }
 0xac6   : > { %4726 = vst.msk [vmem:[#allocation4 + $0x180] sm:$0xff] %vm771_vm2, %v4710_v45  ;;  %v6773_v47 = vpop.f32.mrb[50].mxu0  ;;  %7632 = vrcp.f32 (!%p6085_p3), %v4765_v48  ;;  %v4769_v45 = vld [vmem:[#allocation3 + $0x38] sm:$0xff] (!%p6085_p3) }
 0xac7   : > { %v4713_v27 = vadd.f32 %v6773_v47, %v4488_v58  ;;  %v4641_v14 = vpop.f32.mrb[51].mxu0  ;;  %7634 = vrcp.f32 (!%p6085_p3), %v4763_v46  ;;  %v4768_v58 = vld [vmem:[#allocation3 + $0x30] sm:$0xff] (!%p6085_p3)  ;;  %v4773_v47 = vld [vmem:[#allocation3 + $0x58] sm:$0xff] (!%p6085_p3) }
 0xac8   : > { %v4712_v20 = vadd.f32 %v4641_v14, %v4487_v16  ;;  %7636 = vrcp.f32 (!%p6085_p3), %v4767_v17  ;;  %v4771_v16 = vld [vmem:[#allocation3 + $0x48] sm:$0xff] (!%p6085_p3) }
 0xac9   : > { %4729 = vst.msk [vmem:[#allocation4 + $0x198] sm:$0xff] %vm771_vm2, %v4713_v27  ;;  %7638 = vrcp.f32 (!%p6085_p3), %v4766_v57  ;;  %v11128_v27 = vld [vmem:[#allocation3 + $0x50] sm:$0xff] (!%p6085_p3) }
 0xaca   : > { %4728 = vst.msk [vmem:[#allocation4 + $0x190] sm:$0xff] %vm771_vm2, %v4712_v20  ;;  %v6776_v13 = vpop.f32.mrb[52].mxu0  ;;  %7640 = vrcp.f32 (!%p6085_p3), %v4769_v45 }
 0xacb   : > { %v4715_v10 = vadd.f32 %v6776_v13, %v4490_v9  ;;  %v4651_v34 = vpop.f32.mrb[53].mxu0  ;;  %7642 = vrcp.f32 (!%p6085_p3), %v4768_v58 }
 0xacc   : > { %v4714_v33 = vadd.f32 %v4651_v34, %v4489_v56  ;;  %7644 = vrcp.f32 (!%p6085_p3), %v4771_v16 }
 0xacd   : > { %4731 = vst.msk [vmem:[#allocation4 + $0x1a8] sm:$0xff] %vm771_vm2, %v4715_v10  ;;  %7646 = vrcp.f32 (!%p6085_p3), %v4770_v18  ;;  %v4775_v10 = vld [vmem:[#allocation3 + $0x68] sm:$0xff] (!%p6085_p3) }
 0xace   : > { %4730 = vst.msk [vmem:[#allocation4 + $0x1a0] sm:$0xff] %vm771_vm2, %v4714_v33  ;;  %v6779_v60 = vpop.f32.mrb[54].mxu0  ;;  %v7629_v5 = vpop.eup (!%p6085_p3), %7628  ;;  %7648 = vrcp.f32 (!%p6085_p3), %v4773_v47 }
 0xacf   : > { %v4717_v8 = vadd.f32 %v6779_v60, %v4492_v35  ;;  %v4661_v53 = vpop.f32.mrb[55].mxu0  ;;  %v7631_v14 = vpop.eup (!%p6085_p3), %7630  ;;  %v4796_v20 = vmul.f32 (!%p6085_p3), %v7629_v5, %v4764_v50  ;;  %7650 = vrcp.f32 (!%p6085_p3), %v11128_v27 }
 0xad0   : > { %v4716_v42 = vadd.f32 %v4661_v53, %v4491_v49  ;;  %v7633_v9 = vpop.eup (!%p6085_p3), %7632  ;;  %v4794_v56 = vmul.f32 (!%p6085_p3), %v7631_v14, %v4762_v62  ;;  %v11131_v49 = vld [vmem:[#allocation3 + $0x60] sm:$0xff] (!%p6085_p3)  ;;  %7652 = vrcp.f32 (!%p6085_p3), %v4775_v10 }
 0xad1   : > { %4733 = vst.msk [vmem:[#allocation4 + $0x1b8] sm:$0xff] %vm771_vm2, %v4717_v8  ;;  %v7635_v22 = vpop.eup (!%p6085_p3), %7634  ;;  %v4812_v13 = vsub.f32 (!%p6085_p3), 2.0, %v4796_v20  ;;  %v4797_v19 = vmul.f32 (!%p6085_p3), %v7633_v9, %v4765_v48  ;;  %7654 = vrcp.f32 (!%p6085_p3), %v11131_v49 }
 0xad2   : > { %4732 = vst.msk [vmem:[#allocation4 + $0x1b0] sm:$0xff] %vm771_vm2, %v4716_v42  ;;  %v6782_v3 = vpop.f32.mrb[56].mxu0  ;;  %v7637_v34 = vpop.eup (!%p6085_p3), %7636  ;;  %v4810_v33 = vsub.f32 (!%p6085_p3), 2.0, %v4794_v56  ;;  %v4795_v35 = vmul.f32 (!%p6085_p3), %v7635_v22, %v4763_v46  ;;  %v4975_v46 = vld [vmem:[#allocation3 + $0xa8] sm:$0xff] (!%p6085_p3) }
 0xad3   : > { %v4719_v52 = vadd.f32 %v6782_v3, %v4494_v29  ;;  %v4671_v54 = vpop.f32.mrb[57].mxu0  ;;  %v7639_v43 = vpop.eup (!%p6085_p3), %7638  ;;  %v4828_v60 = vmul.f32 (!%p6085_p3), %v7629_v5, %v4812_v13  ;;  %v4813_v39 = vsub.f32 (!%p6085_p3), 2.0, %v4797_v19  ;;  %v4799_v8 = vmul.f32 (!%p6085_p3), %v7637_v34, %v4767_v17  ;;  %v4976_v13 = vld [vmem:[#allocation3 + $0xb0] sm:$0xff] (!%p6085_p3) }
 0xad4   : > { %v4718_v44 = vadd.f32 %v4671_v54, %v4493_v37  ;;  %v7641_v53 = vpop.eup (!%p6085_p3), %7640  ;;  %v4826_v42 = vmul.f32 (!%p6085_p3), %v7631_v14, %v4810_v33  ;;  %v4811_v29 = vsub.f32 (!%p6085_p3), 2.0, %v4795_v35  ;;  %v4798_v37 = vmul.f32 (!%p6085_p3), %v7639_v43, %v4766_v57  ;;  %v4777_v54 = vld [vmem:[#allocation3 + $0x78] sm:$0xff] (!%p6085_p3)  ;;  %v4979_v35 = vld [vmem:[#allocation3 + $0xc8] sm:$0xff] (!%p6085_p3) }
 0xad5   : > { %4735 = vst.msk [vmem:[#allocation4 + $0x1c8] sm:$0xff] %vm771_vm2, %v4719_v52  ;;  %v7643_v40 = vpop.eup (!%p6085_p3), %7642  ;;  %4870 = vperm.xlu1 (!%p6085_p3), %7627, %v4828_v60   ;;  %v4829_v3 = vmul.f32 (!%p6085_p3), %v7633_v9, %v4813_v39  ;;  %v4815_v38 = vsub.f32 (!%p6085_p3), 2.0, %v4799_v8  ;;  %v4801_v52 = vmul.f32 (!%p6085_p3), %v7641_v53, %v4769_v45  ;;  %7656 = vrcp.f32 (!%p6085_p3), %v4777_v54  ;;  %v4977_v14 = vld [vmem:[#allocation3 + $0xb8] sm:$0xff] (!%p6085_p3)  ;;  %v4978_v8 = vld [vmem:[#allocation3 + $0xc0] sm:$0xff] (!%p6085_p3) }
 0xad6   : > { %4734 = vst.msk [vmem:[#allocation4 + $0x1c0] sm:$0xff] %vm771_vm2, %v4718_v44  ;;  %v6785_v23 = vpop.f32.mrb[58].mxu0  ;;  %v7645_v44 = vpop.eup (!%p6085_p3), %7644  ;;  %4860 = vperm.xlu0 (!%p6085_p3), %7626, %v4826_v42   ;;  %v4800_v6 = vmul.f32 (!%p6085_p3), %v7643_v40, %v4768_v58 }
 0xad7   : > { %v4721_v25 = vadd.f32 %v6785_v23, %v4496_v4  ;;  %v4681_v41 = vpop.f32.mrb[59].mxu0  ;;  %v4827_v4 = vmul.f32 (!%p6085_p3), %v7635_v22, %v4811_v29  ;;  %v4776_v23 = vld [vmem:[#allocation3 + $0x70] sm:$0xff] (!%p6085_p3)  ;;  %v7647_v24 = vpop.eup (!%p6085_p3), %7646 }
 0xad8   : > { %v4720_v1 = vadd.f32 %v4681_v41, %v4495_v51  ;;  %v4814_v51 = vsub.f32 (!%p6085_p3), 2.0, %v4798_v37  ;;  %v4817_v41 = vsub.f32 (!%p6085_p3), 2.0, %v4801_v52  ;;  %7658 = vrcp.f32 (!%p6085_p3), %v4776_v23 }
 0xad9   : > { %4737 = vst.msk [vmem:[#allocation4 + $0x1d8] sm:$0xff] %vm771_vm2, %v4721_v25  ;;  %4875 = vperm.xlu1 (!%p6085_p3), %7627, %v4829_v3   ;;  %v4831_v25 = vmul.f32 (!%p6085_p3), %v7637_v34, %v4815_v38  ;;  %v4816_v2 = vsub.f32 (!%p6085_p3), 2.0, %v4800_v6 }
 0xada   : > { %4736 = vst.msk [vmem:[#allocation4 + $0x1d0] sm:$0xff] %vm771_vm2, %v4720_v1  ;;  %v6788_v12 = vpop.f32.mrb[60].mxu0  ;;  %v4803_v1 = vmul.f32 (!%p6085_p3), %v7645_v44, %v4771_v16  ;;  %4865 = vperm.xlu0 (!%p6085_p3), %7626, %v4827_v4   ;;  %v4830_v55 = vmul.f32 (!%p6085_p3), %v7639_v43, %v4814_v51  ;;  %v4974_v16 = vld [vmem:[#allocation3 + $0xa0] sm:$0xff] (!%p6085_p3) }
 0xadb   : > { %v4723_v36 = vadd.f32 %v6788_v12, %v4498_v15  ;;  %v4691_v21 = vpop.f32.mrb[61].mxu0  ;;  %v4971_v15 = vld [vmem:[#allocation3 + $0x88] sm:$0xff] (!%p6085_p3)  ;;  %v4802_v12 = vmul.f32 (!%p6085_p3), %v7647_v24, %v4770_v18 }
 0xadc   : > { %v4722_v28 = vadd.f32 %v4691_v21, %v4497_v26  ;;  %4761 = sbr.rel (%p6085_p3) target bundleno = 3133 (0xc3d), region = 109  ;;  %v7649_v26 = vpop.eup (!%p6085_p3), %7648  ;;  %7660 = vrcp.f32 (!%p6085_p3), %v4971_v15  ;;  %v4819_v21 = vsub.f32 (!%p6085_p3), 2.0, %v4803_v1 }
 0xadd   : > { %4739 = vst.msk [vmem:[#allocation4 + $0x1e8] sm:$0xff] %vm771_vm2, %v4723_v36  ;;  %v7651_v11 = vpop.eup (!%p6085_p3), %7650  ;;  %4885 = vperm.xlu1 (!%p6085_p3), %7627, %v4831_v25   ;;  %v4833_v36 = vmul.f32 (!%p6085_p3), %v7641_v53, %v4817_v41  ;;  %7662 = vrcp.f32 (!%p6085_p3), %v4970_v0 }
 0xade   : > { %4738 = vst.msk [vmem:[#allocation4 + $0x1e0] sm:$0xff] %vm771_vm2, %v4722_v28  ;;  %v6791_v7 = vpop.f32.mrb[62].mxu0  ;;  %v4805_v28 = vmul.f32 (!%p6085_p3), %v7649_v26, %v4773_v47  ;;  %4880 = vperm.xlu0 (!%p6085_p3), %7626, %v4830_v55   ;;  %v4835_v62 = vmul.f32 (!%p6085_p3), %v7645_v44, %v4819_v21  ;;  %v4980_v44 = vld [vmem:[#allocation3 + $0xd0] sm:$0xff] (!%p6085_p3) }
 0xadf   : > { %v4725_v31 = vadd.f32 %v6791_v7, %v4500_v59  ;;  %v4701_v32 = vpop.f32.mrb[63].mxu0  ;;  %v4973_v59 = vld [vmem:[#allocation3 + $0x98] sm:$0xff] (!%p6085_p3)  ;;  %v4832_v7 = vmul.f32 (!%p6085_p3), %v7643_v40, %v4816_v2 }
 0xae0   : > { %v4724_v61 = vadd.f32 %v4701_v32, %v4499_v30  ;;  %v7653_v30 = vpop.eup (!%p6085_p3), %7652  ;;  %v4804_v32 = vmul.f32 (!%p6085_p3), %v7651_v11, %v11128_v27  ;;  %7664 = vrcp.f32 (!%p6085_p3), %v4973_v59  ;;  %v4821_v48 = vsub.f32 (!%p6085_p3), 2.0, %v4805_v28  ;;  %v4981_v40 = vld [vmem:[#allocation3 + $0xd8] sm:$0xff] (!%p6085_p3) }
 0xae1   : > { %4741 = vst.msk [vmem:[#allocation4 + $0x1f8] sm:$0xff] %vm771_vm2, %v4725_v31  ;;  %v4818_v31 = vsub.f32 (!%p6085_p3), 2.0, %v4802_v12  ;;  %v7655_v50 = vpop.eup (!%p6085_p3), %7654  ;;  %4895 = vperm.xlu1 (!%p6085_p3), %7627, %v4833_v36   ;;  %v4807_v63 = vmul.f32 (!%p6085_p3), %v7653_v30, %v4775_v10 }
 0xae2   : > { %4740 = vst.msk [vmem:[#allocation4 + $0x1f0] sm:$0xff] %vm771_vm2, %v4724_v61  ;;  %v4972_v61 = vld [vmem:[#allocation3 + $0x90] sm:$0xff] (!%p6085_p3)  ;;  %v7657_v17 = vpop.eup (!%p6085_p3), %7656  ;;  %4890 = vperm.xlu0 (!%p6085_p3), %7626, %v4832_v7   ;;  %v4820_v45 = vsub.f32 (!%p6085_p3), 2.0, %v4804_v32  ;;  %v4806_v58 = vmul.f32 (!%p6085_p3), %v7655_v50, %v11131_v49  ;;  %v4837_v47 = vmul.f32 (!%p6085_p3), %v7649_v26, %v4821_v48  ;;  %v4982_v26 = vld [vmem:[#allocation3 + $0xe0] sm:$0xff] (!%p6085_p3) }
 0xae3   : > { %7666 = vrcp.f32 %v4972_v61  ;;  %v4834_v57 = vmul.f32 %v7647_v24, %v4818_v31  ;;  %v7659_v18 = vpop.eup %7658  ;;  %v4823_v5 = vsub.f32 2.0, %v4807_v63  ;;  %v4809_v27 = vmul.f32 %v7657_v17, %v4777_v54  ;;  %v4983_v24 = vld [vmem:[#allocation3 + $0xe8] sm:$0xff] }
 0xae4   : > { %7668 = vrcp.f32 %v4975_v46  ;;  %v4836_v9 = vmul.f32 %v7651_v11, %v4820_v45  ;;  %v4822_v56 = vsub.f32 2.0, %v4806_v58  ;;  %v4808_v22 = vmul.f32 %v7659_v18, %v4776_v23  ;;  %v4985_v11 = vld [vmem:[#allocation3 + $0xf8] sm:$0xff] }
 0xae5   : > { %4905 = vperm.xlu1 %7627, %v4835_v62   ;;  %7670 = vrcp.f32 %v4974_v16  ;;  %v4839_v10 = vmul.f32 %v7653_v30, %v4823_v5  ;;  %v4825_v34 = vsub.f32 2.0, %v4809_v27  ;;  %v4984_v30 = vld [vmem:[#allocation3 + $0xf0] sm:$0xff] }
 0xae6   : > { %v7661_v20 = vpop.eup %7660  ;;  %4900 = vperm.xlu0 %7626, %v4834_v57   ;;  %7672 = vrcp.f32 %v4977_v14  ;;  %v4838_v43 = vmul.f32 %v7655_v50, %v4822_v56  ;;  %v4824_v60 = vsub.f32 2.0, %v4808_v22  ;;  %v5244_v50 = vld [vmem:[#allocation3 + $0x108] sm:$0xff] }
 0xae7   : > { %v7663_v19 = vpop.eup %7662  ;;  %v5003_v33 = vmul.f32 %v7661_v20, %v4971_v15  ;;  %7674 = vrcp.f32 %v4976_v13  ;;  %v4841_v42 = vmul.f32 %v7657_v17, %v4825_v34  ;;  %v5243_v17 = vld [vmem:[#allocation3 + $0x100] sm:$0xff] }
 0xae8   : > { %v5002_v39 = vmul.f32 %v7663_v19, %v4970_v0  ;;  %7676 = vrcp.f32 %v4979_v35  ;;  %v4840_v38 = vmul.f32 %v7659_v18, %v4824_v60  ;;  %v5246_v18 = vld [vmem:[#allocation3 + $0x118] sm:$0xff] }
 0xae9   : > { %4915 = vperm.xlu1 %7627, %v4837_v47   ;;  %v5019_v29 = vsub.f32 2.0, %v5003_v33  ;;  %7678 = vrcp.f32 %v4978_v8 }
 0xaea   : > { %v7665_v49 = vpop.eup %7664  ;;  %4910 = vperm.xlu0 %7626, %v4836_v9   ;;  %v5018_v52 = vsub.f32 2.0, %v5002_v39  ;;  %7680 = vrcp.f32 %v4981_v40 }
 0xaeb   : > { %v5005_v37 = vmul.f32 %v7665_v49, %v4973_v59  ;;  %v5035_v51 = vmul.f32 %v7661_v20, %v5019_v29  ;;  %7682 = vrcp.f32 %v4980_v44  ;;  %v5245_v20 = vld [vmem:[#allocation3 + $0x110] sm:$0xff] }
 0xaec   : > { %v5034_v41 = vmul.f32 %v7663_v19, %v5018_v52  ;;  %7684 = vrcp.f32 %v4983_v24  ;;  %v5248_v19 = vld [vmem:[#allocation3 + $0x128] sm:$0xff] }
 0xaed   : > { %v7667_v53 = vpop.eup %7666  ;;  %4925 = vperm.xlu1 %7627, %v4839_v10   ;;  %v5021_v6 = vsub.f32 2.0, %v5005_v37  ;;  %7686 = vrcp.f32 %v4982_v26 }
 0xaee   : > { %v7669_v3 = vpop.eup %7668  ;;  %4920 = vperm.xlu0 %7626, %v4838_v43   ;;  %v5004_v54 = vmul.f32 %v7667_v53, %v4972_v61  ;;  %7688 = vrcp.f32 %v4985_v11 }
 0xaef   : > { %v7671_v4 = vpop.eup %7670  ;;  %v5007_v23 = vmul.f32 %v7669_v3, %v4975_v46  ;;  %v5037_v2 = vmul.f32 %v7665_v49, %v5021_v6  ;;  %7690 = vrcp.f32 %v4984_v30  ;;  %v5247_v49 = vld [vmem:[#allocation3 + $0x120] sm:$0xff] }
 0xaf0   : > { %v7673_v25 = vpop.eup %7672  ;;  %v5020_v1 = vsub.f32 2.0, %v5004_v54  ;;  %v5006_v15 = vmul.f32 %v7671_v4, %v4974_v16  ;;  %7692 = vrcp.f32 %v5244_v50 }
 0xaf1   : > { %4935 = vperm.xlu1 %7627, %v4841_v42   ;;  %v7675_v55 = vpop.eup %7674  ;;  %v5023_v12 = vsub.f32 2.0, %v5007_v23  ;;  %v5009_v0 = vmul.f32 %v7673_v25, %v4977_v14  ;;  %7694 = vrcp.f32 %v5243_v17 }
 0xaf2   : > { %4930 = vperm.xlu0 %7626, %v4840_v38   ;;  %v7677_v36 = vpop.eup %7676  ;;  %v5036_v21 = vmul.f32 %v7667_v53, %v5020_v1  ;;  %v5022_v28 = vsub.f32 2.0, %v5006_v15  ;;  %v5008_v59 = vmul.f32 %v7675_v55, %v4976_v13  ;;  %7696 = vrcp.f32 %v5246_v18  ;;  %v5250_v53 = vld [vmem:[#allocation3 + $0x138] sm:$0xff] }
 0xaf3   : > { %v7679_v7 = vpop.eup %7678  ;;  %v5039_v31 = vmul.f32 %v7669_v3, %v5023_v12  ;;  %v5025_v32 = vsub.f32 2.0, %v5009_v0  ;;  %v5011_v61 = vmul.f32 %v7677_v36, %v4979_v35  ;;  %7698 = vrcp.f32 %v5245_v20  ;;  %v5249_v3 = vld [vmem:[#allocation3 + $0x130] sm:$0xff] }
 0xaf4   : > { %v7681_v62 = vpop.eup %7680  ;;  %v5038_v48 = vmul.f32 %v7671_v4, %v5022_v28  ;;  %v5024_v63 = vsub.f32 2.0, %v5008_v59  ;;  %v5010_v46 = vmul.f32 %v7679_v7, %v4978_v8  ;;  %7700 = vrcp.f32 %v5248_v19  ;;  %v5451_v4 = vld [vmem:[#allocation3 + $0x180] sm:$0xff] }
 0xaf5   : > { %5073 = vperm.xlu1 %7627, %v5035_v51   ;;  %v7683_v57 = vpop.eup %7682  ;;  %v5041_v45 = vmul.f32 %v7673_v25, %v5025_v32  ;;  %v5027_v58 = vsub.f32 2.0, %v5011_v61  ;;  %v5013_v16 = vmul.f32 %v7681_v62, %v4981_v40  ;;  %7702 = vrcp.f32 %v5247_v49  ;;  %v5251_v25 = vld [vmem:[#allocation3 + $0x140] sm:$0xff] }
 0xaf6   : > { %5068 = vperm.xlu0 %7626, %v5034_v41   ;;  %v7685_v47 = vpop.eup %7684  ;;  %v5040_v5 = vmul.f32 %v7675_v55, %v5024_v63  ;;  %v5026_v27 = vsub.f32 2.0, %v5010_v46  ;;  %v5012_v14 = vmul.f32 %v7683_v57, %v4980_v44  ;;  %7704 = vrcp.f32 %v5250_v53  ;;  %v5453_v55 = vld [vmem:[#allocation3 + $0x190] sm:$0xff] }
 0xaf7   : > { %v7687_v9 = vpop.eup %7686  ;;  %v5043_v56 = vmul.f32 %v7677_v36, %v5027_v58  ;;  %v5029_v22 = vsub.f32 2.0, %v5013_v16  ;;  %v5015_v13 = vmul.f32 %v7685_v47, %v4983_v24  ;;  %7706 = vrcp.f32 %v5249_v3  ;;  %v5452_v36 = vld [vmem:[#allocation3 + $0x188] sm:$0xff] }
 0xaf8   : > { %v7689_v10 = vpop.eup %7688  ;;  %v5042_v34 = vmul.f32 %v7679_v7, %v5026_v27  ;;  %v5028_v33 = vsub.f32 2.0, %v5012_v14  ;;  %v5014_v35 = vmul.f32 %v7687_v9, %v4982_v26  ;;  %7708 = vrcp.f32 %v5451_v4  ;;  %v5455_v7 = vld [vmem:[#allocation3 + $0x1a0] sm:$0xff] }
 0xaf9   : > { %5083 = vperm.xlu1 %7627, %v5037_v2   ;;  %v7691_v43 = vpop.eup %7690  ;;  %v5045_v60 = vmul.f32 %v7681_v62, %v5029_v22  ;;  %v5031_v39 = vsub.f32 2.0, %v5015_v13  ;;  %v5017_v8 = vmul.f32 %v7689_v10, %v4985_v11  ;;  %7710 = vrcp.f32 %v5251_v25  ;;  %v5454_v62 = vld [vmem:[#allocation3 + $0x198] sm:$0xff] }
 0xafa   : > { %5078 = vperm.xlu0 %7626, %v5036_v21   ;;  %v7693_v42 = vpop.eup %7692  ;;  %v5044_v29 = vmul.f32 %v7683_v57, %v5028_v33  ;;  %v5030_v37 = vsub.f32 2.0, %v5014_v35  ;;  %v5016_v40 = vmul.f32 %v7691_v43, %v4984_v30  ;;  %7712 = vrcp.f32 %v5453_v55  ;;  %v5457_v57 = vld [vmem:[#allocation3 + $0x1b0] sm:$0xff] }
 0xafb   : > { %v7695_v38 = vpop.eup %7694  ;;  %v5047_v52 = vmul.f32 %v7685_v47, %v5031_v39  ;;  %v5033_v54 = vsub.f32 2.0, %v5017_v8  ;;  %v5276_v44 = vmul.f32 %v7693_v42, %v5244_v50  ;;  %7714 = vrcp.f32 %v5452_v36  ;;  %v5456_v47 = vld [vmem:[#allocation3 + $0x1a8] sm:$0xff] }
 0xafc   : > { %v7697_v51 = vpop.eup %7696  ;;  %v5046_v6 = vmul.f32 %v7687_v9, %v5030_v37  ;;  %v5032_v23 = vsub.f32 2.0, %v5016_v40  ;;  %v5275_v24 = vmul.f32 %v7695_v38, %v5243_v17  ;;  %7716 = vrcp.f32 %v5455_v7  ;;  %v5459_v9 = vld [vmem:[#allocation3 + $0x1c0] sm:$0xff] }
 0xafd   : > { %5093 = vperm.xlu1 %7627, %v5039_v31   ;;  %v7699_v41 = vpop.eup %7698  ;;  %v5049_v1 = vmul.f32 %v7689_v10, %v5033_v54  ;;  %v5292_v15 = vsub.f32 2.0, %v5276_v44  ;;  %v5278_v26 = vmul.f32 %v7697_v51, %v5246_v18  ;;  %7718 = vrcp.f32 %v5454_v62  ;;  %v5458_v10 = vld [vmem:[#allocation3 + $0x1b8] sm:$0xff] }
 0xafe   : > { %5088 = vperm.xlu0 %7626, %v5038_v48   ;;  %v7701_v2 = vpop.eup %7700  ;;  %v5048_v12 = vmul.f32 %v7691_v43, %v5032_v23  ;;  %v5291_v0 = vsub.f32 2.0, %v5275_v24  ;;  %v5277_v11 = vmul.f32 %v7699_v41, %v5245_v20  ;;  %7720 = vrcp.f32 %v5457_v57  ;;  %v5461_v43 = vld [vmem:[#allocation3 + $0x1d0] sm:$0xff] }
 0xaff   : > { %v7703_v21 = vpop.eup %7702  ;;  %v5308_v28 = vmul.f32 %v7693_v42, %v5292_v15  ;;  %v5294_v59 = vsub.f32 2.0, %v5278_v26  ;;  %v5280_v30 = vmul.f32 %v7701_v2, %v5248_v19  ;;  %7722 = vrcp.f32 %v5456_v47  ;;  %v5460_v42 = vld [vmem:[#allocation3 + $0x1c8] sm:$0xff] }
 0xb00   : > { %v7705_v31 = vpop.eup %7704  ;;  %v5307_v32 = vmul.f32 %v7695_v38, %v5291_v0  ;;  %v5293_v61 = vsub.f32 2.0, %v5277_v11  ;;  %v5279_v50 = vmul.f32 %v7703_v21, %v5247_v49  ;;  %7724 = vrcp.f32 %v5459_v9  ;;  %v5463_v38 = vld [vmem:[#allocation3 + $0x1e0] sm:$0xff] }
 0xb01   : > { %5103 = vperm.xlu1 %7627, %v5041_v45   ;;  %v7707_v48 = vpop.eup %7706  ;;  %v5310_v63 = vmul.f32 %v7697_v51, %v5294_v59  ;;  %v5296_v46 = vsub.f32 2.0, %v5280_v30  ;;  %v5282_v17 = vmul.f32 %v7705_v31, %v5250_v53  ;;  %7726 = vrcp.f32 %v5458_v10  ;;  %v5462_v51 = vld [vmem:[#allocation3 + $0x1d8] sm:$0xff] }
 0xb02   : > { %5098 = vperm.xlu0 %7626, %v5040_v5   ;;  %v7709_v45 = vpop.eup %7708  ;;  %v5309_v58 = vmul.f32 %v7699_v41, %v5293_v61  ;;  %v5295_v16 = vsub.f32 2.0, %v5279_v50  ;;  %v5281_v18 = vmul.f32 %v7707_v48, %v5249_v3  ;;  %7728 = vrcp.f32 %v5461_v43  ;;  %v5465_v41 = vld [vmem:[#allocation3 + $0x1f0] sm:$0xff] }
 0xb03   : > { %v7711_v5 = vpop.eup %7710  ;;  %v5312_v27 = vmul.f32 %v7701_v2, %v5296_v46  ;;  %v5298_v14 = vsub.f32 2.0, %v5282_v17  ;;  %v5483_v20 = vmul.f32 %v7709_v45, %v5451_v4  ;;  %7730 = vrcp.f32 %v5460_v42  ;;  %v5464_v2 = vld [vmem:[#allocation3 + $0x1e8] sm:$0xff] }
 0xb04   : > { %v5311_v22 = vmul.f32 %v7703_v21, %v5295_v16  ;;  %v5297_v13 = vsub.f32 2.0, %v5281_v18  ;;  %v5283_v19 = vmul.f32 %v7711_v5, %v5251_v25  ;;  %7732 = vrcp.f32 %v5463_v38  ;;  %v5252_v21 = vld [vmem:[#allocation3 + $0x148] sm:$0xff] }
 0xb05   : > { %5113 = vperm.xlu1 %7627, %v5043_v56   ;;  %v7713_v56 = vpop.eup %7712  ;;  %v5314_v33 = vmul.f32 %v7705_v31, %v5298_v14  ;;  %v5499_v35 = vsub.f32 2.0, %v5483_v20  ;;  %7734 = vrcp.f32 %v5462_v51  ;;  %v5466_v31 = vld [vmem:[#allocation3 + $0x1f8] sm:$0xff] }
 0xb06   : > { %5108 = vperm.xlu0 %7626, %v5042_v34   ;;  %v7715_v34 = vpop.eup %7714  ;;  %v5485_v49 = vmul.f32 %v7713_v56, %v5453_v55  ;;  %v5313_v39 = vmul.f32 %v7707_v48, %v5297_v13  ;;  %v5299_v8 = vsub.f32 2.0, %v5283_v19  ;;  %7736 = vrcp.f32 %v5465_v41  ;;  %v5254_v48 = vld [vmem:[#allocation3 + $0x158] sm:$0xff] }
 0xb07   : > { %v5484_v53 = vmul.f32 %v7715_v34, %v5452_v36  ;;  %v5515_v37 = vmul.f32 %v7709_v45, %v5499_v35  ;;  %7738 = vrcp.f32 %v5464_v2  ;;  %v5253_v45 = vld [vmem:[#allocation3 + $0x150] sm:$0xff] }
 0xb08   : > { %v5501_v40 = vsub.f32 2.0, %v5485_v49  ;;  %v5315_v54 = vmul.f32 %v7711_v5, %v5299_v8  ;;  %7740 = vrcp.f32 %v5252_v21 }
 0xb09   : > { %5123 = vperm.xlu1 %7627, %v5045_v60   ;;  %v7717_v60 = vpop.eup %7716  ;;  %v5500_v44 = vsub.f32 2.0, %v5484_v53  ;;  %7742 = vrcp.f32 %v5466_v31 }
 0xb0a   : > { %5118 = vperm.xlu0 %7626, %v5044_v29   ;;  %v7719_v29 = vpop.eup %7718  ;;  %v5487_v3 = vmul.f32 %v7717_v60, %v5455_v7  ;;  %v5517_v23 = vmul.f32 %v7713_v56, %v5501_v40  ;;  %7744 = vrcp.f32 %v5254_v48 }
 0xb0b   : > { %v5486_v4 = vmul.f32 %v7719_v29, %v5454_v62  ;;  %v5516_v15 = vmul.f32 %v7715_v34, %v5500_v44  ;;  %7746 = vrcp.f32 %v5253_v45 }
 0xb0c   : > { %v5503_v24 = vsub.f32 2.0, %v5487_v3 }
 0xb0d   : > { %5133 = vperm.xlu1 %7627, %v5047_v52   ;;  %v7721_v52 = vpop.eup %7720  ;;  %v5502_v26 = vsub.f32 2.0, %v5486_v4 }
 0xb0e   : > { %5128 = vperm.xlu0 %7626, %v5046_v6   ;;  %v7723_v6 = vpop.eup %7722  ;;  %v5489_v25 = vmul.f32 %v7721_v52, %v5457_v57  ;;  %v5519_v0 = vmul.f32 %v7717_v60, %v5503_v24 }
 0xb0f   : > { %v5488_v55 = vmul.f32 %v7723_v6, %v5456_v47  ;;  %v5518_v59 = vmul.f32 %v7719_v29, %v5502_v26 }
 0xb10   : > { %v5505_v11 = vsub.f32 2.0, %v5489_v25  ;;  %v4844_v25 = vld [vmem:[#allocation4 + $0x10] sm:$0xff] }
 0xb11   : > { %5143 = vperm.xlu1 %7627, %v5049_v1   ;;  %v7725_v1 = vpop.eup %7724  ;;  %v5504_v30 = vsub.f32 2.0, %v5488_v55 }
 0xb12   : > { %5138 = vperm.xlu0 %7626, %v5048_v12   ;;  %v7727_v12 = vpop.eup %7726  ;;  %v5491_v36 = vmul.f32 %v7725_v1, %v5459_v9  ;;  %v5521_v61 = vmul.f32 %v7721_v52, %v5505_v11 }
 0xb13   : > { %v5490_v7 = vmul.f32 %v7727_v12, %v5458_v10  ;;  %v5520_v46 = vmul.f32 %v7723_v6, %v5504_v30 }
 0xb14   : > { %v5507_v50 = vsub.f32 2.0, %v5491_v36 }
 0xb15   : > { %5346 = vperm.xlu1 %7627, %v5308_v28   ;;  %v7729_v28 = vpop.eup %7728  ;;  %v5506_v17 = vsub.f32 2.0, %v5490_v7 }
 0xb16   : > { %5341 = vperm.xlu0 %7626, %v5307_v32   ;;  %v7731_v32 = vpop.eup %7730  ;;  %v5493_v62 = vmul.f32 %v7729_v28, %v5461_v43  ;;  %v5523_v16 = vmul.f32 %v7725_v1, %v5507_v50  ;;  %v4848_v50 = vld [vmem:[#allocation4 + $0x30] sm:$0xff] }
 0xb17   : > { %v5492_v57 = vmul.f32 %v7731_v32, %v5460_v42 }
 0xb18   : > { %v5509_v18 = vsub.f32 2.0, %v5493_v62 }
 0xb19   : > { %5356 = vperm.xlu1 %7627, %v5310_v63   ;;  %v7733_v63 = vpop.eup %7732  ;;  %v5508_v14 = vsub.f32 2.0, %v5492_v57  ;;  %v4850_v57 = vld [vmem:[#allocation4 + $0x40] sm:$0xff] }
 0xb1a   : > { %5351 = vperm.xlu0 %7626, %v5309_v58   ;;  %v7735_v58 = vpop.eup %7734  ;;  %v5495_v47 = vmul.f32 %v7733_v63, %v5463_v38  ;;  %v5525_v56 = vmul.f32 %v7729_v28, %v5509_v18  ;;  %v4847_v28 = vld [vmem:[#allocation4 + $0x28] sm:$0xff] }
 0xb1b   : > { %v7737_v5 = vpop.eup %7736  ;;  %v5494_v20 = vmul.f32 %v7735_v58, %v5462_v51  ;;  %v5524_v10 = vmul.f32 %v7731_v32, %v5508_v14 }
 0xb1c   : > { %v7739_v9 = vpop.eup %7738  ;;  %v5497_v13 = vmul.f32 %v7737_v5, %v5465_v41  ;;  %v4842_v41 = vld [vmem:[#allocation4] sm:$0xff] }
 0xb1d   : > { %5366 = vperm.xlu1 %7627, %v5312_v27   ;;  %v5522_v27 = vmul.f32 %v7727_v12, %v5506_v17  ;;  %v7741_v19 = vpop.eup %7740  ;;  %v5510_v34 = vsub.f32 2.0, %v5494_v20  ;;  %v4843_v12 = vld [vmem:[#allocation4 + $0x8] sm:$0xff] }
 0xb1e   : > { %5361 = vperm.xlu0 %7626, %v5311_v22   ;;  %v5511_v22 = vsub.f32 2.0, %v5495_v47  ;;  %v7743_v35 = vpop.eup %7742  ;;  %v5513_v43 = vsub.f32 2.0, %v5497_v13  ;;  %v5284_v60 = vmul.f32 %v7741_v19, %v5252_v21  ;;  %v4851_v17 = vld [vmem:[#allocation4 + $0x48] sm:$0xff]  ;;  %v4853_v47 = vld [vmem:[#allocation4 + $0x58] sm:$0xff] }
 0xb1f   : > { %v5526_v8 = vmul.f32 %v7735_v58, %v5510_v34  ;;  %v5498_v42 = vmul.f32 %v7743_v35, %v5466_v31 }
 0xb20   : > { %v5527_v49 = vmul.f32 %v7733_v63, %v5511_v22  ;;  %v5300_v40 = vsub.f32 2.0, %v5284_v60  ;;  %v4854_v22 = vld [vmem:[#allocation4 + $0x60] sm:$0xff] }
 0xb21   : > { %5376 = vperm.xlu1 %7627, %v5314_v33   ;;  %v5496_v33 = vmul.f32 %v7739_v9, %v5464_v2  ;;  %v5514_v52 = vsub.f32 2.0, %v5498_v42  ;;  %v4845_v2 = vld [vmem:[#allocation4 + $0x18] sm:$0xff] }
 0xb22   : > { %5371 = vperm.xlu0 %7626, %v5313_v39   ;;  %v7745_v39 = vpop.eup %7744  ;;  %v5316_v44 = vmul.f32 %v7741_v19, %v5300_v40 }
 0xb23   : > { %v5512_v53 = vsub.f32 2.0, %v5496_v33  ;;  %v7747_v29 = vpop.eup %7746  ;;  %v5286_v3 = vmul.f32 %v7745_v39, %v5254_v48  ;;  %v5530_v51 = vmul.f32 %v7743_v35, %v5514_v52  ;;  %v4857_v33 = vld [vmem:[#allocation4 + $0x78] sm:$0xff]  ;;  %v4856_v35 = vld [vmem:[#allocation4 + $0x70] sm:$0xff] }
 0xb25   : > { %5549 = vperm.xlu1 %7627, %v5515_v37   ;;  %v5529_v37 = vmul.f32 %v7737_v5, %v5513_v43  ;;  %v5528_v38 = vmul.f32 %v7739_v9, %v5512_v53  ;;  %v5302_v4 = vsub.f32 2.0, %v5286_v3  ;;  %v4852_v5 = vld [vmem:[#allocation4 + $0x50] sm:$0xff]  ;;  %v5050_v53 = vld [vmem:[#allocation4 + $0x80] sm:$0xff]  ;;  %v5053_v3 = vld [vmem:[#allocation4 + $0x98] sm:$0xff] }
 0xb26   : > { %5381 = vperm.xlu0 %7626, %v5315_v54   ;;  %v5285_v54 = vmul.f32 %v7747_v29, %v5253_v45 }
 0xb28   : > { %v5301_v6 = vsub.f32 2.0, %v5285_v54 }
 0xb29   : > { %5559 = vperm.xlu1 %7627, %v5517_v23   ;;  %v5318_v23 = vmul.f32 %v7745_v39, %v5302_v4 }
 0xb2a   : > { %5554 = vperm.xlu0 %7626, %v5516_v15   ;;  %v5317_v24 = vmul.f32 %v7747_v29, %v5301_v6  ;;  %v5054_v6 = vld [vmem:[#allocation4 + $0xa0] sm:$0xff] }
 0xb2d   : > { %5569 = vperm.xlu1 %7627, %v5519_v0  }
 0xb2e   : > { %5564 = vperm.xlu0 %7626, %v5518_v59   ;;  %v4846_v59 = vld [vmem:[#allocation4 + $0x20] sm:$0xff] }
 0xb31   : > { %5579 = vperm.xlu1 %7627, %v5521_v61   ;;  %v4849_v61 = vld [vmem:[#allocation4 + $0x38] sm:$0xff] }
 0xb32   : > { %5574 = vperm.xlu0 %7626, %v5520_v46  }
 0xb35   : > { %5589 = vperm.xlu1 %7627, %v5523_v16  }
 0xb36   : > { %5584 = vperm.xlu0 %7626, %v5522_v27  }
 0xb39   : > { %5599 = vperm.xlu1 %7627, %v5525_v56   ;;  %v4855_v56 = vld [vmem:[#allocation4 + $0x68] sm:$0xff] }
 0xb3a   : > { %5594 = vperm.xlu0 %7626, %v5524_v10  }
 0xb3d   : > { %5609 = vperm.xlu1 %7627, %v5527_v49  }
 0xb3e   : > { %5604 = vperm.xlu0 %7626, %v5526_v8   ;;  %v5051_v8 = vld [vmem:[#allocation4 + $0x88] sm:$0xff] }
 0xb41   : > { %5619 = vperm.xlu1 %7627, %v5529_v37  }
 0xb42   : > { %5614 = vperm.xlu0 %7626, %v5528_v38   ;;  %v5052_v38 = vld [vmem:[#allocation4 + $0x90] sm:$0xff] }
 0xb45   : > { %5386 = vperm.xlu1 %7627, %v5316_v44  }
 0xb46   : > { %5624 = vperm.xlu0 %7626, %v5530_v51   ;;  %v5055_v51 = vld [vmem:[#allocation4 + $0xa8] sm:$0xff] }
 0xb49   : > { %5396 = vperm.xlu1 %7627, %v5318_v23   ;;  %v5256_v23 = vld [vmem:[#allocation3 + $0x168] sm:$0xff] }
 0xb4a   : > { %5391 = vperm.xlu0 %7626, %v5317_v24   ;;  %7748 = vrcp.f32 %v5256_v23 }
 0xb54   : > { %v4871_v1 = vpop.permute.xlu1 %4870 }
 0xb55   : > { %v4940_v15 = vmul.f32 %v4871_v1, %v4844_v25  ;;  %v4861_v26 = vpop.permute.xlu0 %4860  ;;  %v5255_v25 = vld [vmem:[#allocation3 + $0x160] sm:$0xff] }
 0xb56   : > { %v4938_v55 = vmul.f32 %v4861_v26, %v4842_v41  ;;  %v5057_v26 = vld [vmem:[#allocation4 + $0xb8] sm:$0xff]  ;;  %7750 = vrcp.f32 %v5255_v25 }
 0xb57   : > { %4956 = vst.msk [vmem:[%s8202_s27 + $0x20] sm:$0xff] %vm771_vm2, %v4940_v15 }
 0xb58   : > { %4954 = vst.msk [vmem:[%s8202_s27] sm:$0xff] %vm771_vm2, %v4938_v55  ;;  %v4876_v0 = vpop.permute.xlu1 %4875  ;;  %v5056_v55 = vld [vmem:[#allocation4 + $0xb0] sm:$0xff] }
 0xb59   : > { %v4941_v11 = vmul.f32 %v4876_v0, %v4845_v2  ;;  %v4866_v36 = vpop.permute.xlu0 %4865  ;;  %v5258_v2 = vld [vmem:[#allocation3 + $0x178] sm:$0xff]  ;;  %v5257_v0 = vld [vmem:[#allocation3 + $0x170] sm:$0xff] }
 0xb5a   : > { %v4939_v21 = vmul.f32 %v4866_v36, %v4843_v12  ;;  %7752 = vrcp.f32 %v5258_v2 }
 0xb5b   : > { %4957 = vst.msk [vmem:[%s8202_s27 + $0x30] sm:$0xff] %vm771_vm2, %v4941_v11  ;;  %7754 = vrcp.f32 %v5257_v0 }
 0xb5c   : > { %4955 = vst.msk [vmem:[%s8202_s27 + $0x10] sm:$0xff] %vm771_vm2, %v4939_v21  ;;  %v4886_v30 = vpop.permute.xlu1 %4885 }
 0xb5d   : > { %v4943_v7 = vmul.f32 %v4886_v30, %v4847_v28  ;;  %v4881_v31 = vpop.permute.xlu0 %4880  ;;  %v5059_v28 = vld [vmem:[#allocation4 + $0xc8] sm:$0xff] }
 0xb5e   : > { %v4942_v32 = vmul.f32 %v4881_v31, %v4846_v59  ;;  %v5058_v59 = vld [vmem:[#allocation4 + $0xc0] sm:$0xff] }
 0xb5f   : > { %4959 = vst.msk [vmem:[%s8202_s27 + $0x50] sm:$0xff] %vm771_vm2, %v4943_v7 }
 0xb60   : > { %4958 = vst.msk [vmem:[%s8202_s27 + $0x40] sm:$0xff] %vm771_vm2, %v4942_v32  ;;  %v4896_v62 = vpop.permute.xlu1 %4895 }
 0xb61   : > { %v4945_v48 = vmul.f32 %v4896_v62, %v4849_v61  ;;  %v4891_v63 = vpop.permute.xlu0 %4890  ;;  %v5061_v61 = vld [vmem:[#allocation4 + $0xd8] sm:$0xff]  ;;  %v7749_v62 = vpop.eup %7748 }
 0xb62   : > { %v4944_v46 = vmul.f32 %v4891_v63, %v4848_v50  ;;  %v5060_v50 = vld [vmem:[#allocation4 + $0xd0] sm:$0xff]  ;;  %v7751_v63 = vpop.eup %7750 }
 0xb63   : > { %4961 = vst.msk [vmem:[%s8202_s27 + $0x70] sm:$0xff] %vm771_vm2, %v4945_v48 }
 0xb64   : > { %4960 = vst.msk [vmem:[%s8202_s27 + $0x60] sm:$0xff] %vm771_vm2, %v4944_v46  ;;  %v4906_v45 = vpop.permute.xlu1 %4905 }
 0xb65   : > { %v4947_v58 = vmul.f32 %v4906_v45, %v4851_v17  ;;  %v4901_v16 = vpop.permute.xlu0 %4900  ;;  %v5063_v45 = vld [vmem:[#allocation4 + $0xe8] sm:$0xff] }
 0xb66   : > { %v4946_v18 = vmul.f32 %v4901_v16, %v4850_v57  ;;  %v5288_v16 = vmul.f32 %v7749_v62, %v5256_v23 }
 0xb67   : > { %4963 = vst.msk [vmem:[%s8202_s27 + $0x90] sm:$0xff] %vm771_vm2, %v4947_v58  ;;  %v5062_v58 = vld [vmem:[#allocation4 + $0xe0] sm:$0xff] }
 0xb68   : > { %4962 = vst.msk [vmem:[%s8202_s27 + $0x80] sm:$0xff] %vm771_vm2, %v4946_v18  ;;  %v4916_v27 = vpop.permute.xlu1 %4915  ;;  %v7753_v18 = vpop.eup %7752 }
 0xb69   : > { %v4949_v14 = vmul.f32 %v4916_v27, %v4853_v47  ;;  %v4911_v20 = vpop.permute.xlu0 %4910  ;;  %v7755_v27 = vpop.eup %7754 }
 0xb6a   : > { %v4948_v9 = vmul.f32 %v4911_v20, %v4852_v5  ;;  %v5287_v5 = vmul.f32 %v7751_v63, %v5255_v25  ;;  %v5328_v25 = vld [vmem:[#allocation4 + $0x128] sm:$0xff] }
 0xb6b   : > { %4965 = vst.msk [vmem:[%s8202_s27 + $0xb0] sm:$0xff] %vm771_vm2, %v4949_v14 }
 0xb6c   : > { %4964 = vst.msk [vmem:[%s8202_s27 + $0xa0] sm:$0xff] %vm771_vm2, %v4948_v9  ;;  %v4926_v13 = vpop.permute.xlu1 %4925 }
 0xb6d   : > { %v4951_v19 = vmul.f32 %v4926_v13, %v4855_v56  ;;  %v4921_v10 = vpop.permute.xlu0 %4920  ;;  %v5065_v56 = vld [vmem:[#allocation4 + $0xf8] sm:$0xff]  ;;  %v5304_v13 = vsub.f32 2.0, %v5288_v16 }
 0xb6e   : > { %v4950_v34 = vmul.f32 %v4921_v10, %v4854_v22  ;;  %v5064_v22 = vld [vmem:[#allocation4 + $0xf0] sm:$0xff] }
 0xb6f   : > { %4967 = vst.msk [vmem:[%s8202_s27 + $0xd0] sm:$0xff] %vm771_vm2, %v4951_v19  ;;  %v5290_v19 = vmul.f32 %v7753_v18, %v5258_v2  ;;  %v5330_v2 = vld [vmem:[#allocation4 + $0x138] sm:$0xff] }
 0xb70   : > { %4966 = vst.msk [vmem:[%s8202_s27 + $0xc0] sm:$0xff] %vm771_vm2, %v4950_v34  ;;  %v4936_v49 = vpop.permute.xlu1 %4935  ;;  %v5303_v34 = vsub.f32 2.0, %v5287_v5  ;;  %v5536_v5 = vld [vmem:[#allocation4 + $0x1a8] sm:$0xff] }
 0xb71   : > { %v4953_v43 = vmul.f32 %v4936_v49, %v4857_v33  ;;  %v4931_v60 = vpop.permute.xlu0 %4930  ;;  %v5289_v33 = vmul.f32 %v7755_v27, %v5257_v0 }
 0xb72   : > { %v4952_v39 = vmul.f32 %v4931_v60, %v4856_v35  ;;  %v5324_v60 = vld [vmem:[#allocation4 + $0x108] sm:$0xff] }
 0xb73   : > { %4969 = vst.msk [vmem:[%s8202_s27 + $0xf0] sm:$0xff] %vm771_vm2, %v4953_v43 }
 0xb74   : > { %4968 = vst.msk [vmem:[%s8202_s27 + $0xe0] sm:$0xff] %vm771_vm2, %v4952_v39  ;;  %v5074_v42 = vpop.permute.xlu1 %5073  ;;  %v5323_v39 = vld [vmem:[#allocation4 + $0x100] sm:$0xff] }
 0xb75   : > { %v5147_v29 = vmul.f32 %v5074_v42, %v5051_v8  ;;  %v5069_v37 = vpop.permute.xlu0 %5068  ;;  %v5320_v8 = vmul.f32 %v7749_v62, %v5304_v13 }
 0xb76   : > { %v5146_v40 = vmul.f32 %v5069_v37, %v5050_v53  ;;  %v5306_v53 = vsub.f32 2.0, %v5290_v19  ;;  %v5305_v37 = vsub.f32 2.0, %v5289_v33  ;;  %v5541_v33 = vld [vmem:[#allocation4 + $0x1d0] sm:$0xff] }
 0xb77   : > { %5180 = vrot.lane.b32.xlu1 %v5147_v29, %s7849_s0  ;;  %v5319_v29 = vmul.f32 %v7751_v63, %v5303_v34 }
 0xb78   : > { %5178 = vrot.lane.b32.xlu0 %v5146_v40, %s7849_s0  ;;  %v5084_v52 = vpop.permute.xlu1 %5083 }
 0xb79   : > { %v5149_v54 = vmul.f32 %v5084_v52, %v5053_v3  ;;  %v5079_v44 = vpop.permute.xlu0 %5078  ;;  %v5326_v52 = vld [vmem:[#allocation4 + $0x118] sm:$0xff] }
 0xb7a   : > { %v5148_v4 = vmul.f32 %v5079_v44, %v5052_v38  ;;  %v5322_v44 = vmul.f32 %v7753_v18, %v5306_v53  ;;  %v5542_v53 = vld [vmem:[#allocation4 + $0x1d8] sm:$0xff] }
 0xb7b   : > { %5184 = vrot.lane.b32.xlu1 %v5149_v54, %s7849_s0  ;;  %v5325_v54 = vld [vmem:[#allocation4 + $0x110] sm:$0xff] }
 0xb7c   : > { %5182 = vrot.lane.b32.xlu0 %v5148_v4, %s7849_s0  ;;  %v5094_v24 = vpop.permute.xlu1 %5093 }
 0xb7d   : > { %v5151_v41 = vmul.f32 %v5094_v24, %v5055_v51  ;;  %v5089_v1 = vpop.permute.xlu0 %5088  ;;  %v5321_v51 = vmul.f32 %v7755_v27, %v5305_v37 }
 0xb7e   : > { %v5150_v15 = vmul.f32 %v5089_v1, %v5054_v6 }
 0xb7f   : > { %5188 = vrot.lane.b32.xlu1 %v5151_v41, %s7849_s0  ;;  %v5327_v41 = vld [vmem:[#allocation4 + $0x120] sm:$0xff] }
 0xb80   : > { %5186 = vrot.lane.b32.xlu0 %v5150_v15, %s7849_s0  ;;  %v5104_v12 = vpop.permute.xlu1 %5103 }
 0xb81   : > { %v5153_v11 = vmul.f32 %v5104_v12, %v5057_v26  ;;  %v5099_v36 = vpop.permute.xlu0 %5098  ;;  %v5329_v12 = vld [vmem:[#allocation4 + $0x130] sm:$0xff] }
 0xb82   : > { %v5152_v21 = vmul.f32 %v5099_v36, %v5056_v55 }
 0xb83   : > { %5192 = vrot.lane.b32.xlu1 %v5153_v11, %s7849_s0 }
 0xb84   : > { %5190 = vrot.lane.b32.xlu0 %v5152_v21, %s7849_s0  ;;  %v5114_v30 = vpop.permute.xlu1 %5113 }
 0xb85   : > { %v5155_v7 = vmul.f32 %v5114_v30, %v5059_v28  ;;  %v5109_v31 = vpop.permute.xlu0 %5108  ;;  %v5531_v28 = vld [vmem:[#allocation4 + $0x180] sm:$0xff] }
 0xb86   : > { %v5154_v32 = vmul.f32 %v5109_v31, %v5058_v59  ;;  %v5331_v59 = vld [vmem:[#allocation4 + $0x140] sm:$0xff] }
 0xb87   : > { %5196 = vrot.lane.b32.xlu1 %v5155_v7, %s7849_s0 }
 0xb88   : > { %5194 = vrot.lane.b32.xlu0 %v5154_v32, %s7849_s0  ;;  %v5124_v48 = vpop.permute.xlu1 %5123 }
 0xb89   : > { %v5157_v46 = vmul.f32 %v5124_v48, %v5061_v61  ;;  %v5119_v17 = vpop.permute.xlu0 %5118  ;;  %v5533_v61 = vld [vmem:[#allocation4 + $0x190] sm:$0xff] }
 0xb8a   : > { %v5156_v57 = vmul.f32 %v5119_v17, %v5060_v50  ;;  %v5532_v50 = vld [vmem:[#allocation4 + $0x188] sm:$0xff]  ;;  %v5535_v17 = vld [vmem:[#allocation4 + $0x1a0] sm:$0xff] }
 0xb8b   : > { %5200 = vrot.lane.b32.xlu1 %v5157_v46, %s7849_s0 }
 0xb8c   : > { %5198 = vrot.lane.b32.xlu0 %v5156_v57, %s7849_s0  ;;  %v5134_v47 = vpop.permute.xlu1 %5133  ;;  %v5534_v57 = vld [vmem:[#allocation4 + $0x198] sm:$0xff] }
 0xb8d   : > { %v5159_v14 = vmul.f32 %v5134_v47, %v5063_v45  ;;  %v5129_v20 = vpop.permute.xlu0 %5128  ;;  %v5537_v47 = vld [vmem:[#allocation4 + $0x1b0] sm:$0xff] }
 0xb8e   : > { %v5158_v9 = vmul.f32 %v5129_v20, %v5062_v58 }
 0xb8f   : > { %5204 = vrot.lane.b32.xlu1 %v5159_v14, %s7849_s0 }
 0xb90   : > { %5202 = vrot.lane.b32.xlu0 %v5158_v9, %s7849_s0  ;;  %v5144_v10 = vpop.permute.xlu1 %5143 }
 0xb91   : > { %v5161_v35 = vmul.f32 %v5144_v10, %v5065_v56  ;;  %v5139_v49 = vpop.permute.xlu0 %5138  ;;  %v5539_v56 = vld [vmem:[#allocation4 + $0x1c0] sm:$0xff] }
 0xb92   : > { %v5160_v43 = vmul.f32 %v5139_v49, %v5064_v22  ;;  %v5538_v22 = vld [vmem:[#allocation4 + $0x1b8] sm:$0xff] }
 0xb93   : > { %5208 = vrot.lane.b32.xlu1 %v5161_v35, %s7849_s0  ;;  %v5540_v35 = vld [vmem:[#allocation4 + $0x1c8] sm:$0xff] }
 0xb94   : > { %5206 = vrot.lane.b32.xlu0 %v5160_v43, %s7849_s0  ;;  %v5347_v42 = vpop.permute.xlu1 %5346 }
 0xb95   : > { %v5420_v40 = vmul.f32 %v5347_v42, %v5324_v60  ;;  %v5342_v3 = vpop.permute.xlu0 %5341 }
 0xb96   : > { %v5419_v38 = vmul.f32 %v5342_v3, %v5323_v39  ;;  %v5545_v3 = vld [vmem:[#allocation4 + $0x1f0] sm:$0xff] }
 0xb97   : > { %5436 = vst.msk [vmem:[%s8202_s27 + $0x18] sm:$0xff] %vm771_vm2, %v5420_v40  ;;  %5406 = vperm.xlu1 %7627, %v5320_v8   ;;  %v5543_v8 = vld [vmem:[#allocation4 + $0x1e0] sm:$0xff] }
 0xb98   : > { %5435 = vst.msk [vmem:[%s8202_s27 + $0x8] sm:$0xff] %vm771_vm2, %v5419_v38  ;;  %5401 = vperm.xlu0 %7626, %v5319_v29   ;;  %v5357_v4 = vpop.permute.xlu1 %5356  ;;  %v5544_v38 = vld [vmem:[#allocation4 + $0x1e8] sm:$0xff] }
 0xb99   : > { %v5422_v6 = vmul.f32 %v5357_v4, %v5326_v52  ;;  %v5352_v23 = vpop.permute.xlu0 %5351 }
 0xb9a   : > { %v5421_v24 = vmul.f32 %v5352_v23, %v5325_v54 }
 0xb9b   : > { %5438 = vst.msk [vmem:[%s8202_s27 + $0x38] sm:$0xff] %vm771_vm2, %v5422_v6  ;;  %5416 = vperm.xlu1 %7627, %v5322_v44   ;;  %v5546_v6 = vld [vmem:[#allocation4 + $0x1f8] sm:$0xff] }
 0xb9c   : > { %5437 = vst.msk [vmem:[%s8202_s27 + $0x28] sm:$0xff] %vm771_vm2, %v5421_v24  ;;  %5411 = vperm.xlu0 %7626, %v5321_v51   ;;  %v5367_v1 = vpop.permute.xlu1 %5366  ;;  %v5332_v51 = vld [vmem:[#allocation4 + $0x148] sm:$0xff] }
 0xb9d   : > { %v5424_v15 = vmul.f32 %v5367_v1, %v5328_v25  ;;  %v5362_v26 = vpop.permute.xlu0 %5361  ;;  %v5334_v1 = vld [vmem:[#allocation4 + $0x158] sm:$0xff] }
 0xb9e   : > { %v5423_v55 = vmul.f32 %v5362_v26, %v5327_v41 }
 0xb9f   : > { %5440 = vst.msk [vmem:[%s8202_s27 + $0x58] sm:$0xff] %vm771_vm2, %v5424_v15  ;;  %v5333_v15 = vld [vmem:[#allocation4 + $0x150] sm:$0xff] }
 0xba0   : > { %5439 = vst.msk [vmem:[%s8202_s27 + $0x48] sm:$0xff] %vm771_vm2, %v5423_v55  ;;  %v5377_v0 = vpop.permute.xlu1 %5376 }
 0xba1   : > { %v5426_v11 = vmul.f32 %v5377_v0, %v5330_v2  ;;  %v5372_v36 = vpop.permute.xlu0 %5371 }
 0xba2   : > { %v5425_v21 = vmul.f32 %v5372_v36, %v5329_v12 }
 0xba3   : > { %5442 = vst.msk [vmem:[%s8202_s27 + $0x78] sm:$0xff] %vm771_vm2, %v5426_v11 }
 0xba4   : > { %5441 = vst.msk [vmem:[%s8202_s27 + $0x68] sm:$0xff] %vm771_vm2, %v5425_v21  ;;  %v5550_v30 = vpop.permute.xlu1 %5549 }
 0xba5   : > { %v5627_v7 = vmul.f32 %v5550_v30, %v5531_v28  ;;  %v5382_v31 = vpop.permute.xlu0 %5381 }
 0xba6   : > { %v5427_v32 = vmul.f32 %v5382_v31, %v5331_v59 }
 0xba7   : > { %5659 = vrot.lane.b32.xlu0 %v5627_v7, %s7849_s0 }
 0xba8   : > { %5443 = vst.msk [vmem:[%s8202_s27 + $0x88] sm:$0xff] %vm771_vm2, %v5427_v32  ;;  %v5560_v62 = vpop.permute.xlu1 %5559 }
 0xba9   : > { %v5629_v48 = vmul.f32 %v5560_v62, %v5533_v61  ;;  %v5555_v63 = vpop.permute.xlu0 %5554 }
 0xbaa   : > { %v5628_v46 = vmul.f32 %v5555_v63, %v5532_v50 }
 0xbab   : > { %5663 = vrot.lane.b32.xlu0 %v5629_v48, %s7849_s0 }
 0xbac   : > { %5661 = vrot.lane.b32.xlu1 %v5628_v46, %s7849_s0  ;;  %v5570_v45 = vpop.permute.xlu1 %5569 }
 0xbad   : > { %v5631_v58 = vmul.f32 %v5570_v45, %v5535_v17  ;;  %v5565_v16 = vpop.permute.xlu0 %5564  ;;  %v5336_v17 = vld [vmem:[#allocation4 + $0x168] sm:$0xff] }
 0xbae   : > { %v5630_v18 = vmul.f32 %v5565_v16, %v5534_v57  ;;  %v5335_v57 = vld [vmem:[#allocation4 + $0x160] sm:$0xff] }
 0xbaf   : > { %5667 = vrot.lane.b32.xlu0 %v5631_v58, %s7849_s0 }
 0xbb0   : > { %5665 = vrot.lane.b32.xlu1 %v5630_v18, %s7849_s0  ;;  %v5580_v27 = vpop.permute.xlu1 %5579 }
 0xbb1   : > { %v5633_v14 = vmul.f32 %v5580_v27, %v5537_v47  ;;  %v5575_v20 = vpop.permute.xlu0 %5574  ;;  %v5338_v47 = vld [vmem:[#allocation4 + $0x178] sm:$0xff] }
 0xbb2   : > { %v5632_v9 = vmul.f32 %v5575_v20, %v5536_v5  ;;  %v5337_v5 = vld [vmem:[#allocation4 + $0x170] sm:$0xff] }
 0xbb3   : > { %5671 = vrot.lane.b32.xlu0 %v5633_v14, %s7849_s0 }
 0xbb4   : > { %5669 = vrot.lane.b32.xlu1 %v5632_v9, %s7849_s0  ;;  %v5590_v13 = vpop.permute.xlu1 %5589 }
 0xbb5   : > { %v5635_v19 = vmul.f32 %v5590_v13, %v5539_v56  ;;  %v5585_v10 = vpop.permute.xlu0 %5584 }
 0xbb6   : > { %v5634_v34 = vmul.f32 %v5585_v10, %v5538_v22 }
 0xbb7   : > { %5675 = vrot.lane.b32.xlu0 %v5635_v19, %s7849_s0 }
 0xbb8   : > { %5673 = vrot.lane.b32.xlu1 %v5634_v34, %s7849_s0  ;;  %v5600_v49 = vpop.permute.xlu1 %5599 }
 0xbb9   : > { %v5637_v43 = vmul.f32 %v5600_v49, %v5541_v33  ;;  %v5595_v60 = vpop.permute.xlu0 %5594 }
 0xbba   : > { %v5636_v39 = vmul.f32 %v5595_v60, %v5540_v35 }
 0xbbb   : > { %5679 = vrot.lane.b32.xlu0 %v5637_v43, %s7849_s0 }
 0xbbc   : > { %5677 = vrot.lane.b32.xlu1 %v5636_v39, %s7849_s0  ;;  %v5610_v42 = vpop.permute.xlu1 %5609 }
 0xbbd   : > { %v5639_v29 = vmul.f32 %v5610_v42, %v5543_v8  ;;  %v5605_v37 = vpop.permute.xlu0 %5604 }
 0xbbe   : > { %v5638_v40 = vmul.f32 %v5605_v37, %v5542_v53 }
 0xbbf   : > { %5683 = vrot.lane.b32.xlu0 %v5639_v29, %s7849_s0 }
 0xbc0   : > { %5681 = vrot.lane.b32.xlu1 %v5638_v40, %s7849_s0  ;;  %v5620_v52 = vpop.permute.xlu1 %5619 }
 0xbc1   : > { %v5641_v54 = vmul.f32 %v5620_v52, %v5545_v3  ;;  %v5615_v44 = vpop.permute.xlu0 %5614 }
 0xbc2   : > { %v5640_v4 = vmul.f32 %v5615_v44, %v5544_v38 }
 0xbc3   : > { %5687 = vrot.lane.b32.xlu0 %v5641_v54, %s7849_s0 }
 0xbc4   : > { %5685 = vrot.lane.b32.xlu1 %v5640_v4, %s7849_s0  ;;  %v5387_v23 = vpop.permute.xlu1 %5386 }
 0xbc5   : > { %v5428_v24 = vmul.f32 %v5387_v23, %v5332_v51  ;;  %v5625_v25 = vpop.permute.xlu0 %5624 }
 0xbc6   : > { %v5642_v41 = vmul.f32 %v5625_v25, %v5546_v6 }
 0xbc7   : > { %5444 = vst.msk [vmem:[%s8202_s27 + $0x98] sm:$0xff] %vm771_vm2, %v5428_v24 }
 0xbc8   : > { %5689 = vrot.lane.b32.xlu1 %v5642_v41, %s7849_s0  ;;  %v5397_v26 = vpop.permute.xlu1 %5396 }
 0xbc9   : > { %v5430_v55 = vmul.f32 %v5397_v26, %v5334_v1  ;;  %v5392_v2 = vpop.permute.xlu0 %5391 }
 0xbca   : > { %v5429_v12 = vmul.f32 %v5392_v2, %v5333_v15 }
 0xbcb   : > { %5446 = vst.msk [vmem:[%s8202_s27 + $0xb8] sm:$0xff] %vm771_vm2, %v5430_v55 }
 0xbcc   : > { %5445 = vst.msk [vmem:[%s8202_s27 + $0xa8] sm:$0xff] %vm771_vm2, %v5429_v12 }
 0xbe9   : > { %v5181_v0 = vpop.permute.xlu1 %5180 }
 0xbea   : > { %5228 = vst.msk [vmem:[%s8202_s27 + $0x10] sm:$0xff] %vm5226_vm5, %v5181_v0  ;;  %v5179_v11 = vpop.permute.xlu0 %5178 }
 0xbeb   : > { %5227 = vst.msk [vmem:[%s8202_s27] sm:$0xff] %vm5226_vm5, %v5179_v11 }
 0xbed   : > { %v5185_v36 = vpop.permute.xlu1 %5184 }
 0xbee   : > { %5230 = vst.msk [vmem:[%s8202_s27 + $0x30] sm:$0xff] %vm5226_vm5, %v5185_v36  ;;  %v5183_v21 = vpop.permute.xlu0 %5182 }
 0xbef   : > { %5229 = vst.msk [vmem:[%s8202_s27 + $0x20] sm:$0xff] %vm5226_vm5, %v5183_v21 }
 0xbf1   : > { %v5189_v28 = vpop.permute.xlu1 %5188 }
 0xbf2   : > { %5232 = vst.msk [vmem:[%s8202_s27 + $0x50] sm:$0xff] %vm5226_vm5, %v5189_v28  ;;  %v5187_v59 = vpop.permute.xlu0 %5186 }
 0xbf3   : > { %5231 = vst.msk [vmem:[%s8202_s27 + $0x40] sm:$0xff] %vm5226_vm5, %v5187_v59 }
 0xbf5   : > { %v5193_v30 = vpop.permute.xlu1 %5192 }
 0xbf6   : > { %5234 = vst.msk [vmem:[%s8202_s27 + $0x70] sm:$0xff] %vm5226_vm5, %v5193_v30  ;;  %v5191_v7 = vpop.permute.xlu0 %5190 }
 0xbf7   : > { %5233 = vst.msk [vmem:[%s8202_s27 + $0x60] sm:$0xff] %vm5226_vm5, %v5191_v7 }
 0xbf9   : > { %v5197_v31 = vpop.permute.xlu1 %5196 }
 0xbfa   : > { %5236 = vst.msk [vmem:[%s8202_s27 + $0x90] sm:$0xff] %vm5226_vm5, %v5197_v31  ;;  %v5195_v32 = vpop.permute.xlu0 %5194 }
 0xbfb   : > { %5235 = vst.msk [vmem:[%s8202_s27 + $0x80] sm:$0xff] %vm5226_vm5, %v5195_v32 }
 0xbfd   : > { %v5201_v61 = vpop.permute.xlu1 %5200 }
 0xbfe   : > { %5238 = vst.msk [vmem:[%s8202_s27 + $0xb0] sm:$0xff] %vm5226_vm5, %v5201_v61  ;;  %v5199_v50 = vpop.permute.xlu0 %5198 }
 0xbff   : > { %5237 = vst.msk [vmem:[%s8202_s27 + $0xa0] sm:$0xff] %vm5226_vm5, %v5199_v50 }
 0xc01   : > { %v5205_v62 = vpop.permute.xlu1 %5204 }
 0xc02   : > { %5240 = vst.msk [vmem:[%s8202_s27 + $0xd0] sm:$0xff] %vm5226_vm5, %v5205_v62  ;;  %v5203_v48 = vpop.permute.xlu0 %5202 }
 0xc03   : > { %5239 = vst.msk [vmem:[%s8202_s27 + $0xc0] sm:$0xff] %vm5226_vm5, %v5203_v48 }
 0xc05   : > { %v5209_v63 = vpop.permute.xlu1 %5208 }
 0xc06   : > { %5242 = vst.msk [vmem:[%s8202_s27 + $0xf0] sm:$0xff] %vm5226_vm5, %v5209_v63  ;;  %v5207_v46 = vpop.permute.xlu0 %5206 }
 0xc07   : > { %5241 = vst.msk [vmem:[%s8202_s27 + $0xe0] sm:$0xff] %vm5226_vm5, %v5207_v46 }
 0xc16   : > { %v5407_v45 = vpop.permute.xlu1 %5406 }
 0xc17   : > { %v5432_v58 = vmul.f32 %v5407_v45, %v5336_v17  ;;  %v5402_v16 = vpop.permute.xlu0 %5401 }
 0xc18   : > { %v5431_v18 = vmul.f32 %v5402_v16, %v5335_v57 }
 0xc19   : > { %5448 = vst.msk [vmem:[%s8202_s27 + $0xd8] sm:$0xff] %vm771_vm2, %v5432_v58 }
 0xc1a   : > { %5447 = vst.msk [vmem:[%s8202_s27 + $0xc8] sm:$0xff] %vm771_vm2, %v5431_v18  ;;  %v5417_v27 = vpop.permute.xlu1 %5416 }
 0xc1b   : > { %v5434_v14 = vmul.f32 %v5417_v27, %v5338_v47  ;;  %v5412_v20 = vpop.permute.xlu0 %5411 }
 0xc1c   : > { %v5433_v9 = vmul.f32 %v5412_v20, %v5337_v5 }
 0xc1d   : > { %5450 = vst.msk [vmem:[%s8202_s27 + $0xf8] sm:$0xff] %vm771_vm2, %v5434_v14 }
 0xc1e   : > { %5449 = vst.msk [vmem:[%s8202_s27 + $0xe8] sm:$0xff] %vm771_vm2, %v5433_v9  ;;  %v5662_v56 = vpop.permute.xlu1 %5661 }
 0xc1f   : > { %5708 = vst.msk [vmem:[%s8202_s27 + $0x18] sm:$0xff] %vm5226_vm5, %v5662_v56  ;;  %v5660_v22 = vpop.permute.xlu0 %5659 }
 0xc20   : > { %5707 = vst.msk [vmem:[%s8202_s27 + $0x8] sm:$0xff] %vm5226_vm5, %v5660_v22 }
 0xc22   : > { %v5666_v13 = vpop.permute.xlu1 %5665 }
 0xc23   : > { %5710 = vst.msk [vmem:[%s8202_s27 + $0x38] sm:$0xff] %vm5226_vm5, %v5666_v13  ;;  %v5664_v19 = vpop.permute.xlu0 %5663 }
 0xc24   : > { %5709 = vst.msk [vmem:[%s8202_s27 + $0x28] sm:$0xff] %vm5226_vm5, %v5664_v19 }
 0xc26   : > { %v5670_v10 = vpop.permute.xlu1 %5669 }
 0xc27   : > { %5712 = vst.msk [vmem:[%s8202_s27 + $0x58] sm:$0xff] %vm5226_vm5, %v5670_v10  ;;  %v5668_v34 = vpop.permute.xlu0 %5667 }
 0xc28   : > { %5711 = vst.msk [vmem:[%s8202_s27 + $0x48] sm:$0xff] %vm5226_vm5, %v5668_v34 }
 0xc2a   : > { %v5674_v33 = vpop.permute.xlu1 %5673 }
 0xc2b   : > { %5714 = vst.msk [vmem:[%s8202_s27 + $0x78] sm:$0xff] %vm5226_vm5, %v5674_v33  ;;  %v5672_v35 = vpop.permute.xlu0 %5671 }
 0xc2c   : > { %5713 = vst.msk [vmem:[%s8202_s27 + $0x68] sm:$0xff] %vm5226_vm5, %v5672_v35 }
 0xc2e   : > { %v5678_v49 = vpop.permute.xlu1 %5677 }
 0xc2f   : > { %5716 = vst.msk [vmem:[%s8202_s27 + $0x98] sm:$0xff] %vm5226_vm5, %v5678_v49  ;;  %v5676_v43 = vpop.permute.xlu0 %5675 }
 0xc30   : > { %5715 = vst.msk [vmem:[%s8202_s27 + $0x88] sm:$0xff] %vm5226_vm5, %v5676_v43 }
 0xc32   : > { %v5682_v60 = vpop.permute.xlu1 %5681 }
 0xc33   : > { %5718 = vst.msk [vmem:[%s8202_s27 + $0xb8] sm:$0xff] %vm5226_vm5, %v5682_v60  ;;  %v5680_v39 = vpop.permute.xlu0 %5679 }
 0xc34   : > { %5717 = vst.msk [vmem:[%s8202_s27 + $0xa8] sm:$0xff] %vm5226_vm5, %v5680_v39 }
 0xc36   : > { %v5686_v8 = vpop.permute.xlu1 %5685 }
 0xc37   : > { %5720 = vst.msk [vmem:[%s8202_s27 + $0xd8] sm:$0xff] %vm5226_vm5, %v5686_v8  ;;  %v5684_v53 = vpop.permute.xlu0 %5683 }
 0xc38   : > { %5719 = vst.msk [vmem:[%s8202_s27 + $0xc8] sm:$0xff] %vm5226_vm5, %v5684_v53 }
 0xc3a   : > { %v5690_v42 = vpop.permute.xlu1 %5689 }
 0xc3b   : > { %5722 = vst.msk [vmem:[%s8202_s27 + $0xf8] sm:$0xff] %vm5226_vm5, %v5690_v42  ;;  %v5688_v29 = vpop.permute.xlu0 %5687 }
 0xc3c   : > { %5721 = vst.msk [vmem:[%s8202_s27 + $0xe8] sm:$0xff] %vm5226_vm5, %v5688_v29 }
 0xc3d PF: > { %s13_s22 = sadd.s32 1, %s7842_s22   ;;  %s11887_s30 = sld [smem:[#allocation8_spill]] }
 0xc3e   : > { %p10_p4 = scmp.ge.s32.totalorder %s13_s22, 10   ;;  %s11888_s12 = smov %s7806_s13 }
 0xc3f   : > { %s11889_s13 = smov %s7961_s9  ;;  %s11890_s14 = smov %s7814_s15 }
 0xc40   : > { %s11891_s15 = smov %s7958_s8  ;;  %s11892_s16 = smov %s7830_s19 }
 0xc41   : > { %s11893_s17 = smov %s7834_s20  ;;  %s11894_s18 = smov %s7838_s21 }
 0xc42   : > { %s11895_s19 = smov %s11899_s23  ;;  %s11896_s20 = smov %s11903_s24 }
 0xc43   : > { %s11897_s21 = smov %s11887_s30  ;;  %12 = sbr.rel (!%p10_p4) target bundleno = 8 (0x8), region = 169 }

</bundles_post_ra>
